<compile_context>
chip_gen: v7x
topology: tpu7x:2x2x1
jax: 0.10.0
libtpu: 0.0.40
codegen_flags: <defaults>
</compile_context>

<pallas_src>
import functools

import jax
import jax.numpy as jnp
from jax.experimental import pallas as pl
from jax.experimental.pallas import tpu as pltpu


def _round_up(x: int, m: int) -> int:
    return ((x + m - 1) // m) * m


def fasttext_kernel(ids_ref, emb_ref, w_ref, b_ref, out_ref, acc_ref, *,
                    inv_len: float, block_v: int, compute_dtype):
    """One (batch-tile, vocab-tile) grid step.

    ids_ref : [Bt, L]   int32  token ids for this batch tile
    emb_ref : [Vt, Ep]  f32    current vocab tile of the (zero-padded) embedding table
    w_ref   : [Ep, Cp]  f32    fc weight, pre-transposed + zero-padded
    b_ref   : [1,  Cp]  f32    fc bias, zero-padded
    out_ref : [Bt, Cp]  f32    logits tile (written only on the last vocab step)
    acc_ref : [Bt, Ep]  f32    scratch: running sum_l emb[ids[b, l]] across vocab tiles
    """
    v = pl.program_id(1)

    @pl.when(v == 0)
    def _init():
        acc_ref[...] = jnp.zeros_like(acc_ref)

    ids = ids_ref[...]                                   # [Bt, L] int32
    vt = emb_ref.shape[0]

    # Lane-dense one-hot: this vocab tile lives on the lane axis; the iota is a cheap
    # [1, 1, Vt] lane iota broadcast over (Bt, L) (no materialized [Bt, L, Vt] iota).
    lane_ids = v * block_v + jax.lax.broadcasted_iota(jnp.int32, (1, 1, vt), 2)
    hits = ids[:, :, None] == lane_ids                   # [Bt, L, Vt] bool
    counts = jnp.sum(hits.astype(jnp.float32), axis=1)   # [Bt, Vt] exact integers <= L

    # Accumulate sum_l emb[ids[b, l], :] for this vocab tile on the MXU.
    # counts are exact small integers, so the bf16 cast (compute_dtype=bfloat16) is lossless
    # on that operand; accumulation is always f32.
    acc_ref[...] += jnp.dot(counts.astype(compute_dtype),
                            emb_ref[...].astype(compute_dtype),
                            preferred_element_type=jnp.float32)

    @pl.when(v == pl.num_programs(1) - 1)
    def _finalize():
        # mean over L == AvgPool1d(kernel_size=L); f32 scale on the tiny [Bt, Ep] accumulator.
        pooled = acc_ref[...] * inv_len
        out_ref[...] = (jnp.dot(pooled, w_ref[...], preferred_element_type=jnp.float32)
                        + b_ref[...])


@functools.partial(jax.jit, static_argnames=("block_b", "block_v", "compute_dtype"))
def fasttext_forward(ids, emb_table, fc_weight, fc_bias, *,
                     block_b: int = 32, block_v: int = 256,
                     compute_dtype=jnp.float32):
    """ids: [B, L] int; emb_table: [V, E]; fc_weight: [C, E]; fc_bias: [C]  ->  [B, C] f32."""
    B, L = ids.shape
    V, E = emb_table.shape
    C = fc_weight.shape[0]

    # ---- wrapper-side layout plumbing (zero padding only; does not change the math) ----
    ep = _round_up(E, 128)                                 # lane-dense embedding / fc K dim
    cp = _round_up(C, 128)                                 # lane-dense logits dim (unmasked vst)
    bv = min(block_v, _round_up(V, 128))                   # vocab (MXU contraction) tile, /128
    vp = _round_up(V, bv)
    bb = _round_up(min(block_b, _round_up(B, 8)), 8)       # batch tile, multiple of 8 sublanes
    bp = _round_up(B, bb)

    emb_p = jnp.zeros((vp, ep), jnp.float32).at[:V, :E].set(emb_table.astype(jnp.float32))
    w_p = jnp.zeros((ep, cp), jnp.float32).at[:E, :C].set(fc_weight.astype(jnp.float32).T)
    b_p = jnp.zeros((1, cp), jnp.float32).at[0, :C].set(fc_bias.astype(jnp.float32))
    ids_p = jnp.zeros((bp, L), jnp.int32).at[:B, :].set(ids.astype(jnp.int32))

    grid = (bp // bb, vp // bv)   # (batch tiles, vocab tiles); vocab = reduction axis, last

    kernel = functools.partial(fasttext_kernel, inv_len=1.0 / L, block_v=bv,
                               compute_dtype=compute_dtype)

    out_p = pl.pallas_call(
        kernel,
        out_shape=jax.ShapeDtypeStruct((bp, cp), jnp.float32),
        grid_spec=pltpu.PrefetchScalarGridSpec(
            num_scalar_prefetch=0,
            grid=grid,
            in_specs=[
                pl.BlockSpec((bb, L), lambda b, v: (b, 0)),    # ids tile (per batch tile)
                pl.BlockSpec((bv, ep), lambda b, v: (v, 0)),   # emb vocab tile (double-buffered)
                pl.BlockSpec((ep, cp), lambda b, v: (0, 0)),   # fc weight (resident)
                pl.BlockSpec((1, cp), lambda b, v: (0, 0)),    # fc bias (resident)
            ],
            out_specs=pl.BlockSpec((bb, cp), lambda b, v: (b, 0)),
            scratch_shapes=[pltpu.VMEM((bb, ep), jnp.float32)],
        ),
        compiler_params=pltpu.CompilerParams(
            # batch tiles are independent -> "parallel" (feeds both TCs on v7x);
            # vocab is the reduction axis -> "arbitrary", innermost.
            dimension_semantics=("parallel", "arbitrary"),
        ),
    )(ids_p, emb_p, w_p, b_p)

    return out_p[:B, :C]


if __name__ == "__main__":
    # Shapes from the original module: Fasttext(vocab_size=1000, embedding_size=10,
    # max_length=100, label_num=4) applied to a [64, 100] id tensor.
    vocab_size, embedding_size, max_length, label_num = 1000, 10, 100, 4
    batch = 64

    key = jax.random.PRNGKey(0)
    k_ids, k_emb, k_w, k_b = jax.random.split(key, 4)

    ids = jax.random.randint(k_ids, (batch, max_length), 0, vocab_size, dtype=jnp.int32)
    emb_table = jax.random.normal(k_emb, (vocab_size, embedding_size), dtype=jnp.float32)
    fc_weight = jax.random.normal(k_w, (label_num, embedding_size), dtype=jnp.float32) * 0.1
    fc_bias = jax.random.normal(k_b, (label_num,), dtype=jnp.float32) * 0.1

    # Pure-JAX reference (embedding gather -> mean over seq -> linear).
    ref = jnp.take(emb_table, ids, axis=0).mean(axis=1) @ fc_weight.T + fc_bias

    # Exact (f32) path.
    out = jax.block_until_ready(fasttext_forward(ids, emb_table, fc_weight, fc_bias))
    assert out.shape == (batch, label_num)
    assert jnp.allclose(out, ref, atol=1e-5, rtol=1e-5), "f32 kernel mismatch vs JAX reference"

    # Fast bf16-MXU path (counts operand is exact in bf16; embedding values ~1e-3 rel error).
    out_bf16 = jax.block_until_ready(
        fasttext_forward(ids, emb_table, fc_weight, fc_bias, compute_dtype=jnp.bfloat16))
    assert jnp.allclose(out_bf16, ref, atol=5e-2, rtol=5e-2), "bf16 kernel outside tolerance"

    print("KERNEL_OK")
</pallas_src>

<mosaic_0001>
module attributes {stable_mosaic.version = 11 : i64} {
  func.func @fasttext_kernel(%arg0: i32, %arg1: i32, %arg2: memref<32x100xi32, #tpu.memory_space<vmem>>, %arg3: memref<256x128xf32, #tpu.memory_space<vmem>>, %arg4: memref<128x128xf32, #tpu.memory_space<vmem>>, %arg5: memref<1x128xf32, #tpu.memory_space<vmem>>, %arg6: memref<32x128xf32, #tpu.memory_space<vmem>>, %arg7: memref<32x128xf32, #tpu.memory_space<vmem>>) attributes {dimension_semantics = [#tpu.dimension_semantics<parallel>, #tpu.dimension_semantics<arbitrary>], iteration_bounds = array<i64: 2, 4>, scalar_prefetch = 0 : i64, scratch_operands = 1 : i64, tpu.core_type = #tpu.core_type<tc>, window_params = [{transform_indices = @transform_0, window_bounds = array<i64: 32, 100>}, {transform_indices = @transform_1, window_bounds = array<i64: 256, 128>}, {pipeline_mode = #tpu.pipeline_mode<synchronous>, transform_indices = @transform_2, window_bounds = array<i64: 128, 128>}, {pipeline_mode = #tpu.pipeline_mode<synchronous>, transform_indices = @transform_3, window_bounds = array<i64: 1, 128>}, {transform_indices = @transform_4, window_bounds = array<i64: 32, 128>}]} {
    %c0_i32 = arith.constant 0 : i32
    %0 = arith.cmpi eq, %arg1, %c0_i32 : i32
    %1 = arith.extui %0 : i1 to i32
    %c0_i32_0 = arith.constant 0 : i32
    %2 = arith.cmpi ne, %1, %c0_i32_0 : i32
    scf.if %2 {
      %cst_10 = arith.constant 0.000000e+00 : f32
      %23 = vector.broadcast %cst_10 : f32 to vector<32x128xf32>
      %c0_11 = arith.constant 0 : index
      %c0_12 = arith.constant 0 : index
      %24 = vector.load %arg7[%c0_11, %c0_12] : memref<32x128xf32, #tpu.memory_space<vmem>>, vector<32x128xf32>
      tpu.vector_store %arg7[%c0_11, %c0_12], %23 {strides = array<i32>} : memref<32x128xf32, #tpu.memory_space<vmem>>, vector<32x128xf32>,
    } else {
    }
    %c0 = arith.constant 0 : index
    %c0_1 = arith.constant 0 : index
    %3 = vector.load %arg2[%c0, %c0_1] : memref<32x100xi32, #tpu.memory_space<vmem>>, vector<32x100xi32>
    %c256_i32 = arith.constant 256 : i32
    %4 = arith.muli %arg1, %c256_i32 : i32
    %5 = tpu.iota {dimensions = array<i32: 2>} : vector<1x1x256xi32>
    %6 = vector.broadcast %4 : i32 to vector<1x1x256xi32>
    %7 = arith.addi %6, %5 : vector<1x1x256xi32>
    %8 = vector.shape_cast %3 : vector<32x100xi32> to vector<32x100x1xi32>
    %9 = vector.broadcast %8 : vector<32x100x1xi32> to vector<32x100x256xi32>
    %10 = vector.broadcast %7 : vector<1x1x256xi32> to vector<32x100x256xi32>
    %11 = arith.cmpi eq, %9, %10 : vector<32x100x256xi32>
    %12 = arith.extui %11 : vector<32x100x256xi1> to vector<32x100x256xi32>
    %13 = arith.sitofp %12 : vector<32x100x256xi32> to vector<32x100x256xf32>
    %cst = arith.constant dense<0.000000e+00> : vector<32x256xf32>
    %14 = vector.multi_reduction <add>, %13, %cst [1] : vector<32x100x256xf32> to vector<32x256xf32>
    %c0_2 = arith.constant 0 : index
    %c0_3 = arith.constant 0 : index
    %15 = vector.load %arg7[%c0_2, %c0_3] : memref<32x128xf32, #tpu.memory_space<vmem>>, vector<32x128xf32>
    %c0_4 = arith.constant 0 : index
    %c0_5 = arith.constant 0 : index
    %16 = vector.load %arg3[%c0_4, %c0_5] : memref<256x128xf32, #tpu.memory_space<vmem>>, vector<256x128xf32>
    %cst_6 = arith.constant dense<0.000000e+00> : vector<32x128xf32>
    %17 = tpu.matmul %14, %16, %cst_6 {dimension_numbers = #tpu.dot_dimension_numbers<[1], [0], [0], [1], [0, 0, 1, 1], [], []>} : vector<32x256xf32>, vector<256x128xf32>, vector<32x128xf32> -> vector<32x128xf32>
    %18 = arith.addf %15, %17 : vector<32x128xf32>
    %c0_7 = arith.constant 0 : index
    %c0_8 = arith.constant 0 : index
    %19 = vector.load %arg7[%c0_7, %c0_8] : memref<32x128xf32, #tpu.memory_space<vmem>>, vector<32x128xf32>
    tpu.vector_store %arg7[%c0_7, %c0_8], %18 {strides = array<i32>} : memref<32x128xf32, #tpu.memory_space<vmem>>, vector<32x128xf32>,
    %c3_i32 = arith.constant 3 : i32
    %20 = arith.cmpi eq, %arg1, %c3_i32 : i32
    %21 = arith.extui %20 : i1 to i32
    %c0_i32_9 = arith.constant 0 : i32
    %22 = arith.cmpi ne, %21, %c0_i32_9 : i32
    scf.if %22 {
      %c0_10 = arith.constant 0 : index
      %c0_11 = arith.constant 0 : index
      %23 = vector.load %arg7[%c0_10, %c0_11] : memref<32x128xf32, #tpu.memory_space<vmem>>, vector<32x128xf32>
      %cst_12 = arith.constant 0.00999999977 : f32
      %24 = vector.broadcast %cst_12 : f32 to vector<32x128xf32>
      %25 = arith.mulf %23, %24 : vector<32x128xf32>
      %c0_13 = arith.constant 0 : index
      %c0_14 = arith.constant 0 : index
      %26 = vector.load %arg4[%c0_13, %c0_14] : memref<128x128xf32, #tpu.memory_space<vmem>>, vector<128x128xf32>
      %cst_15 = arith.constant dense<0.000000e+00> : vector<32x128xf32>
      %27 = tpu.matmul %25, %26, %cst_15 {dimension_numbers = #tpu.dot_dimension_numbers<[1], [0], [0], [1], [0, 0, 1, 1], [], []>} : vector<32x128xf32>, vector<128x128xf32>, vector<32x128xf32> -> vector<32x128xf32>
      %c0_16 = arith.constant 0 : index
      %c0_17 = arith.constant 0 : index
      %28 = vector.load %arg5[%c0_16, %c0_17] : memref<1x128xf32, #tpu.memory_space<vmem>>, vector<1x128xf32>
      %29 = vector.broadcast %28 : vector<1x128xf32> to vector<32x128xf32>
      %30 = arith.addf %27, %29 : vector<32x128xf32>
      %c0_18 = arith.constant 0 : index
      %c0_19 = arith.constant 0 : index
      %31 = vector.load %arg6[%c0_18, %c0_19] : memref<32x128xf32, #tpu.memory_space<vmem>>, vector<32x128xf32>
      tpu.vector_store %arg6[%c0_18, %c0_19], %30 {strides = array<i32>} : memref<32x128xf32, #tpu.memory_space<vmem>>, vector<32x128xf32>,
    } else {
    }
    return
  }
  func.func @transform_0(%arg0: i32, %arg1: i32) -> (i32, i32) {
    %c0_i32 = arith.constant 0 : i32
    %c0_i32_0 = arith.constant 0 : i32
    return %arg0, %c0_i32 : i32, i32
  }
  func.func @transform_1(%arg0: i32, %arg1: i32) -> (i32, i32) {
    %c0_i32 = arith.constant 0 : i32
    %c0_i32_0 = arith.constant 0 : i32
    return %arg1, %c0_i32 : i32, i32
  }
  func.func @transform_2(%arg0: i32, %arg1: i32) -> (i32, i32) {
    %c0_i32 = arith.constant 0 : i32
    %c0_i32_0 = arith.constant 0 : i32
    %c0_i32_1 = arith.constant 0 : i32
    return %c0_i32, %c0_i32_0 : i32, i32
  }
  func.func @transform_3(%arg0: i32, %arg1: i32) -> (i32, i32) {
    %c0_i32 = arith.constant 0 : i32
    %c0_i32_0 = arith.constant 0 : i32
    %c0_i32_1 = arith.constant 0 : i32
    return %c0_i32, %c0_i32_0 : i32, i32
  }
  func.func @transform_4(%arg0: i32, %arg1: i32) -> (i32, i32) {
    %c0_i32 = arith.constant 0 : i32
    %c0_i32_0 = arith.constant 0 : i32
    return %arg0, %c0_i32 : i32, i32
  }
}

</mosaic_0001>

<bundles_post_ra>
// kernel: fasttext_forward.1
= control target key start
LH: loop header
LB: loop body
LE: loop exit
PB: predicated region body
PF: predicated region fallthrough
CT: control target
= control target key end

     0   :  { %s7354_s15 = smov 0   ;;  %s7356_s16 = smov 0   ;;  %s12212_s0 = inlined_call_operand.vmem [shape: s32[64,100], index: 0, kind: input, shape index: {}]   ;;  %s12213_s1 = inlined_call_operand.vmem [shape: f32[1024,128], index: 1, kind: input, shape index: {}]   ;;  %s12214_s2 = inlined_call_operand.vmem [shape: f32[128,128], index: 2, kind: input, shape index: {}]   ;;  %s12215_s3 = inlined_call_operand.vmem [shape: f32[1,128], index: 3, kind: input, shape index: {}]   ;;  %s12216_s4 = inlined_call_operand.vmem [shape: f32[64,128], index: 4, kind: output, shape index: {}]  }
   0x1   :  { %s7358_s17 = smov 0   ;;  %s7360_s18 = smov 0  }
   0x2   :  { %s7362_s19 = smov 0  }
   0x3 LB: > { %s23_s20 = sadd.s32 1, %s7317_s17  ;;  %s26_s21 = sadd.s32 1, %s7321_s18  ;;  %s7325_s19 = sphi %s7362_s19, %s14_s19   ;;  %s7321_s18 = sphi %s7360_s18, %s12295_s18   ;;  %s7317_s17 = sphi %s7358_s17, %s12294_s17   ;;  %s7313_s16 = sphi %s7356_s16, %s12293_s16   ;;  %s7309_s15 = sphi %s7354_s15, %s12292_s15  }
   0x4   : > { %p24_p0 = scmp.ge.s32.totalorder %s23_s20, 4  ;;  %p6199_p1 = scmp.ge.s32.totalorder %s7325_s19, 1 }
   0x5   : > { %p186_p2 = scmp.lt.s32.totalorder %s7325_s19, 9 }
   0x6   : > { %s12297_s20 = smov (%p24_p0, %s23_s20), 0  ;;  %s12299_s21 = smov (!%p24_p0, %s26_s21), %s7321_s18 }
   0x7   : > { %p187_p3 = pnand %p6199_p1, %p186_p2  ;;  %p28_p4 = scmp.ge.s32.totalorder %s12299_s21, 2 }
   0x9   : > { %s12301_s21 = smov (%p28_p4, %s12299_s21), 0  ;;  %190 = sbr.rel (%p187_p3) target bundleno = 1469 (0x5bd), region = 36 }
  0x10   : > { %s6200_s22 = sshll.u32 %s7313_s16, 2  ;;  %s6202_s23 = sshll.u32 %s7309_s15, 5 }
  0x11   : > { %p218_p5 = scmp.lt.s32.totalorder %s6200_s22, 7  ;;  %p224_p6 = scmp.lt.s32.totalorder %s6202_s23, 127 }
  0x12   : > { %p6206_p7 = scmp.ne.s32.totalorder %s7309_s15, 0 }
  0x13   : > { %s12303_s22 = smov (!%p218_p5, %s6200_s22), 7  ;;  %s12305_s23 = smov (!%p224_p6, %s6202_s23), 127 }
  0x14   : > { %s6201_s24 = sshll.u32 %s12303_s22, 3  ;;  %s6203_s28 = sshll.u32 %s12305_s23, 3  ;;  %v7327_v0 = vmov (!%p6206_p7), 0.0  }
  0x15   : > { %s7390_s27 = scalar_lea.vmem %s12212_s0, %s6201_s24  ;;  %s7395_s5 = scalar_lea.vmem %s12213_s1, %s6203_s28  ;;  %239 = vst [vmem:[#allocation2] sm:$0xff] (!%p6206_p7), %v7327_v0  ;;  %240 = vst [vmem:[#allocation2 + $0x8] sm:$0xff] (!%p6206_p7), %v7327_v0 }
  0x16   : > { %s7400_s8 = scalar_lea.vmem %s12216_s4, %s6201_s24  ;;  %238 = sbr.rel (%p6206_p7) target bundleno = 29 (0x1d), region = 40  ;;  %241 = vst [vmem:[#allocation2 + $0x10] sm:$0xff] (!%p6206_p7), %v7327_v0  ;;  %242 = vst [vmem:[#allocation2 + $0x18] sm:$0xff] (!%p6206_p7), %v7327_v0 }
  0x1d PF: > { %v248_v1 = vlaneseq  ;;  %v7407_v3 = vld [vmem:[%s7390_s27] sm:$0xff]  ;;  %s6207_s9 = sshll.u32 %s7309_s15, 8  ;;  %v7328_v29 = vmov 0.0   ;;  %p7040_p8 = scmp.ne.s32.totalorder %s7309_s15, 3 }
  0x1e   : > { %v251_v19 = vstv %s6207_s9 }
  0x1f   : > { %v7404_v2 = vshrl.u32 %v248_v1, 7  ;;  %v249_v18 = vand.u32 127, %v248_v1 }
  0x21   : > { %v7410_v4 = vsub.s32 0, %v7404_v2  ;;  %v7415_v6 = vsub.s32 1, %v7404_v2  ;;  %v7420_v8 = vsub.s32 2, %v7404_v2  ;;  %v7425_v10 = vsub.s32 3, %v7404_v2 }
  0x22   : > { %v7430_v12 = vsub.s32 4, %v7404_v2  ;;  %v7437_v20 = vsub.s32 5, %v7404_v2  ;;  %v250_v23 = vadd.s32 128, %v249_v18  ;;  %v7441_v24 = vadd.s32 %v251_v19, %v249_v18 }
  0x23   : > { %v257_v5 = vrot.slane %v7407_v3, %v7410_v4  ;;  %v312_v7 = vrot.slane %v7407_v3, %v7415_v6  ;;  %v367_v9 = vrot.slane %v7407_v3, %v7420_v8  ;;  %v422_v11 = vrot.slane %v7407_v3, %v7425_v10 }
  0x24   : > { %v477_v13 = vrot.slane %v7407_v3, %v7430_v12  ;;  %v7445_v25 = vrot.slane %v7407_v3, %v7437_v20  ;;  %v7452_v28 = vadd.s32 %v251_v19, %v250_v23  ;;  %v7510_v60 = vsub.s32 6, %v7404_v2 }
  0x25   : > { %267 = vbcast.lane.b32.xlu1 %v257_v5, 272  ;;  %259 = vbcast.lane.b32.xlu0 %v257_v5, 256 }
  0x29   : > { %271 = vbcast.lane.b32.xlu1 %v257_v5, 280  ;;  %263 = vbcast.lane.b32.xlu0 %v257_v5, 264 }
  0x2d   : > { %279 = vbcast.lane.b32.xlu1 %v257_v5, 296  ;;  %275 = vbcast.lane.b32.xlu0 %v257_v5, 288 }
  0x31   : > { %287 = vbcast.lane.b32.xlu1 %v257_v5, 312  ;;  %283 = vbcast.lane.b32.xlu0 %v257_v5, 304 }
  0x35   : > { %295 = vbcast.lane.b32.xlu1 %v257_v5, 328  ;;  %291 = vbcast.lane.b32.xlu0 %v257_v5, 320 }
  0x39   : > { %303 = vbcast.lane.b32.xlu1 %v257_v5, 344  ;;  %299 = vbcast.lane.b32.xlu0 %v257_v5, 336 }
  0x3d   : > { %314 = vbcast.lane.b32.xlu1 %v312_v7, 256  ;;  %307 = vbcast.lane.b32.xlu0 %v257_v5, 352 }
  0x41   : > { %322 = vbcast.lane.b32.xlu1 %v312_v7, 272  ;;  %318 = vbcast.lane.b32.xlu0 %v312_v7, 264 }
  0x45   : > { %330 = vbcast.lane.b32.xlu1 %v312_v7, 288  ;;  %326 = vbcast.lane.b32.xlu0 %v312_v7, 280 }
  0x49   : > { %338 = vbcast.lane.b32.xlu1 %v312_v7, 304  ;;  %334 = vbcast.lane.b32.xlu0 %v312_v7, 296 }
  0x4d   : > { %346 = vbcast.lane.b32.xlu1 %v312_v7, 320  ;;  %342 = vbcast.lane.b32.xlu0 %v312_v7, 312 }
  0x51   : > { %354 = vbcast.lane.b32.xlu1 %v312_v7, 336  ;;  %350 = vbcast.lane.b32.xlu0 %v312_v7, 328 }
  0x55   : > { %362 = vbcast.lane.b32.xlu1 %v312_v7, 352  ;;  %358 = vbcast.lane.b32.xlu0 %v312_v7, 344  ;;  %v7525_v7 = vrot.slane %v7407_v3, %v7510_v60 }
  0x59   : > { %373 = vbcast.lane.b32.xlu1 %v367_v9, 264  ;;  %369 = vbcast.lane.b32.xlu0 %v367_v9, 256 }
  0x5d   : > { %381 = vbcast.lane.b32.xlu1 %v367_v9, 280  ;;  %377 = vbcast.lane.b32.xlu0 %v367_v9, 272 }
  0x61   : > { %389 = vbcast.lane.b32.xlu1 %v367_v9, 296  ;;  %385 = vbcast.lane.b32.xlu0 %v367_v9, 288 }
  0x65   : > { %397 = vbcast.lane.b32.xlu1 %v367_v9, 312  ;;  %393 = vbcast.lane.b32.xlu0 %v367_v9, 304 }
  0x69   : > { %405 = vbcast.lane.b32.xlu1 %v367_v9, 328  ;;  %401 = vbcast.lane.b32.xlu0 %v367_v9, 320 }
  0x6d   : > { %413 = vbcast.lane.b32.xlu1 %v367_v9, 344  ;;  %409 = vbcast.lane.b32.xlu0 %v367_v9, 336 }
  0x71   : > { %424 = vbcast.lane.b32.xlu1 %v422_v11, 256  ;;  %417 = vbcast.lane.b32.xlu0 %v367_v9, 352 }
  0x75   : > { %432 = vbcast.lane.b32.xlu1 %v422_v11, 272  ;;  %428 = vbcast.lane.b32.xlu0 %v422_v11, 264 }
  0x79   : > { %440 = vbcast.lane.b32.xlu1 %v422_v11, 288  ;;  %436 = vbcast.lane.b32.xlu0 %v422_v11, 280 }
  0x7d   : > { %448 = vbcast.lane.b32.xlu1 %v422_v11, 304  ;;  %444 = vbcast.lane.b32.xlu0 %v422_v11, 296 }
  0x81   : > { %456 = vbcast.lane.b32.xlu1 %v422_v11, 320  ;;  %452 = vbcast.lane.b32.xlu0 %v422_v11, 312 }
  0x85   : > { %464 = vbcast.lane.b32.xlu1 %v422_v11, 336  ;;  %460 = vbcast.lane.b32.xlu0 %v422_v11, 328 }
  0x89   : > { %472 = vbcast.lane.b32.xlu1 %v422_v11, 352  ;;  %468 = vbcast.lane.b32.xlu0 %v422_v11, 344 }
  0x8d   : > { %483 = vbcast.lane.b32.xlu1 %v477_v13, 264  ;;  %479 = vbcast.lane.b32.xlu0 %v477_v13, 256 }
  0x91   : > { %491 = vbcast.lane.b32.xlu1 %v477_v13, 280  ;;  %487 = vbcast.lane.b32.xlu0 %v477_v13, 272 }
  0x95   : > { %499 = vbcast.lane.b32.xlu1 %v477_v13, 296  ;;  %495 = vbcast.lane.b32.xlu0 %v477_v13, 288 }
  0x97   : > { %v268_v14 = vpop.permute.xlu1 %267  ;;  %v260_v15 = vpop.permute.xlu0 %259 }
  0x98   : > { %vm2014_vm1 = vcmp.eq.s32.totalorder %v260_v15, %v7441_v24  ;;  %vm2018_vm3 = vcmp.eq.s32.totalorder %v268_v14, %v7441_v24  ;;  %vm2015_vm4 = vcmp.eq.s32.totalorder %v260_v15, %v7452_v28  ;;  %vm2019_vm5 = vcmp.eq.s32.totalorder %v268_v14, %v7452_v28 }
  0x99   : > { %507 = vbcast.lane.b32.xlu1 %v477_v13, 312  ;;  %503 = vbcast.lane.b32.xlu0 %v477_v13, 304  ;;  %v6208_v31 = vsel %vm2014_vm1, 1.0, %v7328_v29  ;;  %v6212_v36 = vsel %vm2018_vm3, 1.0, %v7328_v29  ;;  %v6209_v37 = vsel %vm2015_vm4, 1.0, %v7328_v29  ;;  %v6213_v42 = vsel %vm2019_vm5, 1.0, %v7328_v29 }
  0x9b   : > { %v272_v16 = vpop.permute.xlu1 %271  ;;  %v264_v17 = vpop.permute.xlu0 %263 }
  0x9c   : > { %vm2016_vm0 = vcmp.eq.s32.totalorder %v264_v17, %v7441_v24  ;;  %vm2017_vm2 = vcmp.eq.s32.totalorder %v264_v17, %v7452_v28  ;;  %vm2020_vm6 = vcmp.eq.s32.totalorder %v272_v16, %v7441_v24  ;;  %vm2021_vm7 = vcmp.eq.s32.totalorder %v272_v16, %v7452_v28 }
  0x9d   : > { %515 = vbcast.lane.b32.xlu1 %v477_v13, 328  ;;  %511 = vbcast.lane.b32.xlu0 %v477_v13, 320  ;;  %v6210_v30 = vsel %vm2016_vm0, 1.0, %v7328_v29  ;;  %v6211_v35 = vsel %vm2017_vm2, 1.0, %v7328_v29  ;;  %v6214_v43 = vsel %vm2020_vm6, 1.0, %v7328_v29  ;;  %v6215_v48 = vsel %vm2021_vm7, 1.0, %v7328_v29 }
  0x9e   : > { %v4510_v34 = vadd.f32 %v6210_v30, %v6208_v31  ;;  %v4530_v41 = vadd.f32 %v6211_v35, %v6209_v37 }
  0x9f   : > { %v7439_v21 = vpop.permute.xlu1 %279  ;;  %v276_v22 = vpop.permute.xlu0 %275 }
  0xa0   : > { %v4511_v40 = vadd.f32 %v6212_v36, %v4510_v34  ;;  %v4531_v46 = vadd.f32 %v6213_v42, %v4530_v41  ;;  %vm2022_vm8 = vcmp.eq.s32.totalorder %v276_v22, %v7441_v24  ;;  %vm2024_vm9 = vcmp.eq.s32.totalorder %v7439_v21, %v7441_v24 }
  0xa1   : > { %523 = vbcast.lane.b32.xlu1 %v477_v13, 344  ;;  %519 = vbcast.lane.b32.xlu0 %v477_v13, 336  ;;  %v6216_v49 = vsel %vm2022_vm8, 1.0, %v7328_v29  ;;  %vm2023_vm10 = vcmp.eq.s32.totalorder %v276_v22, %v7452_v28  ;;  %v6218_v54 = vsel %vm2024_vm9, 1.0, %v7328_v29  ;;  %vm2025_vm11 = vcmp.eq.s32.totalorder %v7439_v21, %v7452_v28 }
  0xa2   : > { %v4512_v47 = vadd.f32 %v6214_v43, %v4511_v40  ;;  %v4532_v52 = vadd.f32 %v6215_v48, %v4531_v46  ;;  %v6217_v55 = vsel %vm2023_vm10, 1.0, %v7328_v29  ;;  %v6219_v61 = vsel %vm2025_vm11, 1.0, %v7328_v29 }
  0xa3   : > { %v7448_v26 = vpop.permute.xlu1 %287  ;;  %v7450_v27 = vpop.permute.xlu0 %283 }
  0xa4   : > { %v4513_v53 = vadd.f32 %v6216_v49, %v4512_v47  ;;  %v4533_v58 = vadd.f32 %v6217_v55, %v4532_v52  ;;  %vm2026_vm12 = vcmp.eq.s32.totalorder %v7450_v27, %v7441_v24  ;;  %vm2028_vm13 = vcmp.eq.s32.totalorder %v7448_v26, %v7441_v24 }
  0xa5   : > { %534 = vbcast.lane.b32.xlu1 %v7445_v25, 256  ;;  %527 = vbcast.lane.b32.xlu0 %v477_v13, 352  ;;  %v6220_v62 = vsel %vm2026_vm12, 1.0, %v7328_v29  ;;  %vm2027_vm14 = vcmp.eq.s32.totalorder %v7450_v27, %v7452_v28  ;;  %vm2029_vm0 = vcmp.eq.s32.totalorder %v7448_v26, %v7452_v28  ;;  %v6222_v9 = vsel %vm2028_vm13, 1.0, %v7328_v29 }
  0xa6   : > { %v4514_v59 = vadd.f32 %v6218_v54, %v4513_v53  ;;  %v4534_v1 = vadd.f32 %v6219_v61, %v4533_v58  ;;  %v6221_v11 = vsel %vm2027_vm14, 1.0, %v7328_v29  ;;  %v6223_v18 = vsel %vm2029_vm0, 1.0, %v7328_v29 }
  0xa7   : > { %v7459_v32 = vpop.permute.xlu1 %295  ;;  %v7461_v33 = vpop.permute.xlu0 %291 }
  0xa8   : > { %v4515_v5 = vadd.f32 %v6220_v62, %v4514_v59  ;;  %v4535_v15 = vadd.f32 %v6221_v11, %v4534_v1  ;;  %vm2030_vm2 = vcmp.eq.s32.totalorder %v7461_v33, %v7441_v24  ;;  %vm2032_vm5 = vcmp.eq.s32.totalorder %v7459_v32, %v7441_v24 }
  0xa9   : > { %542 = vbcast.lane.b32.xlu1 %v7445_v25, 272  ;;  %538 = vbcast.lane.b32.xlu0 %v7445_v25, 264  ;;  %vm2031_vm7 = vcmp.eq.s32.totalorder %v7461_v33, %v7452_v28  ;;  %v6224_v21 = vsel %vm2030_vm2, 1.0, %v7328_v29  ;;  %vm2033_vm10 = vcmp.eq.s32.totalorder %v7459_v32, %v7452_v28  ;;  %v6226_v37 = vsel %vm2032_vm5, 1.0, %v7328_v29 }
  0xaa   : > { %v4516_v16 = vadd.f32 %v6222_v9, %v4515_v5  ;;  %v4536_v26 = vadd.f32 %v6223_v18, %v4535_v15  ;;  %v6225_v40 = vsel %vm2031_vm7, 1.0, %v7328_v29  ;;  %v6227_v33 = vsel %vm2033_vm10, 1.0, %v7328_v29 }
  0xab   : > { %v7470_v38 = vpop.permute.xlu1 %303  ;;  %v7472_v39 = vpop.permute.xlu0 %299  ;;  %vm4521_vm2 = vcmask 1043456  }
  0xac   : > { %v4517_v27 = vadd.f32 %v6224_v21, %v4516_v16  ;;  %v4537_v43 = vadd.f32 %v6225_v40, %v4536_v26  ;;  %vm2034_vm12 = vcmp.eq.s32.totalorder %v7472_v39, %v7441_v24  ;;  %vm2036_vm14 = vcmp.eq.s32.totalorder %v7470_v38, %v7441_v24 }
  0xad   : > { %550 = vbcast.lane.b32.xlu1 %v7445_v25, 288  ;;  %546 = vbcast.lane.b32.xlu0 %v7445_v25, 280  ;;  %v6228_v49 = vsel %vm2034_vm12, 1.0, %v7328_v29 }
  0xae   : > { %v4538_v52 = vadd.f32 %v6227_v33, %v4537_v43  ;;  %v5731_v33 = vld [vmem:[%s7395_s5] sm:$0xff] }
  0xaf   : > { %v7480_v44 = vpop.permute.xlu1 %314  ;;  %v7482_v45 = vpop.permute.xlu0 %307 }
  0xb0   : > { %vm2040_vm3 = vcmp.eq.s32.totalorder %v7480_v44, %v7441_v24  ;;  %vm2041_vm4 = vcmp.eq.s32.totalorder %v7480_v44, %v7452_v28  ;;  %v4518_v44 = vadd.f32 %v6226_v37, %v4517_v27 }
  0xb1   : > { %558 = vbcast.lane.b32.xlu1 %v7445_v25, 304  ;;  %554 = vbcast.lane.b32.xlu0 %v7445_v25, 296  ;;  %v6234_v22 = vsel %vm2040_vm3, 1.0, %v7328_v29  ;;  %v6235_v30 = vsel %vm2041_vm4, 1.0, %v7328_v29  ;;  %vm2039_vm4 = vcmp.eq.s32.totalorder %v7482_v45, %v7452_v28 }
  0xb2   : > { %v4519_v53 = vadd.f32 %v6228_v49, %v4518_v44 }
  0xb3   : > { %v7490_v50 = vpop.permute.xlu1 %322  ;;  %v319_v51 = vpop.permute.xlu0 %318 }
  0xb4   : > { %vm2042_vm15 = vcmp.eq.s32.totalorder %v319_v51, %v7441_v24  ;;  %vm2043_vm1 = vcmp.eq.s32.totalorder %v319_v51, %v7452_v28  ;;  %vm2044_vm6 = vcmp.eq.s32.totalorder %v7490_v50, %v7441_v24  ;;  %vm2045_vm8 = vcmp.eq.s32.totalorder %v7490_v50, %v7452_v28 }
  0xb5   : > { %566 = vbcast.lane.b32.xlu1 %v7445_v25, 320  ;;  %562 = vbcast.lane.b32.xlu0 %v7445_v25, 312  ;;  %v6236_v17 = vsel %vm2042_vm15, 1.0, %v7328_v29  ;;  %v6237_v19 = vsel %vm2043_vm1, 1.0, %v7328_v29  ;;  %v6238_v34 = vsel %vm2044_vm6, 1.0, %v7328_v29  ;;  %v6239_v36 = vsel %vm2045_vm8, 1.0, %v7328_v29 }
  0xb6   : > { %v4549_v31 = vadd.f32 %v6236_v17, %v6234_v22  ;;  %v4568_v35 = vadd.f32 %v6237_v19, %v6235_v30  ;;  %vm2038_vm15 = vcmp.eq.s32.totalorder %v7482_v45, %v7441_v24  ;;  %vm2035_vm1 = vcmp.eq.s32.totalorder %v7472_v39, %v7452_v28 }
  0xb7   : > { %v7499_v56 = vpop.permute.xlu1 %330  ;;  %v7501_v57 = vpop.permute.xlu0 %326  ;;  %v6232_v58 = vsel %vm2038_vm15, 1.0, %v7328_v29  ;;  %v6230_v39 = vsel %vm2036_vm14, 1.0, %v7328_v29  ;;  %v6229_v59 = vsel %vm2035_vm1, 1.0, %v7328_v29  ;;  %vm2037_vm6 = vcmp.eq.s32.totalorder %v7470_v38, %v7452_v28 }
  0xb8   : > { %vm2046_vm9 = vcmp.eq.s32.totalorder %v7501_v57, %v7441_v24  ;;  %vm2047_vm11 = vcmp.eq.s32.totalorder %v7501_v57, %v7452_v28  ;;  %v4550_v46 = vadd.f32 %v6238_v34, %v4549_v31  ;;  %v4569_v32 = vadd.f32 %v6239_v36, %v4568_v35 }
  0xb9   : > { %574 = vbcast.lane.b32.xlu1 %v7445_v25, 336  ;;  %570 = vbcast.lane.b32.xlu0 %v7445_v25, 328  ;;  %v6240_v47 = vsel %vm2046_vm9, 1.0, %v7328_v29  ;;  %vm2048_vm13 = vcmp.eq.s32.totalorder %v7499_v56, %v7441_v24  ;;  %v6241_v48 = vsel %vm2047_vm11, 1.0, %v7328_v29  ;;  %vm2049_vm0 = vcmp.eq.s32.totalorder %v7499_v56, %v7452_v28 }
  0xba   : > { %v4551_v54 = vadd.f32 %v6240_v47, %v4550_v46  ;;  %v6242_v55 = vsel %vm2048_vm13, 1.0, %v7328_v29  ;;  %v4570_v57 = vadd.f32 %v6241_v48, %v4569_v32  ;;  %v6243_v56 = vsel %vm2049_vm0, 1.0, %v7328_v29  ;;  %v5747_v32 = vld [vmem:[%s7395_s5 + $0x80] sm:$0xff]  ;;  %v5748_v47 = vld [vmem:[%s7395_s5 + $0x88] sm:$0xff] }
  0xbb   : > { %v7514_v63 = vpop.permute.xlu1 %338  ;;  %v7516_v0 = vpop.permute.xlu0 %334  ;;  %v4520_v1 = vadd.f32 %v6230_v39, %v4519_v53  ;;  %v4539_v5 = vadd.f32 %v6229_v59, %v4538_v52  ;;  %v4522_v11 = vsel %vm4521_vm2, %v6232_v58, 0.0  ;;  %v7637_v45 = vsub.s32 7, %v7404_v2  ;;  %v5732_v53 = vld [vmem:[%s7395_s5 + $0x8] sm:$0xff] }
  0xbc   : > { %vm2050_vm3 = vcmp.eq.s32.totalorder %v7516_v0, %v7441_v24  ;;  %vm2051_vm5 = vcmp.eq.s32.totalorder %v7516_v0, %v7452_v28  ;;  %v4552_v9 = vadd.f32 %v6242_v55, %v4551_v54  ;;  %v4571_v15 = vadd.f32 %v6243_v56, %v4570_v57  ;;  %v5749_v54 = vld [vmem:[%s7395_s5 + $0x90] sm:$0xff]  ;;  %v5750_v55 = vld [vmem:[%s7395_s5 + $0x98] sm:$0xff] }
  0xbd   : > { %582 = vbcast.lane.b32.xlu1 %v7445_v25, 352  ;;  %578 = vbcast.lane.b32.xlu0 %v7445_v25, 344  ;;  %v6244_v16 = vsel %vm2050_vm3, 1.0, %v7328_v29  ;;  %v6233_v0 = vsel %vm2039_vm4, 1.0, %v7328_v29  ;;  %vm2052_vm7 = vcmp.eq.s32.totalorder %v7514_v63, %v7441_v24  ;;  %v6245_v38 = vsel %vm2051_vm5, 1.0, %v7328_v29 }
  0xbe   : > { %v6231_v17 = vsel %vm2037_vm6, 1.0, %v7328_v29  ;;  %vm2053_vm8 = vcmp.eq.s32.totalorder %v7514_v63, %v7452_v28  ;;  %v4523_v21 = vadd.f32 %v4522_v11, %v4520_v1  ;;  %v4553_v22 = vadd.f32 %v6244_v16, %v4552_v9  ;;  %v5734_v9 = vld [vmem:[%s7395_s5 + $0x18] sm:$0xff] }
  0xbf   : > { %v7534_v13 = vpop.permute.xlu1 %346  ;;  %v7536_v14 = vpop.permute.xlu0 %342  ;;  %v4540_v2 = vadd.f32 %v6231_v17, %v4539_v5  ;;  %v4541_v26 = vsel %vm4521_vm2, %v6233_v0, 0.0  ;;  %v6246_v27 = vsel %vm2052_vm7, 1.0, %v7328_v29  ;;  %v4572_v30 = vadd.f32 %v6245_v38, %v4571_v15  ;;  %v5733_v5 = vld [vmem:[%s7395_s5 + $0x10] sm:$0xff]  ;;  %v5751_v0 = vld [vmem:[%s7395_s5 + $0xa0] sm:$0xff]  ;;  %v5752_v38 = vld [vmem:[%s7395_s5 + $0xa8] sm:$0xff] }
  0xc0   : > { %v7656_v31 = vrot.slane %v7407_v3, %v7637_v45  ;;  %v6247_v63 = vsel %vm2053_vm8, 1.0, %v7328_v29  ;;  %vm2054_vm9 = vcmp.eq.s32.totalorder %v7536_v14, %v7441_v24  ;;  %vm2055_vm10 = vcmp.eq.s32.totalorder %v7536_v14, %v7452_v28 }
  0xc1   : > { %593 = vbcast.lane.b32.xlu1 %v7525_v7, 264  ;;  %589 = vbcast.lane.b32.xlu0 %v7525_v7, 256  ;;  %v4524_v36 = vrot.slane %v4523_v21, 4  ;;  %v7668_v3 = vadd.f32 %v4541_v26, %v4540_v2  ;;  %v4554_v37 = vadd.f32 %v6246_v27, %v4553_v22  ;;  %v4573_v40 = vadd.f32 %v6247_v63, %v4572_v30 }
  0xc2   : > { %v6248_v43 = vsel %vm2054_vm9, 1.0, %v7328_v29  ;;  %vm2056_vm11 = vcmp.eq.s32.totalorder %v7534_v13, %v7441_v24  ;;  %v6249_v14 = vsel %vm2055_vm10, 1.0, %v7328_v29  ;;  %vm2057_vm12 = vcmp.eq.s32.totalorder %v7534_v13, %v7452_v28 }
  0xc3   : > { %v7559_v23 = vpop.permute.xlu1 %354  ;;  %v7561_v25 = vpop.permute.xlu0 %350  ;;  %v7685_v48 = vadd.f32 %v4524_v36, %v4523_v21  ;;  %v4543_v49 = vrot.slane %v7668_v3, 4  ;;  %v4555_v52 = vadd.f32 %v6248_v43, %v4554_v37  ;;  %v4574_v57 = vadd.f32 %v6249_v14, %v4573_v40  ;;  %v5735_v37 = vld [vmem:[%s7395_s5 + $0x20] sm:$0xff]  ;;  %v5736_v40 = vld [vmem:[%s7395_s5 + $0x28] sm:$0xff]  ;;  %v5753_v14 = vld [vmem:[%s7395_s5 + $0xb0] sm:$0xff] }
  0xc4   : > { %v6251_v58 = vsel %vm2057_vm12, 1.0, %v7328_v29  ;;  %vm2058_vm15 = vcmp.eq.s32.totalorder %v7561_v25, %v7441_v24  ;;  %v7146_v39 = vpack.c.bf16 %v5748_v47, %v5747_v32  ;;  %v7148_v59 = vpack.c.bf16 %v5732_v53, %v5731_v33  ;;  %v5754_v32 = vld [vmem:[%s7395_s5 + $0xb8] sm:$0xff] }
  0xc5   : > { %601 = vbcast.lane.b32.xlu1 %v7525_v7, 280  ;;  %597 = vbcast.lane.b32.xlu0 %v7525_v7, 272  ;;  %v7150_v1 = vpack.c.bf16 %v5750_v55, %v5749_v54  ;;  %vm2059_vm4 = vcmp.eq.s32.totalorder %v7561_v25, %v7452_v28  ;;  %vm2060_vm5 = vcmp.eq.s32.totalorder %v7559_v23, %v7441_v24  ;;  %v6252_v2 = vsel %vm2058_vm15, 1.0, %v7328_v29 }
  0xc6   : > { %v4575_v17 = vadd.f32 %v6251_v58, %v4574_v57  ;;  %7147 = vmatprep.subr.bf16.mxu0 %v7146_v39  ;;  %v7152_v27 = vpack.c.bf16 %v5734_v9, %v5733_v5  ;;  %v7760_v36 = vpack.c.bf16 %v5752_v38, %v5751_v0  ;;  %vm2061_vm8 = vcmp.eq.s32.totalorder %v7559_v23, %v7452_v28  ;;  %v5738_v5 = vld [vmem:[%s7395_s5 + $0x38] sm:$0xff] }
  0xc7   : > { %v7585_v41 = vpop.permute.xlu1 %362  ;;  %v7587_v42 = vpop.permute.xlu0 %358  ;;  %7149 = vmatpush3.bf16.msra.mxu0 %v7148_v59  ;;  %7210 = vmatprep.subr.bf16.mxu1 %v7146_v39  ;;  %v6254_v47 = vsel %vm2060_vm5, 1.0, %v7328_v29  ;;  %v7156_v54 = vpack.c.bf16 %v5736_v40, %v5735_v37  ;;  %v6255_v55 = vsel %vm2061_vm8, 1.0, %v7328_v29  ;;  %v7158_v39 = vpack.c.bf16 %v5754_v32, %v5753_v14  ;;  %v5758_v14 = vld [vmem:[%s7395_s5 + $0xd8] sm:$0xff] }
  0xc8   : > { %7151 = vmatprep.subr.bf16.mxu0 %v7150_v1  ;;  %vm2064_vm9 = vcmp.eq.s32.totalorder %v7585_v41, %v7441_v24  ;;  %7218 = vmatpush3.bf16.msra.mxu1 %v7148_v59  ;;  %v5737_v59 = vld [vmem:[%s7395_s5 + $0x30] sm:$0xff]  ;;  %v7804_v23 = vadd.f32 %v4543_v49, %v7668_v3  ;;  %v4526_v37 = vrot.slane %v7685_v48, 2 }
  0xc9   : > { %609 = vbcast.lane.b32.xlu1 %v7525_v7, 296  ;;  %605 = vbcast.lane.b32.xlu0 %v7525_v7, 288 }
  0xca   : > { %7211 = vmatprep.subr.bf16.mxu1 %v7150_v1  ;;  %v7824_v1 = vld [vmem:[%s7390_s27 + $0x8] sm:$0xff] }
  0xcb   : > { %v7605_v50 = vpop.permute.xlu1 %373  ;;  %v7607_v51 = vpop.permute.xlu0 %369  ;;  %7153 = vmatpush3.bf16.msra.mxu0 %v7152_v27 }
  0xcc   : > { %vm2068_vm13 = vcmp.eq.s32.totalorder %v7605_v50, %v7441_v24  ;;  %vm2066_vm14 = vcmp.eq.s32.totalorder %v7607_v51, %v7441_v24  ;;  %vm2069_vm0 = vcmp.eq.s32.totalorder %v7605_v50, %v7452_v28  ;;  %vm2067_vm1 = vcmp.eq.s32.totalorder %v7607_v51, %v7452_v28  ;;  %7155 = vmatprep.subr.bf16.mxu0 %v7760_v36 }
  0xcd   : > { %617 = vbcast.lane.b32.xlu1 %v7525_v7, 312  ;;  %613 = vbcast.lane.b32.xlu0 %v7525_v7, 304  ;;  %v6262_v15 = vsel %vm2068_vm13, 1.0, %v7328_v29  ;;  %v6260_v16 = vsel %vm2066_vm14, 1.0, %v7328_v29  ;;  %v6263_v21 = vsel %vm2069_vm0, 1.0, %v7328_v29  ;;  %v6261_v22 = vsel %vm2067_vm1, 1.0, %v7328_v29 }
  0xce   : > { %v6253_v50 = vsel %vm2059_vm4, 1.0, %v7328_v29  ;;  %v4587_v30 = vadd.f32 %v6262_v15, %v6260_v16  ;;  %v4606_v33 = vadd.f32 %v6263_v21, %v6261_v22  ;;  %vm2063_vm13 = vcmp.eq.s32.totalorder %v7587_v42, %v7452_v28  ;;  %v5755_v15 = vld [vmem:[%s7395_s5 + $0xc0] sm:$0xff]  ;;  %v5756_v16 = vld [vmem:[%s7395_s5 + $0xc8] sm:$0xff]  ;;  %7219 = vmatpush3.bf16.msra.mxu1 %v7152_v27 }
  0xcf   : > { %v7627_v61 = vpop.permute.xlu1 %381  ;;  %v7629_v62 = vpop.permute.xlu0 %377  ;;  %vm2065_vm14 = vcmp.eq.s32.totalorder %v7585_v41, %v7452_v28  ;;  %7157 = vmatpush3.bf16.msra.mxu0 %v7156_v54  ;;  %v7162_v27 = vpack.c.bf16 %v5756_v16, %v5755_v15  ;;  %7212 = vmatprep.subr.bf16.mxu1 %v7760_v36 }
  0xd0   : > { %vm2070_vm3 = vcmp.eq.s32.totalorder %v7629_v62, %v7441_v24  ;;  %vm2071_vm6 = vcmp.eq.s32.totalorder %v7629_v62, %v7452_v28  ;;  %vm2072_vm7 = vcmp.eq.s32.totalorder %v7627_v61, %v7441_v24  ;;  %vm2073_vm10 = vcmp.eq.s32.totalorder %v7627_v61, %v7452_v28  ;;  %7159 = vmatprep.subr.bf16.mxu0 %v7158_v39 }
  0xd1   : > { %625 = vbcast.lane.b32.xlu1 %v7525_v7, 328  ;;  %621 = vbcast.lane.b32.xlu0 %v7525_v7, 320  ;;  %v6264_v26 = vsel %vm2070_vm3, 1.0, %v7328_v29  ;;  %v6265_v25 = vsel %vm2071_vm6, 1.0, %v7328_v29  ;;  %v4576_v62 = vadd.f32 %v6253_v50, %v4575_v17  ;;  %v6266_v53 = vsel %vm2072_vm7, 1.0, %v7328_v29  ;;  %v5739_v50 = vld [vmem:[%s7395_s5 + $0x40] sm:$0xff] }
  0xd2   : > { %v6258_v61 = vsel %vm2064_vm9, 1.0, %v7328_v29  ;;  %v7160_v17 = vpack.c.bf16 %v5738_v5, %v5737_v59  ;;  %v6259_v32 = vsel %vm2065_vm14, 1.0, %v7328_v29  ;;  %7220 = vmatpush3.bf16.msra.mxu1 %v7156_v54  ;;  %v5742_v59 = vld [vmem:[%s7395_s5 + $0x58] sm:$0xff]  ;;  %v7884_v5 = vadd.f32 %v4526_v37, %v7685_v48 }
  0xd3   : > { %v7647_v18 = vpop.permute.xlu1 %389  ;;  %v7649_v19 = vpop.permute.xlu0 %385  ;;  %v4577_v0 = vadd.f32 %v6255_v55, %v4576_v62  ;;  %7213 = vmatprep.subr.bf16.mxu1 %v7158_v39  ;;  %v7898_v48 = vrot.slane %v7824_v1, %v7415_v6  ;;  %v7902_v39 = vrot.slane %v7824_v1, %v7420_v8 }
  0xd4   : > { %vm2074_vm12 = vcmp.eq.s32.totalorder %v7649_v19, %v7441_v24  ;;  %vm2075_vm15 = vcmp.eq.s32.totalorder %v7649_v19, %v7452_v28  ;;  %vm2076_vm0 = vcmp.eq.s32.totalorder %v7647_v18, %v7441_v24  ;;  %vm2077_vm1 = vcmp.eq.s32.totalorder %v7647_v18, %v7452_v28  ;;  %7161 = vmatpush3.bf16.msra.mxu0 %v7160_v17 }
  0xd5   : > { %633 = vbcast.lane.b32.xlu1 %v7525_v7, 344  ;;  %629 = vbcast.lane.b32.xlu0 %v7525_v7, 336  ;;  %v6268_v38 = vsel %vm2074_vm12, 1.0, %v7328_v29  ;;  %v6270_v41 = vsel %vm2076_vm0, 1.0, %v7328_v29  ;;  %v6271_v15 = vsel %vm2077_vm1, 1.0, %v7328_v29 }
  0xd6   : > { %7163 = vmatprep.subr.bf16.mxu0 %v7162_v27  ;;  %7221 = vmatpush3.bf16.msra.mxu1 %v7160_v17 }
  0xd7   : > { %v7664_v34 = vpop.permute.xlu1 %397  ;;  %v7666_v35 = vpop.permute.xlu0 %393  ;;  %7214 = vmatprep.subr.bf16.mxu1 %v7162_v27 }
  0xd8   : > { %vm2078_vm3 = vcmp.eq.s32.totalorder %v7666_v35, %v7441_v24  ;;  %vm2079_vm4 = vcmp.eq.s32.totalorder %v7666_v35, %v7452_v28  ;;  %vm2080_vm5 = vcmp.eq.s32.totalorder %v7664_v34, %v7441_v24  ;;  %vm2081_vm8 = vcmp.eq.s32.totalorder %v7664_v34, %v7452_v28 }
  0xd9   : > { %644 = vbcast.lane.b32.xlu1 %v7656_v31, 256  ;;  %637 = vbcast.lane.b32.xlu0 %v7525_v7, 352  ;;  %v6250_v7 = vsel %vm2056_vm11, 1.0, %v7328_v29  ;;  %vm2062_vm11 = vcmp.eq.s32.totalorder %v7587_v42, %v7441_v24  ;;  %v6269_v42 = vsel %vm2075_vm15, 1.0, %v7328_v29  ;;  %v6272_v18 = vsel %vm2078_vm3, 1.0, %v7328_v29 }
  0xda   : > { %v4556_v11 = vadd.f32 %v6250_v7, %v4555_v52  ;;  %v4588_v52 = vadd.f32 %v6264_v26, %v4587_v30  ;;  %v4607_v7 = vadd.f32 %v6265_v25, %v4606_v33  ;;  %v6256_v3 = vsel %vm2062_vm11, 1.0, %v7328_v29  ;;  %v5740_v30 = vld [vmem:[%s7395_s5 + $0x48] sm:$0xff]  ;;  %v5757_v25 = vld [vmem:[%s7395_s5 + $0xd0] sm:$0xff] }
  0xdb   : > { %v7678_v44 = vpop.permute.xlu1 %405  ;;  %v7680_v46 = vpop.permute.xlu0 %401  ;;  %v4545_v33 = vrot.slane %v7804_v23, 2  ;;  %v7164_v36 = vpack.c.bf16 %v5740_v30, %v5739_v50  ;;  %v7879_v54 = vpack.c.bf16 %v5758_v14, %v5757_v25  ;;  %v4528_v50 = vrot.slane %v7884_v5, 1 }
  0xdc   : > { %v4557_v43 = vadd.f32 %v6252_v2, %v4556_v11  ;;  %v6267_v11 = vsel %vm2073_vm10, 1.0, %v7328_v29  ;;  %v4589_v49 = vadd.f32 %v6266_v53, %v4588_v52  ;;  %v6257_v2 = vsel %vm2063_vm13, 1.0, %v7328_v29 }
  0xdd   : > { %652 = vbcast.lane.b32.xlu1 %v7656_v31, 272  ;;  %648 = vbcast.lane.b32.xlu0 %v7656_v31, 264  ;;  %v4608_v21 = vadd.f32 %v6267_v11, %v4607_v7  ;;  %v4578_v52 = vadd.f32 %v6257_v2, %v4577_v0  ;;  %v5741_v7 = vld [vmem:[%s7395_s5 + $0x50] sm:$0xff]  ;;  %v5759_v2 = vld [vmem:[%s7395_s5 + $0xe0] sm:$0xff]  ;;  %v6273_v30 = vsel %vm2079_vm4, 1.0, %v7328_v29  ;;  %v6274_v17 = vsel %vm2080_vm5, 1.0, %v7328_v29 }
  0xde   : > { %v4558_v9 = vadd.f32 %v6254_v47, %v4557_v43  ;;  %v7854_v43 = vrot.slane %v7824_v1, %v7410_v4  ;;  %v4560_v47 = vsel %vm4521_vm2, %v6258_v61, 0.0  ;;  %v4590_v19 = vadd.f32 %v6268_v38, %v4589_v49  ;;  %7165 = vmatpush3.bf16.msra.mxu0 %v7164_v36  ;;  %7222 = vmatpush3.bf16.msra.mxu1 %v7164_v36 }
  0xdf   : > { %v7710_v56 = vpop.permute.xlu1 %413  ;;  %v7712_v13 = vpop.permute.xlu0 %409  ;;  %v4609_v62 = vadd.f32 %v6269_v42, %v4608_v21  ;;  %v7168_v49 = vpack.c.bf16 %v5742_v59, %v5741_v7  ;;  %7167 = vmatprep.subr.bf16.mxu0 %v7879_v54  ;;  %v5760_v21 = vld [vmem:[%s7395_s5 + $0xe8] sm:$0xff]  ;;  %vm2082_vm10 = vcmp.eq.s32.totalorder %v7680_v46, %v7441_v24  ;;  %vm2083_vm13 = vcmp.eq.s32.totalorder %v7680_v46, %v7452_v28  ;;  %v5745_v59 = vld [vmem:[%s7395_s5 + $0x70] sm:$0xff] }
  0xe0   : > { %v4559_v40 = vadd.f32 %v6256_v3, %v4558_v9  ;;  %v4579_v9 = vsel %vm4521_vm2, %v6259_v32, 0.0  ;;  %v4591_v16 = vadd.f32 %v6270_v41, %v4590_v19  ;;  %v7905_v3 = vadd.f32 %v4545_v33, %v7804_v23  ;;  %v5744_v19 = vld [vmem:[%s7395_s5 + $0x68] sm:$0xff]  ;;  %v5761_v33 = vld [vmem:[%s7395_s5 + $0xf0] sm:$0xff]  ;;  %7215 = vmatprep.subr.bf16.mxu1 %v7879_v54 }
  0xe1   : > { %660 = vbcast.lane.b32.xlu1 %v7656_v31, 288  ;;  %656 = vbcast.lane.b32.xlu0 %v7656_v31, 280  ;;  %v7914_v61 = vadd.f32 %v4579_v9, %v4578_v52  ;;  %v4610_v0 = vadd.f32 %v6271_v15, %v4609_v62  ;;  %v7170_v27 = vpack.c.bf16 %v5760_v21, %v5759_v2  ;;  %v5762_v52 = vld [vmem:[%s7395_s5 + $0xf8] sm:$0xff]  ;;  %v6275_v41 = vsel %vm2081_vm8, 1.0, %v7328_v29 }
  0xe2   : > { %v7887_v11 = vadd.f32 %v4560_v47, %v4559_v40  ;;  %v4592_v37 = vadd.f32 %v6272_v18, %v4591_v16  ;;  %7169 = vmatpush3.bf16.msra.mxu0 %v7168_v49  ;;  %v5743_v40 = vld [vmem:[%s7395_s5 + $0x60] sm:$0xff]  ;;  %v6276_v36 = vsel %vm2082_vm10, 1.0, %v7328_v29  ;;  %v5746_v9 = vld [vmem:[%s7395_s5 + $0x78] sm:$0xff]  ;;  %vm2084_vm15 = vcmp.eq.s32.totalorder %v7678_v44, %v7441_v24  ;;  %7223 = vmatpush3.bf16.msra.mxu1 %v7168_v49 }
  0xe3   : > { %v7756_v51 = vpop.permute.xlu1 %424  ;;  %v7758_v63 = vpop.permute.xlu0 %417  ;;  %v4581_v42 = vrot.slane %v7914_v61, 4  ;;  %v4611_v25 = vadd.f32 %v6273_v30, %v4610_v0  ;;  %7171 = vmatprep.subr.bf16.mxu0 %v7170_v27  ;;  %v7172_v18 = vpack.c.bf16 %v5744_v19, %v5743_v40  ;;  %v7174_v0 = vpack.c.bf16 %v5762_v52, %v5761_v33  ;;  %7216 = vmatprep.subr.bf16.mxu1 %v7170_v27 }
  0xe4   : > { %vm2092_vm9 = vcmp.eq.s32.totalorder %v7756_v51, %v7441_v24  ;;  %vm2093_vm11 = vcmp.eq.s32.totalorder %v7756_v51, %v7452_v28  ;;  %v4593_v62 = vadd.f32 %v6274_v17, %v4592_v37  ;;  %v6277_v17 = vsel %vm2083_vm13, 1.0, %v7328_v29 }
  0xe5   : > { %668 = vbcast.lane.b32.xlu1 %v7656_v31, 304  ;;  %664 = vbcast.lane.b32.xlu0 %v7656_v31, 296  ;;  %v6287_v34 = vsel %vm2093_vm11, 1.0, %v7328_v29  ;;  %v4612_v51 = vadd.f32 %v6275_v41, %v4611_v25  ;;  %vm2085_vm3 = vcmp.eq.s32.totalorder %v7678_v44, %v7452_v28  ;;  %v6278_v46 = vsel %vm2084_vm15, 1.0, %v7328_v29 }
  0xe6   : > { %7173 = vmatpush3.bf16.msra.mxu0 %v7172_v18  ;;  %v4594_v37 = vadd.f32 %v6276_v36, %v4593_v62  ;;  %vm2086_vm4 = vcmp.eq.s32.totalorder %v7712_v13, %v7441_v24  ;;  %7224 = vmatpush3.bf16.msra.mxu1 %v7172_v18  ;;  %v8040_v27 = vadd.f32 %v4528_v50, %v7884_v5  ;;  %v6279_v52 = vsel %vm2085_vm3, 1.0, %v7328_v29 }
  0xe7   : > { %v7794_v57 = vpop.permute.xlu1 %432  ;;  %v7796_v58 = vpop.permute.xlu0 %428  ;;  %7175 = vmatprep.subr.bf16.mxu0 %v7174_v0  ;;  %v4613_v40 = vadd.f32 %v6277_v17, %v4612_v51  ;;  %v8043_v33 = vadd.f32 %v4581_v42, %v7914_v61  ;;  %7217 = vmatprep.subr.bf16.mxu1 %v7174_v0  ;;  %vm2088_vm8 = vcmp.eq.s32.totalorder %v7710_v56, %v7441_v24  ;;  %v6280_v44 = vsel %vm2086_vm4, 1.0, %v7328_v29 }
  0xe8   : > { %vm2094_vm6 = vcmp.eq.s32.totalorder %v7796_v58, %v7441_v24  ;;  %vm2095_vm7 = vcmp.eq.s32.totalorder %v7796_v58, %v7452_v28  ;;  %vm2096_vm12 = vcmp.eq.s32.totalorder %v7794_v57, %v7441_v24  ;;  %v6286_v58 = vsel %vm2092_vm9, 1.0, %v7328_v29 }
  0xe9   : > { %676 = vbcast.lane.b32.xlu1 %v7656_v31, 320  ;;  %672 = vbcast.lane.b32.xlu0 %v7656_v31, 312  ;;  %v6288_v35 = vsel %vm2094_vm6, 1.0, %v7328_v29  ;;  %v6289_v14 = vsel %vm2095_vm7, 1.0, %v7328_v29  ;;  %vm2097_vm14 = vcmp.eq.s32.totalorder %v7794_v57, %v7452_v28  ;;  %v6290_v15 = vsel %vm2096_vm12, 1.0, %v7328_v29 }
  0xea   : > { %v4625_v7 = vadd.f32 %v6288_v35, %v6286_v58  ;;  %v4644_v16 = vadd.f32 %v6289_v14, %v6287_v34  ;;  %v6291_v2 = vsel %vm2097_vm14, 1.0, %v7328_v29  ;;  %v7176_v57 = vpack.c.bf16 %v5746_v9, %v5745_v59 }
  0xeb   : > { %v7841_v22 = vpop.permute.xlu1 %440  ;;  %v7843_v26 = vpop.permute.xlu0 %436  ;;  %v4595_v41 = vadd.f32 %v6278_v46, %v4594_v37  ;;  %vm2087_vm7 = vcmp.eq.s32.totalorder %v7712_v13, %v7452_v28  ;;  %vm2089_vm9 = vcmp.eq.s32.totalorder %v7710_v56, %v7452_v28  ;;  %v4614_v50 = vadd.f32 %v6279_v52, %v4613_v40 }
  0xec   : > { %vm2098_vm0 = vcmp.eq.s32.totalorder %v7843_v26, %v7441_v24  ;;  %vm2099_vm1 = vcmp.eq.s32.totalorder %v7843_v26, %v7452_v28  ;;  %v4626_v35 = vadd.f32 %v6290_v15, %v4625_v7  ;;  %v4645_v49 = vadd.f32 %v6291_v2, %v4644_v16  ;;  %7177 = vmatpush3.bf16.msra.mxu0 %v7176_v57 }
  0xed   : > { %684 = vbcast.lane.b32.xlu1 %v7656_v31, 336  ;;  %680 = vbcast.lane.b32.xlu0 %v7656_v31, 328  ;;  %vm2100_vm5 = vcmp.eq.s32.totalorder %v7841_v22, %v7441_v24  ;;  %v6293_v25 = vsel %vm2099_vm1, 1.0, %v7328_v29  ;;  %vm2101_vm6 = vcmp.eq.s32.totalorder %v7841_v22, %v7452_v28  ;;  %v4583_v34 = vrot.slane %v8043_v33, 2 }
  0xee   : > { %v6294_v5 = vsel %vm2100_vm5, 1.0, %v7328_v29  ;;  %v4646_v61 = vadd.f32 %v6293_v25, %v4645_v49  ;;  %v6295_v42 = vsel %vm2101_vm6, 1.0, %v7328_v29  ;;  %7225 = vmatpush3.bf16.msra.mxu1 %v7176_v57  ;;  %v6281_v22 = vsel %vm2087_vm7, 1.0, %v7328_v29 }
  0xef   : > { %v7875_v53 = vpop.permute.xlu1 %448  ;;  %v7877_v55 = vpop.permute.xlu0 %444  ;;  %v8081_v7 = vrot.slane %v7824_v1, %v7425_v10  ;;  %v6282_v9 = vsel %vm2088_vm8, 1.0, %v7328_v29  ;;  %v4596_v15 = vadd.f32 %v6280_v44, %v4595_v41  ;;  %v6283_v13 = vsel %vm2089_vm9, 1.0, %v7328_v29 }
  0xf0   : > { %vm2102_vm10 = vcmp.eq.s32.totalorder %v7877_v55, %v7441_v24  ;;  %vm2103_vm11 = vcmp.eq.s32.totalorder %v7877_v55, %v7452_v28  ;;  %v4647_v55 = vadd.f32 %v6295_v42, %v4646_v61  ;;  %v8098_v0 = vrot.slane %v7824_v1, %v7430_v12 }
  0xf1   : > { %692 = vbcast.lane.b32.xlu1 %v7656_v31, 352  ;;  %688 = vbcast.lane.b32.xlu0 %v7656_v31, 344  ;;  %v4562_v31 = vrot.slane %v7887_v11, 4  ;;  %v6296_v18 = vsel %vm2102_vm10, 1.0, %v7328_v29  ;;  %v4615_v51 = vadd.f32 %v6281_v22, %v4614_v50  ;;  %vm2090_vm12 = vcmp.eq.s32.totalorder %v7758_v63, %v7441_v24 }
  0xf2   : > { %vm2104_vm13 = vcmp.eq.s32.totalorder %v7875_v53, %v7441_v24  ;;  %v6297_v2 = vsel %vm2103_vm11, 1.0, %v7328_v29  ;;  %v4597_v1 = vadd.f32 %v6282_v9, %v4596_v15  ;;  %vm2091_vm3 = vcmp.eq.s32.totalorder %v7758_v63, %v7452_v28 }
  0xf3   : > { %v7918_v23 = vpop.permute.xlu1 %456  ;;  %v7920_v38 = vpop.permute.xlu0 %452  ;;  %v4563_v30 = vadd.f32 %v4562_v31, %v7887_v11  ;;  %v4547_v11 = vrot.slane %v7905_v3, 1  ;;  %v6292_v31 = vsel %vm2098_vm0, 1.0, %v7328_v29  ;;  %vm2105_vm4 = vcmp.eq.s32.totalorder %v7875_v53, %v7452_v28 }
  0xf4   : > { %v4627_v58 = vadd.f32 %v6292_v31, %v4626_v35  ;;  %v6298_v57 = vsel %vm2104_vm13, 1.0, %v7328_v29  ;;  %v4648_v37 = vadd.f32 %v6297_v2, %v4647_v55  ;;  %v6299_v52 = vsel %vm2105_vm4, 1.0, %v7328_v29 }
  0xf5   : > { %703 = vbcast.lane.b32.xlu1 %v7854_v43, 264  ;;  %699 = vbcast.lane.b32.xlu0 %v7854_v43, 256  ;;  %v4564_v26 = vrot.slane %v4563_v30, 2  ;;  %vm2106_vm7 = vcmp.eq.s32.totalorder %v7920_v38, %v7441_v24  ;;  %vm2107_vm8 = vcmp.eq.s32.totalorder %v7920_v38, %v7452_v28  ;;  %vm2108_vm11 = vcmp.eq.s32.totalorder %v7918_v23, %v7441_v24 }
  0xf6   : > { %v4628_v16 = vadd.f32 %v6294_v5, %v4627_v58  ;;  %v4649_v5 = vadd.f32 %v6299_v52, %v4648_v37  ;;  %v6300_v61 = vsel %vm2106_vm7, 1.0, %v7328_v29  ;;  %v4616_v22 = vadd.f32 %v6283_v13, %v4615_v51 }
  0xf7   : > { %v7959_v32 = vpop.permute.xlu1 %464  ;;  %v7961_v47 = vpop.permute.xlu0 %460  ;;  %v8083_v59 = vadd.f32 %v4564_v26, %v4563_v30  ;;  %v6302_v38 = vsel %vm2108_vm11, 1.0, %v7328_v29 }
  0xf8   : > { %v4629_v17 = vadd.f32 %v6296_v18, %v4628_v16 }
  0xf9   : > { %711 = vbcast.lane.b32.xlu1 %v7854_v43, 280  ;;  %707 = vbcast.lane.b32.xlu0 %v7854_v43, 272 }
  0xfa   : > { %v4630_v26 = vadd.f32 %v6298_v57, %v4629_v17 }
  0xfb   : > { %v8003_v54 = vpop.permute.xlu1 %472  ;;  %v8005_v21 = vpop.permute.xlu0 %468 }
  0xfc   : > { %v4631_v18 = vadd.f32 %v6300_v61, %v4630_v26  ;;  %vm2117_vm7 = vcmp.eq.s32.totalorder %v8003_v54, %v7452_v28 }
  0xfd   : > { %719 = vbcast.lane.b32.xlu1 %v7854_v43, 296  ;;  %715 = vbcast.lane.b32.xlu0 %v7854_v43, 288 }
  0xff   : > { %v484_v14 = vpop.permute.xlu1 %483  ;;  %v8035_v19 = vpop.permute.xlu0 %479 }
 0x100   : > { %vm2120_vm14 = vcmp.eq.s32.totalorder %v484_v14, %v7441_v24  ;;  %vm2121_vm15 = vcmp.eq.s32.totalorder %v484_v14, %v7452_v28  ;;  %vm2118_vm0 = vcmp.eq.s32.totalorder %v8035_v19, %v7441_v24  ;;  %vm2119_vm1 = vcmp.eq.s32.totalorder %v8035_v19, %v7452_v28 }
 0x101   : > { %727 = vbcast.lane.b32.xlu1 %v7854_v43, 312  ;;  %723 = vbcast.lane.b32.xlu0 %v7854_v43, 304  ;;  %v6314_v35 = vsel %vm2120_vm14, 1.0, %v7328_v29  ;;  %v6315_v46 = vsel %vm2121_vm15, 1.0, %v7328_v29  ;;  %v6312_v49 = vsel %vm2118_vm0, 1.0, %v7328_v29  ;;  %v6313_v31 = vsel %vm2119_vm1, 1.0, %v7328_v29 }
 0x102   : > { %v6284_v14 = vsel %vm2090_vm12, 1.0, %v7328_v29  ;;  %v6285_v19 = vsel %vm2091_vm3, 1.0, %v7328_v29  ;;  %v4663_v63 = vadd.f32 %v6314_v35, %v6312_v49  ;;  %v4682_v44 = vadd.f32 %v6315_v46, %v6313_v31 }
 0x103   : > { %v8070_v62 = vpop.permute.xlu1 %491  ;;  %v488_v36 = vpop.permute.xlu0 %487  ;;  %v4598_v53 = vsel %vm4521_vm2, %v6284_v14, 0.0  ;;  %vm2109_vm12 = vcmp.eq.s32.totalorder %v7918_v23, %v7452_v28  ;;  %v4617_v9 = vsel %vm4521_vm2, %v6285_v19, 0.0  ;;  %vm2112_vm15 = vcmp.eq.s32.totalorder %v7959_v32, %v7441_v24 }
 0x104   : > { %vm2122_vm5 = vcmp.eq.s32.totalorder %v488_v36, %v7441_v24  ;;  %vm2123_vm6 = vcmp.eq.s32.totalorder %v488_v36, %v7452_v28  ;;  %vm2124_vm9 = vcmp.eq.s32.totalorder %v8070_v62, %v7441_v24  ;;  %vm2125_vm10 = vcmp.eq.s32.totalorder %v8070_v62, %v7452_v28 }
 0x105   : > { %735 = vbcast.lane.b32.xlu1 %v7854_v43, 328  ;;  %731 = vbcast.lane.b32.xlu0 %v7854_v43, 320  ;;  %v6316_v41 = vsel %vm2122_vm5, 1.0, %v7328_v29  ;;  %v6317_v58 = vsel %vm2123_vm6, 1.0, %v7328_v29  ;;  %v6318_v15 = vsel %vm2124_vm9, 1.0, %v7328_v29  ;;  %v6319_v16 = vsel %vm2125_vm10, 1.0, %v7328_v29 }
 0x106   : > { %v4664_v62 = vadd.f32 %v6316_v41, %v4663_v63  ;;  %v4683_v36 = vadd.f32 %v6317_v58, %v4682_v44  ;;  %v8174_v55 = vadd.f32 %v4598_v53, %v4597_v1  ;;  %v6303_v13 = vsel %vm2109_vm12, 1.0, %v7328_v29 }
 0x107   : > { %v8105_v56 = vpop.permute.xlu1 %499  ;;  %v8107_v30 = vpop.permute.xlu0 %495  ;;  %vm2113_vm0 = vcmp.eq.s32.totalorder %v7959_v32, %v7452_v28  ;;  %vm2110_vm1 = vcmp.eq.s32.totalorder %v7961_v47, %v7441_v24  ;;  %v8196_v23 = vadd.f32 %v4617_v9, %v4616_v22  ;;  %vm2111_vm3 = vcmp.eq.s32.totalorder %v7961_v47, %v7452_v28 }
 0x108   : > { %vm2126_vm13 = vcmp.eq.s32.totalorder %v8107_v30, %v7441_v24  ;;  %vm2127_vm14 = vcmp.eq.s32.totalorder %v8107_v30, %v7452_v28  ;;  %v4665_v30 = vadd.f32 %v6318_v15, %v4664_v62  ;;  %v4684_v17 = vadd.f32 %v6319_v16, %v4683_v36 }
 0x109   : > { %743 = vbcast.lane.b32.xlu1 %v7854_v43, 344  ;;  %739 = vbcast.lane.b32.xlu0 %v7854_v43, 336  ;;  %v6320_v57 = vsel %vm2126_vm13, 1.0, %v7328_v29  ;;  %v6321_v37 = vsel %vm2127_vm14, 1.0, %v7328_v29  ;;  %v4600_v35 = vrot.slane %v8174_v55, 4  ;;  %v4632_v46 = vadd.f32 %v6302_v38, %v4631_v18 }
 0x10a   : > { %vm2128_vm4 = vcmp.eq.s32.totalorder %v8105_v56, %v7441_v24  ;;  %vm2129_vm5 = vcmp.eq.s32.totalorder %v8105_v56, %v7452_v28  ;;  %v8213_v49 = vsel %vm2112_vm15, 1.0, %v7328_v29  ;;  %v6307_v31 = vsel %vm2113_vm0, 1.0, %v7328_v29 }
 0x10b   : > { %v8128_v40 = vpop.permute.xlu1 %507  ;;  %v8130_v25 = vpop.permute.xlu0 %503  ;;  %v6304_v19 = vsel %vm2110_vm1, 1.0, %v7328_v29  ;;  %v6305_v56 = vsel %vm2111_vm3, 1.0, %v7328_v29  ;;  %vm2116_vm6 = vcmp.eq.s32.totalorder %v8003_v54, %v7441_v24  ;;  %v4666_v41 = vadd.f32 %v6320_v57, %v4665_v30 }
 0x10c   : > { %v4685_v32 = vadd.f32 %v6321_v37, %v4684_v17  ;;  %v6322_v58 = vsel %vm2128_vm4, 1.0, %v7328_v29  ;;  %v6323_v63 = vsel %vm2129_vm5, 1.0, %v7328_v29  ;;  %v4633_v47 = vadd.f32 %v6304_v19, %v4632_v46 }
 0x10d   : > { %754 = vbcast.lane.b32.xlu1 %v7898_v48, 256  ;;  %747 = vbcast.lane.b32.xlu0 %v7854_v43, 352  ;;  %v6301_v43 = vsel %vm2107_vm8, 1.0, %v7328_v29  ;;  %vm2130_vm8 = vcmp.eq.s32.totalorder %v8130_v25, %v7441_v24  ;;  %vm2114_vm9 = vcmp.eq.s32.totalorder %v8005_v21, %v7441_v24  ;;  %vm2115_vm10 = vcmp.eq.s32.totalorder %v8005_v21, %v7452_v28 }
 0x10e   : > { %v4650_v51 = vadd.f32 %v6301_v43, %v4649_v5  ;;  %vm2131_vm11 = vcmp.eq.s32.totalorder %v8130_v25, %v7452_v28  ;;  %vm2132_vm12 = vcmp.eq.s32.totalorder %v8128_v40, %v7441_v24  ;;  %vm2133_vm13 = vcmp.eq.s32.totalorder %v8128_v40, %v7452_v28 }
 0x10f   : > { %v8160_v50 = vpop.permute.xlu1 %515  ;;  %v8162_v42 = vpop.permute.xlu0 %511  ;;  %v4667_v61 = vadd.f32 %v6322_v58, %v4666_v41  ;;  %v4686_v43 = vadd.f32 %v6323_v63, %v4685_v32  ;;  %v6324_v62 = vsel %vm2130_vm8, 1.0, %v7328_v29  ;;  %v6325_v25 = vsel %vm2131_vm11, 1.0, %v7328_v29 }
 0x110   : > { %v4651_v14 = vadd.f32 %v6303_v13, %v4650_v51  ;;  %v6310_v16 = vsel %vm2116_vm6, 1.0, %v7328_v29  ;;  %v6311_v18 = vsel %vm2117_vm7, 1.0, %v7328_v29  ;;  %v6308_v30 = vsel %vm2114_vm9, 1.0, %v7328_v29 }
 0x111   : > { %762 = vbcast.lane.b32.xlu1 %v7898_v48, 272  ;;  %758 = vbcast.lane.b32.xlu0 %v7898_v48, 264  ;;  %v4668_v17 = vadd.f32 %v6324_v62, %v4667_v61  ;;  %v4687_v57 = vadd.f32 %v6325_v25, %v4686_v43  ;;  %v6326_v54 = vsel %vm2132_vm12, 1.0, %v7328_v29  ;;  %v6327_v46 = vsel %vm2133_vm13, 1.0, %v7328_v29 }
 0x112   : > { %v4652_v44 = vadd.f32 %v6305_v56, %v4651_v14  ;;  %vm2134_vm5 = vcmp.eq.s32.totalorder %v8162_v42, %v7441_v24  ;;  %vm2135_vm6 = vcmp.eq.s32.totalorder %v8162_v42, %v7452_v28  ;;  %v4634_v58 = vadd.f32 %v8213_v49, %v4633_v47 }
 0x113   : > { %v8188_v2 = vpop.permute.xlu1 %523  ;;  %v8190_v1 = vpop.permute.xlu0 %519  ;;  %v6309_v42 = vsel %vm2115_vm10, 1.0, %v7328_v29  ;;  %v4669_v63 = vadd.f32 %v6326_v54, %v4668_v17  ;;  %vm2136_vm11 = vcmp.eq.s32.totalorder %v8160_v50, %v7441_v24  ;;  %vm2137_vm12 = vcmp.eq.s32.totalorder %v8160_v50, %v7452_v28 }
 0x114   : > { %v4653_v56 = vadd.f32 %v6307_v31, %v4652_v44  ;;  %v6328_v31 = vsel %vm2134_vm5, 1.0, %v7328_v29  ;;  %v6329_v44 = vsel %vm2135_vm6, 1.0, %v7328_v29  ;;  %v4636_v47 = vsel %vm4521_vm2, %v6310_v16, 0.0 }
 0x115   : > { %770 = vbcast.lane.b32.xlu1 %v7898_v48, 288  ;;  %766 = vbcast.lane.b32.xlu0 %v7898_v48, 280  ;;  %v4655_v25 = vsel %vm4521_vm2, %v6311_v18, 0.0 }
 0x116   : > { %v4654_v43 = vadd.f32 %v6309_v42, %v4653_v56 }
 0x117   : > { %v535_v52 = vpop.permute.xlu1 %534  ;;  %v8220_v26 = vpop.permute.xlu0 %527 }
 0x118   : > { %vm2145_vm14 = vcmp.eq.s32.totalorder %v535_v52, %v7452_v28  ;;  %vm2144_vm0 = vcmp.eq.s32.totalorder %v535_v52, %v7441_v24  ;;  %vm2142_vm5 = vcmp.eq.s32.totalorder %v8220_v26, %v7441_v24 }
 0x119   : > { %778 = vbcast.lane.b32.xlu1 %v7898_v48, 304  ;;  %774 = vbcast.lane.b32.xlu0 %v7898_v48, 296  ;;  %v6339_v36 = vsel %vm2145_vm14, 1.0, %v7328_v29  ;;  %v6338_v37 = vsel %vm2144_vm0, 1.0, %v7328_v29  ;;  %vm2138_vm14 = vcmp.eq.s32.totalorder %v8190_v1, %v7441_v24 }
 0x11b   : > { %v543_v53 = vpop.permute.xlu1 %542  ;;  %v539_v5 = vpop.permute.xlu0 %538 }
 0x11c   : > { %vm2149_vm15 = vcmp.eq.s32.totalorder %v543_v53, %v7452_v28  ;;  %vm2146_vm1 = vcmp.eq.s32.totalorder %v539_v5, %v7441_v24  ;;  %vm2147_vm3 = vcmp.eq.s32.totalorder %v539_v5, %v7452_v28  ;;  %vm2148_vm4 = vcmp.eq.s32.totalorder %v543_v53, %v7441_v24 }
 0x11d   : > { %786 = vbcast.lane.b32.xlu1 %v7898_v48, 320  ;;  %v6343_v22 = vsel %vm2149_vm15, 1.0, %v7328_v29  ;;  %v6340_v9 = vsel %vm2146_vm1, 1.0, %v7328_v29  ;;  %v6341_v15 = vsel %vm2147_vm3, 1.0, %v7328_v29  ;;  %782 = vbcast.lane.b32.xlu0 %v7898_v48, 312  ;;  %v6342_v52 = vsel %vm2148_vm4, 1.0, %v7328_v29 }
 0x11e   : > { %v4720_v38 = vadd.f32 %v6341_v15, %v6339_v36  ;;  %v4701_v14 = vadd.f32 %v6340_v9, %v6338_v37  ;;  %v4688_v53 = vadd.f32 %v6327_v46, %v4687_v57  ;;  %v4635_v36 = vadd.f32 %v6308_v30, %v4634_v58 }
 0x11f   : > { %v551_v13 = vpop.permute.xlu1 %550  ;;  %v547_v51 = vpop.permute.xlu0 %546  ;;  %v6330_v15 = vsel %vm2136_vm11, 1.0, %v7328_v29  ;;  %vm2139_vm15 = vcmp.eq.s32.totalorder %v8190_v1, %v7452_v28  ;;  %v4656_v30 = vadd.f32 %v4655_v25, %v4654_v43  ;;  %v8341_v1 = vadd.f32 %v4600_v35, %v8174_v55 }
 0x120   : > { %v4721_v19 = vadd.f32 %v6343_v22, %v4720_v38  ;;  %vm2151_vm7 = vcmp.eq.s32.totalorder %v547_v51, %v7452_v28  ;;  %vm2153_vm8 = vcmp.eq.s32.totalorder %v551_v13, %v7452_v28  ;;  %vm2150_vm9 = vcmp.eq.s32.totalorder %v547_v51, %v7441_v24 }
 0x121   : > { %794 = vbcast.lane.b32.xlu1 %v7898_v48, 336  ;;  %790 = vbcast.lane.b32.xlu0 %v7898_v48, 328  ;;  %v6345_v40 = vsel %vm2151_vm7, 1.0, %v7328_v29  ;;  %v4702_v5 = vadd.f32 %v6342_v52, %v4701_v14  ;;  %v6347_v21 = vsel %vm2153_vm8, 1.0, %v7328_v29  ;;  %v6344_v49 = vsel %vm2150_vm9, 1.0, %v7328_v29 }
 0x122   : > { %v4722_v61 = vadd.f32 %v6345_v40, %v4721_v19  ;;  %vm2152_vm10 = vcmp.eq.s32.totalorder %v551_v13, %v7441_v24  ;;  %v4670_v22 = vadd.f32 %v6328_v31, %v4669_v63  ;;  %v4689_v9 = vadd.f32 %v6329_v44, %v4688_v53 }
 0x123   : > { %v8291_v41 = vpop.permute.xlu1 %558  ;;  %v555_v32 = vpop.permute.xlu0 %554  ;;  %v4703_v38 = vadd.f32 %v6344_v49, %v4702_v5  ;;  %v6346_v13 = vsel %vm2152_vm10, 1.0, %v7328_v29  ;;  %v4619_v51 = vrot.slane %v8196_v23, 4  ;;  %v8343_v37 = vadd.f32 %v4636_v47, %v4635_v36 }
 0x124   : > { %vm2155_vm13 = vcmp.eq.s32.totalorder %v555_v32, %v7452_v28  ;;  %v4723_v16 = vadd.f32 %v6347_v21, %v4722_v61  ;;  %vm2157_vm0 = vcmp.eq.s32.totalorder %v8291_v41, %v7452_v28  ;;  %vm2154_vm1 = vcmp.eq.s32.totalorder %v555_v32, %v7441_v24 }
 0x125   : > { %802 = vbcast.lane.b32.xlu1 %v7898_v48, 352  ;;  %798 = vbcast.lane.b32.xlu0 %v7898_v48, 344  ;;  %v6331_v48 = vsel %vm2137_vm12, 1.0, %v7328_v29  ;;  %v6349_v18 = vsel %vm2155_vm13, 1.0, %v7328_v29  ;;  %v4671_v54 = vadd.f32 %v6330_v15, %v4670_v22  ;;  %v6332_v14 = vsel %vm2138_vm14, 1.0, %v7328_v29 }
 0x126   : > { %v4690_v46 = vadd.f32 %v6331_v48, %v4689_v9  ;;  %v6333_v19 = vsel %vm2139_vm15, 1.0, %v7328_v29  ;;  %v4704_v52 = vadd.f32 %v6346_v13, %v4703_v38  ;;  %v4724_v56 = vadd.f32 %v6349_v18, %v4723_v16 }
 0x127   : > { %v8315_v62 = vpop.permute.xlu1 %566  ;;  %v8317_v50 = vpop.permute.xlu0 %562  ;;  %vm2140_vm3 = vcmp.eq.s32.totalorder %v8188_v2, %v7441_v24  ;;  %vm2141_vm4 = vcmp.eq.s32.totalorder %v8188_v2, %v7452_v28  ;;  %v6351_v55 = vsel %vm2157_vm0, 1.0, %v7328_v29  ;;  %v6348_v35 = vsel %vm2154_vm1, 1.0, %v7328_v29 }
 0x128   : > { %v4657_v40 = vrot.slane %v4656_v30, 4  ;;  %vm2156_vm6 = vcmp.eq.s32.totalorder %v8291_v41, %v7441_v24  ;;  %vm2159_vm7 = vcmp.eq.s32.totalorder %v8317_v50, %v7452_v28  ;;  %v4602_v2 = vrot.slane %v8341_v1, 2 }
 0x129   : > { %813 = vbcast.lane.b32.xlu1 %v7902_v39, 264  ;;  %809 = vbcast.lane.b32.xlu0 %v7902_v39, 256  ;;  %v8365_v58 = vadd.f32 %v4619_v51, %v8196_v23  ;;  %v4672_v42 = vadd.f32 %v6332_v14, %v4671_v54  ;;  %v4691_v63 = vadd.f32 %v6333_v19, %v4690_v46  ;;  %v6334_v31 = vsel %vm2140_vm3, 1.0, %v7328_v29 }
 0x12a   : > { %v6335_v44 = vsel %vm2141_vm4, 1.0, %v7328_v29  ;;  %v4705_v5 = vadd.f32 %v6348_v35, %v4704_v52  ;;  %v4725_v41 = vadd.f32 %v6351_v55, %v4724_v56  ;;  %vm2143_vm8 = vcmp.eq.s32.totalorder %v8220_v26, %v7452_v28 }
 0x12b   : > { %v8334_v17 = vpop.permute.xlu1 %574  ;;  %v8336_v57 = vpop.permute.xlu0 %570  ;;  %v6336_v61 = vsel %vm2142_vm5, 1.0, %v7328_v29  ;;  %v6350_v23 = vsel %vm2156_vm6, 1.0, %v7328_v29  ;;  %v6353_v21 = vsel %vm2159_vm7, 1.0, %v7328_v29  ;;  %v4638_v49 = vrot.slane %v8343_v37, 4 }
 0x12c   : > { %v8379_v47 = vadd.f32 %v4657_v40, %v4656_v30  ;;  %vm2161_vm9 = vcmp.eq.s32.totalorder %v8315_v62, %v7452_v28  ;;  %vm2158_vm11 = vcmp.eq.s32.totalorder %v8317_v50, %v7441_v24  ;;  %v4673_v26 = vadd.f32 %v6334_v31, %v4672_v42 }
 0x12d   : > { %821 = vbcast.lane.b32.xlu1 %v7902_v39, 280  ;;  %817 = vbcast.lane.b32.xlu0 %v7902_v39, 272  ;;  %v8385_v25 = vadd.f32 %v6335_v44, %v4691_v63  ;;  %v6337_v22 = vsel %vm2143_vm8, 1.0, %v7328_v29  ;;  %v4674_v9 = vsel %vm4521_vm2, %v6336_v61, 0.0  ;;  %v4706_v15 = vadd.f32 %v6350_v23, %v4705_v5 }
 0x12e   : > { %v4726_v48 = vadd.f32 %v6353_v21, %v4725_v41  ;;  %v6355_v38 = vsel %vm2161_vm9, 1.0, %v7328_v29  ;;  %v6352_v50 = vsel %vm2158_vm11, 1.0, %v7328_v29  ;;  %v8401_v54 = vadd.f32 %v4674_v9, %v4673_v26 }
 0x12f   : > { %v8361_v32 = vpop.permute.xlu1 %582  ;;  %v8367_v53 = vpop.permute.xlu0 %578  ;;  %v8404_v46 = vsel %vm4521_vm2, %v6337_v22, 0.0  ;;  %vm2160_vm1 = vcmp.eq.s32.totalorder %v8315_v62, %v7441_v24  ;;  %v4707_v19 = vadd.f32 %v6352_v50, %v4706_v15  ;;  %vm2163_vm3 = vcmp.eq.s32.totalorder %v8336_v57, %v7452_v28 }
 0x130   : > { %v4727_v52 = vadd.f32 %v6355_v38, %v4726_v48  ;;  %v6354_v61 = vsel %vm2160_vm1, 1.0, %v7328_v29  ;;  %vm2165_vm8 = vcmp.eq.s32.totalorder %v8334_v17, %v7452_v28  ;;  %vm2162_vm9 = vcmp.eq.s32.totalorder %v8336_v57, %v7441_v24 }
 0x131   : > { %829 = vbcast.lane.b32.xlu1 %v7902_v39, 296  ;;  %825 = vbcast.lane.b32.xlu0 %v7902_v39, 288  ;;  %v6357_v23 = vsel %vm2163_vm3, 1.0, %v7328_v29  ;;  %v4708_v15 = vadd.f32 %v6354_v61, %v4707_v19  ;;  %v6356_v19 = vsel %vm2162_vm9, 1.0, %v7328_v29  ;;  %vm2167_vm1 = vcmp.eq.s32.totalorder %v8367_v53, %v7452_v28 }
 0x132   : > { %v4728_v48 = vadd.f32 %v6357_v23, %v4727_v52  ;;  %vm2169_vm3 = vcmp.eq.s32.totalorder %v8361_v32, %v7452_v28  ;;  %v4676_v57 = vrot.slane %v8401_v54, 4 }
 0x133   : > { %v594_v43 = vpop.permute.xlu1 %593  ;;  %v590_v36 = vpop.permute.xlu0 %589  ;;  %v6363_v61 = vsel %vm2169_vm3, 1.0, %v7328_v29 }
 0x134   : > { %vm2172_vm12 = vcmp.eq.s32.totalorder %v594_v43, %v7441_v24  ;;  %vm2173_vm10 = vcmp.eq.s32.totalorder %v594_v43, %v7452_v28  ;;  %vm2170_vm13 = vcmp.eq.s32.totalorder %v590_v36, %v7441_v24  ;;  %vm2171_vm14 = vcmp.eq.s32.totalorder %v590_v36, %v7452_v28 }
 0x135   : > { %837 = vbcast.lane.b32.xlu1 %v7902_v39, 312  ;;  %833 = vbcast.lane.b32.xlu0 %v7902_v39, 304  ;;  %v6366_v16 = vsel %vm2172_vm12, 1.0, %v7328_v29  ;;  %v6367_v13 = vsel %vm2173_vm10, 1.0, %v7328_v29  ;;  %v6364_v18 = vsel %vm2170_vm13, 1.0, %v7328_v29  ;;  %v6365_v51 = vsel %vm2171_vm14, 1.0, %v7328_v29 }
 0x136   : > { %v4739_v56 = vadd.f32 %v6366_v16, %v6364_v18  ;;  %v4758_v55 = vadd.f32 %v6367_v13, %v6365_v51 }
 0x137   : > { %v602_v30 = vpop.permute.xlu1 %601  ;;  %v598_v14 = vpop.permute.xlu0 %597 }
 0x138   : > { %vm2176_vm15 = vcmp.eq.s32.totalorder %v602_v30, %v7441_v24  ;;  %vm2177_vm0 = vcmp.eq.s32.totalorder %v602_v30, %v7452_v28  ;;  %vm2174_vm4 = vcmp.eq.s32.totalorder %v598_v14, %v7441_v24  ;;  %vm2175_vm5 = vcmp.eq.s32.totalorder %v598_v14, %v7452_v28 }
 0x139   : > { %845 = vbcast.lane.b32.xlu1 %v7902_v39, 328  ;;  %841 = vbcast.lane.b32.xlu0 %v7902_v39, 320  ;;  %v6370_v35 = vsel %vm2176_vm15, 1.0, %v7328_v29  ;;  %v6371_v40 = vsel %vm2177_vm0, 1.0, %v7328_v29  ;;  %v6368_v42 = vsel %vm2174_vm4, 1.0, %v7328_v29  ;;  %v6369_v63 = vsel %vm2175_vm5, 1.0, %v7328_v29 }
 0x13a   : > { %v4740_v44 = vadd.f32 %v6368_v42, %v4739_v56  ;;  %v4759_v5 = vadd.f32 %v6369_v63, %v4758_v55  ;;  %vm2164_vm0 = vcmp.eq.s32.totalorder %v8334_v17, %v7441_v24  ;;  %v6359_v14 = vsel %vm2165_vm8, 1.0, %v7328_v29 }
 0x13b   : > { %v610_v31 = vpop.permute.xlu1 %609  ;;  %v606_v41 = vpop.permute.xlu0 %605  ;;  %v4694_v42 = vadd.f32 %v8404_v46, %v8385_v25  ;;  %v6358_v63 = vsel %vm2164_vm0, 1.0, %v7328_v29  ;;  %v6361_v25 = vsel %vm2167_vm1, 1.0, %v7328_v29 }
 0x13c   : > { %vm2180_vm6 = vcmp.eq.s32.totalorder %v610_v31, %v7441_v24  ;;  %vm2181_vm7 = vcmp.eq.s32.totalorder %v610_v31, %v7452_v28  ;;  %v4741_v21 = vadd.f32 %v6370_v35, %v4740_v44  ;;  %v4760_v43 = vadd.f32 %v6371_v40, %v4759_v5 }
 0x13d   : > { %853 = vbcast.lane.b32.xlu1 %v7902_v39, 344  ;;  %vm2178_vm11 = vcmp.eq.s32.totalorder %v606_v41, %v7441_v24  ;;  %vm2179_vm12 = vcmp.eq.s32.totalorder %v606_v41, %v7452_v28  ;;  %849 = vbcast.lane.b32.xlu0 %v7902_v39, 336  ;;  %v6374_v62 = vsel %vm2180_vm6, 1.0, %v7328_v29  ;;  %v6375_v26 = vsel %vm2181_vm7, 1.0, %v7328_v29 }
 0x13e   : > { %v6372_v36 = vsel %vm2178_vm11, 1.0, %v7328_v29  ;;  %v6373_v22 = vsel %vm2179_vm12, 1.0, %v7328_v29  ;;  %v4709_v31 = vadd.f32 %v6356_v19, %v4708_v15  ;;  %v4729_v44 = vadd.f32 %v6359_v14, %v4728_v48 }
 0x13f   : > { %v618_v9 = vpop.permute.xlu1 %617  ;;  %v4742_v38 = vadd.f32 %v6372_v36, %v4741_v21  ;;  %v4761_v50 = vadd.f32 %v6373_v22, %v4760_v43  ;;  %v614_v16 = vpop.permute.xlu0 %613  ;;  %vm2168_vm6 = vcmp.eq.s32.totalorder %v8361_v32, %v7441_v24  ;;  %vm2166_vm7 = vcmp.eq.s32.totalorder %v8367_v53, %v7441_v24 }
 0x140   : > { %vm2184_vm10 = vcmp.eq.s32.totalorder %v618_v9, %v7441_v24  ;;  %vm2185_vm13 = vcmp.eq.s32.totalorder %v618_v9, %v7452_v28  ;;  %vm2182_vm14 = vcmp.eq.s32.totalorder %v614_v16, %v7441_v24  ;;  %vm2183_vm15 = vcmp.eq.s32.totalorder %v614_v16, %v7452_v28 }
 0x141   : > { %864 = vbcast.lane.b32.xlu1 %v8081_v7, 256  ;;  %v4743_v13 = vadd.f32 %v6374_v62, %v4742_v38  ;;  %v4762_v18 = vadd.f32 %v6375_v26, %v4761_v50  ;;  %v6376_v51 = vsel %vm2182_vm14, 1.0, %v7328_v29  ;;  %v6377_v30 = vsel %vm2183_vm15, 1.0, %v7328_v29  ;;  %857 = vbcast.lane.b32.xlu0 %v7902_v39, 352 }
 0x142   : > { %v6378_v56 = vsel %vm2184_vm10, 1.0, %v7328_v29  ;;  %v6379_v39 = vsel %vm2185_vm13, 1.0, %v7328_v29  ;;  %v4621_v43 = vrot.slane %v8365_v58, 2  ;;  %v4695_v62 = vrot.slane %v4694_v42, 4 }
 0x143   : > { %v626_v52 = vpop.permute.xlu1 %625  ;;  %v4744_v55 = vadd.f32 %v6376_v51, %v4743_v13  ;;  %v4763_v35 = vadd.f32 %v6377_v30, %v4762_v18  ;;  %v622_v40 = vpop.permute.xlu0 %621  ;;  %v8497_v26 = vadd.f32 %v4638_v49, %v8343_v37  ;;  %v6362_v53 = vsel %vm2168_vm6, 1.0, %v7328_v29 }
 0x144   : > { %vm2186_vm4 = vcmp.eq.s32.totalorder %v622_v40, %v7441_v24  ;;  %vm2187_vm5 = vcmp.eq.s32.totalorder %v622_v40, %v7452_v28  ;;  %vm2188_vm8 = vcmp.eq.s32.totalorder %v626_v52, %v7441_v24  ;;  %vm2189_vm9 = vcmp.eq.s32.totalorder %v626_v52, %v7452_v28 }
 0x145   : > { %872 = vbcast.lane.b32.xlu1 %v8081_v7, 272  ;;  %868 = vbcast.lane.b32.xlu0 %v8081_v7, 264  ;;  %v4745_v46 = vadd.f32 %v6378_v56, %v4744_v55  ;;  %v4764_v5 = vadd.f32 %v6379_v39, %v4763_v35  ;;  %v6380_v17 = vsel %vm2186_vm4, 1.0, %v7328_v29  ;;  %v6381_v23 = vsel %vm2187_vm5, 1.0, %v7328_v29 }
 0x146   : > { %v4710_v36 = vadd.f32 %v6358_v63, %v4709_v31  ;;  %v4730_v22 = vadd.f32 %v6361_v25, %v4729_v44  ;;  %v4731_v9 = vsel %vm4521_vm2, %v6363_v61, 0.0  ;;  %v6360_v15 = vsel %vm2166_vm7, 1.0, %v7328_v29 }
 0x147   : > { %v8483_v41 = vpop.permute.xlu1 %633  ;;  %v630_v21 = vpop.permute.xlu0 %629  ;;  %v4746_v48 = vadd.f32 %v6380_v17, %v4745_v46  ;;  %v4765_v38 = vadd.f32 %v6381_v23, %v4764_v5  ;;  %v4659_v16 = vrot.slane %v8379_v47, 2  ;;  %v8508_v37 = vadd.f32 %v4676_v57, %v8401_v54 }
 0x148   : > { %v6382_v49 = vsel %vm2188_vm8, 1.0, %v7328_v29  ;;  %v6383_v32 = vsel %vm2189_vm9, 1.0, %v7328_v29  ;;  %v8512_v18 = vadd.f32 %v4695_v62, %v4694_v42  ;;  %v8515_v51 = vsel %vm4521_vm2, %v6362_v53, 0.0 }
 0x149   : > { %880 = vbcast.lane.b32.xlu1 %v8081_v7, 288  ;;  %876 = vbcast.lane.b32.xlu0 %v8081_v7, 280  ;;  %vm2190_vm11 = vcmp.eq.s32.totalorder %v630_v21, %v7441_v24  ;;  %vm2191_vm12 = vcmp.eq.s32.totalorder %v630_v21, %v7452_v28  ;;  %v8520_v30 = vadd.f32 %v6360_v15, %v4710_v36 }
 0x14a   : > { %v8522_v54 = vadd.f32 %v4731_v9, %v4730_v22  ;;  %vm2192_vm14 = vcmp.eq.s32.totalorder %v8483_v41, %v7441_v24  ;;  %vm2193_vm15 = vcmp.eq.s32.totalorder %v8483_v41, %v7452_v28  ;;  %v4747_v14 = vadd.f32 %v6382_v49, %v4746_v48 }
 0x14b   : > { %v645_v50 = vpop.permute.xlu1 %644  ;;  %v638_v13 = vpop.permute.xlu0 %637  ;;  %v4766_v19 = vadd.f32 %v6383_v32, %v4765_v38  ;;  %v6384_v56 = vsel %vm2190_vm11, 1.0, %v7328_v29  ;;  %v6385_v39 = vsel %vm2191_vm12, 1.0, %v7328_v29  ;;  %v6386_v5 = vsel %vm2192_vm14, 1.0, %v7328_v29 }
 0x14c   : > { %vm2196_vm10 = vcmp.eq.s32.totalorder %v645_v50, %v7441_v24  ;;  %vm2197_vm13 = vcmp.eq.s32.totalorder %v645_v50, %v7452_v28  ;;  %vm2194_vm5 = vcmp.eq.s32.totalorder %v638_v13, %v7441_v24  ;;  %vm2195_vm6 = vcmp.eq.s32.totalorder %v638_v13, %v7452_v28 }
 0x14d   : > { %888 = vbcast.lane.b32.xlu1 %v8081_v7, 304  ;;  %884 = vbcast.lane.b32.xlu0 %v8081_v7, 296  ;;  %v6390_v35 = vsel %vm2196_vm10, 1.0, %v7328_v29  ;;  %v6391_v40 = vsel %vm2197_vm13, 1.0, %v7328_v29  ;;  %v6387_v61 = vsel %vm2193_vm15, 1.0, %v7328_v29  ;;  %v4748_v23 = vadd.f32 %v6384_v56, %v4747_v14 }
 0x14e   : > { %v4767_v21 = vadd.f32 %v6385_v39, %v4766_v19  ;;  %v6388_v36 = vsel %vm2194_vm5, 1.0, %v7328_v29  ;;  %v6389_v22 = vsel %vm2195_vm6, 1.0, %v7328_v29 }
 0x14f   : > { %v653_v52 = vpop.permute.xlu1 %652  ;;  %v649_v55 = vpop.permute.xlu0 %648  ;;  %v4769_v14 = vsel %vm4521_vm2, %v6389_v22, 0.0 }
 0x150   : > { %vm2200_vm0 = vcmp.eq.s32.totalorder %v653_v52, %v7441_v24  ;;  %vm2201_vm1 = vcmp.eq.s32.totalorder %v653_v52, %v7452_v28  ;;  %vm2198_vm3 = vcmp.eq.s32.totalorder %v649_v55, %v7441_v24  ;;  %vm2199_vm4 = vcmp.eq.s32.totalorder %v649_v55, %v7452_v28 }
 0x151   : > { %896 = vbcast.lane.b32.xlu1 %v8081_v7, 320  ;;  %v6394_v42 = vsel %vm2200_vm0, 1.0, %v7328_v29  ;;  %v6395_v57 = vsel %vm2201_vm1, 1.0, %v7328_v29  ;;  %v6392_v63 = vsel %vm2198_vm3, 1.0, %v7328_v29  ;;  %v6393_v31 = vsel %vm2199_vm4, 1.0, %v7328_v29  ;;  %892 = vbcast.lane.b32.xlu0 %v8081_v7, 312 }
 0x152   : > { %v4777_v44 = vadd.f32 %v6392_v63, %v6390_v35  ;;  %v4796_v25 = vadd.f32 %v6393_v31, %v6391_v40  ;;  %v4768_v13 = vadd.f32 %v6387_v61, %v4767_v21  ;;  %v4749_v55 = vadd.f32 %v6386_v5, %v4748_v23 }
 0x153   : > { %v661_v46 = vpop.permute.xlu1 %660  ;;  %v657_v17 = vpop.permute.xlu0 %656  ;;  %v4750_v35 = vsel %vm4521_vm2, %v6388_v36, 0.0  ;;  %v4733_v23 = vrot.slane %v8522_v54, 4 }
 0x154   : > { %vm2204_vm7 = vcmp.eq.s32.totalorder %v661_v46, %v7441_v24  ;;  %vm2205_vm8 = vcmp.eq.s32.totalorder %v661_v46, %v7452_v28  ;;  %v4778_v62 = vadd.f32 %v6394_v42, %v4777_v44  ;;  %v4797_v53 = vadd.f32 %v6395_v57, %v4796_v25 }
 0x155   : > { %904 = vbcast.lane.b32.xlu1 %v8081_v7, 336  ;;  %vm2202_vm9 = vcmp.eq.s32.totalorder %v657_v17, %v7441_v24  ;;  %vm2203_vm11 = vcmp.eq.s32.totalorder %v657_v17, %v7452_v28  ;;  %900 = vbcast.lane.b32.xlu0 %v8081_v7, 328  ;;  %v6398_v41 = vsel %vm2204_vm7, 1.0, %v7328_v29  ;;  %v6399_v9 = vsel %vm2205_vm8, 1.0, %v7328_v29 }
 0x156   : > { %v6396_v15 = vsel %vm2202_vm9, 1.0, %v7328_v29  ;;  %v6397_v48 = vsel %vm2203_vm11, 1.0, %v7328_v29  ;;  %v4713_v25 = vadd.f32 %v8515_v51, %v8520_v30  ;;  %v4770_v46 = vadd.f32 %v4769_v14, %v4768_v13 }
 0x157   : > { %v669_v38 = vpop.permute.xlu1 %668  ;;  %v4779_v50 = vadd.f32 %v6396_v15, %v4778_v62  ;;  %v4798_v49 = vadd.f32 %v6397_v48, %v4797_v53  ;;  %v665_v32 = vpop.permute.xlu0 %664  ;;  %v4751_v21 = vadd.f32 %v4750_v35, %v4749_v55 }
 0x158   : > { %vm2208_vm12 = vcmp.eq.s32.totalorder %v669_v38, %v7441_v24  ;;  %vm2209_vm10 = vcmp.eq.s32.totalorder %v669_v38, %v7452_v28  ;;  %vm2206_vm13 = vcmp.eq.s32.totalorder %v665_v32, %v7441_v24  ;;  %vm2207_vm14 = vcmp.eq.s32.totalorder %v665_v32, %v7452_v28 }
 0x159   : > { %912 = vbcast.lane.b32.xlu1 %v8081_v7, 352  ;;  %v4780_v19 = vadd.f32 %v6398_v41, %v4779_v50  ;;  %v4799_v52 = vadd.f32 %v6399_v9, %v4798_v49  ;;  %v6400_v56 = vsel %vm2206_vm13, 1.0, %v7328_v29  ;;  %v6401_v39 = vsel %vm2207_vm14, 1.0, %v7328_v29  ;;  %908 = vbcast.lane.b32.xlu0 %v8081_v7, 344 }
 0x15a   : > { %v6402_v40 = vsel %vm2208_vm12, 1.0, %v7328_v29  ;;  %v6403_v42 = vsel %vm2209_vm10, 1.0, %v7328_v29  ;;  %v4714_v41 = vrot.slane %v4713_v25, 4  ;;  %v4771_v9 = vrot.slane %v4770_v46, 4 }
 0x15b   : > { %v677_v57 = vpop.permute.xlu1 %676  ;;  %v4781_v63 = vadd.f32 %v6400_v56, %v4780_v19  ;;  %v4800_v31 = vadd.f32 %v6401_v39, %v4799_v52  ;;  %v673_v44 = vpop.permute.xlu0 %672  ;;  %v4734_v49 = vadd.f32 %v4733_v23, %v8522_v54  ;;  %v4752_v32 = vrot.slane %v4751_v21, 4 }
 0x15c   : > { %vm2212_vm15 = vcmp.eq.s32.totalorder %v677_v57, %v7441_v24  ;;  %vm2213_vm0 = vcmp.eq.s32.totalorder %v677_v57, %v7452_v28  ;;  %vm2210_vm1 = vcmp.eq.s32.totalorder %v673_v44, %v7441_v24  ;;  %vm2211_vm3 = vcmp.eq.s32.totalorder %v673_v44, %v7452_v28 }
 0x15d   : > { %923 = vbcast.lane.b32.xlu1 %v8098_v0, 264  ;;  %v4782_v7 = vadd.f32 %v6402_v40, %v4781_v63  ;;  %v4801_v5 = vadd.f32 %v6403_v42, %v4800_v31  ;;  %v6404_v61 = vsel %vm2210_vm1, 1.0, %v7328_v29  ;;  %v6405_v17 = vsel %vm2211_vm3, 1.0, %v7328_v29  ;;  %919 = vbcast.lane.b32.xlu0 %v8098_v0, 256 }
 0x15e   : > { %v6406_v51 = vsel %vm2212_vm15, 1.0, %v7328_v29  ;;  %v6407_v30 = vsel %vm2213_vm0, 1.0, %v7328_v29  ;;  %v4715_v54 = vadd.f32 %v4714_v41, %v4713_v25  ;;  %v4772_v40 = vadd.f32 %v4771_v9, %v4770_v46 }
 0x15f   : > { %v685_v62 = vpop.permute.xlu1 %684  ;;  %v4783_v53 = vadd.f32 %v6404_v61, %v4782_v7  ;;  %v4802_v36 = vadd.f32 %v6405_v17, %v4801_v5  ;;  %v681_v22 = vpop.permute.xlu0 %680  ;;  %v4697_v61 = vrot.slane %v8512_v18, 2  ;;  %v4753_v17 = vadd.f32 %v4752_v32, %v4751_v21 }
 0x160   : > { %vm2216_vm4 = vcmp.eq.s32.totalorder %v685_v62, %v7441_v24  ;;  %vm2217_vm5 = vcmp.eq.s32.totalorder %v685_v62, %v7452_v28  ;;  %vm2214_vm6 = vcmp.eq.s32.totalorder %v681_v22, %v7441_v24  ;;  %vm2215_vm7 = vcmp.eq.s32.totalorder %v681_v22, %v7452_v28 }
 0x161   : > { %931 = vbcast.lane.b32.xlu1 %v8098_v0, 280  ;;  %v4784_v15 = vadd.f32 %v6406_v51, %v4783_v53  ;;  %v4803_v48 = vadd.f32 %v6407_v30, %v4802_v36  ;;  %v6408_v38 = vsel %vm2214_vm6, 1.0, %v7328_v29  ;;  %v6409_v50 = vsel %vm2215_vm7, 1.0, %v7328_v29  ;;  %927 = vbcast.lane.b32.xlu0 %v8098_v0, 272 }
 0x162   : > { %v6410_v13 = vsel %vm2216_vm4, 1.0, %v7328_v29  ;;  %v6411_v14 = vsel %vm2217_vm5, 1.0, %v7328_v29  ;;  %v4584_v51 = vadd.f32 %v4583_v34, %v8043_v33  ;;  %v4622_v30 = vadd.f32 %v4621_v43, %v8365_v58 }
 0x163   : > { %v693_v19 = vpop.permute.xlu1 %692  ;;  %v4785_v52 = vadd.f32 %v6408_v38, %v4784_v15  ;;  %v4804_v56 = vadd.f32 %v6409_v50, %v4803_v48  ;;  %v689_v39 = vpop.permute.xlu0 %688  ;;  %v4640_v62 = vrot.slane %v8497_v26, 2  ;;  %v4735_v53 = vrot.slane %v4734_v49, 2 }
 0x164   : > { %vm2220_vm8 = vcmp.eq.s32.totalorder %v693_v19, %v7441_v24  ;;  %vm2221_vm9 = vcmp.eq.s32.totalorder %v693_v19, %v7452_v28  ;;  %vm2218_vm11 = vcmp.eq.s32.totalorder %v689_v39, %v7441_v24  ;;  %vm2219_vm12 = vcmp.eq.s32.totalorder %v689_v39, %v7452_v28 }
 0x165   : > { %v6414_v55 = vsel %vm2220_vm8, 1.0, %v7328_v29  ;;  %v6415_v35 = vsel %vm2221_vm9, 1.0, %v7328_v29  ;;  %939 = vbcast.lane.b32.xlu1 %v8098_v0, 296  ;;  %v4786_v42 = vadd.f32 %v6410_v13, %v4785_v52  ;;  %v4805_v57 = vadd.f32 %v6411_v14, %v4804_v56  ;;  %935 = vbcast.lane.b32.xlu0 %v8098_v0, 288 }
 0x166   : > { %v4788_v63 = vsel %vm4521_vm2, %v6414_v55, 0.0  ;;  %v4807_v31 = vsel %vm4521_vm2, %v6415_v35, 0.0  ;;  %v6412_v44 = vsel %vm2218_vm11, 1.0, %v7328_v29  ;;  %v6413_v7 = vsel %vm2219_vm12, 1.0, %v7328_v29 }
 0x167   : > { %v8615_v5 = vpop.permute.xlu1 %703  ;;  %v4787_v23 = vadd.f32 %v6412_v44, %v4786_v42  ;;  %v4806_v25 = vadd.f32 %v6413_v7, %v4805_v57  ;;  %v8618_v46 = vpop.permute.xlu0 %699  ;;  %v4678_v36 = vrot.slane %v8508_v37, 2  ;;  %v4773_v41 = vrot.slane %v4772_v40, 2 }
 0x168   : > { %vm5827_vm10 = vcmask 1041409   ;;  %v4566_v9 = vrot.slane %v8083_v59, 1  ;;  %v4603_v33 = vadd.f32 %v4602_v2, %v8341_v1  ;;  %v4660_v34 = vadd.f32 %v4659_v16, %v8379_v47 }
 0x169   : > { %947 = vbcast.lane.b32.xlu1 %v8098_v0, 312  ;;  %v4789_v21 = vadd.f32 %v4788_v63, %v4787_v23  ;;  %v4808_v22 = vadd.f32 %v4807_v31, %v4806_v25  ;;  %943 = vbcast.lane.b32.xlu0 %v8098_v0, 304  ;;  %v4716_v58 = vrot.slane %v4715_v54, 2  ;;  %vm5829_vm13 = vcmask 1042434  }
 0x16a   : > { %v4698_v15 = vadd.f32 %v4697_v61, %v8512_v18  ;;  %v4754_v48 = vrot.slane %v4753_v17, 2  ;;  %vm5831_vm14 = vcmask 1043459   ;;  %v4585_v13 = vrot.slane %v4584_v51, 1 }
 0x16b   : > { %v8637_v43 = vpop.permute.xlu1 %711  ;;  %v4790_v38 = vrot.slane %v4789_v21, 4  ;;  %v4809_v50 = vrot.slane %v4808_v22, 4  ;;  %v8640_v32 = vpop.permute.xlu0 %707  ;;  %v4623_v14 = vrot.slane %v4622_v30, 1  ;;  %v4641_v1 = vadd.f32 %v4640_v62, %v8497_v26 }
 0x16c   : > { %v4736_v2 = vadd.f32 %v4735_v53, %v4734_v49  ;;  %vm12228_vm15 = vcmask 1044484   ;;  %v4679_v47 = vadd.f32 %v4678_v36, %v8508_v37  ;;  %v4774_v18 = vadd.f32 %v4773_v41, %v4772_v40  ;;  %v8655_v40 = vld [vmem:[%s7390_s27 + $0x8] sm:$0xff] }
 0x16d   : > { %955 = vbcast.lane.b32.xlu1 %v8098_v0, 328  ;;  %v4791_v16 = vadd.f32 %v4790_v38, %v4789_v21  ;;  %951 = vbcast.lane.b32.xlu0 %v8098_v0, 320  ;;  %v4810_v19 = vadd.f32 %v4809_v50, %v4808_v22  ;;  %v4548_v52 = vadd.f32 %v4547_v11, %v7905_v3  ;;  %v4604_v56 = vrot.slane %v4603_v33, 1 }
 0x16e   : > { %v4661_v39 = vrot.slane %v4660_v34, 1  ;;  %v4717_v55 = vadd.f32 %v4716_v58, %v4715_v54  ;;  %v4699_v35 = vrot.slane %v4698_v15, 1  ;;  %v4755_v37 = vadd.f32 %v4754_v48, %v4753_v17 }
 0x16f   : > { %v8649_v26 = vpop.permute.xlu1 %719  ;;  %v8651_v49 = vpop.permute.xlu0 %715  ;;  %v4811_v42 = vrot.slane %v4810_v19, 2  ;;  %v4792_v57 = vrot.slane %v4791_v16, 2  ;;  %v4586_v63 = vadd.f32 %v4585_v13, %v4584_v51  ;;  %v4642_v31 = vrot.slane %v4641_v1, 1 }
 0x170   : > { %v8659_v3 = vrot.slane %v8655_v40, %v7437_v20  ;;  %v4737_v11 = vrot.slane %v4736_v2, 1  ;;  %v4567_v54 = vadd.f32 %v4566_v9, %v8083_v59  ;;  %v4624_v44 = vadd.f32 %v4623_v14, %v4622_v30 }
 0x171   : > { %963 = vbcast.lane.b32.xlu1 %v8098_v0, 344  ;;  %v4680_v7 = vrot.slane %v4679_v47, 1  ;;  %959 = vbcast.lane.b32.xlu0 %v8098_v0, 336  ;;  %v4775_v61 = vrot.slane %v4774_v18, 1  ;;  %v4662_v23 = vadd.f32 %v4661_v39, %v4660_v34  ;;  %v4812_v25 = vadd.f32 %v4811_v42, %v4810_v19 }
 0x172   : > { %v4718_v51 = vrot.slane %v4717_v55, 1  ;;  %v4793_v62 = vadd.f32 %v4792_v57, %v4791_v16  ;;  %v4605_v53 = vadd.f32 %v4604_v56, %v4603_v33  ;;  %v4700_v21 = vadd.f32 %v4699_v35, %v4698_v15 }
 0x173   : > { %v8663_v17 = vpop.permute.xlu1 %727  ;;  %v8665_v36 = vpop.permute.xlu0 %723  ;;  %vm12222_vm0 = vcmask 1045509   ;;  %v4756_v22 = vrot.slane %v4755_v37, 1  ;;  %v4643_v41 = vadd.f32 %v4642_v31, %v4641_v1  ;;  %v4738_v59 = vadd.f32 %v4737_v11, %v4736_v2 }
 0x174   : > { %vm12218_vm1 = vcmask 1046534   ;;  %v5841_v30 = vsel %vm5827_vm10, %v4586_v63, %v4548_v52  ;;  %v4681_v9 = vadd.f32 %v4680_v7, %v4679_v47  ;;  %v4776_v34 = vadd.f32 %v4775_v61, %v4774_v18 }
 0x175   : > { %974 = vbcast.lane.b32.xlu1 %v8659_v3, 256  ;;  %967 = vbcast.lane.b32.xlu0 %v8098_v0, 352  ;;  %v5842_v58 = vsel %vm5829_vm13, %v4624_v44, %v5841_v30  ;;  %v5828_v33 = vsel %vm5827_vm10, %v4567_v54, %v8040_v27  ;;  %v4813_v15 = vrot.slane %v4812_v25, 1  ;;  %v4719_v50 = vadd.f32 %v4718_v51, %v4717_v55 }
 0x176   : > { %v5843_v38 = vsel %vm5831_vm14, %v4662_v23, %v5842_v58  ;;  %v4794_v13 = vrot.slane %v4793_v62, 1  ;;  %vm12217_vm3 = vcmask 1047559   ;;  %v4757_v2 = vadd.f32 %v4756_v22, %v4755_v37 }
 0x177   : > { %v8673_v48 = vpop.permute.xlu1 %735  ;;  %v5844_v14 = vsel %vm12228_vm15, %v4700_v21, %v5843_v38  ;;  %v8677_v1 = vpop.permute.xlu0 %731  ;;  %v5830_v0 = vsel %vm5829_vm13, %v4605_v53, %v5828_v33  ;;  %v4814_v47 = vadd.f32 %v4813_v15, %v4812_v25  ;;  %vm2224_vm4 = vcmp.eq.s32.totalorder %v8615_v5, %v7441_v24 }
 0x178   : > { %v5845_v16 = vsel %vm12222_vm0, %v4738_v59, %v5844_v14  ;;  %v5832_v27 = vsel %vm5831_vm14, %v4643_v41, %v5830_v0  ;;  %v4795_v56 = vadd.f32 %v4794_v13, %v4793_v62  ;;  %vm2225_vm5 = vcmp.eq.s32.totalorder %v8615_v5, %v7452_v28 }
 0x179   : > { %982 = vbcast.lane.b32.xlu1 %v8659_v3, 272  ;;  %v5846_v18 = vsel %vm12218_vm1, %v4776_v34, %v5845_v16  ;;  %v5834_v19 = vsel %vm12228_vm15, %v4681_v9, %v5832_v27  ;;  %978 = vbcast.lane.b32.xlu0 %v8659_v3, 264  ;;  %vm2222_vm6 = vcmp.eq.s32.totalorder %v8618_v46, %v7441_v24  ;;  %v6418_v54 = vsel %vm2224_vm4, 1.0, %v7328_v29 }
 0x17a   : > { %v5847_v52 = vsel %vm12217_vm3, %v4814_v47, %v5846_v18  ;;  %v5836_v39 = vsel %vm12222_vm0, %v4719_v50, %v5834_v19  ;;  %vm2223_vm7 = vcmp.eq.s32.totalorder %v8618_v46, %v7452_v28  ;;  %vm2226_vm8 = vcmp.eq.s32.totalorder %v8640_v32, %v7441_v24 }
 0x17b   : > { %v8688_v55 = vpop.permute.xlu1 %743  ;;  %5962 = vmatprep.mubr.f32.mxu0 %v5847_v52  ;;  %v5838_v35 = vsel %vm12218_vm1, %v4757_v2, %v5836_v39  ;;  %v8691_v42 = vpop.permute.xlu0 %739  ;;  %vm2227_vm9 = vcmp.eq.s32.totalorder %v8640_v32, %v7452_v28  ;;  %v6419_v5 = vsel %vm2225_vm5, 1.0, %v7328_v29  ;;  %v6416_v44 = vsel %vm2222_vm6, 1.0, %v7328_v29 }
 0x17c   : > { %v5840_v37 = vsel %vm12217_vm3, %v4795_v56, %v5838_v35  ;;  %v6417_v7 = vsel %vm2223_vm7, 1.0, %v7328_v29  ;;  %v6420_v46 = vsel %vm2226_vm8, 1.0, %v7328_v29  ;;  %v6421_v61 = vsel %vm2227_vm9, 1.0, %v7328_v29 }
 0x17d   : > { %990 = vbcast.lane.b32.xlu1 %v8659_v3, 288  ;;  %5963 = vmatmul.mubr.f32.vlgmr.msra.gmra.mrb[0].mxu0 %v5840_v37  ;;  %v4815_v32 = vadd.f32 %v6418_v54, %v6416_v44  ;;  %v4834_v25 = vadd.f32 %v6419_v5, %v6417_v7  ;;  %vm2228_vm11 = vcmp.eq.s32.totalorder %v8637_v43, %v7441_v24 }
 0x17e   : > { %986 = vbcast.lane.b32.xlu0 %v8659_v3, 280  ;;  %vm2229_vm12 = vcmp.eq.s32.totalorder %v8637_v43, %v7452_v28  ;;  %v6422_v21 = vsel %vm2228_vm11, 1.0, %v7328_v29  ;;  %vm2230_vm4 = vcmp.eq.s32.totalorder %v8651_v49, %v7441_v24  ;;  %vm2231_vm5 = vcmp.eq.s32.totalorder %v8651_v49, %v7452_v28 }
 0x17f   : > { %v8696_v57 = vpop.permute.xlu1 %754  ;;  %v8698_v63 = vpop.permute.xlu0 %747  ;;  %v4816_v62 = vadd.f32 %v6420_v46, %v4815_v32  ;;  %v4835_v53 = vadd.f32 %v6421_v61, %v4834_v25  ;;  %v6423_v22 = vsel %vm2229_vm12, 1.0, %v7328_v29  ;;  %v8747_v59 = vrot.slane %v8655_v40, %v7510_v60 }
 0x180   : > { %v6424_v34 = vsel %vm2230_vm4, 1.0, %v7328_v29  ;;  %v6425_v58 = vsel %vm2231_vm5, 1.0, %v7328_v29  ;;  %vm2232_vm8 = vcmp.eq.s32.totalorder %v8649_v26, %v7441_v24  ;;  %vm2233_vm9 = vcmp.eq.s32.totalorder %v8649_v26, %v7452_v28 }
 0x181   : > { %998 = vbcast.lane.b32.xlu1 %v8659_v3, 304  ;;  %v4817_v30 = vadd.f32 %v6422_v21, %v4816_v62  ;;  %v4836_v9 = vadd.f32 %v6423_v22, %v4835_v53  ;;  %vm2248_vm11 = vcmp.eq.s32.totalorder %v8696_v57, %v7441_v24  ;;  %vm2249_vm12 = vcmp.eq.s32.totalorder %v8696_v57, %v7452_v28 }
 0x182   : > { %994 = vbcast.lane.b32.xlu0 %v8659_v3, 296  ;;  %v6426_v26 = vsel %vm2232_vm8, 1.0, %v7328_v29  ;;  %v6427_v13 = vsel %vm2233_vm9, 1.0, %v7328_v29  ;;  %vm2234_vm3 = vcmp.eq.s32.totalorder %v8665_v36, %v7441_v24  ;;  %v6442_v2 = vsel %vm2248_vm11, 1.0, %v7328_v29 }
 0x183   : > { %v8710_v31 = vpop.permute.xlu1 %762  ;;  %v759_v11 = vpop.permute.xlu0 %758  ;;  %v4837_v15 = vadd.f32 %v6425_v58, %v4836_v9  ;;  %v6443_v0 = vsel %vm2249_vm12, 1.0, %v7328_v29  ;;  %vm2236_vm9 = vcmp.eq.s32.totalorder %v8663_v17, %v7441_v24  ;;  %vm2237_vm11 = vcmp.eq.s32.totalorder %v8663_v17, %v7452_v28 }
 0x184   : > { %vm2250_vm6 = vcmp.eq.s32.totalorder %v759_v11, %v7441_v24  ;;  %vm2251_vm7 = vcmp.eq.s32.totalorder %v759_v11, %v7452_v28  ;;  %vm2252_vm4 = vcmp.eq.s32.totalorder %v8710_v31, %v7441_v24  ;;  %vm2253_vm5 = vcmp.eq.s32.totalorder %v8710_v31, %v7452_v28 }
 0x185   : > { %1006 = vbcast.lane.b32.xlu1 %v8659_v3, 320  ;;  %v6444_v38 = vsel %vm2250_vm6, 1.0, %v7328_v29  ;;  %v6445_v50 = vsel %vm2251_vm7, 1.0, %v7328_v29  ;;  %vm2235_vm6 = vcmp.eq.s32.totalorder %v8665_v36, %v7452_v28  ;;  %v4838_v19 = vadd.f32 %v6427_v13, %v4837_v15 }
 0x186   : > { %1002 = vbcast.lane.b32.xlu0 %v8659_v3, 312  ;;  %v4853_v16 = vadd.f32 %v6444_v38, %v6442_v2  ;;  %v4872_v27 = vadd.f32 %v6445_v50, %v6443_v0  ;;  %v6446_v52 = vsel %vm2252_vm4, 1.0, %v7328_v29  ;;  %v6447_v56 = vsel %vm2253_vm5, 1.0, %v7328_v29 }
 0x187   : > { %v8724_v23 = vpop.permute.xlu1 %770  ;;  %v8730_v51 = vpop.permute.xlu0 %766  ;;  %v6428_v36 = vsel %vm2234_vm3, 1.0, %v7328_v29  ;;  %v6429_v39 = vsel %vm2235_vm6, 1.0, %v7328_v29  ;;  %v6430_v7 = vsel %vm2236_vm9, 1.0, %v7328_v29  ;;  %v6431_v46 = vsel %vm2237_vm11, 1.0, %v7328_v29 }
 0x188   : > { %vm2254_vm7 = vcmp.eq.s32.totalorder %v8730_v51, %v7441_v24  ;;  %vm2255_vm8 = vcmp.eq.s32.totalorder %v8730_v51, %v7452_v28  ;;  %v4854_v57 = vadd.f32 %v6446_v52, %v4853_v16  ;;  %v4873_v31 = vadd.f32 %v6447_v56, %v4872_v27 }
 0x189   : > { %1014 = vbcast.lane.b32.xlu1 %v8659_v3, 336  ;;  %v4839_v54 = vadd.f32 %v6429_v39, %v4838_v19  ;;  %v6448_v5 = vsel %vm2254_vm7, 1.0, %v7328_v29  ;;  %v6449_v44 = vsel %vm2255_vm8, 1.0, %v7328_v29  ;;  %vm2256_vm3 = vcmp.eq.s32.totalorder %v8724_v23, %v7441_v24 }
 0x18a   : > { %1010 = vbcast.lane.b32.xlu0 %v8659_v3, 328  ;;  %vm2257_vm12 = vcmp.eq.s32.totalorder %v8724_v23, %v7452_v28  ;;  %vm2238_vm4 = vcmp.eq.s32.totalorder %v8677_v1, %v7441_v24  ;;  %vm2239_vm5 = vcmp.eq.s32.totalorder %v8677_v1, %v7452_v28  ;;  %v4855_v32 = vadd.f32 %v6448_v5, %v4854_v57 }
 0x18b   : > { %v8736_v41 = vpop.permute.xlu1 %778  ;;  %v8742_v43 = vpop.permute.xlu0 %774  ;;  %v4874_v25 = vadd.f32 %v6449_v44, %v4873_v31  ;;  %v4840_v62 = vadd.f32 %v6431_v46, %v4839_v54  ;;  %v6450_v53 = vsel %vm2256_vm3, 1.0, %v7328_v29  ;;  %v6451_v23 = vsel %vm2257_vm12, 1.0, %v7328_v29 }
 0x18c   : > { %v6432_v21 = vsel %vm2238_vm4, 1.0, %v7328_v29  ;;  %v6433_v22 = vsel %vm2239_vm5, 1.0, %v7328_v29  ;;  %vm2258_vm6 = vcmp.eq.s32.totalorder %v8742_v43, %v7441_v24  ;;  %vm2259_vm7 = vcmp.eq.s32.totalorder %v8742_v43, %v7452_v28 }
 0x18d   : > { %1022 = vbcast.lane.b32.xlu1 %v8659_v3, 352  ;;  %vm2240_vm8 = vcmp.eq.s32.totalorder %v8673_v48, %v7441_v24  ;;  %vm2241_vm9 = vcmp.eq.s32.totalorder %v8673_v48, %v7452_v28  ;;  %v4856_v9 = vadd.f32 %v6450_v53, %v4855_v32  ;;  %v6452_v15 = vsel %vm2258_vm6, 1.0, %v7328_v29 }
 0x18e   : > { %1018 = vbcast.lane.b32.xlu0 %v8659_v3, 344  ;;  %v4818_v3 = vadd.f32 %v6424_v34, %v4817_v30  ;;  %v4875_v34 = vadd.f32 %v6451_v23, %v4874_v25  ;;  %v6453_v43 = vsel %vm2259_vm7, 1.0, %v7328_v29  ;;  %v6434_v38 = vsel %vm2240_vm8, 1.0, %v7328_v29 }
 0x18f   : > { %v8754_v49 = vpop.permute.xlu1 %786  ;;  %v8760_v33 = vpop.permute.xlu0 %782  ;;  %v6435_v50 = vsel %vm2241_vm9, 1.0, %v7328_v29  ;;  %vm2260_vm11 = vcmp.eq.s32.totalorder %v8736_v41, %v7441_v24  ;;  %vm2261_vm3 = vcmp.eq.s32.totalorder %v8736_v41, %v7452_v28  ;;  %vm2242_vm12 = vcmp.eq.s32.totalorder %v8691_v42, %v7441_v24 }
 0x190   : > { %v4819_v18 = vadd.f32 %v6426_v26, %v4818_v3  ;;  %v4841_v3 = vadd.f32 %v6433_v22, %v4840_v62  ;;  %vm2243_vm4 = vcmp.eq.s32.totalorder %v8691_v42, %v7452_v28  ;;  %v8860_v13 = vrot.slane %v8655_v40, %v7637_v45 }
 0x191   : > { %1033 = vbcast.lane.b32.xlu1 %v8747_v59, 264  ;;  %vm2244_vm5 = vcmp.eq.s32.totalorder %v8688_v55, %v7441_v24  ;;  %vm2245_vm6 = vcmp.eq.s32.totalorder %v8688_v55, %v7452_v28  ;;  %v4857_v41 = vadd.f32 %v6452_v15, %v4856_v9  ;;  %v4876_v2 = vadd.f32 %v6453_v43, %v4875_v34 }
 0x192   : > { %1029 = vbcast.lane.b32.xlu0 %v8747_v59, 256  ;;  %v4820_v11 = vadd.f32 %v6428_v36, %v4819_v18  ;;  %v4842_v16 = vadd.f32 %v6435_v50, %v4841_v3  ;;  %v6454_v42 = vsel %vm2260_vm11, 1.0, %v7328_v29  ;;  %v6455_v27 = vsel %vm2261_vm3, 1.0, %v7328_v29 }
 0x193   : > { %v8776_v14 = vpop.permute.xlu1 %794  ;;  %v8784_v47 = vpop.permute.xlu0 %790  ;;  %v6436_v40 = vsel %vm2242_vm12, 1.0, %v7328_v29  ;;  %v6437_v18 = vsel %vm2243_vm4, 1.0, %v7328_v29  ;;  %vm2262_vm7 = vcmp.eq.s32.totalorder %v8760_v33, %v7441_v24  ;;  %vm2263_vm8 = vcmp.eq.s32.totalorder %v8760_v33, %v7452_v28 }
 0x194   : > { %v4821_v51 = vadd.f32 %v6430_v7, %v4820_v11  ;;  %v6438_v56 = vsel %vm2244_vm5, 1.0, %v7328_v29  ;;  %v6439_v36 = vsel %vm2245_vm6, 1.0, %v7328_v29  ;;  %v4858_v39 = vadd.f32 %v6454_v42, %v4857_v41 }
 0x195   : > { %1041 = vbcast.lane.b32.xlu1 %v8747_v59, 280  ;;  %v4877_v57 = vadd.f32 %v6455_v27, %v4876_v2  ;;  %v4843_v33 = vadd.f32 %v6437_v18, %v4842_v16  ;;  %v6456_v11 = vsel %vm2262_vm7, 1.0, %v7328_v29  ;;  %v6457_v54 = vsel %vm2263_vm8, 1.0, %v7328_v29 }
 0x196   : > { %1037 = vbcast.lane.b32.xlu0 %v8747_v59, 272  ;;  %v4822_v58 = vadd.f32 %v6432_v21, %v4821_v51  ;;  %vm2246_vm4 = vcmp.eq.s32.totalorder %v8698_v63, %v7441_v24  ;;  %vm2247_vm5 = vcmp.eq.s32.totalorder %v8698_v63, %v7452_v28  ;;  %vm2264_vm6 = vcmp.eq.s32.totalorder %v8754_v49, %v7441_v24 }
 0x197   : > { %v8796_v35 = vpop.permute.xlu1 %802  ;;  %v8802_v37 = vpop.permute.xlu0 %798  ;;  %vm2265_vm7 = vcmp.eq.s32.totalorder %v8754_v49, %v7452_v28  ;;  %v4859_v5 = vadd.f32 %v6456_v11, %v4858_v39  ;;  %v4878_v44 = vadd.f32 %v6457_v54, %v4877_v57  ;;  %v6440_v32 = vsel %vm2246_vm4, 1.0, %v7328_v29 }
 0x198   : > { %v4823_v0 = vadd.f32 %v6434_v38, %v4822_v58  ;;  %v6458_v25 = vsel %vm2264_vm6, 1.0, %v7328_v29  ;;  %v6459_v51 = vsel %vm2265_vm7, 1.0, %v7328_v29  ;;  %v4826_v9 = vsel %vm4521_vm2, %v6440_v32, 0.0 }
 0x199   : > { %1049 = vbcast.lane.b32.xlu1 %v8747_v59, 296  ;;  %v4860_v34 = vadd.f32 %v6458_v25, %v4859_v5  ;;  %v4879_v58 = vadd.f32 %v6459_v51, %v4878_v44  ;;  %vm2269_vm4 = vcmp.eq.s32.totalorder %v8776_v14, %v7452_v28  ;;  %v4844_v2 = vadd.f32 %v6439_v36, %v4843_v33  ;;  %v9007_v51 = vld [vmem:[%s7390_s27 + $0x10] sm:$0xff] }
 0x19a   : > { %1045 = vbcast.lane.b32.xlu0 %v8747_v59, 288  ;;  %v4824_v31 = vadd.f32 %v6436_v40, %v4823_v0  ;;  %v6463_v40 = vsel %vm2269_vm4, 1.0, %v7328_v29  ;;  %vm2270_vm7 = vcmp.eq.s32.totalorder %v8802_v37, %v7441_v24 }
 0x19b   : > { %v8814_v17 = vpop.permute.xlu1 %813  ;;  %v8820_v61 = vpop.permute.xlu0 %809  ;;  %v6464_v54 = vsel %vm2270_vm7, 1.0, %v7328_v29 }
 0x19c   : > { %vm2276_vm9 = vcmp.eq.s32.totalorder %v8814_v17, %v7441_v24  ;;  %vm2277_vm11 = vcmp.eq.s32.totalorder %v8814_v17, %v7452_v28  ;;  %vm2274_vm3 = vcmp.eq.s32.totalorder %v8820_v61, %v7441_v24  ;;  %vm2275_vm12 = vcmp.eq.s32.totalorder %v8820_v61, %v7452_v28 }
 0x19d   : > { %1057 = vbcast.lane.b32.xlu1 %v8747_v59, 312  ;;  %v6470_v7 = vsel %vm2276_vm9, 1.0, %v7328_v29  ;;  %v6471_v46 = vsel %vm2277_vm11, 1.0, %v7328_v29  ;;  %v6468_v17 = vsel %vm2274_vm3, 1.0, %v7328_v29  ;;  %v6469_v49 = vsel %vm2275_vm12, 1.0, %v7328_v29 }
 0x19e   : > { %1053 = vbcast.lane.b32.xlu0 %v8747_v59, 304  ;;  %v4825_v61 = vadd.f32 %v6438_v56, %v4824_v31  ;;  %vm2266_vm9 = vcmp.eq.s32.totalorder %v8784_v47, %v7441_v24  ;;  %vm2267_vm11 = vcmp.eq.s32.totalorder %v8784_v47, %v7452_v28  ;;  %v4891_v22 = vadd.f32 %v6470_v7, %v6468_v17 }
 0x19f   : > { %v8832_v1 = vpop.permute.xlu1 %821  ;;  %v8838_v30 = vpop.permute.xlu0 %817  ;;  %v6441_v47 = vsel %vm2247_vm5, 1.0, %v7328_v29  ;;  %v6460_v3 = vsel %vm2266_vm9, 1.0, %v7328_v29  ;;  %v6461_v15 = vsel %vm2267_vm11, 1.0, %v7328_v29  ;;  %vm2272_vm9 = vcmp.eq.s32.totalorder %v8796_v35, %v7441_v24 }
 0x1a0   : > { %vm2278_vm8 = vcmp.eq.s32.totalorder %v8838_v30, %v7441_v24  ;;  %vm2279_vm1 = vcmp.eq.s32.totalorder %v8838_v30, %v7452_v28  ;;  %v4910_v30 = vadd.f32 %v6471_v46, %v6469_v49  ;;  %vm2280_vm3 = vcmp.eq.s32.totalorder %v8832_v1, %v7441_v24 }
 0x1a1   : > { %1065 = vbcast.lane.b32.xlu1 %v8747_v59, 328  ;;  %v6472_v53 = vsel %vm2278_vm8, 1.0, %v7328_v29  ;;  %v6473_v23 = vsel %vm2279_vm1, 1.0, %v7328_v29  ;;  %vm2281_vm12 = vcmp.eq.s32.totalorder %v8832_v1, %v7452_v28  ;;  %vm2268_vm1 = vcmp.eq.s32.totalorder %v8776_v14, %v7441_v24 }
 0x1a2   : > { %1061 = vbcast.lane.b32.xlu0 %v8747_v59, 320  ;;  %v4892_v43 = vadd.f32 %v6472_v53, %v4891_v22  ;;  %v4911_v38 = vadd.f32 %v6473_v23, %v4910_v30  ;;  %v6474_v63 = vsel %vm2280_vm3, 1.0, %v7328_v29  ;;  %v6475_v50 = vsel %vm2281_vm12, 1.0, %v7328_v29 }
 0x1a3   : > { %v8850_v48 = vpop.permute.xlu1 %829  ;;  %v8856_v26 = vpop.permute.xlu0 %825  ;;  %v4827_v0 = vadd.f32 %v4826_v9, %v4825_v61  ;;  %v4845_v16 = vsel %vm4521_vm2, %v6441_v47, 0.0  ;;  %v4861_v42 = vadd.f32 %v6460_v3, %v4860_v34  ;;  %v4880_v14 = vadd.f32 %v6461_v15, %v4879_v58 }
 0x1a4   : > { %vm2282_vm5 = vcmp.eq.s32.totalorder %v8856_v26, %v7441_v24  ;;  %vm2283_vm6 = vcmp.eq.s32.totalorder %v8856_v26, %v7452_v28  ;;  %v6462_v27 = vsel %vm2268_vm1, 1.0, %v7328_v29  ;;  %v4893_v18 = vadd.f32 %v6474_v63, %v4892_v43 }
 0x1a5   : > { %1073 = vbcast.lane.b32.xlu1 %v8747_v59, 344  ;;  %v4912_v56 = vadd.f32 %v6475_v50, %v4911_v38  ;;  %vm2271_vm8 = vcmp.eq.s32.totalorder %v8802_v37, %v7452_v28  ;;  %v6476_v26 = vsel %vm2282_vm5, 1.0, %v7328_v29  ;;  %v6477_v39 = vsel %vm2283_vm6, 1.0, %v7328_v29 }
 0x1a6   : > { %1069 = vbcast.lane.b32.xlu0 %v8747_v59, 336  ;;  %vm2273_vm11 = vcmp.eq.s32.totalorder %v8796_v35, %v7452_v28  ;;  %vm2284_vm3 = vcmp.eq.s32.totalorder %v8850_v48, %v7441_v24  ;;  %vm2285_vm12 = vcmp.eq.s32.totalorder %v8850_v48, %v7452_v28  ;;  %v4828_v37 = vrot.slane %v4827_v0, 4 }
 0x1a7   : > { %v8876_v19 = vpop.permute.xlu1 %837  ;;  %v8878_v52 = vpop.permute.xlu0 %833  ;;  %v4846_v31 = vadd.f32 %v4845_v16, %v4844_v2  ;;  %v4862_v33 = vadd.f32 %v6462_v27, %v4861_v42  ;;  %v4881_v11 = vadd.f32 %v6463_v40, %v4880_v14  ;;  %v6465_v5 = vsel %vm2271_vm8, 1.0, %v7328_v29 }
 0x1a8   : > { %v4894_v35 = vadd.f32 %v6476_v26, %v4893_v18  ;;  %v4913_v44 = vadd.f32 %v6477_v39, %v4912_v56  ;;  %v6466_v46 = vsel %vm2272_vm9, 1.0, %v7328_v29  ;;  %v6467_v48 = vsel %vm2273_vm11, 1.0, %v7328_v29 }
 0x1a9   : > { %1084 = vbcast.lane.b32.xlu1 %v8860_v13, 256  ;;  %v6478_v17 = vsel %vm2284_vm3, 1.0, %v7328_v29  ;;  %v6479_v49 = vsel %vm2285_vm12, 1.0, %v7328_v29  ;;  %vm2286_vm1 = vcmp.eq.s32.totalorder %v8878_v52, %v7441_v24  ;;  %vm2287_vm4 = vcmp.eq.s32.totalorder %v8878_v52, %v7452_v28 }
 0x1aa   : > { %1077 = vbcast.lane.b32.xlu0 %v8747_v59, 352  ;;  %v4863_v32 = vadd.f32 %v6464_v54, %v4862_v33  ;;  %v4882_v25 = vadd.f32 %v6465_v5, %v4881_v11  ;;  %v4864_v53 = vsel %vm4521_vm2, %v6466_v46, 0.0  ;;  %v4883_v23 = vsel %vm4521_vm2, %v6467_v48, 0.0 }
 0x1ab   : > { %v8900_v55 = vpop.permute.xlu1 %845  ;;  %v8910_v59 = vpop.permute.xlu0 %841  ;;  %v4895_v22 = vadd.f32 %v6478_v17, %v4894_v35  ;;  %v4914_v30 = vadd.f32 %v6479_v49, %v4913_v44  ;;  %v4829_v9 = vadd.f32 %v4828_v37, %v4827_v0  ;;  %v4847_v34 = vrot.slane %v4846_v31, 4 }
 0x1ac   : > { %v6480_v52 = vsel %vm2286_vm1, 1.0, %v7328_v29  ;;  %v6481_v58 = vsel %vm2287_vm4, 1.0, %v7328_v29  ;;  %vm2288_vm5 = vcmp.eq.s32.totalorder %v8876_v19, %v7441_v24  ;;  %vm2289_vm6 = vcmp.eq.s32.totalorder %v8876_v19, %v7452_v28 }
 0x1ad   : > { %1092 = vbcast.lane.b32.xlu1 %v8860_v13, 272  ;;  %v9024_v15 = vrot.slane %v9007_v51, %v7410_v4  ;;  %v4865_v43 = vadd.f32 %v4864_v53, %v4863_v32  ;;  %v4884_v38 = vadd.f32 %v4883_v23, %v4882_v25  ;;  %v9029_v63 = vrot.slane %v9007_v51, %v7415_v6 }
 0x1ae   : > { %1088 = vbcast.lane.b32.xlu0 %v8860_v13, 264  ;;  %v9033_v50 = vrot.slane %v9007_v51, %v7420_v8  ;;  %v4896_v2 = vadd.f32 %v6480_v52, %v4895_v22  ;;  %v4915_v0 = vadd.f32 %v6481_v58, %v4914_v30  ;;  %v4830_v42 = vrot.slane %v4829_v9, 2 }
 0x1af   : > { %v8928_v62 = vpop.permute.xlu1 %853  ;;  %v8936_v21 = vpop.permute.xlu0 %849  ;;  %v6482_v14 = vsel %vm2288_vm5, 1.0, %v7328_v29  ;;  %v6483_v27 = vsel %vm2289_vm6, 1.0, %v7328_v29  ;;  %vm2290_vm9 = vcmp.eq.s32.totalorder %v8910_v59, %v7441_v24  ;;  %vm2291_vm11 = vcmp.eq.s32.totalorder %v8910_v59, %v7452_v28 }
 0x1b0   : > { %v4866_v18 = vrot.slane %v4865_v43, 4  ;;  %v4885_v56 = vrot.slane %v4884_v38, 4  ;;  %v4897_v39 = vadd.f32 %v6482_v14, %v4896_v2  ;;  %v6485_v37 = vsel %vm2291_vm11, 1.0, %v7328_v29 }
 0x1b1   : > { %1100 = vbcast.lane.b32.xlu1 %v8860_v13, 288  ;;  %vm2292_vm5 = vcmp.eq.s32.totalorder %v8900_v55, %v7441_v24  ;;  %vm2293_vm6 = vcmp.eq.s32.totalorder %v8900_v55, %v7452_v28  ;;  %v9080_v5 = vadd.f32 %v4830_v42, %v4829_v9  ;;  %vm2295_vm11 = vcmp.eq.s32.totalorder %v8936_v21, %v7452_v28 }
 0x1b2   : > { %1096 = vbcast.lane.b32.xlu0 %v8860_v13, 280  ;;  %v4867_v32 = vadd.f32 %v4866_v18, %v4865_v43  ;;  %v4886_v25 = vadd.f32 %v4885_v56, %v4884_v38  ;;  %v6486_v53 = vsel %vm2292_vm5, 1.0, %v7328_v29  ;;  %v6487_v23 = vsel %vm2293_vm6, 1.0, %v7328_v29 }
 0x1b3   : > { %v8951_v1 = vpop.permute.xlu1 %864  ;;  %v8959_v41 = vpop.permute.xlu0 %857  ;;  %v4832_v9 = vrot.slane %v9080_v5, 1 }
 0x1b4   : > { %vm2300_vm3 = vcmp.eq.s32.totalorder %v8951_v1, %v7441_v24  ;;  %vm2301_vm12 = vcmp.eq.s32.totalorder %v8951_v1, %v7452_v28  ;;  %v6484_v1 = vsel %vm2290_vm9, 1.0, %v7328_v29  ;;  %vm2294_vm9 = vcmp.eq.s32.totalorder %v8936_v21, %v7441_v24 }
 0x1b5   : > { %1108 = vbcast.lane.b32.xlu1 %v8860_v13, 304  ;;  %v6495_v33 = vsel %vm2301_vm12, 1.0, %v7328_v29  ;;  %v4898_v48 = vadd.f32 %v6484_v1, %v4897_v39  ;;  %v4868_v2 = vrot.slane %v4867_v32, 2  ;;  %v6488_v42 = vsel %vm2294_vm9, 1.0, %v7328_v29 }
 0x1b6   : > { %1104 = vbcast.lane.b32.xlu0 %v8860_v13, 296  ;;  %v9135_v21 = vrot.slane %v9007_v51, %v7425_v10 }
 0x1b7   : > { %v8970_v36 = vpop.permute.xlu1 %872  ;;  %v8978_v57 = vpop.permute.xlu0 %868  ;;  %v4899_v58 = vadd.f32 %v6486_v53, %v4898_v48  ;;  %v9143_v1 = vadd.f32 %v4868_v2, %v4867_v32 }
 0x1b8   : > { %vm2302_vm7 = vcmp.eq.s32.totalorder %v8978_v57, %v7441_v24  ;;  %vm2303_vm8 = vcmp.eq.s32.totalorder %v8978_v57, %v7452_v28  ;;  %v4916_v57 = vadd.f32 %v6483_v27, %v4915_v0  ;;  %vm2304_vm1 = vcmp.eq.s32.totalorder %v8970_v36, %v7441_v24 }
 0x1b9   : > { %1116 = vbcast.lane.b32.xlu1 %v8860_v13, 320  ;;  %v6496_v19 = vsel %vm2302_vm7, 1.0, %v7328_v29  ;;  %v6497_v26 = vsel %vm2303_vm8, 1.0, %v7328_v29  ;;  %vm2305_vm4 = vcmp.eq.s32.totalorder %v8970_v36, %v7452_v28  ;;  %v6498_v44 = vsel %vm2304_vm1, 1.0, %v7328_v29 }
 0x1ba   : > { %1112 = vbcast.lane.b32.xlu0 %v8860_v13, 312  ;;  %v4948_v36 = vadd.f32 %v6497_v26, %v6495_v33  ;;  %v6499_v46 = vsel %vm2305_vm4, 1.0, %v7328_v29  ;;  %v4917_v17 = vadd.f32 %v6485_v37, %v4916_v57  ;;  %v4887_v0 = vrot.slane %v4886_v25, 2 }
 0x1bb   : > { %v8992_v7 = vpop.permute.xlu1 %880  ;;  %v8998_v61 = vpop.permute.xlu0 %876  ;;  %vm2296_vm1 = vcmp.eq.s32.totalorder %v8928_v62, %v7441_v24  ;;  %vm2297_vm4 = vcmp.eq.s32.totalorder %v8928_v62, %v7452_v28  ;;  %v4900_v26 = vadd.f32 %v6488_v42, %v4899_v58 }
 0x1bc   : > { %vm2306_vm7 = vcmp.eq.s32.totalorder %v8998_v61, %v7441_v24  ;;  %vm2307_vm8 = vcmp.eq.s32.totalorder %v8998_v61, %v7452_v28  ;;  %v4949_v30 = vadd.f32 %v6499_v46, %v4948_v36  ;;  %v4918_v43 = vadd.f32 %v6487_v23, %v4917_v17 }
 0x1bd   : > { %1124 = vbcast.lane.b32.xlu1 %v8860_v13, 336  ;;  %v6500_v52 = vsel %vm2306_vm7, 1.0, %v7328_v29  ;;  %v6501_v55 = vsel %vm2307_vm8, 1.0, %v7328_v29  ;;  %vm2309_vm12 = vcmp.eq.s32.totalorder %v8992_v7, %v7452_v28  ;;  %v9145_v37 = vadd.f32 %v4887_v0, %v4886_v25 }
 0x1be   : > { %1120 = vbcast.lane.b32.xlu0 %v8860_v13, 328  ;;  %v4950_v27 = vadd.f32 %v6501_v55, %v4949_v30  ;;  %v6491_v33 = vsel %vm2297_vm4, 1.0, %v7328_v29  ;;  %vm2298_vm7 = vcmp.eq.s32.totalorder %v8959_v41, %v7441_v24  ;;  %vm2299_vm8 = vcmp.eq.s32.totalorder %v8959_v41, %v7452_v28 }
 0x1bf   : > { %v9011_v47 = vpop.permute.xlu1 %888  ;;  %v9015_v3 = vpop.permute.xlu0 %884  ;;  %v6492_v25 = vsel %vm2298_vm7, 1.0, %v7328_v29  ;;  %v6493_v53 = vsel %vm2299_vm8, 1.0, %v7328_v29 }
 0x1c0   : > { %vm2310_vm5 = vcmp.eq.s32.totalorder %v9015_v3, %v7441_v24  ;;  %vm2311_vm6 = vcmp.eq.s32.totalorder %v9015_v3, %v7452_v28  ;;  %v9158_v3 = vrot.slane %v9007_v51, %v7430_v12  ;;  %vm2312_vm9 = vcmp.eq.s32.totalorder %v9011_v47, %v7441_v24 }
 0x1c1   : > { %1132 = vbcast.lane.b32.xlu1 %v8860_v13, 352  ;;  %v6504_v62 = vsel %vm2310_vm5, 1.0, %v7328_v29  ;;  %v6505_v46 = vsel %vm2311_vm6, 1.0, %v7328_v29  ;;  %v4902_v2 = vsel %vm4521_vm2, %v6492_v25, 0.0  ;;  %v4921_v0 = vsel %vm4521_vm2, %v6493_v53, 0.0 }
 0x1c2   : > { %1128 = vbcast.lane.b32.xlu0 %v8860_v13, 344  ;;  %v4848_v13 = vadd.f32 %v4847_v34, %v4846_v31  ;;  %v6494_v31 = vsel %vm2300_vm3, 1.0, %v7328_v29  ;;  %vm2308_vm3 = vcmp.eq.s32.totalorder %v8992_v7, %v7441_v24 }
 0x1c3   : > { %v9039_v16 = vpop.permute.xlu1 %896  ;;  %v9049_v40 = vpop.permute.xlu0 %892  ;;  %v4929_v54 = vadd.f32 %v6496_v19, %v6494_v31  ;;  %v6502_v56 = vsel %vm2308_vm3, 1.0, %v7328_v29  ;;  %v6503_v19 = vsel %vm2309_vm12, 1.0, %v7328_v29  ;;  %v6490_v31 = vsel %vm2296_vm1, 1.0, %v7328_v29 }
 0x1c4   : > { %v4849_v35 = vrot.slane %v4848_v13, 2  ;;  %v4901_v48 = vadd.f32 %v6490_v31, %v4900_v26  ;;  %vm2314_vm7 = vcmp.eq.s32.totalorder %v9049_v40, %v7441_v24  ;;  %vm2315_vm8 = vcmp.eq.s32.totalorder %v9049_v40, %v7452_v28  ;;  %v9214_v26 = vld [vmem:[%s7390_s27 + $0x18] sm:$0xff] }
 0x1c5   : > { %1143 = vbcast.lane.b32.xlu1 %v9024_v15, 264  ;;  %v4930_v61 = vadd.f32 %v6498_v44, %v4929_v54  ;;  %v9162_v44 = vrot.slane %v9007_v51, %v7437_v20  ;;  %v9239_v40 = vrot.slane %v9214_v26, %v7410_v4 }
 0x1c6   : > { %1139 = vbcast.lane.b32.xlu0 %v9024_v15, 256  ;;  %v9107_v34 = vadd.f32 %v4849_v35, %v4848_v13  ;;  %v6489_v13 = vsel %vm2295_vm11, 1.0, %v7328_v29  ;;  %v4951_v35 = vadd.f32 %v6503_v19, %v4950_v27  ;;  %vm2313_vm11 = vcmp.eq.s32.totalorder %v9011_v47, %v7452_v28 }
 0x1c7   : > { %v9067_v59 = vpop.permute.xlu1 %904  ;;  %v9073_v11 = vpop.permute.xlu0 %900  ;;  %v4931_v7 = vadd.f32 %v6500_v52, %v4930_v61  ;;  %v4919_v39 = vadd.f32 %v6489_v13, %v4918_v43  ;;  %v6506_v47 = vsel %vm2312_vm9, 1.0, %v7328_v29  ;;  %v6507_v30 = vsel %vm2313_vm11, 1.0, %v7328_v29 }
 0x1c8   : > { %v4851_v18 = vrot.slane %v9107_v34, 1  ;;  %v4952_v61 = vadd.f32 %v6505_v46, %v4951_v35 }
 0x1c9   : > { %1151 = vbcast.lane.b32.xlu1 %v9024_v15, 280  ;;  %v4932_v36 = vadd.f32 %v6502_v56, %v4931_v7  ;;  %v4920_v17 = vadd.f32 %v6491_v33, %v4919_v39  ;;  %v4903_v39 = vadd.f32 %v4902_v2, %v4901_v48  ;;  %v6508_v33 = vsel %vm2314_vm7, 1.0, %v7328_v29 }
 0x1ca   : > { %1147 = vbcast.lane.b32.xlu0 %v9024_v15, 272  ;;  %v9243_v48 = vrot.slane %v9214_v26, %v7415_v6  ;;  %vm2320_vm7 = vcmp.eq.s32.totalorder %v9067_v59, %v7441_v24 }
 0x1cb   : > { %v9089_v49 = vpop.permute.xlu1 %912  ;;  %v9099_v22 = vpop.permute.xlu0 %908  ;;  %v4933_v23 = vadd.f32 %v6504_v62, %v4932_v36  ;;  %v9216_v31 = vadd.f32 %v4921_v0, %v4920_v17  ;;  %v4904_v53 = vrot.slane %v4903_v39, 4 }
 0x1cd   : > { %1159 = vbcast.lane.b32.xlu1 %v9024_v15, 296  ;;  %v4934_v13 = vadd.f32 %v6506_v47, %v4933_v23  ;;  %v4923_v23 = vrot.slane %v9216_v31, 4 }
 0x1ce   : > { %1155 = vbcast.lane.b32.xlu0 %v9024_v15, 288 }
 0x1cf   : > { %v924_v38 = vpop.permute.xlu1 %923  ;;  %v920_v14 = vpop.permute.xlu0 %919  ;;  %v4935_v17 = vadd.f32 %v6508_v33, %v4934_v13 }
 0x1d0   : > { %vm2328_vm3 = vcmp.eq.s32.totalorder %v924_v38, %v7441_v24  ;;  %vm2329_vm12 = vcmp.eq.s32.totalorder %v924_v38, %v7452_v28  ;;  %vm2326_vm1 = vcmp.eq.s32.totalorder %v920_v14, %v7441_v24  ;;  %vm2327_vm4 = vcmp.eq.s32.totalorder %v920_v14, %v7452_v28 }
 0x1d1   : > { %1167 = vbcast.lane.b32.xlu1 %v9024_v15, 312  ;;  %v6522_v52 = vsel %vm2328_vm3, 1.0, %v7328_v29  ;;  %v6523_v55 = vsel %vm2329_vm12, 1.0, %v7328_v29  ;;  %v6520_v58 = vsel %vm2326_vm1, 1.0, %v7328_v29  ;;  %v6521_v43 = vsel %vm2327_vm4, 1.0, %v7328_v29 }
 0x1d2   : > { %1163 = vbcast.lane.b32.xlu0 %v9024_v15, 304  ;;  %v4953_v14 = vadd.f32 %v6507_v30, %v4952_v61  ;;  %v4967_v56 = vadd.f32 %v6522_v52, %v6520_v58  ;;  %v4986_v19 = vadd.f32 %v6523_v55, %v6521_v43  ;;  %vm2316_vm3 = vcmp.eq.s32.totalorder %v9039_v16, %v7441_v24 }
 0x1d3   : > { %v9141_v57 = vpop.permute.xlu1 %931  ;;  %v928_v54 = vpop.permute.xlu0 %927  ;;  %vm2317_vm12 = vcmp.eq.s32.totalorder %v9039_v16, %v7452_v28  ;;  %v6510_v4 = vsel %vm2316_vm3, 1.0, %v7328_v29  ;;  %v9279_v43 = vadd.f32 %v4904_v53, %v4903_v39  ;;  %vm2324_vm3 = vcmp.eq.s32.totalorder %v9089_v49, %v7441_v24 }
 0x1d4   : > { %vm2330_vm5 = vcmp.eq.s32.totalorder %v928_v54, %v7441_v24  ;;  %vm2331_vm6 = vcmp.eq.s32.totalorder %v928_v54, %v7452_v28  ;;  %vm2332_vm9 = vcmp.eq.s32.totalorder %v9141_v57, %v7441_v24  ;;  %vm2333_vm11 = vcmp.eq.s32.totalorder %v9141_v57, %v7452_v28 }
 0x1d5   : > { %1175 = vbcast.lane.b32.xlu1 %v9024_v15, 328  ;;  %v6524_v7 = vsel %vm2330_vm5, 1.0, %v7328_v29  ;;  %v6525_v27 = vsel %vm2331_vm6, 1.0, %v7328_v29  ;;  %v6509_v54 = vsel %vm2315_vm8, 1.0, %v7328_v29  ;;  %v6526_v62 = vsel %vm2332_vm9, 1.0, %v7328_v29 }
 0x1d6   : > { %1171 = vbcast.lane.b32.xlu0 %v9024_v15, 320  ;;  %v4987_v57 = vadd.f32 %v6525_v27, %v4986_v19  ;;  %v6527_v46 = vsel %vm2333_vm11, 1.0, %v7328_v29  ;;  %v4954_v25 = vadd.f32 %v6509_v54, %v4953_v14  ;;  %v6511_v6 = vsel %vm2317_vm12, 1.0, %v7328_v29 }
 0x1d7   : > { %v9175_v32 = vpop.permute.xlu1 %939  ;;  %v9181_v41 = vpop.permute.xlu0 %935  ;;  %vm2318_vm5 = vcmp.eq.s32.totalorder %v9073_v11, %v7441_v24  ;;  %vm2319_vm6 = vcmp.eq.s32.totalorder %v9073_v11, %v7452_v28  ;;  %vm2321_vm8 = vcmp.eq.s32.totalorder %v9067_v59, %v7452_v28  ;;  %v4936_v55 = vadd.f32 %v6510_v4, %v4935_v17 }
 0x1d8   : > { %vm2334_vm1 = vcmp.eq.s32.totalorder %v9181_v41, %v7441_v24  ;;  %vm2335_vm4 = vcmp.eq.s32.totalorder %v9181_v41, %v7452_v28  ;;  %v4988_v47 = vadd.f32 %v6527_v46, %v4987_v57  ;;  %v4955_v58 = vadd.f32 %v6511_v6, %v4954_v25 }
 0x1d9   : > { %1183 = vbcast.lane.b32.xlu1 %v9024_v15, 344  ;;  %v6528_v16 = vsel %vm2334_vm1, 1.0, %v7328_v29  ;;  %v6529_v52 = vsel %vm2335_vm4, 1.0, %v7328_v29  ;;  %vm2336_vm9 = vcmp.eq.s32.totalorder %v9175_v32, %v7441_v24  ;;  %vm2337_vm11 = vcmp.eq.s32.totalorder %v9175_v32, %v7452_v28 }
 0x1da   : > { %1179 = vbcast.lane.b32.xlu0 %v9024_v15, 336  ;;  %v6512_v2 = vsel %vm2318_vm5, 1.0, %v7328_v29  ;;  %v6513_v0 = vsel %vm2319_vm6, 1.0, %v7328_v29  ;;  %v6514_v32 = vsel %vm2320_vm7, 1.0, %v7328_v29  ;;  %vm2325_vm12 = vcmp.eq.s32.totalorder %v9089_v49, %v7452_v28 }
 0x1db   : > { %v9195_v38 = vpop.permute.xlu1 %947  ;;  %v9203_v42 = vpop.permute.xlu0 %943  ;;  %v6530_v11 = vsel %vm2336_vm9, 1.0, %v7328_v29  ;;  %v6531_v19 = vsel %vm2337_vm11, 1.0, %v7328_v29  ;;  %v4937_v39 = vadd.f32 %v6512_v2, %v4936_v55  ;;  %v4956_v49 = vadd.f32 %v6513_v0, %v4955_v58 }
 0x1dc   : > { %vm2338_vm1 = vcmp.eq.s32.totalorder %v9203_v42, %v7441_v24  ;;  %v9306_v33 = vsel %vm2324_vm3, 1.0, %v7328_v29  ;;  %vm2339_vm4 = vcmp.eq.s32.totalorder %v9203_v42, %v7452_v28  ;;  %v9312_v59 = vsel %vm2325_vm12, 1.0, %v7328_v29 }
 0x1dd   : > { %1194 = vbcast.lane.b32.xlu1 %v9029_v63, 256  ;;  %vm2340_vm5 = vcmp.eq.s32.totalorder %v9195_v38, %v7441_v24  ;;  %vm2341_vm6 = vcmp.eq.s32.totalorder %v9195_v38, %v7452_v28  ;;  %v6533_v46 = vsel %vm2339_vm4, 1.0, %v7328_v29  ;;  %vm2322_vm12 = vcmp.eq.s32.totalorder %v9099_v22, %v7441_v24 }
 0x1de   : > { %1187 = vbcast.lane.b32.xlu0 %v9024_v15, 352  ;;  %v4968_v15 = vadd.f32 %v6524_v7, %v4967_v56  ;;  %v4989_v7 = vadd.f32 %v6529_v52, %v4988_v47  ;;  %v6515_v56 = vsel %vm2321_vm8, 1.0, %v7328_v29  ;;  %v4938_v47 = vadd.f32 %v6514_v32, %v4937_v39 }
 0x1df   : > { %v9226_v36 = vpop.permute.xlu1 %955  ;;  %v9232_v35 = vpop.permute.xlu0 %951  ;;  %v6534_v2 = vsel %vm2340_vm5, 1.0, %v7328_v29  ;;  %v6535_v0 = vsel %vm2341_vm6, 1.0, %v7328_v29  ;;  %v4957_v32 = vadd.f32 %v6515_v56, %v4956_v49 }
 0x1e0   : > { %v4969_v41 = vadd.f32 %v6526_v62, %v4968_v15  ;;  %v4990_v57 = vadd.f32 %v6531_v19, %v4989_v7  ;;  %v6532_v62 = vsel %vm2338_vm1, 1.0, %v7328_v29  ;;  %vm2323_vm1 = vcmp.eq.s32.totalorder %v9099_v22, %v7452_v28 }
 0x1e1   : > { %1202 = vbcast.lane.b32.xlu1 %v9029_v63, 272  ;;  %v6517_v19 = vsel %vm2323_vm1, 1.0, %v7328_v29 }
 0x1e2   : > { %1198 = vbcast.lane.b32.xlu0 %v9029_v63, 264  ;;  %v4970_v14 = vadd.f32 %v6528_v16, %v4969_v41  ;;  %v4991_v52 = vadd.f32 %v6533_v46, %v4990_v57  ;;  %v4940_v46 = vsel %vm4521_vm2, %v9306_v33, 0.0 }
 0x1e3   : > { %v9259_v61 = vpop.permute.xlu1 %963  ;;  %v9265_v30 = vpop.permute.xlu0 %959 }
 0x1e4   : > { %v4971_v15 = vadd.f32 %v6530_v11, %v4970_v14  ;;  %v4992_v56 = vadd.f32 %v6535_v0, %v4991_v52 }
 0x1e5   : > { %1210 = vbcast.lane.b32.xlu1 %v9029_v63, 288 }
 0x1e6   : > { %1206 = vbcast.lane.b32.xlu0 %v9029_v63, 280  ;;  %v4972_v16 = vadd.f32 %v6532_v62, %v4971_v15 }
 0x1e7   : > { %v975_v13 = vpop.permute.xlu1 %974  ;;  %v9294_v27 = vpop.permute.xlu0 %967 }
 0x1e8   : > { %vm2353_vm7 = vcmp.eq.s32.totalorder %v975_v13, %v7452_v28  ;;  %vm2352_vm9 = vcmp.eq.s32.totalorder %v975_v13, %v7441_v24  ;;  %v4973_v39 = vadd.f32 %v6534_v2, %v4972_v16 }
 0x1e9   : > { %1218 = vbcast.lane.b32.xlu1 %v9029_v63, 304  ;;  %v6547_v17 = vsel %vm2353_vm7, 1.0, %v7328_v29  ;;  %v6546_v55 = vsel %vm2352_vm9, 1.0, %v7328_v29  ;;  %vm2342_vm7 = vcmp.eq.s32.totalorder %v9232_v35, %v7441_v24 }
 0x1ea   : > { %1214 = vbcast.lane.b32.xlu0 %v9029_v63, 296 }
 0x1eb   : > { %v983_v54 = vpop.permute.xlu1 %982  ;;  %v979_v42 = vpop.permute.xlu0 %978 }
 0x1ec   : > { %vm2357_vm8 = vcmp.eq.s32.totalorder %v983_v54, %v7452_v28  ;;  %vm2354_vm11 = vcmp.eq.s32.totalorder %v979_v42, %v7441_v24  ;;  %vm2355_vm3 = vcmp.eq.s32.totalorder %v979_v42, %v7452_v28  ;;  %vm2356_vm4 = vcmp.eq.s32.totalorder %v983_v54, %v7441_v24 }
 0x1ed   : > { %1226 = vbcast.lane.b32.xlu1 %v9029_v63, 320  ;;  %v6551_v25 = vsel %vm2357_vm8, 1.0, %v7328_v29  ;;  %v6548_v53 = vsel %vm2354_vm11, 1.0, %v7328_v29  ;;  %v6549_v4 = vsel %vm2355_vm3, 1.0, %v7328_v29  ;;  %vm2343_vm8 = vcmp.eq.s32.totalorder %v9232_v35, %v7452_v28 }
 0x1ee   : > { %1222 = vbcast.lane.b32.xlu0 %v9029_v63, 312  ;;  %v5024_v6 = vadd.f32 %v6549_v4, %v6547_v17  ;;  %v5005_v14 = vadd.f32 %v6548_v53, %v6546_v55  ;;  %v6550_v13 = vsel %vm2356_vm4, 1.0, %v7328_v29  ;;  %v6516_v35 = vsel %vm2322_vm12, 1.0, %v7328_v29 }
 0x1ef   : > { %v991_v41 = vpop.permute.xlu1 %990  ;;  %v6536_v54 = vsel %vm2342_vm7, 1.0, %v7328_v29  ;;  %v6537_v15 = vsel %vm2343_vm8, 1.0, %v7328_v29  ;;  %vm2344_vm11 = vcmp.eq.s32.totalorder %v9226_v36, %v7441_v24  ;;  %vm2345_vm3 = vcmp.eq.s32.totalorder %v9226_v36, %v7452_v28 }
 0x1f0   : > { %v987_v58 = vpop.permute.xlu0 %986  ;;  %v5025_v7 = vadd.f32 %v6551_v25, %v5024_v6  ;;  %vm2361_vm5 = vcmp.eq.s32.totalorder %v991_v41, %v7452_v28  ;;  %v5006_v57 = vadd.f32 %v6550_v13, %v5005_v14  ;;  %v4958_v17 = vadd.f32 %v6517_v19, %v4957_v32 }
 0x1f1   : > { %1234 = vbcast.lane.b32.xlu1 %v9029_v63, 336  ;;  %vm2359_vm9 = vcmp.eq.s32.totalorder %v987_v58, %v7452_v28  ;;  %vm2358_vm6 = vcmp.eq.s32.totalorder %v987_v58, %v7441_v24  ;;  %v6555_v22 = vsel %vm2361_vm5, 1.0, %v7328_v29  ;;  %vm2360_vm12 = vcmp.eq.s32.totalorder %v991_v41, %v7441_v24 }
 0x1f2   : > { %1230 = vbcast.lane.b32.xlu0 %v9029_v63, 328  ;;  %v6553_v38 = vsel %vm2359_vm9, 1.0, %v7328_v29  ;;  %v6552_v42 = vsel %vm2358_vm6, 1.0, %v7328_v29  ;;  %v4959_v36 = vsel %vm4521_vm2, %v9312_v59, 0.0  ;;  %v4939_v53 = vadd.f32 %v6516_v35, %v4938_v47 }
 0x1f3   : > { %v9358_v11 = vpop.permute.xlu1 %998  ;;  %v5026_v62 = vadd.f32 %v6553_v38, %v5025_v7  ;;  %v4974_v4 = vadd.f32 %v6536_v54, %v4973_v39  ;;  %v4993_v6 = vadd.f32 %v6537_v15, %v4992_v56  ;;  %v6539_v52 = vsel %vm2345_vm3, 1.0, %v7328_v29 }
 0x1f4   : > { %v995_v49 = vpop.permute.xlu0 %994  ;;  %v5007_v33 = vadd.f32 %v6552_v42, %v5006_v57  ;;  %vm2346_vm4 = vcmp.eq.s32.totalorder %v9265_v30, %v7441_v24  ;;  %vm2347_vm7 = vcmp.eq.s32.totalorder %v9265_v30, %v7452_v28  ;;  %v6554_v59 = vsel %vm2360_vm12, 1.0, %v7328_v29 }
 0x1f5   : > { %1242 = vbcast.lane.b32.xlu1 %v9029_v63, 352  ;;  %vm2363_vm1 = vcmp.eq.s32.totalorder %v995_v49, %v7452_v28  ;;  %v5027_v55 = vadd.f32 %v6555_v22, %v5026_v62  ;;  %v9405_v47 = vadd.f32 %v4923_v23, %v9216_v31  ;;  %v4960_v58 = vadd.f32 %v4959_v36, %v4958_v17 }
 0x1f6   : > { %1238 = vbcast.lane.b32.xlu0 %v9029_v63, 344  ;;  %v6538_v63 = vsel %vm2344_vm11, 1.0, %v7328_v29  ;;  %v6557_v41 = vsel %vm2363_vm1, 1.0, %v7328_v29  ;;  %vm2365_vm8 = vcmp.eq.s32.totalorder %v9358_v11, %v7452_v28  ;;  %vm2362_vm9 = vcmp.eq.s32.totalorder %v995_v49, %v7441_v24 }
 0x1f7   : > { %v9386_v25 = vpop.permute.xlu1 %1006  ;;  %v4906_v30 = vrot.slane %v9279_v43, 2  ;;  %v9413_v0 = vadd.f32 %v4940_v46, %v4939_v53  ;;  %v4975_v14 = vadd.f32 %v6538_v63, %v4974_v4  ;;  %v4994_v7 = vadd.f32 %v6539_v52, %v4993_v6 }
 0x1f8   : > { %v9390_v16 = vpop.permute.xlu0 %1002  ;;  %v6540_v32 = vsel %vm2346_vm4, 1.0, %v7328_v29  ;;  %v6541_v31 = vsel %vm2347_vm7, 1.0, %v7328_v29  ;;  %v5008_v23 = vadd.f32 %v6554_v59, %v5007_v33  ;;  %v5028_v38 = vadd.f32 %v6557_v41, %v5027_v55 }
 0x1f9   : > { %1253 = vbcast.lane.b32.xlu1 %v9033_v50, 264  ;;  %vm2348_vm5 = vcmp.eq.s32.totalorder %v9259_v61, %v7441_v24  ;;  %vm2349_vm6 = vcmp.eq.s32.totalorder %v9259_v61, %v7452_v28  ;;  %v6559_v35 = vsel %vm2365_vm8, 1.0, %v7328_v29  ;;  %v6556_v19 = vsel %vm2362_vm9, 1.0, %v7328_v29 }
 0x1fa   : > { %1249 = vbcast.lane.b32.xlu0 %v9033_v50, 256  ;;  %v4961_v39 = vrot.slane %v4960_v58, 4  ;;  %vm2350_vm11 = vcmp.eq.s32.totalorder %v9294_v27, %v7441_v24  ;;  %vm2364_vm3 = vcmp.eq.s32.totalorder %v9358_v11, %v7441_v24  ;;  %vm2367_vm12 = vcmp.eq.s32.totalorder %v9390_v16, %v7452_v28 }
 0x1fb   : > { %v9410_v2 = vpop.permute.xlu1 %1014  ;;  %v4925_v61 = vrot.slane %v9405_v47, 2  ;;  %v4976_v49 = vadd.f32 %v6540_v32, %v4975_v14  ;;  %v4995_v54 = vadd.f32 %v6541_v31, %v4994_v7  ;;  %v9440_v57 = vrot.slane %v9007_v51, %v7510_v60 }
 0x1fc   : > { %v9415_v13 = vpop.permute.xlu0 %1010  ;;  %v6542_v62 = vsel %vm2348_vm5, 1.0, %v7328_v29  ;;  %v6543_v22 = vsel %vm2349_vm6, 1.0, %v7328_v29  ;;  %v5009_v11 = vadd.f32 %v6556_v19, %v5008_v23  ;;  %v5029_v42 = vadd.f32 %v6559_v35, %v5028_v38 }
 0x1fd   : > { %1261 = vbcast.lane.b32.xlu1 %v9033_v50, 280  ;;  %vm2351_vm1 = vcmp.eq.s32.totalorder %v9294_v27, %v7452_v28  ;;  %v6544_v46 = vsel %vm2350_vm11, 1.0, %v7328_v29  ;;  %v6558_v17 = vsel %vm2364_vm3, 1.0, %v7328_v29  ;;  %v6561_v36 = vsel %vm2367_vm12, 1.0, %v7328_v29 }
 0x1fe   : > { %1257 = vbcast.lane.b32.xlu0 %v9033_v50, 272  ;;  %v4942_v51 = vrot.slane %v9413_v0, 4  ;;  %v9452_v53 = vadd.f32 %v4961_v39, %v4960_v58  ;;  %vm2369_vm4 = vcmp.eq.s32.totalorder %v9386_v25, %v7452_v28  ;;  %vm2366_vm7 = vcmp.eq.s32.totalorder %v9390_v16, %v7441_v24 }
 0x1ff   : > { %v9433_v56 = vpop.permute.xlu1 %1022  ;;  %v4977_v27 = vadd.f32 %v6542_v62, %v4976_v49  ;;  %v9458_v6 = vadd.f32 %v6543_v22, %v4995_v54  ;;  %v6545_v52 = vsel %vm2351_vm1, 1.0, %v7328_v29  ;;  %v4978_v33 = vsel %vm4521_vm2, %v6544_v46, 0.0 }
 0x200   : > { %v9436_v15 = vpop.permute.xlu0 %1018  ;;  %v5010_v55 = vadd.f32 %v6558_v17, %v5009_v11  ;;  %v5030_v59 = vadd.f32 %v6561_v36, %v5029_v42  ;;  %v6563_v41 = vsel %vm2369_vm4, 1.0, %v7328_v29  ;;  %v6560_v16 = vsel %vm2366_vm7, 1.0, %v7328_v29 }
 0x201   : > { %1269 = vbcast.lane.b32.xlu1 %v9033_v50, 296  ;;  %v9474_v23 = vadd.f32 %v4978_v33, %v4977_v27  ;;  %v9477_v38 = vsel %vm4521_vm2, %v6545_v52, 0.0  ;;  %vm2368_vm12 = vcmp.eq.s32.totalorder %v9386_v25, %v7441_v24  ;;  %vm2371_vm1 = vcmp.eq.s32.totalorder %v9415_v13, %v7452_v28 }
 0x202   : > { %1265 = vbcast.lane.b32.xlu0 %v9033_v50, 288  ;;  %v5011_v19 = vadd.f32 %v6560_v16, %v5010_v55  ;;  %v5031_v39 = vadd.f32 %v6563_v41, %v5030_v59  ;;  %v6562_v27 = vsel %vm2368_vm12, 1.0, %v7328_v29 }
 0x203   : > { %v1034_v4 = vpop.permute.xlu1 %1033 }
 0x204   : > { %vm2380_vm8 = vcmp.eq.s32.totalorder %v1034_v4, %v7441_v24  ;;  %vm2381_vm9 = vcmp.eq.s32.totalorder %v1034_v4, %v7452_v28  ;;  %v1030_v63 = vpop.permute.xlu0 %1029 }
 0x205   : > { %1277 = vbcast.lane.b32.xlu1 %v9033_v50, 312  ;;  %vm2378_vm5 = vcmp.eq.s32.totalorder %v1030_v63, %v7441_v24  ;;  %vm2379_vm6 = vcmp.eq.s32.totalorder %v1030_v63, %v7452_v28  ;;  %v6574_v58 = vsel %vm2380_vm8, 1.0, %v7328_v29  ;;  %v6575_v14 = vsel %vm2381_vm9, 1.0, %v7328_v29 }
 0x206   : > { %1273 = vbcast.lane.b32.xlu0 %v9033_v50, 304  ;;  %v6572_v7 = vsel %vm2378_vm5, 1.0, %v7328_v29  ;;  %v6573_v32 = vsel %vm2379_vm6, 1.0, %v7328_v29  ;;  %vm2373_vm5 = vcmp.eq.s32.totalorder %v9410_v2, %v7452_v28  ;;  %vm2370_vm6 = vcmp.eq.s32.totalorder %v9415_v13, %v7441_v24 }
 0x207   : > { %v1042_v31 = vpop.permute.xlu1 %1041  ;;  %v5043_v49 = vadd.f32 %v6574_v58, %v6572_v7  ;;  %v5062_v54 = vadd.f32 %v6575_v14, %v6573_v32  ;;  %v6565_v63 = vsel %vm2371_vm1, 1.0, %v7328_v29  ;;  %v5012_v58 = vadd.f32 %v6562_v27, %v5011_v19 }
 0x208   : > { %vm2384_vm11 = vcmp.eq.s32.totalorder %v1042_v31, %v7441_v24  ;;  %vm2385_vm3 = vcmp.eq.s32.totalorder %v1042_v31, %v7452_v28  ;;  %v1038_v35 = vpop.permute.xlu0 %1037  ;;  %v5032_v14 = vadd.f32 %v6565_v63, %v5031_v39  ;;  %v6567_v39 = vsel %vm2373_vm5, 1.0, %v7328_v29 }
 0x209   : > { %1285 = vbcast.lane.b32.xlu1 %v9033_v50, 328  ;;  %vm2382_vm4 = vcmp.eq.s32.totalorder %v1038_v35, %v7441_v24  ;;  %vm2383_vm7 = vcmp.eq.s32.totalorder %v1038_v35, %v7452_v28  ;;  %v6578_v62 = vsel %vm2384_vm11, 1.0, %v7328_v29  ;;  %v6579_v22 = vsel %vm2385_vm3, 1.0, %v7328_v29 }
 0x20a   : > { %1281 = vbcast.lane.b32.xlu0 %v9033_v50, 320  ;;  %v6576_v11 = vsel %vm2382_vm4, 1.0, %v7328_v29  ;;  %v6577_v42 = vsel %vm2383_vm7, 1.0, %v7328_v29  ;;  %vm2377_vm5 = vcmp.eq.s32.totalorder %v9433_v56, %v7452_v28  ;;  %v4980_v13 = vrot.slane %v9474_v23, 4 }
 0x20b   : > { %v1050_v46 = vpop.permute.xlu1 %1049  ;;  %v5044_v17 = vadd.f32 %v6576_v11, %v5043_v49  ;;  %v5063_v36 = vadd.f32 %v6577_v42, %v5062_v54  ;;  %v5033_v63 = vadd.f32 %v6567_v39, %v5032_v14 }
 0x20c   : > { %vm2388_vm8 = vcmp.eq.s32.totalorder %v1050_v46, %v7441_v24  ;;  %vm2389_vm9 = vcmp.eq.s32.totalorder %v1050_v46, %v7452_v28  ;;  %v1046_v4 = vpop.permute.xlu0 %1045 }
 0x20d   : > { %1293 = vbcast.lane.b32.xlu1 %v9033_v50, 344  ;;  %v5045_v52 = vadd.f32 %v6578_v62, %v5044_v17  ;;  %v5064_v33 = vadd.f32 %v6579_v22, %v5063_v36  ;;  %vm2386_vm11 = vcmp.eq.s32.totalorder %v1046_v4, %v7441_v24  ;;  %vm2387_vm3 = vcmp.eq.s32.totalorder %v1046_v4, %v7452_v28 }
 0x20e   : > { %1289 = vbcast.lane.b32.xlu0 %v9033_v50, 336  ;;  %v6582_v25 = vsel %vm2388_vm8, 1.0, %v7328_v29  ;;  %v6583_v55 = vsel %vm2389_vm9, 1.0, %v7328_v29  ;;  %v6580_v59 = vsel %vm2386_vm11, 1.0, %v7328_v29  ;;  %v6581_v41 = vsel %vm2387_vm3, 1.0, %v7328_v29 }
 0x20f   : > { %v1058_v16 = vpop.permute.xlu1 %1057  ;;  %v5046_v7 = vadd.f32 %v6580_v59, %v5045_v52  ;;  %v5065_v32 = vadd.f32 %v6581_v41, %v5064_v33  ;;  %vm2372_vm8 = vcmp.eq.s32.totalorder %v9410_v2, %v7441_v24  ;;  %v6564_v62 = vsel %vm2370_vm6, 1.0, %v7328_v29 }
 0x210   : > { %v1054_v31 = vpop.permute.xlu0 %1053  ;;  %vm2392_vm12 = vcmp.eq.s32.totalorder %v1058_v16, %v7441_v24  ;;  %vm2393_vm1 = vcmp.eq.s32.totalorder %v1058_v16, %v7452_v28  ;;  %vm2375_vm9 = vcmp.eq.s32.totalorder %v9436_v15, %v7452_v28  ;;  %v4998_v36 = vadd.f32 %v9477_v38, %v9458_v6 }
 0x211   : > { %vm2390_vm4 = vcmp.eq.s32.totalorder %v1054_v31, %v7441_v24  ;;  %vm2391_vm7 = vcmp.eq.s32.totalorder %v1054_v31, %v7452_v28  ;;  %1304 = vbcast.lane.b32.xlu1 %v9135_v21, 256  ;;  %v5047_v35 = vadd.f32 %v6582_v25, %v5046_v7  ;;  %v5066_v49 = vadd.f32 %v6583_v55, %v5065_v32 }
 0x212   : > { %v6584_v54 = vsel %vm2390_vm4, 1.0, %v7328_v29  ;;  %v6585_v19 = vsel %vm2391_vm7, 1.0, %v7328_v29  ;;  %1297 = vbcast.lane.b32.xlu0 %v9033_v50, 352  ;;  %v6586_v11 = vsel %vm2392_vm12, 1.0, %v7328_v29  ;;  %v6587_v50 = vsel %vm2393_vm1, 1.0, %v7328_v29 }
 0x213   : > { %v1066_v22 = vpop.permute.xlu1 %1065  ;;  %v5048_v42 = vadd.f32 %v6584_v54, %v5047_v35  ;;  %v5067_v46 = vadd.f32 %v6585_v19, %v5066_v49  ;;  %v6566_v4 = vsel %vm2372_vm8, 1.0, %v7328_v29  ;;  %v5013_v27 = vadd.f32 %v6564_v62, %v5012_v58 }
 0x214   : > { %v1062_v17 = vpop.permute.xlu0 %1061  ;;  %vm2376_vm3 = vcmp.eq.s32.totalorder %v9433_v56, %v7441_v24  ;;  %v6569_v6 = vsel %vm2375_vm9, 1.0, %v7328_v29  ;;  %v6571_v25 = vsel %vm2377_vm5, 1.0, %v7328_v29  ;;  %vm2374_vm12 = vcmp.eq.s32.totalorder %v9436_v15, %v7441_v24 }
 0x215   : > { %vm2394_vm11 = vcmp.eq.s32.totalorder %v1062_v17, %v7441_v24  ;;  %vm2395_vm6 = vcmp.eq.s32.totalorder %v1062_v17, %v7452_v28  ;;  %1312 = vbcast.lane.b32.xlu1 %v9135_v21, 272  ;;  %v5049_v38 = vadd.f32 %v6586_v11, %v5048_v42  ;;  %v5068_v52 = vadd.f32 %v6587_v50, %v5067_v46 }
 0x216   : > { %1308 = vbcast.lane.b32.xlu0 %v9135_v21, 264  ;;  %v6588_v2 = vsel %vm2394_vm11, 1.0, %v7328_v29  ;;  %v6589_v55 = vsel %vm2395_vm6, 1.0, %v7328_v29  ;;  %v4999_v41 = vrot.slane %v4998_v36, 4  ;;  %vm2396_vm1 = vcmp.eq.s32.totalorder %v1066_v22, %v7441_v24 }
 0x217   : > { %v9556_v33 = vpop.permute.xlu1 %1073  ;;  %vm2397_vm4 = vcmp.eq.s32.totalorder %v1066_v22, %v7452_v28  ;;  %v9568_v16 = vrot.slane %v9214_v26, %v7420_v8  ;;  %v9573_v15 = vadd.f32 %v4942_v51, %v9413_v0  ;;  %v6570_v58 = vsel %vm2376_vm3, 1.0, %v7328_v29 }
 0x218   : > { %v1070_v59 = vpop.permute.xlu0 %1069  ;;  %v5014_v14 = vadd.f32 %v6566_v4, %v5013_v27  ;;  %v5034_v7 = vadd.f32 %v6569_v6, %v5033_v63  ;;  %v5035_v32 = vsel %vm4521_vm2, %v6571_v25, 0.0  ;;  %v6568_v31 = vsel %vm2374_vm12, 1.0, %v7328_v29 }
 0x219   : > { %1320 = vbcast.lane.b32.xlu1 %v9135_v21, 288  ;;  %v5050_v8 = vadd.f32 %v6588_v2, %v5049_v38  ;;  %v5069_v35 = vadd.f32 %v6589_v55, %v5068_v52  ;;  %v4963_v54 = vrot.slane %v9452_v53, 2  ;;  %v9584_v0 = vadd.f32 %v4980_v13, %v9474_v23 }
 0x21a   : > { %1316 = vbcast.lane.b32.xlu0 %v9135_v21, 280  ;;  %v6590_v56 = vsel %vm2396_vm1, 1.0, %v7328_v29  ;;  %v6591_v51 = vsel %vm2397_vm4, 1.0, %v7328_v29  ;;  %v9592_v39 = vadd.f32 %v4999_v41, %v4998_v36  ;;  %v9595_v62 = vsel %vm4521_vm2, %v6570_v58, 0.0 }
 0x21b   : > { %v1085_v49 = vpop.permute.xlu1 %1084  ;;  %vm2398_vm7 = vcmp.eq.s32.totalorder %v1070_v59, %v7441_v24  ;;  %vm2399_vm8 = vcmp.eq.s32.totalorder %v1070_v59, %v7452_v28  ;;  %v9600_v23 = vadd.f32 %v6568_v31, %v5014_v14  ;;  %v9602_v11 = vadd.f32 %v5035_v32, %v5034_v7 }
 0x21c   : > { %v1078_v19 = vpop.permute.xlu0 %1077  ;;  %vm2404_vm9 = vcmp.eq.s32.totalorder %v1085_v49, %v7441_v24  ;;  %vm2405_vm5 = vcmp.eq.s32.totalorder %v1085_v49, %v7452_v28  ;;  %vm2400_vm11 = vcmp.eq.s32.totalorder %v9556_v33, %v7441_v24  ;;  %vm2401_vm6 = vcmp.eq.s32.totalorder %v9556_v33, %v7452_v28 }
 0x21d   : > { %1328 = vbcast.lane.b32.xlu1 %v9135_v21, 304  ;;  %v5051_v22 = vadd.f32 %v6590_v56, %v5050_v8  ;;  %v5070_v50 = vadd.f32 %v6591_v51, %v5069_v35  ;;  %v6592_v46 = vsel %vm2398_vm7, 1.0, %v7328_v29  ;;  %v6593_v17 = vsel %vm2399_vm8, 1.0, %v7328_v29 }
 0x21e   : > { %1324 = vbcast.lane.b32.xlu0 %v9135_v21, 296  ;;  %v6598_v13 = vsel %vm2404_vm9, 1.0, %v7328_v29  ;;  %v6599_v4 = vsel %vm2405_vm5, 1.0, %v7328_v29  ;;  %vm2402_vm7 = vcmp.eq.s32.totalorder %v1078_v19, %v7441_v24  ;;  %vm2403_vm8 = vcmp.eq.s32.totalorder %v1078_v19, %v7452_v28 }
 0x21f   : > { %v1093_v42 = vpop.permute.xlu1 %1092  ;;  %v6594_v55 = vsel %vm2400_vm11, 1.0, %v7328_v29  ;;  %v6595_v59 = vsel %vm2401_vm6, 1.0, %v7328_v29  ;;  %v5052_v58 = vadd.f32 %v6592_v46, %v5051_v22  ;;  %v5071_v14 = vadd.f32 %v6593_v17, %v5070_v50 }
 0x220   : > { %vm2408_vm3 = vcmp.eq.s32.totalorder %v1093_v42, %v7441_v24  ;;  %vm2409_vm12 = vcmp.eq.s32.totalorder %v1093_v42, %v7452_v28  ;;  %v1089_v36 = vpop.permute.xlu0 %1088  ;;  %v6596_v31 = vsel %vm2402_vm7, 1.0, %v7328_v29  ;;  %v6597_v8 = vsel %vm2403_vm8, 1.0, %v7328_v29 }
 0x221   : > { %vm2406_vm1 = vcmp.eq.s32.totalorder %v1089_v36, %v7441_v24  ;;  %vm2407_vm4 = vcmp.eq.s32.totalorder %v1089_v36, %v7452_v28  ;;  %1359 = vbcast.lane.b32.xlu1 %v9158_v3, 256  ;;  %v6602_v27 = vsel %vm2408_vm3, 1.0, %v7328_v29  ;;  %v6603_v63 = vsel %vm2409_vm12, 1.0, %v7328_v29 }
 0x222   : > { %v6600_v6 = vsel %vm2406_vm1, 1.0, %v7328_v29  ;;  %v6601_v38 = vsel %vm2407_vm4, 1.0, %v7328_v29  ;;  %1332 = vbcast.lane.b32.xlu0 %v9135_v21, 312  ;;  %v5072_v42 = vadd.f32 %v6595_v59, %v5071_v14  ;;  %v5073_v46 = vsel %vm4521_vm2, %v6597_v8, 0.0 }
 0x223   : > { %v5081_v52 = vadd.f32 %v6600_v6, %v6598_v13  ;;  %v5100_v25 = vadd.f32 %v6601_v38, %v6599_v4  ;;  %v1101_v2 = vpop.permute.xlu1 %1100 }
 0x224   : > { %vm2412_vm9 = vcmp.eq.s32.totalorder %v1101_v2, %v7441_v24  ;;  %vm2413_vm5 = vcmp.eq.s32.totalorder %v1101_v2, %v7452_v28  ;;  %v1097_v41 = vpop.permute.xlu0 %1096  ;;  %v5074_v14 = vadd.f32 %v5073_v46, %v5072_v42 }
 0x225   : > { %v5082_v7 = vadd.f32 %v6602_v27, %v5081_v52  ;;  %v5101_v32 = vadd.f32 %v6603_v63, %v5100_v25  ;;  %1414 = vbcast.lane.b32.xlu1 %v9162_v44, 256  ;;  %vm2410_vm11 = vcmp.eq.s32.totalorder %v1097_v41, %v7441_v24  ;;  %vm2411_vm3 = vcmp.eq.s32.totalorder %v1097_v41, %v7452_v28 }
 0x226   : > { %1363 = vbcast.lane.b32.xlu0 %v9158_v3, 264  ;;  %v6606_v33 = vsel %vm2412_vm9, 1.0, %v7328_v29  ;;  %v6607_v35 = vsel %vm2413_vm5, 1.0, %v7328_v29  ;;  %v6604_v49 = vsel %vm2410_vm11, 1.0, %v7328_v29  ;;  %v6605_v56 = vsel %vm2411_vm3, 1.0, %v7328_v29 }
 0x227   : > { %v1109_v51 = vpop.permute.xlu1 %1108  ;;  %v5083_v19 = vadd.f32 %v6604_v49, %v5082_v7  ;;  %v5102_v22 = vadd.f32 %v6605_v56, %v5101_v32  ;;  %v5053_v27 = vadd.f32 %v6594_v55, %v5052_v58  ;;  %v5054_v63 = vsel %vm4521_vm2, %v6596_v31, 0.0 }
 0x228   : > { %vm2416_vm6 = vcmp.eq.s32.totalorder %v1109_v51, %v7441_v24  ;;  %vm2417_vm12 = vcmp.eq.s32.totalorder %v1109_v51, %v7452_v28  ;;  %v1105_v50 = vpop.permute.xlu0 %1104  ;;  %v5017_v41 = vadd.f32 %v9595_v62, %v9600_v23  ;;  %v5037_v31 = vrot.slane %v9602_v11, 4 }
 0x229   : > { %vm2414_vm1 = vcmp.eq.s32.totalorder %v1105_v50, %v7441_v24  ;;  %vm2415_vm4 = vcmp.eq.s32.totalorder %v1105_v50, %v7452_v28  ;;  %1579 = vbcast.lane.b32.xlu1 %v9239_v40, 256  ;;  %v5084_v17 = vadd.f32 %v6606_v33, %v5083_v19  ;;  %v5103_v36 = vadd.f32 %v6607_v35, %v5102_v22 }
 0x22a   : > { %v6608_v13 = vsel %vm2414_vm1, 1.0, %v7328_v29  ;;  %v6609_v4 = vsel %vm2415_vm4, 1.0, %v7328_v29  ;;  %1418 = vbcast.lane.b32.xlu0 %v9162_v44, 264  ;;  %v6610_v6 = vsel %vm2416_vm6, 1.0, %v7328_v29  ;;  %v6611_v38 = vsel %vm2417_vm12, 1.0, %v7328_v29 }
 0x22b   : > { %v1117_v52 = vpop.permute.xlu1 %1116  ;;  %v5085_v25 = vadd.f32 %v6608_v13, %v5084_v17  ;;  %v5104_v2 = vadd.f32 %v6609_v4, %v5103_v36  ;;  %v5055_v8 = vadd.f32 %v5054_v63, %v5053_v27  ;;  %v5018_v51 = vrot.slane %v5017_v41, 4 }
 0x22c   : > { %vm2420_vm7 = vcmp.eq.s32.totalorder %v1117_v52, %v7441_v24  ;;  %vm2421_vm8 = vcmp.eq.s32.totalorder %v1117_v52, %v7452_v28  ;;  %v1113_v59 = vpop.permute.xlu0 %1112  ;;  %v5075_v19 = vrot.slane %v5074_v14, 4  ;;  %v5038_v17 = vadd.f32 %v5037_v31, %v9602_v11 }
 0x22d   : > { %vm2418_vm9 = vcmp.eq.s32.totalorder %v1113_v59, %v7441_v24  ;;  %vm2419_vm5 = vcmp.eq.s32.totalorder %v1113_v59, %v7452_v28  ;;  %1634 = vbcast.lane.b32.xlu1 %v9243_v48, 256  ;;  %v5086_v55 = vadd.f32 %v6610_v6, %v5085_v25  ;;  %v5105_v58 = vadd.f32 %v6611_v38, %v5104_v2 }
 0x22e   : > { %v6612_v7 = vsel %vm2418_vm9, 1.0, %v7328_v29  ;;  %v6613_v32 = vsel %vm2419_vm5, 1.0, %v7328_v29  ;;  %1583 = vbcast.lane.b32.xlu0 %v9239_v40, 264  ;;  %v6614_v62 = vsel %vm2420_vm7, 1.0, %v7328_v29  ;;  %v6615_v23 = vsel %vm2421_vm8, 1.0, %v7328_v29 }
 0x22f   : > { %v1125_v33 = vpop.permute.xlu1 %1124  ;;  %v5087_v35 = vadd.f32 %v6612_v7, %v5086_v55  ;;  %v5106_v49 = vadd.f32 %v6613_v32, %v5105_v58  ;;  %v5056_v36 = vrot.slane %v5055_v8, 4  ;;  %v5019_v11 = vadd.f32 %v5018_v51, %v5017_v41 }
 0x230   : > { %vm2424_vm11 = vcmp.eq.s32.totalorder %v1125_v33, %v7441_v24  ;;  %vm2425_vm3 = vcmp.eq.s32.totalorder %v1125_v33, %v7452_v28  ;;  %v1121_v56 = vpop.permute.xlu0 %1120  ;;  %v5076_v2 = vadd.f32 %v5075_v19, %v5074_v14  ;;  %v5039_v51 = vrot.slane %v5038_v17, 2  ;;  %v7285_v19 = vld [vmem:[%s7390_s27 + $0x10] sm:$0xff] }
 0x231   : > { %vm2422_vm6 = vcmp.eq.s32.totalorder %v1121_v56, %v7441_v24  ;;  %vm2423_vm12 = vcmp.eq.s32.totalorder %v1121_v56, %v7452_v28  ;;  %1367 = vbcast.lane.b32.xlu1 %v9158_v3, 272  ;;  %v5088_v22 = vadd.f32 %v6614_v62, %v5087_v35  ;;  %v5107_v50 = vadd.f32 %v6615_v23, %v5106_v49 }
 0x232   : > { %v6616_v42 = vsel %vm2422_vm6, 1.0, %v7328_v29  ;;  %v6617_v46 = vsel %vm2423_vm12, 1.0, %v7328_v29  ;;  %1638 = vbcast.lane.b32.xlu0 %v9243_v48, 264  ;;  %v6618_v13 = vsel %vm2424_vm11, 1.0, %v7328_v29  ;;  %v6619_v4 = vsel %vm2425_vm3, 1.0, %v7328_v29 }
 0x233   : > { %v1133_v27 = vpop.permute.xlu1 %1132  ;;  %v5089_v63 = vadd.f32 %v6616_v42, %v5088_v22  ;;  %v5108_v6 = vadd.f32 %v6617_v46, %v5107_v50  ;;  %v5001_v23 = vrot.slane %v9592_v39, 2  ;;  %v5057_v33 = vadd.f32 %v5056_v36, %v5055_v8 }
 0x234   : > { %vm2428_vm1 = vcmp.eq.s32.totalorder %v1133_v27, %v7441_v24  ;;  %vm2429_vm4 = vcmp.eq.s32.totalorder %v1133_v27, %v7452_v28  ;;  %v1129_v38 = vpop.permute.xlu0 %1128  ;;  %v4926_v49 = vadd.f32 %v4925_v61, %v9405_v47  ;;  %v4944_v56 = vrot.slane %v9573_v15, 2 }
 0x235   : > { %v6622_v52 = vsel %vm2428_vm1, 1.0, %v7328_v29  ;;  %v6623_v25 = vsel %vm2429_vm4, 1.0, %v7328_v29  ;;  %vm2426_vm7 = vcmp.eq.s32.totalorder %v1129_v38, %v7441_v24  ;;  %vm2427_vm8 = vcmp.eq.s32.totalorder %v1129_v38, %v7452_v28  ;;  %1473 = vbcast.lane.b32.xlu1 %v9440_v57, 264 }
 0x236   : > { %v5090_v59 = vadd.f32 %v6618_v13, %v5089_v63  ;;  %v5109_v55 = vadd.f32 %v6619_v4, %v5108_v6  ;;  %1469 = vbcast.lane.b32.xlu0 %v9440_v57, 256  ;;  %v5092_v58 = vsel %vm4521_vm2, %v6622_v52, 0.0  ;;  %v5111_v7 = vsel %vm4521_vm2, %v6623_v25, 0.0 }
 0x237   : > { %v6620_v32 = vsel %vm2426_vm7, 1.0, %v7328_v29  ;;  %v6621_v31 = vsel %vm2427_vm8, 1.0, %v7328_v29  ;;  %v9695_v62 = vpop.permute.xlu1 %1143  ;;  %v9707_v22 = vrot.slane %v7285_v19, %v7637_v45  ;;  %v4982_v50 = vrot.slane %v9584_v0, 2 }
 0x238   : > { %v5091_v41 = vadd.f32 %v6620_v32, %v5090_v59  ;;  %v5110_v14 = vadd.f32 %v6621_v31, %v5109_v55  ;;  %v9698_v35 = vpop.permute.xlu0 %1139  ;;  %v5077_v8 = vrot.slane %v5076_v2, 2  ;;  %v4870_v36 = vrot.slane %v9143_v1, 1 }
 0x239   : > { %1693 = vbcast.lane.b32.xlu1 %v9568_v16, 264  ;;  %v4907_v47 = vadd.f32 %v4906_v30, %v9279_v43  ;;  %v4964_v61 = vadd.f32 %v4963_v54, %v9452_v53  ;;  %v5020_v13 = vrot.slane %v5019_v11, 2  ;;  %v5002_v27 = vadd.f32 %v5001_v23, %v9592_v39 }
 0x23a   : > { %v5093_v42 = vadd.f32 %v5092_v58, %v5091_v41  ;;  %v5112_v46 = vadd.f32 %v5111_v7, %v5110_v14  ;;  %1689 = vbcast.lane.b32.xlu0 %v9568_v16, 256  ;;  %v5058_v63 = vrot.slane %v5057_v33, 2  ;;  %v4889_v25 = vrot.slane %v9145_v37, 1 }
 0x23b   : > { %v9718_v4 = vpop.permute.xlu1 %1151  ;;  %v4927_v59 = vrot.slane %v4926_v49, 1  ;;  %v4945_v55 = vadd.f32 %v4944_v56, %v9573_v15  ;;  %v5040_v43 = vadd.f32 %v5039_v51, %v5038_v17  ;;  %v4983_v30 = vadd.f32 %v4982_v50, %v9584_v0 }
 0x23c   : > { %v5094_v6 = vrot.slane %v5093_v42, 4  ;;  %v5113_v38 = vrot.slane %v5112_v46, 4  ;;  %v9721_v52 = vpop.permute.xlu0 %1147  ;;  %v5078_v39 = vadd.f32 %v5077_v8, %v5076_v2  ;;  %v4852_v58 = vadd.f32 %v4851_v18, %v9107_v34 }
 0x23d   : > { %1524 = vbcast.lane.b32.xlu1 %v9707_v22, 256  ;;  %v4908_v7 = vrot.slane %v4907_v47, 1  ;;  %v4965_v32 = vrot.slane %v4964_v61, 1  ;;  %v5021_v31 = vadd.f32 %v5020_v13, %v5019_v11  ;;  %v5003_v15 = vrot.slane %v5002_v27, 1 }
 0x23e   : > { %v5095_v53 = vadd.f32 %v5094_v6, %v5093_v42  ;;  %v5114_v54 = vadd.f32 %v5113_v38, %v5112_v46  ;;  %1422 = vbcast.lane.b32.xlu0 %v9162_v44, 272  ;;  %v5059_v14 = vadd.f32 %v5058_v63, %v5057_v33  ;;  %v4890_v56 = vadd.f32 %v4889_v25, %v9145_v37 }
 0x23f   : > { %v9731_v23 = vpop.permute.xlu1 %1159  ;;  %v4946_v51 = vrot.slane %v4945_v55, 1  ;;  %v9739_v2 = vrot.slane %v9214_v26, %v7425_v10  ;;  %v5041_v34 = vrot.slane %v5040_v43, 1  ;;  %v4871_v18 = vadd.f32 %v4870_v36, %v9143_v1 }
 0x240   : > { %v9733_v17 = vpop.permute.xlu0 %1155  ;;  %v5115_v41 = vrot.slane %v5114_v54, 2  ;;  %v5096_v0 = vrot.slane %v5095_v53, 2  ;;  %v4928_v11 = vadd.f32 %v4927_v59, %v4926_v49  ;;  %v4984_v19 = vrot.slane %v4983_v30, 1 }
 0x241   : > { %1587 = vbcast.lane.b32.xlu1 %v9239_v40, 272  ;;  %v5079_v50 = vrot.slane %v5078_v39, 1  ;;  %v4966_v8 = vadd.f32 %v4965_v32, %v4964_v61  ;;  %v5022_v37 = vrot.slane %v5021_v31, 1  ;;  %v4833_v13 = vadd.f32 %v4832_v9, %v9080_v5 }
 0x242   : > { %1528 = vbcast.lane.b32.xlu0 %v9707_v22, 264  ;;  %v5116_v42 = vadd.f32 %v5115_v41, %v5114_v54  ;;  %v5097_v46 = vadd.f32 %v5096_v0, %v5095_v53  ;;  %v4909_v10 = vadd.f32 %v4908_v7, %v4907_v47  ;;  %v5004_v26 = vadd.f32 %v5003_v15, %v5002_v27 }
 0x243   : > { %v9743_v33 = vpop.permute.xlu1 %1167  ;;  %v5060_v1 = vrot.slane %v5059_v14, 1  ;;  %v4947_v49 = vadd.f32 %v4946_v51, %v4945_v55  ;;  %v5042_v36 = vadd.f32 %v5041_v34, %v5040_v43  ;;  %v5855_v61 = vsel %vm5827_vm10, %v4890_v56, %v4852_v58 }
 0x244   : > { %v9748_v63 = vpop.permute.xlu0 %1163  ;;  %v4985_v6 = vadd.f32 %v4984_v19, %v4983_v30  ;;  %v5080_v38 = vadd.f32 %v5079_v50, %v5078_v39  ;;  %v5856_v25 = vsel %vm5829_vm13, %v4928_v11, %v5855_v61  ;;  %v5848_v59 = vsel %vm5827_vm10, %v4871_v18, %v4833_v13  ;;  %v9778_v18 = vld [vmem:[%s7390_s27 + $0x18] sm:$0xff] }
 0x245   : > { %1744 = vbcast.lane.b32.xlu1 %v9739_v2, 256  ;;  %v5117_v9 = vrot.slane %v5116_v42, 1  ;;  %v5857_v47 = vsel %vm5831_vm14, %v4966_v8, %v5856_v25  ;;  %v5023_v27 = vadd.f32 %v5022_v37, %v5021_v31  ;;  %v5098_v55 = vrot.slane %v5097_v46, 1 }
 0x246   : > { %1642 = vbcast.lane.b32.xlu0 %v9243_v48, 272  ;;  %v5858_v53 = vsel %vm12228_vm15, %v5004_v26, %v5857_v47  ;;  %v5061_v54 = vadd.f32 %v5060_v1, %v5059_v14  ;;  %v5849_v30 = vsel %vm5829_vm13, %v4909_v10, %v5848_v59  ;;  %vm12230_vm9 = vcmask 1046534  }
 0x247   : > { %v9755_v5 = vpop.permute.xlu1 %1175  ;;  %v5118_v58 = vadd.f32 %v5117_v9, %v5116_v42  ;;  %v5859_v39 = vsel %vm12222_vm0, %v5042_v36, %v5858_v53  ;;  %v5850_v7 = vsel %vm5831_vm14, %v4947_v49, %v5849_v30  ;;  %vm12231_vm5 = vcmask 1047559   ;;  %vm12232_vm11 = vmmov %vm12230_vm9  ;;  %v5727_v42 = vld [vmem:[#allocation2] sm:$0xff] }
 0x248   : > { %v9759_v43 = vpop.permute.xlu0 %1171  ;;  %v5860_v32 = vsel %vm12230_vm9, %v5080_v38, %v5859_v39  ;;  %v5851_v31 = vsel %vm12228_vm15, %v4985_v6, %v5850_v7  ;;  %v5099_v41 = vadd.f32 %v5098_v55, %v5097_v46  ;;  %vm12233_vm3 = vmmov %vm12231_vm5  ;;  %v9782_v11 = vrot.slane %v9778_v18, %v7430_v12 }
 0x249   : > { %1371 = vbcast.lane.b32.xlu1 %v9158_v3, 280  ;;  %v5861_v15 = vsel %vm12231_vm5, %v5118_v58, %v5860_v32  ;;  %v5852_v14 = vsel %vm12222_vm0, %v5023_v27, %v5851_v31  ;;  %v9804_v49 = vrot.slane %v9778_v18, %v7437_v20  ;;  %vm2432_vm6 = vcmp.eq.s32.totalorder %v9695_v62, %v7441_v24 }
 0x24a   : > { %1748 = vbcast.lane.b32.xlu0 %v9739_v2, 264  ;;  %5967 = vmatprep.mubr.f32.mxu0 %v5861_v15  ;;  %v5853_v56 = vsel %vm12232_vm11, %v5061_v54, %v5852_v14  ;;  %vm2430_vm12 = vcmp.eq.s32.totalorder %v9698_v35, %v7441_v24  ;;  %vm2433_vm1 = vcmp.eq.s32.totalorder %v9695_v62, %v7452_v28  ;;  %v6626_v59 = vsel %vm2432_vm6, 1.0, %v7328_v29 }
 0x24b   : > { %v9770_v0 = vpop.permute.xlu1 %1183  ;;  %v5854_v34 = vsel %vm12233_vm3, %v5099_v41, %v5853_v56  ;;  %vm2431_vm4 = vcmp.eq.s32.totalorder %v9698_v35, %v7452_v28  ;;  %vm2434_vm7 = vcmp.eq.s32.totalorder %v9721_v52, %v7441_v24  ;;  %v6624_v9 = vsel %vm2430_vm12, 1.0, %v7328_v29 }
 0x24c   : > { %v9773_v51 = vpop.permute.xlu0 %1179  ;;  %5968 = vmatmul.mubr.f32.gmra.mrb[2].mxu0 %v5854_v34  ;;  %v9838_v47 = vrot.slane %v9778_v18, %v7510_v60  ;;  %vm2435_vm8 = vcmp.eq.s32.totalorder %v9721_v52, %v7452_v28  ;;  %v6627_v62 = vsel %vm2433_vm1, 1.0, %v7328_v29  ;;  %v6625_v35 = vsel %vm2431_vm4, 1.0, %v7328_v29 }
 0x24d   : > { %1697 = vbcast.lane.b32.xlu1 %v9568_v16, 272  ;;  %v6628_v27 = vsel %vm2434_vm7, 1.0, %v7328_v29  ;;  %v5119_v53 = vadd.f32 %v6626_v59, %v6624_v9  ;;  %vm2436_vm9 = vcmp.eq.s32.totalorder %v9718_v4, %v7441_v24  ;;  %v6629_v60 = vsel %vm2435_vm8, 1.0, %v7328_v29 }
 0x24e   : > { %1477 = vbcast.lane.b32.xlu0 %v9440_v57, 272  ;;  %v5138_v52 = vadd.f32 %v6627_v62, %v6625_v35  ;;  %vm2437_vm5 = vcmp.eq.s32.totalorder %v9718_v4, %v7452_v28  ;;  %v6630_v58 = vsel %vm2436_vm9, 1.0, %v7328_v29  ;;  %vm2438_vm11 = vcmp.eq.s32.totalorder %v9733_v17, %v7441_v24 }
 0x24f   : > { %v9785_v19 = vpop.permute.xlu1 %1194  ;;  %v5120_v30 = vadd.f32 %v6628_v27, %v5119_v53  ;;  %v6631_v31 = vsel %vm2437_vm5, 1.0, %v7328_v29  ;;  %vm2439_vm3 = vcmp.eq.s32.totalorder %v9733_v17, %v7452_v28  ;;  %v6632_v4 = vsel %vm2438_vm11, 1.0, %v7328_v29 }
 0x250   : > { %v9787_v50 = vpop.permute.xlu0 %1187  ;;  %v7076_v8 = vpop.f32.mrb[0].mxu0  ;;  %v5139_v7 = vadd.f32 %v6629_v60, %v5138_v52  ;;  %vm2440_vm6 = vcmp.eq.s32.totalorder %v9731_v23, %v7441_v24  ;;  %v6633_v34 = vsel %vm2439_vm3, 1.0, %v7328_v29  ;;  %vm2441_vm12 = vcmp.eq.s32.totalorder %v9731_v23, %v7452_v28 }
 0x251   : > { %1803 = vbcast.lane.b32.xlu1 %v9782_v11, 264  ;;  %v7077_v37 = vpop.f32.mrb[1].mxu0  ;;  %v5121_v15 = vadd.f32 %v6630_v58, %v5120_v30  ;;  %vm2442_vm1 = vcmp.eq.s32.totalorder %v9748_v63, %v7441_v24  ;;  %v9892_v23 = vrot.slane %v9778_v18, %v7637_v45  ;;  %vm2443_vm4 = vcmp.eq.s32.totalorder %v9748_v63, %v7452_v28 }
 0x252   : > { %1799 = vbcast.lane.b32.xlu0 %v9782_v11, 256  ;;  %v7078_v46 = vadd.f32 %v7077_v37, %v7076_v8  ;;  %v5140_v14 = vadd.f32 %v6631_v31, %v5139_v7  ;;  %v6634_v8 = vsel %vm2440_vm6, 1.0, %v7328_v29  ;;  %v6636_v9 = vsel %vm2442_vm1, 1.0, %v7328_v29 }
 0x253   : > { %v9791_v13 = vpop.permute.xlu1 %1202  ;;  %v5122_v17 = vadd.f32 %v6632_v4, %v5121_v15  ;;  %vm2444_vm7 = vcmp.eq.s32.totalorder %v9743_v33, %v7441_v24  ;;  %v6637_v53 = vsel %vm2443_vm4, 1.0, %v7328_v29  ;;  %vm2445_vm8 = vcmp.eq.s32.totalorder %v9743_v33, %v7452_v28 }
 0x254   : > { %v9793_v10 = vpop.permute.xlu0 %1198  ;;  %v5983_v12 = vadd.f32 %v7078_v46, %v5727_v42  ;;  %v5141_v37 = vadd.f32 %v6633_v34, %v5140_v14  ;;  %v6638_v63 = vsel %vm2444_vm7, 1.0, %v7328_v29  ;;  %vm2446_vm9 = vcmp.eq.s32.totalorder %v9759_v43, %v7441_v24 }
 0x255   : > { %1532 = vbcast.lane.b32.xlu1 %v9707_v22, 272  ;;  %v5123_v59 = vadd.f32 %v6634_v8, %v5122_v17  ;;  %v6639_v30 = vsel %vm2445_vm8, 1.0, %v7328_v29  ;;  %vm2447_vm5 = vcmp.eq.s32.totalorder %v9759_v43, %v7452_v28  ;;  %v6640_v33 = vsel %vm2446_vm9, 1.0, %v7328_v29 }
 0x256   : > { %1426 = vbcast.lane.b32.xlu0 %v9162_v44, 280  ;;  %5987 = vst [vmem:[#allocation2] sm:$0xff] %v5983_v12  ;;  %v6635_v12 = vsel %vm2441_vm12, 1.0, %v7328_v29  ;;  %vm2448_vm11 = vcmp.eq.s32.totalorder %v9755_v5, %v7441_v24  ;;  %v6641_v4 = vsel %vm2447_vm5, 1.0, %v7328_v29  ;;  %vm2449_vm3 = vcmp.eq.s32.totalorder %v9755_v5, %v7452_v28 }
 0x257   : > { %v9797_v26 = vpop.permute.xlu1 %1210  ;;  %v5142_v35 = vadd.f32 %v6635_v12, %v5141_v37  ;;  %v5124_v45 = vadd.f32 %v6636_v9, %v5123_v59  ;;  %v6642_v14 = vsel %vm2448_vm11, 1.0, %v7328_v29  ;;  %vm2450_vm6 = vcmp.eq.s32.totalorder %v9773_v51, %v7441_v24 }
 0x258   : > { %v9799_v1 = vpop.permute.xlu0 %1206  ;;  %v6643_v37 = vsel %vm2449_vm3, 1.0, %v7328_v29  ;;  %vm2451_vm12 = vcmp.eq.s32.totalorder %v9773_v51, %v7452_v28  ;;  %v6644_v5 = vsel %vm2450_vm6, 1.0, %v7328_v29  ;;  %vm2452_vm1 = vcmp.eq.s32.totalorder %v9770_v0, %v7441_v24 }
 0x259   : > { %1646 = vbcast.lane.b32.xlu1 %v9243_v48, 280  ;;  %v5143_v60 = vadd.f32 %v6637_v53, %v5142_v35  ;;  %v5125_v58 = vadd.f32 %v6638_v63, %v5124_v45  ;;  %v6645_v53 = vsel %vm2451_vm12, 1.0, %v7328_v29  ;;  %vm2454_vm4 = vcmp.eq.s32.totalorder %v9787_v50, %v7441_v24 }
 0x25a   : > { %1591 = vbcast.lane.b32.xlu0 %v9239_v40, 280  ;;  %vm2453_vm7 = vcmp.eq.s32.totalorder %v9770_v0, %v7452_v28  ;;  %v6646_v45 = vsel %vm2452_vm1, 1.0, %v7328_v29  ;;  %vm2455_vm8 = vcmp.eq.s32.totalorder %v9787_v50, %v7452_v28  ;;  %vm2458_vm9 = vcmp.eq.s32.totalorder %v9793_v10, %v7441_v24 }
 0x25b   : > { %v9807_v36 = vpop.permute.xlu1 %1218  ;;  %v5144_v31 = vadd.f32 %v6639_v30, %v5143_v60  ;;  %v5126_v43 = vadd.f32 %v6640_v33, %v5125_v58  ;;  %v6648_v30 = vsel %vm2454_vm4, 1.0, %v7328_v29  ;;  %v6647_v33 = vsel %vm2453_vm7, 1.0, %v7328_v29 }
 0x25c   : > { %v9809_v61 = vpop.permute.xlu0 %1214  ;;  %vm2459_vm5 = vcmp.eq.s32.totalorder %v9793_v10, %v7452_v28  ;;  %v6649_v50 = vsel %vm2455_vm8, 1.0, %v7328_v29  ;;  %vm2456_vm11 = vcmp.eq.s32.totalorder %v9785_v19, %v7441_v24  ;;  %vm2457_vm3 = vcmp.eq.s32.totalorder %v9785_v19, %v7452_v28 }
 0x25d   : > { %1854 = vbcast.lane.b32.xlu1 %v9804_v49, 256  ;;  %v5145_v17 = vadd.f32 %v6641_v4, %v5144_v31  ;;  %v5127_v12 = vadd.f32 %v6642_v14, %v5126_v43  ;;  %v5130_v31 = vsel %vm4521_vm2, %v6648_v30, 0.0  ;;  %v6652_v10 = vsel %vm2458_vm9, 1.0, %v7328_v29 }
 0x25e   : > { %1752 = vbcast.lane.b32.xlu0 %v9739_v2, 272  ;;  %v6653_v14 = vsel %vm2459_vm5, 1.0, %v7328_v29  ;;  %vm2460_vm6 = vcmp.eq.s32.totalorder %v9791_v13, %v7441_v24  ;;  %vm2461_vm12 = vcmp.eq.s32.totalorder %v9791_v13, %v7452_v28  ;;  %v6650_v19 = vsel %vm2456_vm11, 1.0, %v7328_v29 }
 0x25f   : > { %v9813_v6 = vpop.permute.xlu1 %1226  ;;  %v5146_v9 = vadd.f32 %v6643_v37, %v5145_v17  ;;  %v5128_v51 = vadd.f32 %v6644_v5, %v5127_v12  ;;  %v5149_v37 = vsel %vm4521_vm2, %v6649_v50, 0.0  ;;  %v6651_v12 = vsel %vm2457_vm3, 1.0, %v7328_v29 }
 0x260   : > { %v9815_v38 = vpop.permute.xlu0 %1222  ;;  %v6655_v30 = vsel %vm2461_vm12, 1.0, %v7328_v29  ;;  %vm2462_vm1 = vcmp.eq.s32.totalorder %v9799_v1, %v7441_v24  ;;  %vm2463_vm4 = vcmp.eq.s32.totalorder %v9799_v1, %v7452_v28  ;;  %vm2464_vm7 = vcmp.eq.s32.totalorder %v9797_v26, %v7441_v24 }
 0x261   : > { %1375 = vbcast.lane.b32.xlu1 %v9158_v3, 288  ;;  %v5147_v60 = vadd.f32 %v6645_v53, %v5146_v9  ;;  %v5129_v0 = vadd.f32 %v6646_v45, %v5128_v51  ;;  %v5157_v9 = vadd.f32 %v6652_v10, %v6650_v19  ;;  %v5176_v53 = vadd.f32 %v6653_v14, %v6651_v12 }
 0x262   : > { %1858 = vbcast.lane.b32.xlu0 %v9804_v49, 264  ;;  %v6656_v10 = vsel %vm2462_vm1, 1.0, %v7328_v29  ;;  %v6657_v14 = vsel %vm2463_vm4, 1.0, %v7328_v29  ;;  %vm2465_vm8 = vcmp.eq.s32.totalorder %v9797_v26, %v7452_v28  ;;  %vm2466_vm9 = vcmp.eq.s32.totalorder %v9809_v61, %v7441_v24 }
 0x263   : > { %v9823_v20 = vpop.permute.xlu1 %1234  ;;  %v5148_v43 = vadd.f32 %v6647_v33, %v5147_v60  ;;  %v5131_v5 = vadd.f32 %v5130_v31, %v5129_v0  ;;  %v6654_v60 = vsel %vm2460_vm6, 1.0, %v7328_v29  ;;  %v5177_v50 = vadd.f32 %v6655_v30, %v5176_v53 }
 0x264   : > { %v9831_v25 = vpop.permute.xlu0 %1230  ;;  %v5158_v0 = vadd.f32 %v6654_v60, %v5157_v9  ;;  %v6658_v60 = vsel %vm2464_vm7, 1.0, %v7328_v29  ;;  %v6659_v30 = vsel %vm2465_vm8, 1.0, %v7328_v29  ;;  %vm2467_vm5 = vcmp.eq.s32.totalorder %v9809_v61, %v7452_v28 }
 0x265   : > { %1701 = vbcast.lane.b32.xlu1 %v9568_v16, 280  ;;  %v5150_v45 = vadd.f32 %v5149_v37, %v5148_v43  ;;  %v5132_v13 = vrot.slane %v5131_v5, 4  ;;  %v5178_v12 = vadd.f32 %v6657_v14, %v5177_v50  ;;  %v6660_v50 = vsel %vm2466_vm9, 1.0, %v7328_v29 }
 0x266   : > { %1481 = vbcast.lane.b32.xlu0 %v9440_v57, 280  ;;  %v5159_v19 = vadd.f32 %v6656_v10, %v5158_v0  ;;  %vm2468_vm11 = vcmp.eq.s32.totalorder %v9807_v36, %v7441_v24  ;;  %vm2469_vm3 = vcmp.eq.s32.totalorder %v9807_v36, %v7452_v28  ;;  %vm2470_vm6 = vcmp.eq.s32.totalorder %v9815_v38, %v7441_v24 }
 0x267   : > { %v9846_v55 = vpop.permute.xlu1 %1242  ;;  %v5151_v43 = vrot.slane %v5150_v45, 4  ;;  %v5133_v1 = vadd.f32 %v5132_v13, %v5131_v5  ;;  %v5179_v13 = vadd.f32 %v6659_v30, %v5178_v12  ;;  %v6662_v30 = vsel %vm2468_vm11, 1.0, %v7328_v29 }
 0x268   : > { %v9850_v54 = vpop.permute.xlu0 %1238  ;;  %v5160_v5 = vadd.f32 %v6658_v60, %v5159_v19  ;;  %vm2471_vm12 = vcmp.eq.s32.totalorder %v9815_v38, %v7452_v28  ;;  %vm2472_vm1 = vcmp.eq.s32.totalorder %v9813_v6, %v7441_v24  ;;  %vm2473_vm4 = vcmp.eq.s32.totalorder %v9813_v6, %v7452_v28 }
 0x269   : > { %1909 = vbcast.lane.b32.xlu1 %v9838_v47, 256  ;;  %v5152_v53 = vadd.f32 %v5151_v43, %v5150_v45  ;;  %v5134_v26 = vrot.slane %v5133_v1, 2  ;;  %v6661_v43 = vsel %vm2467_vm5, 1.0, %v7328_v29  ;;  %v6666_v6 = vsel %vm2472_vm1, 1.0, %v7328_v29 }
 0x26a   : > { %1807 = vbcast.lane.b32.xlu0 %v9782_v11, 272  ;;  %v5161_v14 = vadd.f32 %v6660_v50, %v5160_v5  ;;  %v5180_v19 = vadd.f32 %v6661_v43, %v5179_v13  ;;  %v6664_v13 = vsel %vm2470_vm6, 1.0, %v7328_v29  ;;  %vm2476_vm9 = vcmp.eq.s32.totalorder %v9823_v20, %v7441_v24 }
 0x26b   : > { %v9858_v39 = vpop.permute.xlu1 %1253  ;;  %v5153_v0 = vrot.slane %v5152_v53, 2  ;;  %v5135_v61 = vadd.f32 %v5134_v26, %v5133_v1  ;;  %vm2474_vm5 = vcmp.eq.s32.totalorder %v9831_v25, %v7441_v24  ;;  %vm2475_vm11 = vcmp.eq.s32.totalorder %v9831_v25, %v7452_v28 }
 0x26c   : > { %v9862_v32 = vpop.permute.xlu0 %1249  ;;  %v5162_v1 = vadd.f32 %v6662_v30, %v5161_v14  ;;  %v6667_v30 = vsel %vm2473_vm4, 1.0, %v7328_v29  ;;  %vm2480_vm1 = vcmp.eq.s32.totalorder %v9846_v55, %v7441_v24 }
 0x26d   : > { %1430 = vbcast.lane.b32.xlu1 %v9162_v44, 288  ;;  %v5154_v60 = vadd.f32 %v5153_v0, %v5152_v53  ;;  %v5136_v36 = vrot.slane %v5135_v61, 1  ;;  %v6665_v0 = vsel %vm2471_vm12, 1.0, %v7328_v29  ;;  %vm2477_vm12 = vcmp.eq.s32.totalorder %v9823_v20, %v7452_v28 }
 0x26e   : > { %1913 = vbcast.lane.b32.xlu0 %v9838_v47, 264 }
 0x26f   : > { %v9870_v41 = vpop.permute.xlu1 %1261  ;;  %v5155_v5 = vrot.slane %v5154_v60, 1  ;;  %v10066_v38 = vadd.f32 %v5136_v36, %v5135_v61 }
 0x270   : > { %v9874_v56 = vpop.permute.xlu0 %1257 }
 0x271   : > { %1595 = vbcast.lane.b32.xlu1 %v9239_v40, 288  ;;  %12240 = vst [vmem:[#allocation9_spill] sm:$0xff] %v10066_v38 }
 0x272   : > { %1536 = vbcast.lane.b32.xlu0 %v9707_v22, 280 }
 0x273   : > { %v9882_v42 = vpop.permute.xlu1 %1269 }
 0x274   : > { %v9886_v46 = vpop.permute.xlu0 %1265 }
 0x275   : > { %1756 = vbcast.lane.b32.xlu1 %v9739_v2, 280 }
 0x276   : > { %1650 = vbcast.lane.b32.xlu0 %v9243_v48, 288 }
 0x277   : > { %v9898_v62 = vpop.permute.xlu1 %1277 }
 0x278   : > { %v9902_v27 = vpop.permute.xlu0 %1273 }
 0x279   : > { %12234 = vst [vmem:[#allocation3_spill] sm:$0xff] %v9902_v27  ;;  %1964 = vbcast.lane.b32.xlu1 %v9892_v23, 256 }
 0x27a   : > { %1862 = vbcast.lane.b32.xlu0 %v9804_v49, 272 }
 0x27b   : > { %v9910_v18 = vpop.permute.xlu1 %1285 }
 0x27c   : > { %12235 = vst [vmem:[#allocation4_spill] sm:$0xff] %v9910_v18  ;;  %v9914_v52 = vpop.permute.xlu0 %1281 }
 0x27d   : > { %12236 = vst [vmem:[#allocation5_spill] sm:$0xff] %v9914_v52  ;;  %1379 = vbcast.lane.b32.xlu1 %v9158_v3, 296 }
 0x27e   : > { %1968 = vbcast.lane.b32.xlu0 %v9892_v23, 264 }
 0x27f   : > { %v9922_v7 = vpop.permute.xlu1 %1293 }
 0x280   : > { %12237 = vst [vmem:[#allocation6_spill] sm:$0xff] %v9922_v7  ;;  %v9926_v15 = vpop.permute.xlu0 %1289 }
 0x281   : > { %12238 = vst [vmem:[#allocation7_spill] sm:$0xff] %v9926_v15  ;;  %1705 = vbcast.lane.b32.xlu1 %v9568_v16, 288  ;;  %v6663_v15 = vsel %vm2469_vm3, 1.0, %v7328_v29 }
 0x282   : > { %1485 = vbcast.lane.b32.xlu0 %v9440_v57, 288  ;;  %v5181_v26 = vadd.f32 %v6663_v15, %v5180_v19  ;;  %v5163_v15 = vadd.f32 %v6664_v13, %v5162_v1  ;;  %v10075_v19 = vadd.f32 %v5155_v5, %v5154_v60  ;;  %v6668_v1 = vsel %vm2474_vm5, 1.0, %v7328_v29 }
 0x283   : > { %v9934_v34 = vpop.permute.xlu1 %1304 }
 0x284   : > { %v9938_v8 = vpop.permute.xlu0 %1297  ;;  %v5182_v43 = vadd.f32 %v6665_v0, %v5181_v26  ;;  %12241 = vst [vmem:[#allocation10_spill] sm:$0xff] %v10075_v19  ;;  %vm2508_vm3 = vcmp.eq.s32.totalorder %v9934_v34, %v7441_v24  ;;  %vm2509_vm6 = vcmp.eq.s32.totalorder %v9934_v34, %v7452_v28  ;;  %v5164_v25 = vadd.f32 %v6666_v6, %v5163_v15 }
 0x285   : > { %12239 = vst [vmem:[#allocation8_spill] sm:$0xff] %v9938_v8  ;;  %1917 = vbcast.lane.b32.xlu1 %v9838_v47, 272  ;;  %v6669_v26 = vsel %vm2475_vm11, 1.0, %v7328_v29  ;;  %v6702_v5 = vsel %vm2508_vm3, 1.0, %v7328_v29  ;;  %v6703_v13 = vsel %vm2509_vm6, 1.0, %v7328_v29  ;;  %v6674_v15 = vsel %vm2480_vm1, 1.0, %v7328_v29 }
 0x286   : > { %1811 = vbcast.lane.b32.xlu0 %v9782_v11, 280  ;;  %v5183_v36 = vadd.f32 %v6667_v30, %v5182_v43  ;;  %v6671_v30 = vsel %vm2477_vm12, 1.0, %v7328_v29  ;;  %v10134_v20 = vsel %vm4521_vm2, %v6674_v15, 0.0  ;;  %vm2484_vm11 = vcmp.eq.s32.totalorder %v9858_v39, %v7441_v24 }
 0x287   : > { %v9946_v59 = vpop.permute.xlu1 %1312  ;;  %12242 = vst [vmem:[#allocation11_spill] sm:$0xff] %v10134_v20  ;;  %vm2485_vm3 = vcmp.eq.s32.totalorder %v9858_v39, %v7452_v28  ;;  %vm2482_vm6 = vcmp.eq.s32.totalorder %v9862_v32, %v7441_v24  ;;  %vm2483_vm12 = vcmp.eq.s32.totalorder %v9862_v32, %v7452_v28 }
 0x288   : > { %v9950_v35 = vpop.permute.xlu0 %1308  ;;  %vm2512_vm4 = vcmp.eq.s32.totalorder %v9946_v59, %v7441_v24  ;;  %vm2513_vm0 = vcmp.eq.s32.totalorder %v9946_v59, %v7452_v28  ;;  %v6670_v59 = vsel %vm2476_vm9, 1.0, %v7328_v29  ;;  %vm2479_vm9 = vcmp.eq.s32.totalorder %v9850_v54, %v7452_v28 }
 0x289   : > { %1540 = vbcast.lane.b32.xlu1 %v9707_v22, 288  ;;  %vm2510_vm7 = vcmp.eq.s32.totalorder %v9950_v35, %v7441_v24  ;;  %vm2511_vm8 = vcmp.eq.s32.totalorder %v9950_v35, %v7452_v28  ;;  %v6706_v38 = vsel %vm2512_vm4, 1.0, %v7328_v29  ;;  %v6673_v19 = vsel %vm2479_vm9, 1.0, %v7328_v29 }
 0x28a   : > { %1434 = vbcast.lane.b32.xlu0 %v9162_v44, 296  ;;  %v6704_v35 = vsel %vm2510_vm7, 1.0, %v7328_v29  ;;  %v6705_v60 = vsel %vm2511_vm8, 1.0, %v7328_v29  ;;  %vm2481_vm7 = vcmp.eq.s32.totalorder %v9846_v55, %v7452_v28  ;;  %v6707_v55 = vsel %vm2513_vm0, 1.0, %v7328_v29 }
 0x28b   : > { %v9962_v63 = vpop.permute.xlu1 %1320  ;;  %v5233_v43 = vadd.f32 %v6704_v35, %v6702_v5  ;;  %v5252_v6 = vadd.f32 %v6705_v60, %v6703_v13  ;;  %v5165_v35 = vadd.f32 %v6668_v1, %v5164_v25  ;;  %v5184_v60 = vadd.f32 %v6669_v26, %v5183_v36 }
 0x28c   : > { %v9965_v58 = vpop.permute.xlu0 %1316  ;;  %v6675_v13 = vsel %vm2481_vm7, 1.0, %v7328_v29  ;;  %vm2478_vm0 = vcmp.eq.s32.totalorder %v9850_v54, %v7441_v24  ;;  %vm2516_vm1 = vcmp.eq.s32.totalorder %v9962_v63, %v7441_v24  ;;  %vm2517_vm4 = vcmp.eq.s32.totalorder %v9962_v63, %v7452_v28 }
 0x28d   : > { %1654 = vbcast.lane.b32.xlu1 %v9243_v48, 296  ;;  %vm2514_vm8 = vcmp.eq.s32.totalorder %v9965_v58, %v7441_v24  ;;  %vm2515_vm5 = vcmp.eq.s32.totalorder %v9965_v58, %v7452_v28  ;;  %v5234_v58 = vadd.f32 %v6706_v38, %v5233_v43  ;;  %v5253_v36 = vadd.f32 %v6707_v55, %v5252_v6 }
 0x28e   : > { %1599 = vbcast.lane.b32.xlu0 %v9239_v40, 296  ;;  %v6708_v1 = vsel %vm2514_vm8, 1.0, %v7328_v29  ;;  %v6709_v26 = vsel %vm2515_vm5, 1.0, %v7328_v29  ;;  %v5185_v15 = vadd.f32 %v6671_v30, %v5184_v60  ;;  %v6678_v38 = vsel %vm2484_vm11, 1.0, %v7328_v29 }
 0x28f   : > { %v9980_v4 = vpop.permute.xlu1 %1328  ;;  %v6679_v32 = vsel %vm2485_vm3, 1.0, %v7328_v29  ;;  %vm2486_vm7 = vcmp.eq.s32.totalorder %v9874_v56, %v7441_v24  ;;  %vm2487_vm8 = vcmp.eq.s32.totalorder %v9874_v56, %v7452_v28  ;;  %v6676_v6 = vsel %vm2482_vm6, 1.0, %v7328_v29 }
 0x290   : > { %v9984_v17 = vpop.permute.xlu0 %1324  ;;  %v6677_v30 = vsel %vm2483_vm12, 1.0, %v7328_v29  ;;  %v5235_v55 = vadd.f32 %v6708_v1, %v5234_v58  ;;  %v5254_v63 = vadd.f32 %v6709_v26, %v5253_v36  ;;  %v5187_v60 = vsel %vm4521_vm2, %v6675_v13, 0.0 }
 0x291   : > { %1866 = vbcast.lane.b32.xlu1 %v9804_v49, 280  ;;  %v5166_v20 = vadd.f32 %v6670_v59, %v5165_v35  ;;  %v6710_v52 = vsel %vm2516_vm1, 1.0, %v7328_v29  ;;  %v6711_v18 = vsel %vm2517_vm4, 1.0, %v7328_v29  ;;  %v6680_v56 = vsel %vm2486_vm7, 1.0, %v7328_v29 }
 0x292   : > { %1760 = vbcast.lane.b32.xlu0 %v9739_v2, 288  ;;  %v6681_v27 = vsel %vm2487_vm8, 1.0, %v7328_v29  ;;  %vm2518_vm5 = vcmp.eq.s32.totalorder %v9984_v17, %v7441_v24  ;;  %vm2519_vm9 = vcmp.eq.s32.totalorder %v9984_v17, %v7452_v28  ;;  %v6672_v59 = vsel %vm2478_vm0, 1.0, %v7328_v29 }
 0x293   : > { %v9995_v51 = vpop.permute.xlu1 %1359  ;;  %v5186_v35 = vadd.f32 %v6673_v19, %v5185_v15  ;;  %v5195_v13 = vadd.f32 %v6678_v38, %v6676_v6  ;;  %v5214_v36 = vadd.f32 %v6679_v32, %v6677_v30  ;;  %vm2488_vm11 = vcmp.eq.s32.totalorder %v9870_v41, %v7441_v24 }
 0x294   : > { %v9999_v33 = vpop.permute.xlu0 %1332  ;;  %vm2489_vm3 = vcmp.eq.s32.totalorder %v9870_v41, %v7452_v28  ;;  %v5236_v26 = vadd.f32 %v6710_v52, %v5235_v55  ;;  %v5255_v17 = vadd.f32 %v6711_v18, %v5254_v63  ;;  %v6712_v54 = vsel %vm2518_vm5, 1.0, %v7328_v29 }
 0x295   : > { %1383 = vbcast.lane.b32.xlu1 %v9158_v3, 304  ;;  %v6713_v19 = vsel %vm2519_vm9, 1.0, %v7328_v29  ;;  %vm2492_vm0 = vcmp.eq.s32.totalorder %v9882_v42, %v7441_v24  ;;  %vm2493_vm6 = vcmp.eq.s32.totalorder %v9882_v42, %v7452_v28  ;;  %vm2520_vm12 = vcmp.eq.s32.totalorder %v9980_v4, %v7441_v24 }
 0x296   : > { %1972 = vbcast.lane.b32.xlu0 %v9892_v23, 272  ;;  %vm2521_vm1 = vcmp.eq.s32.totalorder %v9980_v4, %v7452_v28  ;;  %v10210_v52 = vadd.f32 %v5187_v60, %v5186_v35  ;;  %v6682_v15 = vsel %vm2488_vm11, 1.0, %v7328_v29  ;;  %v6683_v42 = vsel %vm2489_vm3, 1.0, %v7328_v29 }
 0x297   : > { %v10007_v31 = vpop.permute.xlu1 %1414  ;;  %vm2490_vm4 = vcmp.eq.s32.totalorder %v9886_v46, %v7441_v24  ;;  %vm2491_vm7 = vcmp.eq.s32.totalorder %v9886_v46, %v7452_v28  ;;  %v5237_v4 = vadd.f32 %v6712_v54, %v5236_v26  ;;  %v10228_v32 = vsel %vm2492_vm0, 1.0, %v7328_v29 }
 0x298   : > { %v10011_v37 = vpop.permute.xlu0 %1363  ;;  %12246 = vst [vmem:[#allocation15_spill] sm:$0xff] %v10210_v52  ;;  %12247 = vst [vmem:[#allocation16_spill] sm:$0xff] %v10228_v32  ;;  %v10231_v6 = vsel %vm2493_vm6, 1.0, %v7328_v29  ;;  %v6714_v41 = vsel %vm2520_vm12, 1.0, %v7328_v29  ;;  %v6715_v30 = vsel %vm2521_vm1, 1.0, %v7328_v29  ;;  %vm2522_vm8 = vcmp.eq.s32.totalorder %v9999_v33, %v7441_v24 }
 0x299   : > { %1709 = vbcast.lane.b32.xlu1 %v9568_v16, 296  ;;  %12248 = vst [vmem:[#allocation17_spill] sm:$0xff] %v10231_v6  ;;  %vm2523_vm5 = vcmp.eq.s32.totalorder %v9999_v33, %v7452_v28  ;;  %v6684_v60 = vsel %vm2490_vm4, 1.0, %v7328_v29  ;;  %vm2496_vm9 = vcmp.eq.s32.totalorder %v9898_v62, %v7441_v24  ;;  %vm2497_vm11 = vcmp.eq.s32.totalorder %v9898_v62, %v7452_v28 }
 0x29a   : > { %1489 = vbcast.lane.b32.xlu0 %v9440_v57, 296  ;;  %vm2536_vm3 = vcmp.eq.s32.totalorder %v10011_v37, %v7441_v24  ;;  %vm2537_vm0 = vcmp.eq.s32.totalorder %v10011_v37, %v7452_v28  ;;  %vm2534_vm6 = vcmp.eq.s32.totalorder %v9995_v51, %v7441_v24  ;;  %vm2535_vm12 = vcmp.eq.s32.totalorder %v9995_v51, %v7452_v28 }
 0x29b   : > { %v10019_v9 = vpop.permute.xlu1 %1579  ;;  %v6716_v33 = vsel %vm2522_vm8, 1.0, %v7328_v29  ;;  %v6717_v35 = vsel %vm2523_vm5, 1.0, %v7328_v29  ;;  %vm2560_vm1 = vcmp.eq.s32.totalorder %v10007_v31, %v7441_v24  ;;  %vm2561_vm4 = vcmp.eq.s32.totalorder %v10007_v31, %v7452_v28 }
 0x29c   : > { %v10023_v8 = vpop.permute.xlu0 %1418  ;;  %v10276_v51 = vsel %vm2496_vm9, 1.0, %v7328_v29  ;;  %v10282_v26 = vsel %vm2497_vm11, 1.0, %v7328_v29  ;;  %v6731_v54 = vsel %vm2537_vm0, 1.0, %v7328_v29  ;;  %v6728_v31 = vsel %vm2534_vm6, 1.0, %v7328_v29 }
 0x29d   : > { %1921 = vbcast.lane.b32.xlu1 %v9838_v47, 280  ;;  %12251 = vst [vmem:[#allocation20_spill] sm:$0xff] %v10276_v51  ;;  %12252 = vst [vmem:[#allocation21_spill] sm:$0xff] %v10282_v26  ;;  %v6754_v62 = vsel %vm2560_vm1, 1.0, %v7328_v29  ;;  %vm2563_vm8 = vcmp.eq.s32.totalorder %v10023_v8, %v7452_v28  ;;  %vm2638_vm11 = vcmp.eq.s32.totalorder %v10019_v9, %v7441_v24 }
 0x29e   : > { %1815 = vbcast.lane.b32.xlu0 %v9782_v11, 288 }
 0x29f   : > { %v10031_v45 = vpop.permute.xlu1 %1634 }
 0x2a0   : > { %v10035_v10 = vpop.permute.xlu0 %1583  ;;  %vm2665_vm15 = vcmp.eq.s32.totalorder %v10031_v45, %v7452_v28 }
 0x2a1   : > { %1544 = vbcast.lane.b32.xlu1 %v9707_v22, 296  ;;  %vm2640_vm5 = vcmp.eq.s32.totalorder %v10035_v10, %v7441_v24  ;;  %vm2641_vm9 = vcmp.eq.s32.totalorder %v10035_v10, %v7452_v28  ;;  %v6757_v10 = vsel %vm2563_vm8, 1.0, %v7328_v29 }
 0x2a2   : > { %1438 = vbcast.lane.b32.xlu0 %v9162_v44, 304 }
 0x2a3   : > { %v10043_v12 = vpop.permute.xlu1 %1367 }
 0x2a4   : > { %v10047_v7 = vpop.permute.xlu0 %1638  ;;  %vm2538_vm0 = vcmp.eq.s32.totalorder %v10043_v12, %v7441_v24  ;;  %vm2539_vm6 = vcmp.eq.s32.totalorder %v10043_v12, %v7452_v28  ;;  %v6835_v12 = vsel %vm2641_vm9, 1.0, %v7328_v29 }
 0x2a5   : > { %1658 = vbcast.lane.b32.xlu1 %v9243_v48, 304  ;;  %vm2667_vm1 = vcmp.eq.s32.totalorder %v10047_v7, %v7452_v28 }
 0x2a6   : > { %1603 = vbcast.lane.b32.xlu0 %v9239_v40, 304 }
 0x2a7   : > { %v10055_v53 = vpop.permute.xlu1 %1473 }
 0x2a8   : > { %v10059_v50 = vpop.permute.xlu0 %1469  ;;  %vm2589_vm8 = vcmp.eq.s32.totalorder %v10055_v53, %v7452_v28 }
 0x2a9   : > { %1870 = vbcast.lane.b32.xlu1 %v9804_v49, 288 }
 0x2aa   : > { %1764 = vbcast.lane.b32.xlu0 %v9739_v2, 296 }
 0x2ab   : > { %v10073_v14 = vpop.permute.xlu1 %1693 }
 0x2ac   : > { %v10081_v61 = vpop.permute.xlu0 %1689  ;;  %vm2692_vm9 = vcmp.eq.s32.totalorder %v10073_v14, %v7441_v24 }
 0x2ad   : > { %1387 = vbcast.lane.b32.xlu1 %v9158_v3, 312 }
 0x2ae   : > { %1976 = vbcast.lane.b32.xlu0 %v9892_v23, 280 }
 0x2af   : > { %v10103_v34 = vpop.permute.xlu1 %1524 }
 0x2b0   : > { %v10109_v0 = vpop.permute.xlu0 %1422 }
 0x2b1   : > { %1713 = vbcast.lane.b32.xlu1 %v9568_v16, 304 }
 0x2b2   : > { %1493 = vbcast.lane.b32.xlu0 %v9440_v57, 304 }
 0x2b3   : > { %v10130_v5 = vpop.permute.xlu1 %1587 }
 0x2b4   : > { %v10140_v25 = vpop.permute.xlu0 %1528 }
 0x2b5   : > { %1925 = vbcast.lane.b32.xlu1 %v9838_v47, 288 }
 0x2b6   : > { %1819 = vbcast.lane.b32.xlu0 %v9782_v11, 296 }
 0x2b7   : > { %v10159_v39 = vpop.permute.xlu1 %1744 }
 0x2b8   : > { %12243 = vst [vmem:[#allocation12_spill] sm:$0xff] %v10159_v39  ;;  %v10167_v43 = vpop.permute.xlu0 %1642  ;;  %v5196_v39 = vadd.f32 %v6680_v56, %v5195_v13  ;;  %v6685_v56 = vsel %vm2491_vm7, 1.0, %v7328_v29  ;;  %vm2562_vm7 = vcmp.eq.s32.totalorder %v10023_v8, %v7441_v24 }
 0x2b9   : > { %1442 = vbcast.lane.b32.xlu1 %v9162_v44, 312 }
 0x2ba   : > { %1336 = vbcast.lane.b32.xlu0 %v9135_v21, 320  ;;  %v5197_v55 = vadd.f32 %v6682_v15, %v5196_v39  ;;  %v6729_v15 = vsel %vm2535_vm12, 1.0, %v7328_v29  ;;  %vm2666_vm12 = vcmp.eq.s32.totalorder %v10047_v7, %v7441_v24  ;;  %v6732_v7 = vsel %vm2538_vm0, 1.0, %v7328_v29 }
 0x2bb   : > { %v10182_v58 = vpop.permute.xlu1 %1371  ;;  %vm2691_vm0 = vcmp.eq.s32.totalorder %v10081_v61, %v7452_v28 }
 0x2bc   : > { %12244 = vst [vmem:[#allocation13_spill] sm:$0xff] %v10182_v58  ;;  %v10188_v1 = vpop.permute.xlu0 %1748  ;;  %v5215_v58 = vadd.f32 %v6681_v27, %v5214_v36  ;;  %v10208_v27 = vadd.f32 %v6672_v59, %v5166_v20  ;;  %v5256_v20 = vadd.f32 %v6713_v19, %v5255_v17  ;;  %v10262_v13 = vadd.f32 %v6684_v60, %v5197_v55 }
 0x2bd   : > { %1607 = vbcast.lane.b32.xlu1 %v9239_v40, 312  ;;  %v6730_v17 = vsel %vm2536_vm3, 1.0, %v7328_v29  ;;  %vm2639_vm3 = vcmp.eq.s32.totalorder %v10019_v9, %v7452_v28  ;;  %v6834_v9 = vsel %vm2640_vm5, 1.0, %v7328_v29  ;;  %v6832_v60 = vsel %vm2638_vm11, 1.0, %v7328_v29 }
 0x2be   : > { %1548 = vbcast.lane.b32.xlu0 %v9707_v22, 304  ;;  %12245 = vst [vmem:[#allocation14_spill] sm:$0xff] %v10208_v27  ;;  %v5216_v63 = vadd.f32 %v6683_v42, %v5215_v58  ;;  %v5238_v58 = vadd.f32 %v6714_v41, %v5237_v4  ;;  %v5257_v59 = vadd.f32 %v6715_v30, %v5256_v20  ;;  %12249 = vst [vmem:[#allocation18_spill] sm:$0xff] %v10262_v13 }
 0x2bf   : > { %v10206_v18 = vpop.permute.xlu1 %1697  ;;  %v6755_v20 = vsel %vm2561_vm4, 1.0, %v7328_v29  ;;  %v5271_v41 = vadd.f32 %v6730_v17, %v6728_v31  ;;  %v5290_v30 = vadd.f32 %v6731_v54, %v6729_v15  ;;  %vm2664_vm4 = vcmp.eq.s32.totalorder %v10031_v45, %v7441_v24 }
 0x2c0   : > { %v10220_v38 = vpop.permute.xlu0 %1477  ;;  %v10264_v36 = vadd.f32 %v6685_v56, %v5216_v63  ;;  %v10290_v42 = vadd.f32 %v6716_v33, %v5238_v58  ;;  %v10292_v4 = vadd.f32 %v6717_v35, %v5257_v59  ;;  %v6756_v63 = vsel %vm2562_vm7, 1.0, %v7328_v29 }
 0x2c1   : > { %1768 = vbcast.lane.b32.xlu1 %v9739_v2, 304  ;;  %v6833_v56 = vsel %vm2639_vm3, 1.0, %v7328_v29  ;;  %v6733_v58 = vsel %vm2539_vm6, 1.0, %v7328_v29  ;;  %v5309_v33 = vadd.f32 %v6756_v63, %v6754_v62  ;;  %v5328_v35 = vadd.f32 %v6757_v10, %v6755_v20 }
 0x2c2   : > { %1662 = vbcast.lane.b32.xlu0 %v9243_v48, 312  ;;  %12250 = vst [vmem:[#allocation19_spill] sm:$0xff] %v10264_v36  ;;  %12253 = vst [vmem:[#allocation22_spill] sm:$0xff] %v10290_v42  ;;  %v6860_v45 = vsel %vm2666_vm12, 1.0, %v7328_v29  ;;  %v6861_v17 = vsel %vm2667_vm1, 1.0, %v7328_v29  ;;  %v6858_v31 = vsel %vm2664_vm4, 1.0, %v7328_v29  ;;  %v5423_v52 = vadd.f32 %v6834_v9, %v6832_v60 }
 0x2c3   : > { %v10240_v46 = vpop.permute.xlu1 %1803  ;;  %12254 = vst [vmem:[#allocation23_spill] sm:$0xff] %v10292_v4  ;;  %v6859_v15 = vsel %vm2665_vm15, 1.0, %v7328_v29  ;;  %v5442_v27 = vadd.f32 %v6835_v12, %v6833_v56  ;;  %v10345_v26 = vadd.f32 %v6732_v7, %v5271_v41  ;;  %v10347_v51 = vadd.f32 %v6733_v58, %v5290_v30 }
 0x2c4   : > { %v10248_v39 = vpop.permute.xlu0 %1799  ;;  %vm2588_vm7 = vcmp.eq.s32.totalorder %v10055_v53, %v7441_v24  ;;  %v10354_v62 = vadd.f32 %v6860_v45, %v6858_v31  ;;  %v10356_v20 = vadd.f32 %v6861_v17, %v6859_v15  ;;  %vm2586_vm15 = vcmp.eq.s32.totalorder %v10059_v50, %v7441_v24 }
 0x2c5   : > { %1980 = vbcast.lane.b32.xlu1 %v9892_v23, 288  ;;  %vm2587_vm5 = vcmp.eq.s32.totalorder %v10059_v50, %v7452_v28  ;;  %vm2693_vm11 = vcmp.eq.s32.totalorder %v10073_v14, %v7452_v28  ;;  %vm2690_vm3 = vcmp.eq.s32.totalorder %v10081_v61, %v7441_v24  ;;  %v6782_v30 = vsel %vm2588_vm7, 1.0, %v7328_v29 }
 0x2c6   : > { %1874 = vbcast.lane.b32.xlu0 %v9804_v49, 296  ;;  %v6783_v50 = vsel %vm2589_vm8, 1.0, %v7328_v29  ;;  %vm2564_vm6 = vcmp.eq.s32.totalorder %v10109_v0, %v7441_v24  ;;  %vm2565_vm12 = vcmp.eq.s32.totalorder %v10109_v0, %v7452_v28  ;;  %v6780_v14 = vsel %vm2586_vm15, 1.0, %v7328_v29 }
 0x2c7   : > { %v10270_v37 = vpop.permute.xlu1 %1532  ;;  %v6781_v63 = vsel %vm2587_vm5, 1.0, %v7328_v29  ;;  %vm2642_vm1 = vcmp.eq.s32.totalorder %v10130_v5, %v7441_v24  ;;  %vm2643_vm4 = vcmp.eq.s32.totalorder %v10130_v5, %v7452_v28  ;;  %v6886_v61 = vsel %vm2692_vm9, 1.0, %v7328_v29 }
 0x2c8   : > { %v10286_v19 = vpop.permute.xlu0 %1426  ;;  %v6887_v10 = vsel %vm2693_vm11, 1.0, %v7328_v29  ;;  %v6884_v0 = vsel %vm2690_vm3, 1.0, %v7328_v29  ;;  %v6885_v9 = vsel %vm2691_vm0, 1.0, %v7328_v29  ;;  %vm2612_vm7 = vcmp.eq.s32.totalorder %v10103_v34, %v7441_v24 }
 0x2c9   : > { %1497 = vbcast.lane.b32.xlu1 %v9440_v57, 312  ;;  %vm2613_vm8 = vcmp.eq.s32.totalorder %v10103_v34, %v7452_v28  ;;  %v6758_v5 = vsel %vm2564_vm6, 1.0, %v7328_v29  ;;  %v6759_v60 = vsel %vm2565_vm12, 1.0, %v7328_v29  ;;  %v10402_v7 = vadd.f32 %v6782_v30, %v6780_v14 }
 0x2ca   : > { %1391 = vbcast.lane.b32.xlu0 %v9158_v3, 320  ;;  %v10404_v58 = vadd.f32 %v6783_v50, %v6781_v63  ;;  %v6836_v45 = vsel %vm2642_vm1, 1.0, %v7328_v29  ;;  %v6837_v17 = vsel %vm2643_vm4, 1.0, %v7328_v29  ;;  %v5499_v31 = vadd.f32 %v6886_v61, %v6884_v0 }
 0x2cb   : > { %v10306_v55 = vpop.permute.xlu1 %1646  ;;  %v5518_v15 = vadd.f32 %v6887_v10, %v6885_v9  ;;  %vm2614_vm15 = vcmp.eq.s32.totalorder %v10140_v25, %v7441_v24  ;;  %vm2615_vm5 = vcmp.eq.s32.totalorder %v10140_v25, %v7452_v28  ;;  %v6806_v34 = vsel %vm2612_vm7, 1.0, %v7328_v29 }
 0x2cc   : > { %v10316_v8 = vpop.permute.xlu0 %1591  ;;  %v6807_v30 = vsel %vm2613_vm8, 1.0, %v7328_v29  ;;  %v10416_v50 = vadd.f32 %v6758_v5, %v5309_v33  ;;  %v10418_v14 = vadd.f32 %v6759_v60, %v5328_v35  ;;  %v10422_v61 = vadd.f32 %v6836_v45, %v5423_v52  ;;  %v12255_v35 = vld [vmem:[#allocation13_spill] sm:$0xff] }
 0x2cd   : > { %1823 = vbcast.lane.b32.xlu1 %v9782_v11, 304  ;;  %v10424_v10 = vadd.f32 %v6837_v17, %v5442_v27  ;;  %vm2668_vm9 = vcmp.eq.s32.totalorder %v10167_v43, %v7441_v24  ;;  %vm2669_vm11 = vcmp.eq.s32.totalorder %v10167_v43, %v7452_v28  ;;  %v6808_v0 = vsel %vm2614_vm15, 1.0, %v7328_v29  ;;  %v12256_v27 = vld [vmem:[#allocation12_spill] sm:$0xff] }
 0x2ce   : > { %1717 = vbcast.lane.b32.xlu0 %v9568_v16, 312  ;;  %v6809_v33 = vsel %vm2615_vm5, 1.0, %v7328_v29  ;;  %vm2540_vm3 = vcmp.eq.s32.totalorder %v12255_v35, %v7441_v24  ;;  %vm2541_vm0 = vcmp.eq.s32.totalorder %v12255_v35, %v7452_v28  ;;  %vm2716_vm6 = vcmp.eq.s32.totalorder %v12256_v27, %v7441_v24 }
 0x2cf   : > { %v10336_v59 = vpop.permute.xlu1 %1854  ;;  %vm2717_vm12 = vcmp.eq.s32.totalorder %v12256_v27, %v7452_v28  ;;  %vm2718_vm1 = vcmp.eq.s32.totalorder %v10188_v1, %v7441_v24  ;;  %vm2719_vm4 = vcmp.eq.s32.totalorder %v10188_v1, %v7452_v28  ;;  %v6862_v43 = vsel %vm2668_vm9, 1.0, %v7328_v29 }
 0x2d0   : > { %v10340_v54 = vpop.permute.xlu0 %1752  ;;  %v6863_v52 = vsel %vm2669_vm11, 1.0, %v7328_v29  ;;  %vm2694_vm7 = vcmp.eq.s32.totalorder %v10206_v18, %v7441_v24  ;;  %vm2695_vm8 = vcmp.eq.s32.totalorder %v10206_v18, %v7452_v28  ;;  %v5385_v5 = vadd.f32 %v6808_v0, %v6806_v34 }
 0x2d1   : > { %1340 = vbcast.lane.b32.xlu1 %v9135_v21, 328  ;;  %v5404_v60 = vadd.f32 %v6809_v33, %v6807_v30  ;;  %v6734_v45 = vsel %vm2540_vm3, 1.0, %v7328_v29  ;;  %v6735_v1 = vsel %vm2541_vm0, 1.0, %v7328_v29  ;;  %v6910_v35 = vsel %vm2716_vm6, 1.0, %v7328_v29 }
 0x2d2   : > { %1929 = vbcast.lane.b32.xlu0 %v9838_v47, 296  ;;  %v6911_v27 = vsel %vm2717_vm12, 1.0, %v7328_v29  ;;  %v6912_v6 = vsel %vm2718_vm1, 1.0, %v7328_v29  ;;  %v6913_v36 = vsel %vm2719_vm4, 1.0, %v7328_v29  ;;  %v5462_v18 = vadd.f32 %v6862_v43, %v10354_v62 }
 0x2d3   : > { %v10362_v41 = vpop.permute.xlu1 %1375  ;;  %v5481_v34 = vadd.f32 %v6863_v52, %v10356_v20  ;;  %v6888_v30 = vsel %vm2694_vm7, 1.0, %v7328_v29  ;;  %v6889_v0 = vsel %vm2695_vm8, 1.0, %v7328_v29  ;;  %v10471_v33 = vadd.f32 %v6734_v45, %v10345_v26 }
 0x2d4   : > { %v10372_v53 = vpop.permute.xlu0 %1858  ;;  %v10474_v32 = vadd.f32 %v6735_v1, %v10347_v51  ;;  %vm2590_vm15 = vcmp.eq.s32.totalorder %v10220_v38, %v7441_v24  ;;  %vm2591_vm5 = vcmp.eq.s32.totalorder %v10220_v38, %v7452_v28  ;;  %v10482_v20 = vadd.f32 %v6912_v6, %v6910_v35 }
 0x2d5   : > { %1552 = vbcast.lane.b32.xlu1 %v9707_v22, 312  ;;  %v10484_v43 = vadd.f32 %v6913_v36, %v6911_v27  ;;  %vm2744_vm9 = vcmp.eq.s32.totalorder %v10240_v46, %v7441_v24  ;;  %vm2745_vm11 = vcmp.eq.s32.totalorder %v10240_v46, %v7452_v28  ;;  %v10492_v26 = vadd.f32 %v6888_v30, %v5499_v31 }
 0x2d6   : > { %1446 = vbcast.lane.b32.xlu0 %v9162_v44, 320  ;;  %v10494_v52 = vadd.f32 %v6889_v0, %v5518_v15  ;;  %vm2742_vm3 = vcmp.eq.s32.totalorder %v10248_v39, %v7441_v24  ;;  %vm2743_vm0 = vcmp.eq.s32.totalorder %v10248_v39, %v7452_v28  ;;  %v6784_v38 = vsel %vm2590_vm15, 1.0, %v7328_v29 }
 0x2d7   : > { %v10392_v12 = vpop.permute.xlu1 %1701  ;;  %v6785_v6 = vsel %vm2591_vm5, 1.0, %v7328_v29  ;;  %vm2616_vm6 = vcmp.eq.s32.totalorder %v10270_v37, %v7441_v24  ;;  %vm2617_vm12 = vcmp.eq.s32.totalorder %v10270_v37, %v7452_v28  ;;  %v6938_v46 = vsel %vm2744_vm9, 1.0, %v7328_v29 }
 0x2d8   : > { %v10400_v56 = vpop.permute.xlu0 %1481  ;;  %v6939_v36 = vsel %vm2745_vm11, 1.0, %v7328_v29  ;;  %vm2566_vm1 = vcmp.eq.s32.totalorder %v10286_v19, %v7441_v24  ;;  %vm2567_vm4 = vcmp.eq.s32.totalorder %v10286_v19, %v7452_v28  ;;  %v6936_v31 = vsel %vm2742_vm3, 1.0, %v7328_v29 }
 0x2d9   : > { %1666 = vbcast.lane.b32.xlu1 %v9243_v48, 320  ;;  %v6937_v15 = vsel %vm2743_vm0, 1.0, %v7328_v29  ;;  %vm2670_vm7 = vcmp.eq.s32.totalorder %v10306_v55, %v7441_v24  ;;  %vm2671_vm8 = vcmp.eq.s32.totalorder %v10306_v55, %v7452_v28  ;;  %v6810_v45 = vsel %vm2616_vm6, 1.0, %v7328_v29 }
 0x2da   : > { %1611 = vbcast.lane.b32.xlu0 %v9239_v40, 320  ;;  %v6811_v1 = vsel %vm2617_vm12, 1.0, %v7328_v29  ;;  %vm2644_vm15 = vcmp.eq.s32.totalorder %v10316_v8, %v7441_v24  ;;  %vm2645_vm5 = vcmp.eq.s32.totalorder %v10316_v8, %v7452_v28  ;;  %v10532_v19 = vadd.f32 %v6784_v38, %v10402_v7 }
 0x2db   : > { %v10420_v63 = vpop.permute.xlu1 %1909  ;;  %v10535_v35 = vadd.f32 %v6785_v6, %v10404_v58  ;;  %v6760_v55 = vsel %vm2566_vm1, 1.0, %v7328_v29  ;;  %v6761_v27 = vsel %vm2567_vm4, 1.0, %v7328_v29  ;;  %v10540_v30 = vadd.f32 %v6938_v46, %v6936_v31 }
 0x2dc   : > { %v10430_v25 = vpop.permute.xlu0 %1807  ;;  %v10542_v0 = vadd.f32 %v6939_v36, %v6937_v15  ;;  %v6864_v8 = vsel %vm2670_vm7, 1.0, %v7328_v29  ;;  %v6865_v13 = vsel %vm2671_vm8, 1.0, %v7328_v29  ;;  %v10548_v7 = vadd.f32 %v6810_v45, %v5385_v5 }
 0x2dd   : > { %1878 = vbcast.lane.b32.xlu1 %v9804_v49, 304  ;;  %v10550_v58 = vadd.f32 %v6811_v1, %v5404_v60  ;;  %v6838_v38 = vsel %vm2644_vm15, 1.0, %v7328_v29  ;;  %v6839_v6 = vsel %vm2645_vm5, 1.0, %v7328_v29  ;;  %v10557_v46 = vadd.f32 %v6760_v55, %v10416_v50 }
 0x2de   : > { %1772 = vbcast.lane.b32.xlu0 %v9739_v2, 312  ;;  %v10560_v36 = vadd.f32 %v6761_v27, %v10418_v14  ;;  %vm2720_vm9 = vcmp.eq.s32.totalorder %v10340_v54, %v7441_v24  ;;  %vm2721_vm11 = vcmp.eq.s32.totalorder %v10340_v54, %v7452_v28  ;;  %v10567_v5 = vadd.f32 %v6864_v8, %v5462_v18 }
 0x2df   : > { %v10454_v9 = vpop.permute.xlu1 %1430  ;;  %v10569_v60 = vadd.f32 %v6865_v13, %v5481_v34  ;;  %vm2542_vm3 = vcmp.eq.s32.totalorder %v10362_v41, %v7441_v24  ;;  %vm2543_vm0 = vcmp.eq.s32.totalorder %v10362_v41, %v7452_v28  ;;  %v10577_v50 = vadd.f32 %v6838_v38, %v10422_v61 }
 0x2e0   : > { %v10458_v17 = vpop.permute.xlu0 %1913  ;;  %v10580_v14 = vadd.f32 %v6839_v6, %v10424_v10  ;;  %vm2768_vm6 = vcmp.eq.s32.totalorder %v10336_v59, %v7441_v24  ;;  %vm2770_vm12 = vcmp.eq.s32.totalorder %v10372_v53, %v7441_v24  ;;  %vm2769_vm1 = vcmp.eq.s32.totalorder %v10336_v59, %v7452_v28 }
 0x2e1   : > { %1395 = vbcast.lane.b32.xlu1 %v9158_v3, 328  ;;  %v6914_v54 = vsel %vm2720_vm9, 1.0, %v7328_v29  ;;  %v6915_v41 = vsel %vm2721_vm11, 1.0, %v7328_v29  ;;  %vm2771_vm4 = vcmp.eq.s32.totalorder %v10372_v53, %v7452_v28  ;;  %v6736_v10 = vsel %vm2542_vm3, 1.0, %v7328_v29 }
 0x2e2   : > { %1984 = vbcast.lane.b32.xlu0 %v9892_v23, 296  ;;  %v6737_v18 = vsel %vm2543_vm0, 1.0, %v7328_v29  ;;  %vm2696_vm7 = vcmp.eq.s32.totalorder %v10392_v12, %v7441_v24  ;;  %vm2697_vm8 = vcmp.eq.s32.totalorder %v10392_v12, %v7452_v28  ;;  %v6962_v59 = vsel %vm2768_vm6, 1.0, %v7328_v29 }
 0x2e3   : > { %v10480_v62 = vpop.permute.xlu1 %1595  ;;  %v6964_v34 = vsel %vm2770_vm12, 1.0, %v7328_v29  ;;  %vm2592_vm15 = vcmp.eq.s32.totalorder %v10400_v56, %v7441_v24  ;;  %vm2593_vm5 = vcmp.eq.s32.totalorder %v10400_v56, %v7452_v28  ;;  %v6963_v53 = vsel %vm2769_vm1, 1.0, %v7328_v29 }
 0x2e4   : > { %v10490_v51 = vpop.permute.xlu0 %1536  ;;  %v10612_v31 = vadd.f32 %v6914_v54, %v10482_v20  ;;  %v10615_v12 = vadd.f32 %v6915_v41, %v10484_v43  ;;  %v6965_v15 = vsel %vm2771_vm4, 1.0, %v7328_v29  ;;  %v10621_v1 = vadd.f32 %v6736_v10, %v10471_v33 }
 0x2e5   : > { %1721 = vbcast.lane.b32.xlu1 %v9568_v16, 320  ;;  %v10624_v55 = vadd.f32 %v6737_v18, %v10474_v32  ;;  %v6890_v56 = vsel %vm2696_vm7, 1.0, %v7328_v29  ;;  %v6891_v27 = vsel %vm2697_vm8, 1.0, %v7328_v29  ;;  %v10630_v20 = vadd.f32 %v6964_v34, %v6962_v59 }
 0x2e6   : > { %1501 = vbcast.lane.b32.xlu0 %v9440_v57, 320  ;;  %v6786_v43 = vsel %vm2592_vm15, 1.0, %v7328_v29  ;;  %v6787_v38 = vsel %vm2593_vm5, 1.0, %v7328_v29  ;;  %vm2794_vm9 = vcmp.eq.s32.totalorder %v10420_v63, %v7441_v24  ;;  %v10637_v33 = vadd.f32 %v6965_v15, %v6963_v53 }
 0x2e7   : > { %v10514_v39 = vpop.permute.xlu1 %1756  ;;  %vm2795_vm11 = vcmp.eq.s32.totalorder %v10420_v63, %v7452_v28  ;;  %vm2746_vm3 = vcmp.eq.s32.totalorder %v10430_v25, %v7441_v24  ;;  %vm2747_vm0 = vcmp.eq.s32.totalorder %v10430_v25, %v7452_v28  ;;  %v10647_v32 = vadd.f32 %v6890_v56, %v10492_v26 }
 0x2e8   : > { %v10522_v37 = vpop.permute.xlu0 %1650  ;;  %v10650_v6 = vadd.f32 %v6891_v27, %v10494_v52  ;;  %vm2568_vm6 = vcmp.eq.s32.totalorder %v10454_v9, %v7441_v24  ;;  %vm2569_vm12 = vcmp.eq.s32.totalorder %v10454_v9, %v7452_v28  ;;  %v10659_v54 = vadd.f32 %v6786_v43, %v10532_v19 }
 0x2e9   : > { %1933 = vbcast.lane.b32.xlu1 %v9838_v47, 304  ;;  %v10662_v25 = vadd.f32 %v6787_v38, %v10535_v35  ;;  %v6988_v26 = vsel %vm2794_vm9, 1.0, %v7328_v29  ;;  %vm2796_vm1 = vcmp.eq.s32.totalorder %v10458_v17, %v7441_v24  ;;  %v6989_v41 = vsel %vm2795_vm11, 1.0, %v7328_v29 }
 0x2ea   : > { %1827 = vbcast.lane.b32.xlu0 %v9782_v11, 312  ;;  %v6940_v10 = vsel %vm2746_vm3, 1.0, %v7328_v29  ;;  %v6941_v9 = vsel %vm2747_vm0, 1.0, %v7328_v29  ;;  %vm2797_vm4 = vcmp.eq.s32.totalorder %v10458_v17, %v7452_v28  ;;  %v6762_v19 = vsel %vm2568_vm6, 1.0, %v7328_v29 }
 0x2eb   : > { %v10546_v4 = vpop.permute.xlu1 %1964  ;;  %v6763_v35 = vsel %vm2569_vm12, 1.0, %v7328_v29  ;;  %vm2646_vm7 = vcmp.eq.s32.totalorder %v10480_v62, %v7441_v24  ;;  %vm2647_vm8 = vcmp.eq.s32.totalorder %v10480_v62, %v7452_v28  ;;  %v6990_v18 = vsel %vm2796_vm1, 1.0, %v7328_v29 }
 0x2ec   : > { %v10554_v42 = vpop.permute.xlu0 %1862  ;;  %vm2618_vm15 = vcmp.eq.s32.totalorder %v10490_v51, %v7441_v24  ;;  %vm2619_vm5 = vcmp.eq.s32.totalorder %v10490_v51, %v7452_v28  ;;  %vm2722_vm9 = vcmp.eq.s32.totalorder %v10514_v39, %v7441_v24  ;;  %v10692_v59 = vadd.f32 %v6940_v10, %v10540_v30 }
 0x2ed   : > { %1450 = vbcast.lane.b32.xlu1 %v9162_v44, 328  ;;  %v10695_v62 = vadd.f32 %v6941_v9, %v10542_v0  ;;  %v6991_v34 = vsel %vm2797_vm4, 1.0, %v7328_v29  ;;  %vm2723_vm11 = vcmp.eq.s32.totalorder %v10514_v39, %v7452_v28  ;;  %v10703_v51 = vadd.f32 %v6762_v19, %v10557_v46 }
 0x2ee   : > { %1344 = vbcast.lane.b32.xlu0 %v9135_v21, 336  ;;  %v10706_v15 = vadd.f32 %v6763_v35, %v10560_v36  ;;  %v6840_v56 = vsel %vm2646_vm7, 1.0, %v7328_v29  ;;  %v6841_v30 = vsel %vm2647_vm8, 1.0, %v7328_v29  ;;  %v10711_v0 = vadd.f32 %v6990_v18, %v6988_v26 }
 0x2ef   : > { %v10586_v13 = vpop.permute.xlu1 %1379  ;;  %v6812_v27 = vsel %vm2618_vm15, 1.0, %v7328_v29  ;;  %v6813_v39 = vsel %vm2619_vm5, 1.0, %v7328_v29  ;;  %v6916_v43 = vsel %vm2722_vm9, 1.0, %v7328_v29  ;;  %v10717_v46 = vadd.f32 %v6991_v34, %v6989_v41 }
 0x2f0   : > { %v10594_v61 = vpop.permute.xlu0 %1968  ;;  %v6917_v36 = vsel %vm2723_vm11, 1.0, %v7328_v29  ;;  %vm2672_vm3 = vcmp.eq.s32.totalorder %v10522_v37, %v7441_v24  ;;  %vm2673_vm0 = vcmp.eq.s32.totalorder %v10522_v37, %v7452_v28  ;;  %v10727_v26 = vadd.f32 %v6840_v56, %v10577_v50 }
 0x2f1   : > { %1615 = vbcast.lane.b32.xlu1 %v9239_v40, 328  ;;  %v10730_v10 = vadd.f32 %v6841_v30, %v10580_v14  ;;  %vm2772_vm6 = vcmp.eq.s32.totalorder %v10554_v42, %v7441_v24  ;;  %vm2773_vm12 = vcmp.eq.s32.totalorder %v10554_v42, %v7452_v28  ;;  %v10739_v9 = vadd.f32 %v6812_v27, %v10548_v7 }
 0x2f2   : > { %1556 = vbcast.lane.b32.xlu0 %v9707_v22, 320  ;;  %v10742_v37 = vadd.f32 %v6813_v39, %v10550_v58  ;;  %v10745_v50 = vadd.f32 %v6916_v43, %v10612_v31  ;;  %vm2544_vm1 = vcmp.eq.s32.totalorder %v10586_v13, %v7441_v24  ;;  %v10751_v14 = vadd.f32 %v6917_v36, %v10615_v12 }
 0x2f3   : > { %v10618_v45 = vpop.permute.xlu1 %1705  ;;  %v6866_v42 = vsel %vm2672_vm3, 1.0, %v7328_v29  ;;  %v6867_v19 = vsel %vm2673_vm0, 1.0, %v7328_v29  ;;  %vm2820_vm4 = vcmp.eq.s32.totalorder %v10546_v4, %v7441_v24  ;;  %vm2821_vm7 = vcmp.eq.s32.totalorder %v10546_v4, %v7452_v28 }
 0x2f4   : > { %v10628_v8 = vpop.permute.xlu0 %1485  ;;  %v6966_v7 = vsel %vm2772_vm6, 1.0, %v7328_v29  ;;  %v6967_v58 = vsel %vm2773_vm12, 1.0, %v7328_v29  ;;  %vm2545_vm8 = vcmp.eq.s32.totalorder %v10586_v13, %v7452_v28  ;;  %v6738_v12 = vsel %vm2544_vm1, 1.0, %v7328_v29 }
 0x2f5   : > { %1776 = vbcast.lane.b32.xlu1 %v9739_v2, 320  ;;  %vm2822_vm15 = vcmp.eq.s32.totalorder %v10594_v61, %v7441_v24  ;;  %vm2823_vm5 = vcmp.eq.s32.totalorder %v10594_v61, %v7452_v28  ;;  %vm2698_vm9 = vcmp.eq.s32.totalorder %v10618_v45, %v7441_v24  ;;  %v10776_v35 = vadd.f32 %v6866_v42, %v10567_v5 }
 0x2f6   : > { %1670 = vbcast.lane.b32.xlu0 %v9243_v48, 328  ;;  %v10779_v13 = vadd.f32 %v6867_v19, %v10569_v60  ;;  %v7014_v18 = vsel %vm2820_vm4, 1.0, %v7328_v29  ;;  %vm2699_vm11 = vcmp.eq.s32.totalorder %v10618_v45, %v7452_v28  ;;  %v7015_v61 = vsel %vm2821_vm7, 1.0, %v7328_v29 }
 0x2f7   : > { %v10656_v63 = vpop.permute.xlu1 %1917  ;;  %v10787_v34 = vadd.f32 %v6966_v7, %v10630_v20  ;;  %v10790_v56 = vadd.f32 %v6967_v58, %v10637_v33  ;;  %v6739_v5 = vsel %vm2545_vm8, 1.0, %v7328_v29  ;;  %v10795_v60 = vadd.f32 %v6738_v12, %v10621_v1 }
 0x2f8   : > { %v10667_v52 = vpop.permute.xlu0 %1811  ;;  %v7016_v30 = vsel %vm2822_vm15, 1.0, %v7328_v29  ;;  %v7017_v45 = vsel %vm2823_vm5, 1.0, %v7328_v29  ;;  %v6892_v27 = vsel %vm2698_vm9, 1.0, %v7328_v29  ;;  %v6893_v20 = vsel %vm2699_vm11, 1.0, %v7328_v29 }
 0x2f9   : > { %1988 = vbcast.lane.b32.xlu1 %v9892_v23, 304  ;;  %vm2594_vm3 = vcmp.eq.s32.totalorder %v10628_v8, %v7441_v24  ;;  %vm2595_vm0 = vcmp.eq.s32.totalorder %v10628_v8, %v7452_v28  ;;  %vm2798_vm6 = vcmp.eq.s32.totalorder %v10656_v63, %v7441_v24  ;;  %v10812_v33 = vadd.f32 %v6739_v5, %v10624_v55 }
 0x2fa   : > { %1882 = vbcast.lane.b32.xlu0 %v9804_v49, 312  ;;  %vm2799_vm12 = vcmp.eq.s32.totalorder %v10656_v63, %v7452_v28  ;;  %vm2748_vm1 = vcmp.eq.s32.totalorder %v10667_v52, %v7441_v24  ;;  %vm2749_vm4 = vcmp.eq.s32.totalorder %v10667_v52, %v7452_v28  ;;  %v10821_v8 = vadd.f32 %v7016_v30, %v7014_v18 }
 0x2fb   : > { %v10689_v17 = vpop.permute.xlu1 %1540  ;;  %v10823_v43 = vadd.f32 %v7017_v45, %v7015_v61  ;;  %v10826_v36 = vadd.f32 %v6892_v27, %v10647_v32  ;;  %v10832_v55 = vadd.f32 %v6893_v20, %v10650_v6  ;;  %v6788_v63 = vsel %vm2594_vm3, 1.0, %v7328_v29 }
 0x2fc   : > { %v10700_v53 = vpop.permute.xlu0 %1434  ;;  %vm2620_vm7 = vcmp.eq.s32.totalorder %v10689_v17, %v7441_v24  ;;  %v6789_v52 = vsel %vm2595_vm0, 1.0, %v7328_v29  ;;  %v6992_v42 = vsel %vm2798_vm6, 1.0, %v7328_v29  ;;  %v6993_v7 = vsel %vm2799_vm12, 1.0, %v7328_v29 }
 0x2fd   : > { %1505 = vbcast.lane.b32.xlu1 %v9440_v57, 328  ;;  %v6942_v32 = vsel %vm2748_vm1, 1.0, %v7328_v29  ;;  %v6943_v58 = vsel %vm2749_vm4, 1.0, %v7328_v29  ;;  %vm2621_vm8 = vcmp.eq.s32.totalorder %v10689_v17, %v7452_v28  ;;  %v6814_v6 = vsel %vm2620_vm7, 1.0, %v7328_v29 }
 0x2fe   : > { %1399 = vbcast.lane.b32.xlu0 %v9158_v3, 336  ;;  %vm2570_vm15 = vcmp.eq.s32.totalorder %v10700_v53, %v7441_v24  ;;  %vm2571_vm5 = vcmp.eq.s32.totalorder %v10700_v53, %v7452_v28  ;;  %v10855_v18 = vadd.f32 %v6788_v63, %v10659_v54  ;;  %v10858_v17 = vadd.f32 %v6789_v52, %v10662_v25 }
 0x2ff   : > { %v10724_v38 = vpop.permute.xlu1 %1654  ;;  %v10861_v61 = vadd.f32 %v6992_v42, %v10711_v0  ;;  %v10867_v53 = vadd.f32 %v6993_v7, %v10717_v46  ;;  %v10870_v5 = vadd.f32 %v6942_v32, %v10692_v59  ;;  %v10873_v54 = vadd.f32 %v6943_v58, %v10695_v62 }
 0x300   : > { %v10736_v41 = vpop.permute.xlu0 %1599  ;;  %vm2674_vm9 = vcmp.eq.s32.totalorder %v10724_v38, %v7441_v24  ;;  %vm2675_vm11 = vcmp.eq.s32.totalorder %v10724_v38, %v7452_v28  ;;  %v6815_v25 = vsel %vm2621_vm8, 1.0, %v7328_v29  ;;  %v10879_v0 = vadd.f32 %v6814_v6, %v10739_v9 }
 0x301   : > { %1831 = vbcast.lane.b32.xlu1 %v9782_v11, 320  ;;  %v6764_v38 = vsel %vm2570_vm15, 1.0, %v7328_v29  ;;  %v6765_v45 = vsel %vm2571_vm5, 1.0, %v7328_v29  ;;  %v6868_v46 = vsel %vm2674_vm9, 1.0, %v7328_v29  ;;  %v6869_v59 = vsel %vm2675_vm11, 1.0, %v7328_v29 }
 0x302   : > { %1725 = vbcast.lane.b32.xlu0 %v9568_v16, 328  ;;  %vm2648_vm3 = vcmp.eq.s32.totalorder %v10736_v41, %v7441_v24  ;;  %vm2649_vm0 = vcmp.eq.s32.totalorder %v10736_v41, %v7452_v28  ;;  %v10895_v62 = vadd.f32 %v6815_v25, %v10742_v37  ;;  %v10905_v41 = vadd.f32 %v6764_v38, %v10703_v51 }
 0x303   : > { %v10764_v31 = vpop.permute.xlu1 %1866  ;;  %v10908_v9 = vadd.f32 %v6765_v45, %v10706_v15  ;;  %v10911_v37 = vadd.f32 %v6868_v46, %v10776_v35  ;;  %v10918_v20 = vadd.f32 %v6869_v59, %v10779_v13  ;;  %v6843_v63 = vsel %vm2649_vm0, 1.0, %v7328_v29 }
 0x304   : > { %v10773_v4 = vpop.permute.xlu0 %1760  ;;  %vm2774_vm6 = vcmp.eq.s32.totalorder %v10764_v31, %v7441_v24  ;;  %vm2775_vm12 = vcmp.eq.s32.totalorder %v10764_v31, %v7452_v28 }
 0x305   : > { %1348 = vbcast.lane.b32.xlu1 %v9135_v21, 344  ;;  %vm2724_vm1 = vcmp.eq.s32.totalorder %v10773_v4, %v7441_v24  ;;  %vm2725_vm4 = vcmp.eq.s32.totalorder %v10773_v4, %v7452_v28  ;;  %v6842_v4 = vsel %vm2648_vm3, 1.0, %v7328_v29  ;;  %v6968_v51 = vsel %vm2774_vm6, 1.0, %v7328_v29 }
 0x306   : > { %1937 = vbcast.lane.b32.xlu0 %v9838_v47, 312  ;;  %v6969_v15 = vsel %vm2775_vm12, 1.0, %v7328_v29  ;;  %v6918_v35 = vsel %vm2724_vm1, 1.0, %v7328_v29  ;;  %v6919_v42 = vsel %vm2725_vm4, 1.0, %v7328_v29  ;;  %v10940_v7 = vadd.f32 %v6842_v4, %v10727_v26 }
 0x307   : > { %v10800_v39 = vpop.permute.xlu1 %1383  ;;  %v10954_v58 = vadd.f32 %v6918_v35, %v10745_v50  ;;  %v10957_v6 = vadd.f32 %v6919_v42, %v10751_v14 }
 0x308   : > { %v10809_v1 = vpop.permute.xlu0 %1972  ;;  %vm2546_vm7 = vcmp.eq.s32.totalorder %v10800_v39, %v7441_v24  ;;  %vm2547_vm8 = vcmp.eq.s32.totalorder %v10800_v39, %v7452_v28  ;;  %v10943_v39 = vadd.f32 %v6843_v63, %v10730_v10 }
 0x309   : > { %1560 = vbcast.lane.b32.xlu1 %v9707_v22, 328  ;;  %v6740_v13 = vsel %vm2546_vm7, 1.0, %v7328_v29  ;;  %vm2824_vm15 = vcmp.eq.s32.totalorder %v10809_v1, %v7441_v24  ;;  %vm2825_vm5 = vcmp.eq.s32.totalorder %v10809_v1, %v7452_v28  ;;  %v10951_v1 = vadd.f32 %v6969_v15, %v10790_v56 }
 0x30a   : > { %1454 = vbcast.lane.b32.xlu0 %v9162_v44, 336  ;;  %v6741_v26 = vsel %vm2547_vm8, 1.0, %v7328_v29  ;;  %v7018_v25 = vsel %vm2824_vm15, 1.0, %v7328_v29 }
 0x30b   : > { %v10837_v19 = vpop.permute.xlu1 %1709  ;;  %v10978_v14 = vadd.f32 %v6741_v26, %v10812_v33 }
 0x30c   : > { %v10844_v12 = vpop.permute.xlu0 %1489  ;;  %vm2700_vm9 = vcmp.eq.s32.totalorder %v10837_v19, %v7441_v24  ;;  %vm2701_vm11 = vcmp.eq.s32.totalorder %v10837_v19, %v7452_v28  ;;  %v7019_v19 = vsel %vm2825_vm5, 1.0, %v7328_v29 }
 0x30d   : > { %1674 = vbcast.lane.b32.xlu1 %v9243_v48, 336  ;;  %v6894_v56 = vsel %vm2700_vm9, 1.0, %v7328_v29  ;;  %v6895_v50 = vsel %vm2701_vm11, 1.0, %v7328_v29  ;;  %vm2596_vm3 = vcmp.eq.s32.totalorder %v10844_v12, %v7441_v24  ;;  %vm2597_vm0 = vcmp.eq.s32.totalorder %v10844_v12, %v7452_v28 }
 0x30e   : > { %1619 = vbcast.lane.b32.xlu0 %v9239_v40, 336  ;;  %v10987_v12 = vadd.f32 %v7018_v25, %v10821_v8  ;;  %v10990_v38 = vadd.f32 %v7019_v19, %v10823_v43  ;;  %v10993_v45 = vadd.f32 %v6894_v56, %v10826_v36  ;;  %v6790_v46 = vsel %vm2596_vm3, 1.0, %v7328_v29 }
 0x30f   : > { %v10876_v30 = vpop.permute.xlu1 %1921  ;;  %v11017_v63 = vadd.f32 %v6790_v46, %v10855_v18 }
 0x310   : > { %v10884_v27 = vpop.permute.xlu0 %1815  ;;  %vm2800_vm6 = vcmp.eq.s32.totalorder %v10876_v30, %v7441_v24  ;;  %vm2801_vm12 = vcmp.eq.s32.totalorder %v10876_v30, %v7452_v28  ;;  %v10998_v30 = vadd.f32 %v6895_v50, %v10832_v55 }
 0x311   : > { %1886 = vbcast.lane.b32.xlu1 %v9804_v49, 320  ;;  %vm2750_vm1 = vcmp.eq.s32.totalorder %v10884_v27, %v7441_v24  ;;  %vm2751_vm4 = vcmp.eq.s32.totalorder %v10884_v27, %v7452_v28  ;;  %v6791_v27 = vsel %vm2597_vm0, 1.0, %v7328_v29  ;;  %v6994_v8 = vsel %vm2800_vm6, 1.0, %v7328_v29 }
 0x312   : > { %1780 = vbcast.lane.b32.xlu0 %v9739_v2, 328  ;;  %v6995_v43 = vsel %vm2801_vm12, 1.0, %v7328_v29  ;;  %v6944_v36 = vsel %vm2750_vm1, 1.0, %v7328_v29  ;;  %v6945_v59 = vsel %vm2751_vm4, 1.0, %v7328_v29 }
 0x313   : > { %v10915_v31 = vpop.permute.xlu1 %1544  ;;  %v11027_v35 = vadd.f32 %v6995_v43, %v10867_v53  ;;  %v11030_v42 = vadd.f32 %v6944_v36, %v10870_v5 }
 0x314   : > { %v10923_v52 = vpop.permute.xlu0 %1438  ;;  %vm2622_vm7 = vcmp.eq.s32.totalorder %v10915_v31, %v7441_v24  ;;  %vm2623_vm8 = vcmp.eq.s32.totalorder %v10915_v31, %v7452_v28  ;;  %v11023_v31 = vadd.f32 %v6994_v8, %v10861_v61 }
 0x315   : > { %1352 = vbcast.lane.b32.xlu1 %v9135_v21, 352  ;;  %v10946_v21 = vadd.f32 %v6968_v51, %v10787_v34  ;;  %v10963_v34 = vadd.f32 %v6740_v13, %v10795_v60  ;;  %v6816_v55 = vsel %vm2622_vm7, 1.0, %v7328_v29  ;;  %vm2572_vm15 = vcmp.eq.s32.totalorder %v10923_v52, %v7441_v24 }
 0x316   : > { %1992 = vbcast.lane.b32.xlu0 %v9892_v23, 312  ;;  %vm2573_vm5 = vcmp.eq.s32.totalorder %v10923_v52, %v7452_v28  ;;  %v11020_v51 = vadd.f32 %v6791_v27, %v10858_v17  ;;  %v11033_v13 = vadd.f32 %v6945_v59, %v10873_v54  ;;  %v6817_v18 = vsel %vm2623_vm8, 1.0, %v7328_v29  ;;  %v5728_v54 = vld [vmem:[#allocation2 + $0x8] sm:$0xff] }
 0x317   : > { %v1659_v32 = vpop.permute.xlu1 %1658  ;;  %v11038_v17 = vadd.f32 %v6816_v55, %v10879_v0  ;;  %v6766_v61 = vsel %vm2572_vm15, 1.0, %v7328_v29  ;;  %v6767_v53 = vsel %vm2573_vm5, 1.0, %v7328_v29 }
 0x318   : > { %v10960_v10 = vpop.permute.xlu0 %1603  ;;  %vm2676_vm9 = vcmp.eq.s32.totalorder %v1659_v32, %v7441_v24  ;;  %vm2677_vm11 = vcmp.eq.s32.totalorder %v1659_v32, %v7452_v28  ;;  %v11062_v32 = vadd.f32 %v6817_v18, %v10895_v62  ;;  %v5314_v56 = vadd.f32 %v6766_v61, %v10905_v41 }
 0x319   : > { %1509 = vbcast.lane.b32.xlu1 %v9440_v57, 336  ;;  %v6870_v5 = vsel %vm2676_vm9, 1.0, %v7328_v29  ;;  %vm2650_vm3 = vcmp.eq.s32.totalorder %v10960_v10, %v7441_v24  ;;  %vm2651_vm0 = vcmp.eq.s32.totalorder %v10960_v10, %v7452_v28  ;;  %v5333_v50 = vadd.f32 %v6767_v53, %v10908_v9 }
 0x31a   : > { %1403 = vbcast.lane.b32.xlu0 %v9158_v3, 344  ;;  %v11068_v27 = vadd.f32 %v6870_v5, %v10911_v37  ;;  %v6845_v62 = vsel %vm2651_vm0, 1.0, %v7328_v29 }
 0x31b   : > { %v1871_v60 = vpop.permute.xlu1 %1870  ;;  %v5447_v36 = vadd.f32 %v6845_v62, %v10943_v39 }
 0x31c   : > { %v1765_v33 = vpop.permute.xlu0 %1764  ;;  %vm2776_vm6 = vcmp.eq.s32.totalorder %v1871_v60, %v7441_v24  ;;  %vm2777_vm12 = vcmp.eq.s32.totalorder %v1871_v60, %v7452_v28 }
 0x31d   : > { %1835 = vbcast.lane.b32.xlu1 %v9782_v11, 328  ;;  %vm2726_vm1 = vcmp.eq.s32.totalorder %v1765_v33, %v7441_v24  ;;  %vm2727_vm4 = vcmp.eq.s32.totalorder %v1765_v33, %v7452_v28  ;;  %v6844_v33 = vsel %vm2650_vm3, 1.0, %v7328_v29  ;;  %v6970_v41 = vsel %vm2776_vm6, 1.0, %v7328_v29 }
 0x31e   : > { %1729 = vbcast.lane.b32.xlu0 %v9568_v16, 336  ;;  %v6971_v9 = vsel %vm2777_vm12, 1.0, %v7328_v29  ;;  %v6920_v37 = vsel %vm2726_vm1, 1.0, %v7328_v29  ;;  %v5428_v43 = vadd.f32 %v6844_v33, %v10940_v7  ;;  %v11100_v59 = vadd.f32 %v6970_v41, %v10946_v21 }
 0x31f   : > { %v1388_v4 = vpop.permute.xlu1 %1387  ;;  %v7079_v26 = vpop.f32.mrb[2].mxu0  ;;  %v11103_v55 = vadd.f32 %v6971_v9, %v10951_v1 }
 0x320   : > { %v1977_v15 = vpop.permute.xlu0 %1976  ;;  %v7080_v25 = vpop.f32.mrb[3].mxu0  ;;  %vm2548_vm7 = vcmp.eq.s32.totalorder %v1388_v4, %v7441_v24  ;;  %vm2549_vm8 = vcmp.eq.s32.totalorder %v1388_v4, %v7452_v28  ;;  %v5541_v4 = vadd.f32 %v6920_v37, %v10954_v58 }
 0x321   : > { %1407 = vbcast.lane.b32.xlu1 %v9158_v3, 352  ;;  %v6871_v3 = vsel %vm2677_vm11, 1.0, %v7328_v29  ;;  %v7081_v0 = vadd.f32 %v7080_v25, %v7079_v26  ;;  %vm2826_vm15 = vcmp.eq.s32.totalorder %v1977_v15, %v7441_v24  ;;  %vm2827_vm5 = vcmp.eq.s32.totalorder %v1977_v15, %v7452_v28 }
 0x322   : > { %1941 = vbcast.lane.b32.xlu0 %v9838_v47, 320  ;;  %v11071_v60 = vadd.f32 %v6871_v3, %v10918_v20  ;;  %v6921_v20 = vsel %vm2727_vm4, 1.0, %v7328_v29  ;;  %v6742_v7 = vsel %vm2548_vm7, 1.0, %v7328_v29  ;;  %v6743_v39 = vsel %vm2549_vm8, 1.0, %v7328_v29 }
 0x323   : > { %v1714_v19 = vpop.permute.xlu1 %1713  ;;  %v5984_v46 = vadd.f32 %v7081_v0, %v5728_v54  ;;  %v5560_v15 = vadd.f32 %v6921_v20, %v10957_v6  ;;  %v7020_v18 = vsel %vm2826_vm15, 1.0, %v7328_v29  ;;  %v7021_v26 = vsel %vm2827_vm5, 1.0, %v7328_v29 }
 0x324   : > { %v1494_v52 = vpop.permute.xlu0 %1493  ;;  %vm2702_vm9 = vcmp.eq.s32.totalorder %v1714_v19, %v7441_v24  ;;  %vm2703_vm11 = vcmp.eq.s32.totalorder %v1714_v19, %v7452_v28  ;;  %v11124_v5 = vadd.f32 %v6742_v7, %v10963_v34  ;;  %v11127_v54 = vadd.f32 %v6743_v39, %v10978_v14 }
 0x325   : > { %1564 = vbcast.lane.b32.xlu1 %v9707_v22, 336  ;;  %5988 = vst [vmem:[#allocation2 + $0x8] sm:$0xff] %v5984_v46  ;;  %v6896_v21 = vsel %vm2702_vm9, 1.0, %v7328_v29  ;;  %v6897_v1 = vsel %vm2703_vm11, 1.0, %v7328_v29  ;;  %vm2598_vm6 = vcmp.eq.s32.totalorder %v1494_v52, %v7441_v24  ;;  %vm2599_vm12 = vcmp.eq.s32.totalorder %v1494_v52, %v7452_v28 }
 0x326   : > { %1458 = vbcast.lane.b32.xlu0 %v9162_v44, 344  ;;  %v5691_v0 = vadd.f32 %v7020_v18, %v10987_v12  ;;  %v5710_v19 = vadd.f32 %v7021_v26, %v10990_v38  ;;  %v11137_v52 = vadd.f32 %v6896_v21, %v10993_v45  ;;  %v11140_v46 = vadd.f32 %v6897_v1, %v10998_v30 }
 0x327   : > { %v11086_v8 = vpop.permute.xlu1 %1925  ;;  %v6792_v14 = vsel %vm2598_vm6, 1.0, %v7328_v29 }
 0x328   : > { %v11092_v10 = vpop.permute.xlu0 %1819  ;;  %v5352_v41 = vadd.f32 %v6792_v14, %v11017_v63  ;;  %vm2802_vm15 = vcmp.eq.s32.totalorder %v11086_v8, %v7441_v24  ;;  %vm2803_vm5 = vcmp.eq.s32.totalorder %v11086_v8, %v7452_v28 }
 0x329   : > { %1678 = vbcast.lane.b32.xlu1 %v9243_v48, 344  ;;  %v6996_v7 = vsel %vm2802_vm15, 1.0, %v7328_v29  ;;  %v6997_v39 = vsel %vm2803_vm5, 1.0, %v7328_v29  ;;  %vm2752_vm6 = vcmp.eq.s32.totalorder %v11092_v10, %v7441_v24 }
 0x32a   : > { %1623 = vbcast.lane.b32.xlu0 %v9239_v40, 344  ;;  %v6946_v1 = vsel %vm2752_vm6, 1.0, %v7328_v29 }
 0x32b   : > { %v1443_v61 = vpop.permute.xlu1 %1442 }
 0x32c   : > { %vm2574_vm3 = vcmp.eq.s32.totalorder %v1443_v61, %v7441_v24  ;;  %vm2575_vm0 = vcmp.eq.s32.totalorder %v1443_v61, %v7452_v28  ;;  %v11116_v58 = vpop.permute.xlu0 %1336 }
 0x32d   : > { %v6768_v6 = vsel %vm2574_vm3, 1.0, %v7328_v29  ;;  %v6769_v53 = vsel %vm2575_vm0, 1.0, %v7328_v29  ;;  %1890 = vbcast.lane.b32.xlu1 %v9804_v49, 328  ;;  %vm2524_vm15 = vcmp.eq.s32.totalorder %v11116_v58, %v7441_v24  ;;  %vm2525_vm5 = vcmp.eq.s32.totalorder %v11116_v58, %v7452_v28 }
 0x32e   : > { %v11129_v25 = vadd.f32 %v6768_v6, %v5314_v56  ;;  %v11131_v3 = vadd.f32 %v6769_v53, %v5333_v50  ;;  %1784 = vbcast.lane.b32.xlu0 %v9739_v2, 336  ;;  %v6793_v56 = vsel %vm2599_vm12, 1.0, %v7328_v29  ;;  %vm2753_vm12 = vcmp.eq.s32.totalorder %v11092_v10, %v7452_v28 }
 0x32f   : > { %v1608_v34 = vpop.permute.xlu1 %1607  ;;  %v5371_v9 = vadd.f32 %v6793_v56, %v11020_v51  ;;  %v6947_v6 = vsel %vm2753_vm12, 1.0, %v7328_v29 }
 0x330   : > { %vm2652_vm1 = vcmp.eq.s32.totalorder %v1608_v34, %v7441_v24  ;;  %vm2653_vm4 = vcmp.eq.s32.totalorder %v1608_v34, %v7452_v28  ;;  %v1549_v50 = vpop.permute.xlu0 %1548 }
 0x331   : > { %v6846_v12 = vsel %vm2652_vm1, 1.0, %v7328_v29  ;;  %v6847_v38 = vsel %vm2653_vm4, 1.0, %v7328_v29  ;;  %vm2624_vm7 = vcmp.eq.s32.totalorder %v1549_v50, %v7441_v24  ;;  %vm2625_vm8 = vcmp.eq.s32.totalorder %v1549_v50, %v7452_v28  ;;  %1462 = vbcast.lane.b32.xlu1 %v9162_v44, 352 }
 0x332   : > { %v11151_v45 = vadd.f32 %v6846_v12, %v5428_v43  ;;  %v11153_v30 = vadd.f32 %v6847_v38, %v5447_v36  ;;  %v6818_v33 = vsel %vm2624_vm7, 1.0, %v7328_v29  ;;  %v6819_v62 = vsel %vm2625_vm8, 1.0, %v7328_v29  ;;  %1996 = vbcast.lane.b32.xlu0 %v9892_v23, 320 }
 0x333   : > { %v11161_v37 = vadd.f32 %v6818_v33, %v11038_v17  ;;  %v11164_v20 = vadd.f32 %v6819_v62, %v11062_v32  ;;  %v1769_v44 = vpop.permute.xlu1 %1768  ;;  %v5579_v12 = vadd.f32 %v6946_v1, %v11030_v42  ;;  %v5598_v38 = vadd.f32 %v6947_v6, %v11033_v13  ;;  %v12259_v1 = vld [vmem:[#allocation18_spill] sm:$0xff]  ;;  %v12260_v6 = vld [vmem:[#allocation16_spill] sm:$0xff] }
 0x334   : > { %vm2728_vm9 = vcmp.eq.s32.totalorder %v1769_v44, %v7441_v24  ;;  %vm2729_vm11 = vcmp.eq.s32.totalorder %v1769_v44, %v7452_v28  ;;  %v1663_v63 = vpop.permute.xlu0 %1662  ;;  %v6719_v44 = vsel %vm2525_vm5, 1.0, %v7328_v29 }
 0x335   : > { %v6922_v51 = vsel %vm2728_vm9, 1.0, %v7328_v29  ;;  %v6923_v17 = vsel %vm2729_vm11, 1.0, %v7328_v29  ;;  %vm2678_vm3 = vcmp.eq.s32.totalorder %v1663_v63, %v7441_v24  ;;  %vm2679_vm0 = vcmp.eq.s32.totalorder %v1663_v63, %v7452_v28  ;;  %1627 = vbcast.lane.b32.xlu1 %v9239_v40, 352 }
 0x336   : > { %v11177_v32 = vadd.f32 %v6922_v51, %v5541_v4  ;;  %v11179_v43 = vadd.f32 %v6923_v17, %v5560_v15  ;;  %v6872_v8 = vsel %vm2678_vm3, 1.0, %v7328_v29  ;;  %v6873_v36 = vsel %vm2679_vm0, 1.0, %v7328_v29  ;;  %1513 = vbcast.lane.b32.xlu0 %v9440_v57, 344 }
 0x337   : > { %v11187_v18 = vadd.f32 %v6872_v8, %v11068_v27  ;;  %v11190_v26 = vadd.f32 %v6873_v36, %v11071_v60  ;;  %v1981_v40 = vpop.permute.xlu1 %1980  ;;  %v5654_v17 = vadd.f32 %v6996_v7, %v11023_v31  ;;  %v5673_v8 = vadd.f32 %v6997_v39, %v11027_v35 }
 0x338   : > { %vm2828_vm1 = vcmp.eq.s32.totalorder %v1981_v40, %v7441_v24  ;;  %vm2829_vm4 = vcmp.eq.s32.totalorder %v1981_v40, %v7452_v28  ;;  %v1875_v4 = vpop.permute.xlu0 %1874 }
 0x339   : > { %v7022_v15 = vsel %vm2828_vm1, 1.0, %v7328_v29  ;;  %v7023_v27 = vsel %vm2829_vm4, 1.0, %v7328_v29  ;;  %vm2778_vm7 = vcmp.eq.s32.totalorder %v1875_v4, %v7441_v24  ;;  %vm2779_vm8 = vcmp.eq.s32.totalorder %v1875_v4, %v7452_v28  ;;  %1733 = vbcast.lane.b32.xlu1 %v9568_v16, 344 }
 0x33a   : > { %v11203_v60 = vadd.f32 %v7022_v15, %v5691_v0  ;;  %v11205_v61 = vadd.f32 %v7023_v27, %v5710_v19  ;;  %v6972_v10 = vsel %vm2778_vm7, 1.0, %v7328_v29  ;;  %v6973_v21 = vsel %vm2779_vm8, 1.0, %v7328_v29  ;;  %1682 = vbcast.lane.b32.xlu0 %v9243_v48, 352  ;;  %v12257_v15 = vld [vmem:[#allocation22_spill] sm:$0xff] }
 0x33b   : > { %v11213_v53 = vadd.f32 %v6972_v10, %v11100_v59  ;;  %v11216_v34 = vadd.f32 %v6973_v21, %v11103_v55  ;;  %v1498_v0 = vpop.permute.xlu1 %1497  ;;  %v12258_v10 = vld [vmem:[#allocation23_spill] sm:$0xff] }
 0x33c   : > { %vm2600_vm9 = vcmp.eq.s32.totalorder %v1498_v0, %v7441_v24  ;;  %vm2601_vm11 = vcmp.eq.s32.totalorder %v1498_v0, %v7452_v28  ;;  %v1392_v48 = vpop.permute.xlu0 %1391  ;;  %v5259_v21 = vadd.f32 %v6719_v44, %v12258_v10  ;;  %v5199_v0 = vadd.f32 %v12260_v6, %v12259_v1 }
 0x33d   : > { %v6794_v19 = vsel %vm2600_vm9, 1.0, %v7328_v29  ;;  %v6795_v59 = vsel %vm2601_vm11, 1.0, %v7328_v29  ;;  %vm2550_vm3 = vcmp.eq.s32.totalorder %v1392_v48, %v7441_v24  ;;  %vm2551_vm0 = vcmp.eq.s32.totalorder %v1392_v48, %v7452_v28  ;;  %1945 = vbcast.lane.b32.xlu1 %v9838_v47, 328  ;;  %v12261_v48 = vld [vmem:[#allocation19_spill] sm:$0xff] }
 0x33e   : > { %v11229_v55 = vadd.f32 %v6794_v19, %v5352_v41  ;;  %v11231_v14 = vadd.f32 %v6795_v59, %v5371_v9  ;;  %v6744_v56 = vsel %vm2550_vm3, 1.0, %v7328_v29  ;;  %v6745_v50 = vsel %vm2551_vm0, 1.0, %v7328_v29  ;;  %1839 = vbcast.lane.b32.xlu0 %v9782_v11, 336  ;;  %v12262_v19 = vld [vmem:[#allocation17_spill] sm:$0xff] }
 0x33f   : > { %v11239_v33 = vadd.f32 %v6744_v56, %v11124_v5  ;;  %v11242_v62 = vadd.f32 %v6745_v50, %v11127_v54  ;;  %v1824_v41 = vpop.permute.xlu1 %1823  ;;  %v6718_v9 = vsel %vm2524_vm15, 1.0, %v7328_v29  ;;  %v5218_v59 = vadd.f32 %v12262_v19, %v12261_v48  ;;  %v12265_v48 = vld [vmem:[#allocation5_spill] sm:$0xff] }
 0x340   : > { %vm2754_vm6 = vcmp.eq.s32.totalorder %v1824_v41, %v7441_v24  ;;  %vm2755_vm12 = vcmp.eq.s32.totalorder %v1824_v41, %v7452_v28  ;;  %v1718_v42 = vpop.permute.xlu0 %1717  ;;  %v5240_v27 = vadd.f32 %v6718_v9, %v12257_v15 }
 0x341   : > { %v6948_v13 = vsel %vm2754_vm6, 1.0, %v7328_v29  ;;  %v6949_v5 = vsel %vm2755_vm12, 1.0, %v7328_v29  ;;  %vm2704_vm1 = vcmp.eq.s32.totalorder %v1718_v42, %v7441_v24  ;;  %vm2705_vm4 = vcmp.eq.s32.totalorder %v1718_v42, %v7452_v28  ;;  %1568 = vbcast.lane.b32.xlu1 %v9707_v22, 344 }
 0x342   : > { %v11259_v54 = vadd.f32 %v6948_v13, %v5579_v12  ;;  %v11261_v63 = vadd.f32 %v6949_v5, %v5598_v38  ;;  %v6898_v58 = vsel %vm2704_vm1, 1.0, %v7328_v29  ;;  %v6899_v51 = vsel %vm2705_vm4, 1.0, %v7328_v29  ;;  %1517 = vbcast.lane.b32.xlu0 %v9440_v57, 352  ;;  %v12263_v38 = vld [vmem:[#allocation3_spill] sm:$0xff] }
 0x343   : > { %v11269_v36 = vadd.f32 %v6898_v58, %v11137_v52  ;;  %v11272_v40 = vadd.f32 %v6899_v51, %v11140_v46  ;;  %v1341_v4 = vpop.permute.xlu1 %1340  ;;  %vm2494_vm9 = vcmp.eq.s32.totalorder %v12263_v38, %v7441_v24  ;;  %vm2495_vm11 = vcmp.eq.s32.totalorder %v12263_v38, %v7452_v28  ;;  %v12267_v38 = vld [vmem:[#allocation21_spill] sm:$0xff] }
 0x344   : > { %vm2526_vm7 = vcmp.eq.s32.totalorder %v1341_v4, %v7441_v24  ;;  %vm2527_vm8 = vcmp.eq.s32.totalorder %v1341_v4, %v7452_v28  ;;  %v1930_v57 = vpop.permute.xlu0 %1929  ;;  %v6688_v58 = vsel %vm2494_vm9, 1.0, %v7328_v29  ;;  %v6689_v51 = vsel %vm2495_vm11, 1.0, %v7328_v29 }
 0x345   : > { %v6720_v31 = vsel %vm2526_vm7, 1.0, %v7328_v29  ;;  %v6721_v35 = vsel %vm2527_vm8, 1.0, %v7328_v29  ;;  %vm2804_vm15 = vcmp.eq.s32.totalorder %v1930_v57, %v7441_v24  ;;  %vm2805_vm5 = vcmp.eq.s32.totalorder %v1930_v57, %v7452_v28  ;;  %1788 = vbcast.lane.b32.xlu1 %v9739_v2, 344 }
 0x346   : > { %v11283_v52 = vadd.f32 %v6720_v31, %v5240_v27  ;;  %v11285_v46 = vadd.f32 %v6721_v35, %v5259_v21  ;;  %v6998_v7 = vsel %vm2804_vm15, 1.0, %v7328_v29  ;;  %v6999_v39 = vsel %vm2805_vm5, 1.0, %v7328_v29  ;;  %1737 = vbcast.lane.b32.xlu0 %v9568_v16, 352 }
 0x347   : > { %v11294_v56 = vadd.f32 %v6998_v7, %v5654_v17  ;;  %v11296_v50 = vadd.f32 %v6999_v39, %v5673_v8  ;;  %v1553_v12 = vpop.permute.xlu1 %1552  ;;  %v5200_v57 = vadd.f32 %v6688_v58, %v5199_v0  ;;  %v5219_v31 = vadd.f32 %v6689_v51, %v5218_v59  ;;  %v12266_v59 = vld [vmem:[#allocation20_spill] sm:$0xff] }
 0x348   : > { %vm2626_vm3 = vcmp.eq.s32.totalorder %v1553_v12, %v7441_v24  ;;  %vm2627_vm0 = vcmp.eq.s32.totalorder %v1553_v12, %v7452_v28  ;;  %v1447_v16 = vpop.permute.xlu0 %1446 }
 0x349   : > { %v6820_v41 = vsel %vm2626_vm3, 1.0, %v7328_v29  ;;  %v6821_v9 = vsel %vm2627_vm0, 1.0, %v7328_v29  ;;  %vm2576_vm6 = vcmp.eq.s32.totalorder %v1447_v16, %v7441_v24  ;;  %vm2577_vm12 = vcmp.eq.s32.totalorder %v1447_v16, %v7452_v28  ;;  %2000 = vbcast.lane.b32.xlu1 %v9892_v23, 328 }
 0x34a   : > { %v11310_v44 = vadd.f32 %v6820_v41, %v11161_v37  ;;  %v11313_v42 = vadd.f32 %v6821_v9, %v11164_v20  ;;  %v6770_v13 = vsel %vm2576_vm6, 1.0, %v7328_v29  ;;  %v6771_v5 = vsel %vm2577_vm12, 1.0, %v7328_v29  ;;  %1894 = vbcast.lane.b32.xlu0 %v9804_v49, 336  ;;  %v12264_v20 = vld [vmem:[#allocation4_spill] sm:$0xff] }
 0x34b   : > { %v11321_v17 = vadd.f32 %v6770_v13, %v11129_v25  ;;  %v11324_v8 = vadd.f32 %v6771_v5, %v11131_v3  ;;  %v1667_v37 = vpop.permute.xlu1 %1666  ;;  %vm2500_vm1 = vcmp.eq.s32.totalorder %v12264_v20, %v7441_v24  ;;  %vm2501_vm4 = vcmp.eq.s32.totalorder %v12264_v20, %v7452_v28 }
 0x34c   : > { %vm2680_vm7 = vcmp.eq.s32.totalorder %v1667_v37, %v7441_v24  ;;  %vm2681_vm8 = vcmp.eq.s32.totalorder %v1667_v37, %v7452_v28  ;;  %v1612_v4 = vpop.permute.xlu0 %1611  ;;  %vm2498_vm6 = vcmp.eq.s32.totalorder %v12265_v48, %v7441_v24  ;;  %vm2499_vm12 = vcmp.eq.s32.totalorder %v12265_v48, %v7452_v28 }
 0x34d   : > { %v6874_v15 = vsel %vm2680_vm7, 1.0, %v7328_v29  ;;  %v6875_v25 = vsel %vm2681_vm8, 1.0, %v7328_v29  ;;  %vm2654_vm15 = vcmp.eq.s32.totalorder %v1612_v4, %v7441_v24  ;;  %vm2655_vm5 = vcmp.eq.s32.totalorder %v1612_v4, %v7452_v28  ;;  %1792 = vbcast.lane.b32.xlu1 %v9739_v2, 352  ;;  %v12268_v4 = vld [vmem:[#allocation6_spill] sm:$0xff] }
 0x34e   : > { %v11338_v3 = vadd.f32 %v6874_v15, %v11187_v18  ;;  %v11341_v27 = vadd.f32 %v6875_v25, %v11190_v26  ;;  %v6848_v10 = vsel %vm2654_vm15, 1.0, %v7328_v29  ;;  %v6849_v21 = vsel %vm2655_vm5, 1.0, %v7328_v29  ;;  %1572 = vbcast.lane.b32.xlu0 %v9707_v22, 352 }
 0x34f   : > { %v11347_v35 = vadd.f32 %v6848_v10, %v11151_v45  ;;  %v11350_v7 = vadd.f32 %v6849_v21, %v11153_v30  ;;  %v1879_v2 = vpop.permute.xlu1 %1878  ;;  %v11356_v18 = vsel %vm2500_vm1, 1.0, %v7328_v29  ;;  %v11362_v22 = vsel %vm2501_vm4, 1.0, %v7328_v29 }
 0x350   : > { %vm2780_vm9 = vcmp.eq.s32.totalorder %v1879_v2, %v7441_v24  ;;  %vm2781_vm11 = vcmp.eq.s32.totalorder %v1879_v2, %v7452_v28  ;;  %v1773_v45 = vpop.permute.xlu0 %1772  ;;  %v5201_v12 = vadd.f32 %v12266_v59, %v5200_v57  ;;  %v5220_v16 = vadd.f32 %v12267_v38, %v5219_v31 }
 0x351   : > { %v6974_v30 = vsel %vm2780_vm9, 1.0, %v7328_v29  ;;  %v6975_v26 = vsel %vm2781_vm11, 1.0, %v7328_v29  ;;  %vm2730_vm3 = vcmp.eq.s32.totalorder %v1773_v45, %v7441_v24  ;;  %vm2731_vm0 = vcmp.eq.s32.totalorder %v1773_v45, %v7452_v28  ;;  %1949 = vbcast.lane.b32.xlu1 %v9838_v47, 336 }
 0x352   : > { %v11372_v39 = vadd.f32 %v6974_v30, %v11213_v53  ;;  %v11375_v1 = vadd.f32 %v6975_v26, %v11216_v34  ;;  %v6924_v6 = vsel %vm2730_vm3, 1.0, %v7328_v29  ;;  %v6925_v0 = vsel %vm2731_vm0, 1.0, %v7328_v29  ;;  %1843 = vbcast.lane.b32.xlu0 %v9782_v11, 344 }
 0x353   : > { %v11385_v19 = vadd.f32 %v6924_v6, %v11177_v32  ;;  %v11388_v53 = vadd.f32 %v6925_v0, %v11179_v43  ;;  %v1396_v34 = vpop.permute.xlu1 %1395  ;;  %v6692_v51 = vsel %vm2498_vm6, 1.0, %v7328_v29  ;;  %vm2504_vm15 = vcmp.eq.s32.totalorder %v12268_v4, %v7441_v24 }
 0x354   : > { %vm2552_vm1 = vcmp.eq.s32.totalorder %v1396_v34, %v7441_v24  ;;  %vm2553_vm4 = vcmp.eq.s32.totalorder %v1396_v34, %v7452_v28  ;;  %v1985_v41 = vpop.permute.xlu0 %1984  ;;  %vm2505_vm5 = vcmp.eq.s32.totalorder %v12268_v4, %v7452_v28  ;;  %v5202_v57 = vadd.f32 %v6692_v51, %v5201_v12  ;;  %v12269_v34 = vld [vmem:[#allocation7_spill] sm:$0xff] }
 0x355   : > { %v6746_v9 = vsel %vm2552_vm1, 1.0, %v7328_v29  ;;  %v6747_v13 = vsel %vm2553_vm4, 1.0, %v7328_v29  ;;  %vm2830_vm7 = vcmp.eq.s32.totalorder %v1985_v41, %v7441_v24  ;;  %vm2831_vm8 = vcmp.eq.s32.totalorder %v1985_v41, %v7452_v28  ;;  %1898 = vbcast.lane.b32.xlu1 %v9804_v49, 344 }
 0x356   : > { %v11400_v32 = vadd.f32 %v6746_v9, %v11239_v33  ;;  %v11403_v43 = vadd.f32 %v6747_v13, %v11242_v62  ;;  %v7024_v5 = vsel %vm2830_vm7, 1.0, %v7328_v29  ;;  %v7025_v58 = vsel %vm2831_vm8, 1.0, %v7328_v29  ;;  %1847 = vbcast.lane.b32.xlu0 %v9782_v11, 352 }
 0x357   : > { %v6693_v33 = vsel %vm2499_vm12, 1.0, %v7328_v29  ;;  %v11417_v37 = vadd.f32 %v7024_v5, %v11203_v60  ;;  %v11420_v62 = vadd.f32 %v7025_v58, %v11205_v61  ;;  %v1722_v20 = vpop.permute.xlu1 %1721  ;;  %vm2502_vm7 = vcmp.eq.s32.totalorder %v12269_v34, %v7441_v24  ;;  %v12270_v58 = vld [vmem:[#allocation8_spill] sm:$0xff] }
 0x358   : > { %vm2706_vm9 = vcmp.eq.s32.totalorder %v1722_v20, %v7441_v24  ;;  %vm2707_vm11 = vcmp.eq.s32.totalorder %v1722_v20, %v7452_v28  ;;  %v1502_v11 = vpop.permute.xlu0 %1501  ;;  %v5221_v31 = vadd.f32 %v6693_v33, %v5220_v16  ;;  %vm2503_vm8 = vcmp.eq.s32.totalorder %v12269_v34, %v7452_v28 }
 0x359   : > { %v6900_v15 = vsel %vm2706_vm9, 1.0, %v7328_v29  ;;  %v6901_v60 = vsel %vm2707_vm11, 1.0, %v7328_v29  ;;  %vm2602_vm3 = vcmp.eq.s32.totalorder %v1502_v11, %v7441_v24  ;;  %vm2603_vm0 = vcmp.eq.s32.totalorder %v1502_v11, %v7452_v28  ;;  %1902 = vbcast.lane.b32.xlu1 %v9804_v49, 352 }
 0x35a   : > { %v11434_v61 = vadd.f32 %v6900_v15, %v11269_v36  ;;  %v11437_v25 = vadd.f32 %v6901_v60, %v11272_v40  ;;  %v6796_v10 = vsel %vm2602_vm3, 1.0, %v7328_v29  ;;  %v6797_v21 = vsel %vm2603_vm0, 1.0, %v7328_v29  ;;  %2004 = vbcast.lane.b32.xlu0 %v9892_v23, 336 }
 0x35b   : > { %v11443_v2 = vadd.f32 %v6796_v10, %v11229_v55  ;;  %v11446_v45 = vadd.f32 %v6797_v21, %v11231_v14  ;;  %v1934_v49 = vpop.permute.xlu1 %1933  ;;  %v11452_v36 = vsel %vm2504_vm15, 1.0, %v7328_v29  ;;  %v11458_v40 = vsel %vm2505_vm5, 1.0, %v7328_v29 }
 0x35c   : > { %vm2806_vm6 = vcmp.eq.s32.totalorder %v1934_v49, %v7441_v24  ;;  %vm2807_vm12 = vcmp.eq.s32.totalorder %v1934_v49, %v7452_v28  ;;  %v1828_v55 = vpop.permute.xlu0 %1827  ;;  %v5203_v12 = vadd.f32 %v11356_v18, %v5202_v57  ;;  %v5222_v38 = vadd.f32 %v11362_v22, %v5221_v31 }
 0x35d   : > { %v7000_v14 = vsel %vm2806_vm6, 1.0, %v7328_v29  ;;  %v7001_v30 = vsel %vm2807_vm12, 1.0, %v7328_v29  ;;  %vm2756_vm1 = vcmp.eq.s32.totalorder %v1828_v55, %v7441_v24  ;;  %vm2757_vm4 = vcmp.eq.s32.totalorder %v1828_v55, %v7452_v28  ;;  %1957 = vbcast.lane.b32.xlu1 %v9838_v47, 352 }
 0x35e   : > { %v11468_v26 = vadd.f32 %v7000_v14, %v11294_v56  ;;  %v11471_v6 = vadd.f32 %v7001_v30, %v11296_v50  ;;  %v6950_v0 = vsel %vm2756_vm1, 1.0, %v7328_v29  ;;  %v6951_v48 = vsel %vm2757_vm4, 1.0, %v7328_v29  ;;  %1953 = vbcast.lane.b32.xlu0 %v9838_v47, 344 }
 0x35f   : > { %v11481_v59 = vadd.f32 %v6950_v0, %v11259_v54  ;;  %v11484_v56 = vadd.f32 %v6951_v48, %v11261_v63  ;;  %v1451_v50 = vpop.permute.xlu1 %1450  ;;  %v6696_v9 = vsel %vm2502_vm7, 1.0, %v7328_v29  ;;  %vm2506_vm3 = vcmp.eq.s32.totalorder %v12270_v58, %v7441_v24 }
 0x360   : > { %vm2578_vm15 = vcmp.eq.s32.totalorder %v1451_v50, %v7441_v24  ;;  %vm2579_vm5 = vcmp.eq.s32.totalorder %v1451_v50, %v7452_v28  ;;  %v1345_v47 = vpop.permute.xlu0 %1344  ;;  %vm2507_vm0 = vcmp.eq.s32.totalorder %v12270_v58, %v7452_v28  ;;  %v5204_v11 = vadd.f32 %v6696_v9, %v5203_v12 }
 0x361   : > { %v6772_v16 = vsel %vm2578_vm15, 1.0, %v7328_v29  ;;  %v6773_v41 = vsel %vm2579_vm5, 1.0, %v7328_v29  ;;  %vm2528_vm9 = vcmp.eq.s32.totalorder %v1345_v47, %v7441_v24  ;;  %vm2529_vm11 = vcmp.eq.s32.totalorder %v1345_v47, %v7452_v28  ;;  %2012 = vbcast.lane.b32.xlu1 %v9892_v23, 352 }
 0x362   : > { %v11496_v54 = vadd.f32 %v6772_v16, %v11321_v17  ;;  %v11499_v63 = vadd.f32 %v6773_v41, %v11324_v8  ;;  %v6722_v18 = vsel %vm2528_vm9, 1.0, %v7328_v29  ;;  %v6723_v22 = vsel %vm2529_vm11, 1.0, %v7328_v29  ;;  %2008 = vbcast.lane.b32.xlu0 %v9892_v23, 344  ;;  %v12271_v16 = vld [vmem:[#allocation14_spill] sm:$0xff]  ;;  %v12272_v41 = vld [vmem:[#allocation11_spill] sm:$0xff] }
 0x363   : > { %v6697_v17 = vsel %vm2503_vm8, 1.0, %v7328_v29  ;;  %v11513_v13 = vadd.f32 %v6722_v18, %v11283_v52  ;;  %v11516_v8 = vadd.f32 %v6723_v22, %v11285_v46  ;;  %v1616_v5 = vpop.permute.xlu1 %1615  ;;  %v5205_v30 = vadd.f32 %v11452_v36, %v5204_v11  ;;  %v12273_v22 = vld [vmem:[#allocation15_spill] sm:$0xff] }
 0x364   : > { %vm2656_vm6 = vcmp.eq.s32.totalorder %v1616_v5, %v7441_v24  ;;  %vm2657_vm12 = vcmp.eq.s32.totalorder %v1616_v5, %v7452_v28  ;;  %v1557_v23 = vpop.permute.xlu0 %1556  ;;  %v5223_v15 = vadd.f32 %v6697_v17, %v5222_v38  ;;  %v5169_v18 = vadd.f32 %v12272_v41, %v12271_v16 }
 0x365   : > { %v6850_v51 = vsel %vm2656_vm6, 1.0, %v7328_v29  ;;  %v6851_v52 = vsel %vm2657_vm12, 1.0, %v7328_v29  ;;  %vm2628_vm1 = vcmp.eq.s32.totalorder %v1557_v23, %v7441_v24  ;;  %vm2629_vm4 = vcmp.eq.s32.totalorder %v1557_v23, %v7452_v28 }
 0x366   : > { %v11529_v46 = vadd.f32 %v6850_v51, %v11347_v35  ;;  %v11532_v33 = vadd.f32 %v6851_v52, %v11350_v7  ;;  %v6822_v20 = vsel %vm2628_vm1, 1.0, %v7328_v29  ;;  %v6823_v4 = vsel %vm2629_vm4, 1.0, %v7328_v29 }
 0x367   : > { %v11537_v60 = vadd.f32 %v6822_v20, %v11310_v44  ;;  %v11540_v10 = vadd.f32 %v6823_v4, %v11313_v42  ;;  %v1777_v21 = vpop.permute.xlu1 %1776  ;;  %v6700_v35 = vsel %vm2506_vm3, 1.0, %v7328_v29  ;;  %v6701_v7 = vsel %vm2507_vm0, 1.0, %v7328_v29 }
 0x368   : > { %vm2732_vm7 = vcmp.eq.s32.totalorder %v1777_v21, %v7441_v24  ;;  %vm2733_vm8 = vcmp.eq.s32.totalorder %v1777_v21, %v7452_v28  ;;  %v1671_v44 = vpop.permute.xlu0 %1670  ;;  %v5224_v0 = vadd.f32 %v11458_v40, %v5223_v15  ;;  %v5189_v9 = vrot.slane %v12273_v22, 4 }
 0x369   : > { %v6926_v57 = vsel %vm2732_vm7, 1.0, %v7328_v29  ;;  %v6927_v42 = vsel %vm2733_vm8, 1.0, %v7328_v29  ;;  %vm2682_vm15 = vcmp.eq.s32.totalorder %v1671_v44, %v7441_v24  ;;  %vm2683_vm5 = vcmp.eq.s32.totalorder %v1671_v44, %v7452_v28 }
 0x36a   : > { %v11557_v31 = vadd.f32 %v6926_v57, %v11385_v19  ;;  %v11560_v49 = vadd.f32 %v6927_v42, %v11388_v53  ;;  %v6876_v55 = vsel %vm2682_vm15, 1.0, %v7328_v29  ;;  %v6877_v14 = vsel %vm2683_vm5, 1.0, %v7328_v29 }
 0x36b   : > { %v11567_v48 = vadd.f32 %v6876_v55, %v11338_v3  ;;  %v11570_v34 = vadd.f32 %v6877_v14, %v11341_v27  ;;  %v1989_v50 = vpop.permute.xlu1 %1988  ;;  %v5206_v19 = vsel %vm4521_vm2, %v6700_v35, 0.0  ;;  %v5225_v53 = vsel %vm4521_vm2, %v6701_v7, 0.0 }
 0x36c   : > { %vm2832_vm9 = vcmp.eq.s32.totalorder %v1989_v50, %v7441_v24  ;;  %vm2833_vm11 = vcmp.eq.s32.totalorder %v1989_v50, %v7452_v28  ;;  %v1883_v12 = vpop.permute.xlu0 %1882  ;;  %v5207_v58 = vadd.f32 %v5206_v19, %v5205_v30  ;;  %v5226_v23 = vadd.f32 %v5225_v53, %v5224_v0 }
 0x36d   : > { %v7026_v36 = vsel %vm2832_vm9, 1.0, %v7328_v29  ;;  %v7027_v40 = vsel %vm2833_vm11, 1.0, %v7328_v29  ;;  %vm2782_vm3 = vcmp.eq.s32.totalorder %v1883_v12, %v7441_v24  ;;  %vm2783_vm0 = vcmp.eq.s32.totalorder %v1883_v12, %v7452_v28 }
 0x36e   : > { %v11581_v3 = vadd.f32 %v7026_v36, %v11417_v37  ;;  %v11584_v27 = vadd.f32 %v7027_v40, %v11420_v62  ;;  %v6976_v38 = vsel %vm2782_vm3, 1.0, %v7328_v29  ;;  %v6977_v47 = vsel %vm2783_vm0, 1.0, %v7328_v29 }
 0x36f   : > { %v11592_v17 = vadd.f32 %v6976_v38, %v11372_v39  ;;  %v11595_v5 = vadd.f32 %v6977_v47, %v11375_v1  ;;  %v1506_v37 = vpop.permute.xlu1 %1505  ;;  %v5170_v11 = vrot.slane %v5169_v18, 4  ;;  %v5190_v15 = vadd.f32 %v5189_v9, %v12273_v22 }
 0x370   : > { %vm2604_vm6 = vcmp.eq.s32.totalorder %v1506_v37, %v7441_v24  ;;  %vm2605_vm12 = vcmp.eq.s32.totalorder %v1506_v37, %v7452_v28  ;;  %v1400_v62 = vpop.permute.xlu0 %1399  ;;  %v5208_v44 = vrot.slane %v5207_v58, 4 }
 0x371   : > { %v6798_v51 = vsel %vm2604_vm6, 1.0, %v7328_v29  ;;  %v6799_v52 = vsel %vm2605_vm12, 1.0, %v7328_v29  ;;  %vm2554_vm1 = vcmp.eq.s32.totalorder %v1400_v62, %v7441_v24  ;;  %vm2555_vm4 = vcmp.eq.s32.totalorder %v1400_v62, %v7452_v28 }
 0x372   : > { %v11604_v39 = vadd.f32 %v6798_v51, %v11443_v2  ;;  %v11607_v1 = vadd.f32 %v6799_v52, %v11446_v45  ;;  %v6748_v20 = vsel %vm2554_vm1, 1.0, %v7328_v29  ;;  %v6749_v4 = vsel %vm2555_vm4, 1.0, %v7328_v29 }
 0x373   : > { %v11613_v21 = vadd.f32 %v6748_v20, %v11400_v32  ;;  %v11616_v35 = vadd.f32 %v6749_v4, %v11403_v43  ;;  %v1832_v7 = vpop.permute.xlu1 %1831  ;;  %v5227_v2 = vrot.slane %v5226_v23, 4  ;;  %v5171_v30 = vadd.f32 %v5170_v11, %v5169_v18 }
 0x374   : > { %vm2758_vm7 = vcmp.eq.s32.totalorder %v1832_v7, %v7441_v24  ;;  %vm2759_vm8 = vcmp.eq.s32.totalorder %v1832_v7, %v7452_v28  ;;  %v1726_v45 = vpop.permute.xlu0 %1725  ;;  %v5191_v0 = vrot.slane %v5190_v15, 2  ;;  %v5209_v12 = vadd.f32 %v5208_v44, %v5207_v58 }
 0x375   : > { %v6952_v57 = vsel %vm2758_vm7, 1.0, %v7328_v29  ;;  %v6953_v42 = vsel %vm2759_vm8, 1.0, %v7328_v29  ;;  %vm2708_vm15 = vcmp.eq.s32.totalorder %v1726_v45, %v7441_v24  ;;  %vm2709_vm5 = vcmp.eq.s32.totalorder %v1726_v45, %v7452_v28 }
 0x376   : > { %v11625_v32 = vadd.f32 %v6952_v57, %v11481_v59  ;;  %v11628_v43 = vadd.f32 %v6953_v42, %v11484_v56  ;;  %v6902_v55 = vsel %vm2708_vm15, 1.0, %v7328_v29  ;;  %v6903_v14 = vsel %vm2709_vm5, 1.0, %v7328_v29 }
 0x377   : > { %v11633_v50 = vadd.f32 %v6902_v55, %v11434_v61  ;;  %v11636_v19 = vadd.f32 %v6903_v14, %v11437_v25  ;;  %v1349_v53 = vpop.permute.xlu1 %1348  ;;  %v5228_v36 = vadd.f32 %v5227_v2, %v5226_v23  ;;  %v5172_v16 = vrot.slane %v5171_v30, 2 }
 0x378   : > { %vm2530_vm9 = vcmp.eq.s32.totalorder %v1349_v53, %v7441_v24  ;;  %vm2531_vm11 = vcmp.eq.s32.totalorder %v1349_v53, %v7452_v28  ;;  %v1938_v59 = vpop.permute.xlu0 %1937  ;;  %v5192_v41 = vadd.f32 %v5191_v0, %v5190_v15  ;;  %v5210_v37 = vrot.slane %v5209_v12, 2 }
 0x379   : > { %v6724_v56 = vsel %vm2530_vm9, 1.0, %v7328_v29  ;;  %v6725_v40 = vsel %vm2531_vm11, 1.0, %v7328_v29  ;;  %vm2808_vm3 = vcmp.eq.s32.totalorder %v1938_v59, %v7441_v24  ;;  %vm2809_vm0 = vcmp.eq.s32.totalorder %v1938_v59, %v7452_v28 }
 0x37a   : > { %v11645_v61 = vadd.f32 %v6724_v56, %v11513_v13  ;;  %v11648_v25 = vadd.f32 %v6725_v40, %v11516_v8  ;;  %v7002_v38 = vsel %vm2808_vm3, 1.0, %v7328_v29  ;;  %v7003_v47 = vsel %vm2809_vm0, 1.0, %v7328_v29 }
 0x37b   : > { %v11653_v18 = vadd.f32 %v7002_v38, %v11468_v26  ;;  %v11656_v22 = vadd.f32 %v7003_v47, %v11471_v6  ;;  %v1561_v9 = vpop.permute.xlu1 %1560  ;;  %v5229_v58 = vrot.slane %v5228_v36, 2  ;;  %v5173_v52 = vadd.f32 %v5172_v16, %v5171_v30 }
 0x37c   : > { %vm2630_vm6 = vcmp.eq.s32.totalorder %v1561_v9, %v7441_v24  ;;  %vm2631_vm12 = vcmp.eq.s32.totalorder %v1561_v9, %v7452_v28  ;;  %v1455_v13 = vpop.permute.xlu0 %1454  ;;  %v5193_v20 = vrot.slane %v5192_v41, 1  ;;  %v5211_v7 = vadd.f32 %v5210_v37, %v5209_v12 }
 0x37d   : > { %v6824_v8 = vsel %vm2630_vm6, 1.0, %v7328_v29  ;;  %v6825_v23 = vsel %vm2631_vm12, 1.0, %v7328_v29  ;;  %vm2580_vm1 = vcmp.eq.s32.totalorder %v1455_v13, %v7441_v24  ;;  %vm2581_vm4 = vcmp.eq.s32.totalorder %v1455_v13, %v7452_v28 }
 0x37e   : > { %v11665_v26 = vadd.f32 %v6824_v8, %v11537_v60  ;;  %v11668_v6 = vadd.f32 %v6825_v23, %v11540_v10  ;;  %v6774_v62 = vsel %vm2580_vm1, 1.0, %v7328_v29  ;;  %v6775_v51 = vsel %vm2581_vm4, 1.0, %v7328_v29 }
 0x37f   : > { %v11673_v4 = vadd.f32 %v6774_v62, %v11496_v54  ;;  %v11676_v11 = vadd.f32 %v6775_v51, %v11499_v63  ;;  %v1675_v15 = vpop.permute.xlu1 %1674  ;;  %v5230_v44 = vadd.f32 %v5229_v58, %v5228_v36  ;;  %v5174_v42 = vrot.slane %v5173_v52, 1 }
 0x380   : > { %vm2684_vm7 = vcmp.eq.s32.totalorder %v1675_v15, %v7441_v24  ;;  %vm2685_vm8 = vcmp.eq.s32.totalorder %v1675_v15, %v7452_v28  ;;  %v1620_v60 = vpop.permute.xlu0 %1619  ;;  %v5194_v55 = vadd.f32 %v5193_v20, %v5192_v41  ;;  %v5212_v53 = vrot.slane %v5211_v7, 1  ;;  %v12274_v41 = vld [vmem:[#allocation10_spill] sm:$0xff] }
 0x381   : > { %v6878_v10 = vsel %vm2684_vm7, 1.0, %v7328_v29  ;;  %v6879_v2 = vsel %vm2685_vm8, 1.0, %v7328_v29  ;;  %vm2658_vm15 = vcmp.eq.s32.totalorder %v1620_v60, %v7441_v24  ;;  %vm2659_vm5 = vcmp.eq.s32.totalorder %v1620_v60, %v7452_v28  ;;  %v12275_v60 = vld [vmem:[#allocation9_spill] sm:$0xff] }
 0x382   : > { %v11685_v54 = vadd.f32 %v6878_v10, %v11567_v48  ;;  %v11688_v63 = vadd.f32 %v6879_v2, %v11570_v34  ;;  %v6852_v45 = vsel %vm2658_vm15, 1.0, %v7328_v29  ;;  %v6853_v57 = vsel %vm2659_vm5, 1.0, %v7328_v29 }
 0x383   : > { %v11693_v14 = vadd.f32 %v6852_v45, %v11529_v46  ;;  %v11696_v30 = vadd.f32 %v6853_v57, %v11532_v33  ;;  %v1887_v0 = vpop.permute.xlu1 %1886  ;;  %v5231_v12 = vrot.slane %v5230_v44, 1  ;;  %v5175_v40 = vadd.f32 %v5174_v42, %v5173_v52 }
 0x384   : > { %vm2784_vm9 = vcmp.eq.s32.totalorder %v1887_v0, %v7441_v24  ;;  %vm2785_vm11 = vcmp.eq.s32.totalorder %v1887_v0, %v7452_v28  ;;  %v1781_v48 = vpop.permute.xlu0 %1780  ;;  %v5869_v9 = vsel %vm5827_vm10, %v5194_v55, %v12274_v41 }
 0x385   : > { %v6978_v34 = vsel %vm2784_vm9, 1.0, %v7328_v29  ;;  %v6979_v36 = vsel %vm2785_vm11, 1.0, %v7328_v29  ;;  %vm2734_vm3 = vcmp.eq.s32.totalorder %v1781_v48, %v7441_v24  ;;  %vm2735_vm0 = vcmp.eq.s32.totalorder %v1781_v48, %v7452_v28 }
 0x386   : > { %v11705_v46 = vadd.f32 %v6978_v34, %v11592_v17  ;;  %v11708_v33 = vadd.f32 %v6979_v36, %v11595_v5  ;;  %v6928_v59 = vsel %vm2734_vm3, 1.0, %v7328_v29  ;;  %v6929_v56 = vsel %vm2735_vm0, 1.0, %v7328_v29 }
 0x387   : > { %v11713_v38 = vadd.f32 %v6928_v59, %v11557_v31  ;;  %v11716_v47 = vadd.f32 %v6929_v56, %v11560_v49  ;;  %v1353_v16 = vpop.permute.xlu1 %1352  ;;  %v5213_v17 = vadd.f32 %v5212_v53, %v5211_v7  ;;  %v5232_v37 = vadd.f32 %v5231_v12, %v5230_v44 }
 0x388   : > { %vm2532_vm6 = vcmp.eq.s32.totalorder %v1353_v16, %v7441_v24  ;;  %vm2533_vm12 = vcmp.eq.s32.totalorder %v1353_v16, %v7452_v28  ;;  %v1993_v5 = vpop.permute.xlu0 %1992 }
 0x389   : > { %v6726_v58 = vsel %vm2532_vm6, 1.0, %v7328_v29  ;;  %v6727_v13 = vsel %vm2533_vm12, 1.0, %v7328_v29  ;;  %vm2834_vm1 = vcmp.eq.s32.totalorder %v1993_v5, %v7441_v24  ;;  %vm2835_vm4 = vcmp.eq.s32.totalorder %v1993_v5, %v7452_v28 }
 0x38a   : > { %v5244_v31 = vsel %vm4521_vm2, %v6726_v58, 0.0  ;;  %v5263_v49 = vsel %vm4521_vm2, %v6727_v13, 0.0  ;;  %v7028_v8 = vsel %vm2834_vm1, 1.0, %v7328_v29  ;;  %v7029_v23 = vsel %vm2835_vm4, 1.0, %v7328_v29 }
 0x38b   : > { %v5245_v62 = vadd.f32 %v5244_v31, %v11645_v61  ;;  %v5264_v51 = vadd.f32 %v5263_v49, %v11648_v25  ;;  %v11733_v52 = vadd.f32 %v7028_v8, %v11581_v3  ;;  %v11736_v20 = vadd.f32 %v7029_v23, %v11584_v27  ;;  %v1510_v15 = vpop.permute.xlu1 %1509 }
 0x38c   : > { %vm2606_vm7 = vcmp.eq.s32.totalorder %v1510_v15, %v7441_v24  ;;  %vm2607_vm8 = vcmp.eq.s32.totalorder %v1510_v15, %v7452_v28  ;;  %v1404_v7 = vpop.permute.xlu0 %1403  ;;  %v11741_v44 = vsel %vm5829_vm13, %v5232_v37, %v5869_v9  ;;  %v5862_v61 = vsel %vm5827_vm10, %v5175_v40, %v12275_v60 }
 0x38d   : > { %v5246_v10 = vrot.slane %v5245_v62, 4  ;;  %v5265_v25 = vrot.slane %v5264_v51, 4  ;;  %v6800_v3 = vsel %vm2606_vm7, 1.0, %v7328_v29  ;;  %v6801_v2 = vsel %vm2607_vm8, 1.0, %v7328_v29 }
 0x38e   : > { %v11748_v27 = vadd.f32 %v6800_v3, %v11604_v39  ;;  %vm2556_vm15 = vcmp.eq.s32.totalorder %v1404_v7, %v7441_v24  ;;  %vm2557_vm5 = vcmp.eq.s32.totalorder %v1404_v7, %v7452_v28  ;;  %v11753_v45 = vsel %vm5829_vm13, %v5213_v17, %v5862_v61 }
 0x38f   : > { %v5247_v57 = vadd.f32 %v5246_v10, %v5245_v62  ;;  %v5266_v42 = vadd.f32 %v5265_v25, %v5264_v51  ;;  %v6750_v55 = vsel %vm2556_vm15, 1.0, %v7328_v29  ;;  %v6751_v0 = vsel %vm2557_vm5, 1.0, %v7328_v29  ;;  %v1836_v53 = vpop.permute.xlu1 %1835 }
 0x390   : > { %v11758_v12 = vadd.f32 %v6801_v2, %v11607_v1  ;;  %v5281_v39 = vadd.f32 %v6750_v55, %v11613_v21  ;;  %vm2760_vm9 = vcmp.eq.s32.totalorder %v1836_v53, %v7441_v24  ;;  %vm2761_vm11 = vcmp.eq.s32.totalorder %v1836_v53, %v7452_v28  ;;  %v1730_v48 = vpop.permute.xlu0 %1729 }
 0x391   : > { %v5248_v34 = vrot.slane %v5247_v57, 2  ;;  %v5267_v36 = vrot.slane %v5266_v42, 2  ;;  %v6954_v59 = vsel %vm2760_vm9, 1.0, %v7328_v29  ;;  %v6955_v56 = vsel %vm2761_vm11, 1.0, %v7328_v29 }
 0x392   : > { %v5300_v40 = vadd.f32 %v6751_v0, %v11616_v35  ;;  %v11767_v16 = vadd.f32 %v6954_v59, %v11625_v32  ;;  %vm2710_vm3 = vcmp.eq.s32.totalorder %v1730_v48, %v7441_v24  ;;  %vm2711_vm0 = vcmp.eq.s32.totalorder %v1730_v48, %v7452_v28 }
 0x393   : > { %v5249_v1 = vadd.f32 %v5248_v34, %v5247_v57  ;;  %v5268_v21 = vadd.f32 %v5267_v36, %v5266_v42  ;;  %v11772_v41 = vadd.f32 %v6955_v56, %v11628_v43  ;;  %v6904_v9 = vsel %vm2710_vm3, 1.0, %v7328_v29  ;;  %v1408_v17 = vpop.permute.xlu1 %1407 }
 0x394   : > { %v6905_v37 = vsel %vm2711_vm0, 1.0, %v7328_v29  ;;  %v11777_v5 = vadd.f32 %v6904_v9, %v11633_v50  ;;  %vm2558_vm6 = vcmp.eq.s32.totalorder %v1408_v17, %v7441_v24  ;;  %vm2559_vm12 = vcmp.eq.s32.totalorder %v1408_v17, %v7452_v28  ;;  %v1942_v35 = vpop.permute.xlu0 %1941 }
 0x395   : > { %v5250_v32 = vrot.slane %v5249_v1, 1  ;;  %v5269_v58 = vrot.slane %v5268_v21, 1  ;;  %v6752_v13 = vsel %vm2558_vm6, 1.0, %v7328_v29  ;;  %v6753_v43 = vsel %vm2559_vm12, 1.0, %v7328_v29 }
 0x396   : > { %v5282_v31 = vsel %vm4521_vm2, %v6752_v13, 0.0  ;;  %v5301_v49 = vsel %vm4521_vm2, %v6753_v43, 0.0  ;;  %vm2810_vm1 = vcmp.eq.s32.totalorder %v1942_v35, %v7441_v24  ;;  %vm2811_vm4 = vcmp.eq.s32.totalorder %v1942_v35, %v7452_v28 }
 0x397   : > { %v11787_v50 = vadd.f32 %v5250_v32, %v5249_v1  ;;  %v11790_v8 = vadd.f32 %v6905_v37, %v11636_v19  ;;  %v5283_v23 = vadd.f32 %v5282_v31, %v5281_v39  ;;  %v5302_v62 = vadd.f32 %v5301_v49, %v5300_v40  ;;  %v1565_v51 = vpop.permute.xlu1 %1564 }
 0x398   : > { %v7004_v15 = vsel %vm2810_vm1, 1.0, %v7328_v29  ;;  %v7005_v7 = vsel %vm2811_vm4, 1.0, %v7328_v29  ;;  %vm2632_vm7 = vcmp.eq.s32.totalorder %v1565_v51, %v7441_v24  ;;  %vm2633_vm8 = vcmp.eq.s32.totalorder %v1565_v51, %v7452_v28  ;;  %v1459_v60 = vpop.permute.xlu0 %1458 }
 0x399   : > { %v11796_v61 = vadd.f32 %v5269_v58, %v5268_v21  ;;  %v5284_v10 = vrot.slane %v5283_v23, 4  ;;  %v5303_v25 = vrot.slane %v5302_v62, 4  ;;  %v11799_v3 = vadd.f32 %v7004_v15, %v11653_v18 }
 0x39a   : > { %v6826_v19 = vsel %vm2632_vm7, 1.0, %v7328_v29  ;;  %v6827_v2 = vsel %vm2633_vm8, 1.0, %v7328_v29  ;;  %vm2582_vm15 = vcmp.eq.s32.totalorder %v1459_v60, %v7441_v24  ;;  %vm2583_vm5 = vcmp.eq.s32.totalorder %v1459_v60, %v7452_v28 }
 0x39b   : > { %v5285_v57 = vadd.f32 %v5284_v10, %v5283_v23  ;;  %v5304_v42 = vadd.f32 %v5303_v25, %v5302_v62  ;;  %v11806_v55 = vadd.f32 %v7005_v7, %v11656_v22  ;;  %v11809_v0 = vadd.f32 %v6826_v19, %v11665_v26  ;;  %v1679_v53 = vpop.permute.xlu1 %1678 }
 0x39c   : > { %v6776_v18 = vsel %vm2582_vm15, 1.0, %v7328_v29  ;;  %v6777_v39 = vsel %vm2583_vm5, 1.0, %v7328_v29  ;;  %vm2686_vm9 = vcmp.eq.s32.totalorder %v1679_v53, %v7441_v24  ;;  %vm2687_vm11 = vcmp.eq.s32.totalorder %v1679_v53, %v7452_v28  ;;  %v1624_v48 = vpop.permute.xlu0 %1623 }
 0x39d   : > { %v5286_v34 = vrot.slane %v5285_v57, 2  ;;  %v5305_v36 = vrot.slane %v5304_v42, 2  ;;  %v11816_v59 = vadd.f32 %v6827_v2, %v11668_v6  ;;  %v5319_v22 = vadd.f32 %v6776_v18, %v11673_v4 }
 0x39e   : > { %v6880_v26 = vsel %vm2686_vm9, 1.0, %v7328_v29  ;;  %v6881_v56 = vsel %vm2687_vm11, 1.0, %v7328_v29  ;;  %vm2660_vm3 = vcmp.eq.s32.totalorder %v1624_v48, %v7441_v24  ;;  %vm2661_vm0 = vcmp.eq.s32.totalorder %v1624_v48, %v7452_v28 }
 0x39f   : > { %v5287_v40 = vadd.f32 %v5286_v34, %v5285_v57  ;;  %v5306_v1 = vadd.f32 %v5305_v36, %v5304_v42  ;;  %v5338_v21 = vadd.f32 %v6777_v39, %v11676_v11  ;;  %v11825_v9 = vadd.f32 %v6880_v26, %v11685_v54  ;;  %v1891_v17 = vpop.permute.xlu1 %1890 }
 0x3a0   : > { %v6854_v6 = vsel %vm2660_vm3, 1.0, %v7328_v29  ;;  %v6855_v4 = vsel %vm2661_vm0, 1.0, %v7328_v29  ;;  %vm2786_vm6 = vcmp.eq.s32.totalorder %v1891_v17, %v7441_v24  ;;  %vm2787_vm12 = vcmp.eq.s32.totalorder %v1891_v17, %v7452_v28  ;;  %v1785_v37 = vpop.permute.xlu0 %1784 }
 0x3a1   : > { %v5288_v35 = vrot.slane %v5287_v40, 1  ;;  %v5307_v32 = vrot.slane %v5306_v1, 1  ;;  %v11832_v58 = vadd.f32 %v6881_v56, %v11688_v63  ;;  %v5433_v11 = vadd.f32 %v6854_v6, %v11693_v14 }
 0x3a2   : > { %v6980_v54 = vsel %vm2786_vm6, 1.0, %v7328_v29  ;;  %v6981_v13 = vsel %vm2787_vm12, 1.0, %v7328_v29  ;;  %vm2736_vm1 = vcmp.eq.s32.totalorder %v1785_v37, %v7441_v24  ;;  %vm2737_vm4 = vcmp.eq.s32.totalorder %v1785_v37, %v7452_v28 }
 0x3a3   : > { %v11839_v43 = vadd.f32 %v5288_v35, %v5287_v40  ;;  %v11841_v31 = vadd.f32 %v5307_v32, %v5306_v1  ;;  %v5452_v49 = vadd.f32 %v6855_v4, %v11696_v30  ;;  %v11845_v23 = vadd.f32 %v6980_v54, %v11705_v46  ;;  %v1463_v63 = vpop.permute.xlu1 %1462 }
 0x3a4   : > { %v6930_v14 = vsel %vm2736_vm1, 1.0, %v7328_v29  ;;  %v6931_v62 = vsel %vm2737_vm4, 1.0, %v7328_v29  ;;  %vm2584_vm7 = vcmp.eq.s32.totalorder %v1463_v63, %v7441_v24  ;;  %vm2585_vm8 = vcmp.eq.s32.totalorder %v1463_v63, %v7452_v28  ;;  %v1997_v51 = vpop.permute.xlu0 %1996 }
 0x3a5   : > { %v11852_v15 = vadd.f32 %v6981_v13, %v11708_v33  ;;  %v11855_v7 = vadd.f32 %v6930_v14, %v11713_v38  ;;  %v6778_v30 = vsel %vm2584_vm7, 1.0, %v7328_v29  ;;  %v6779_v46 = vsel %vm2585_vm8, 1.0, %v7328_v29 }
 0x3a6   : > { %v5320_v60 = vsel %vm4521_vm2, %v6778_v30, 0.0  ;;  %v5339_v10 = vsel %vm4521_vm2, %v6779_v46, 0.0  ;;  %vm2836_vm15 = vcmp.eq.s32.totalorder %v1997_v51, %v7441_v24  ;;  %vm2837_vm5 = vcmp.eq.s32.totalorder %v1997_v51, %v7452_v28 }
 0x3a7   : > { %v11864_v25 = vadd.f32 %v6931_v62, %v11716_v47  ;;  %v5321_v33 = vadd.f32 %v5320_v60, %v5319_v22  ;;  %v5340_v19 = vadd.f32 %v5339_v10, %v5338_v21  ;;  %v7030_v38 = vsel %vm2836_vm15, 1.0, %v7328_v29  ;;  %v1628_v2 = vpop.permute.xlu1 %1627 }
 0x3a8   : > { %v7031_v57 = vsel %vm2837_vm5, 1.0, %v7328_v29  ;;  %v11869_v42 = vadd.f32 %v7030_v38, %v11733_v52  ;;  %vm2662_vm9 = vcmp.eq.s32.totalorder %v1628_v2, %v7441_v24  ;;  %vm2663_vm11 = vcmp.eq.s32.totalorder %v1628_v2, %v7452_v28  ;;  %v1514_v53 = vpop.permute.xlu0 %1513 }
 0x3a9   : > { %v5322_v18 = vrot.slane %v5321_v33, 4  ;;  %v5341_v39 = vrot.slane %v5340_v19, 4  ;;  %v6856_v47 = vsel %vm2662_vm9, 1.0, %v7328_v29  ;;  %v6857_v48 = vsel %vm2663_vm11, 1.0, %v7328_v29 }
 0x3aa   : > { %v5434_v34 = vsel %vm4521_vm2, %v6856_v47, 0.0  ;;  %v5453_v36 = vsel %vm4521_vm2, %v6857_v48, 0.0  ;;  %vm2608_vm3 = vcmp.eq.s32.totalorder %v1514_v53, %v7441_v24  ;;  %vm2609_vm0 = vcmp.eq.s32.totalorder %v1514_v53, %v7452_v28 }
 0x3ab   : > { %v5323_v52 = vadd.f32 %v5322_v18, %v5321_v33  ;;  %v5342_v22 = vadd.f32 %v5341_v39, %v5340_v19  ;;  %v5435_v26 = vadd.f32 %v5434_v34, %v5433_v11  ;;  %v5454_v56 = vadd.f32 %v5453_v36, %v5452_v49  ;;  %v1734_v40 = vpop.permute.xlu1 %1733 }
 0x3ac   : > { %v6802_v1 = vsel %vm2608_vm3, 1.0, %v7328_v29  ;;  %v6803_v21 = vsel %vm2609_vm0, 1.0, %v7328_v29  ;;  %vm2712_vm6 = vcmp.eq.s32.totalorder %v1734_v40, %v7441_v24  ;;  %vm2713_vm12 = vcmp.eq.s32.totalorder %v1734_v40, %v7452_v28  ;;  %v1683_v17 = vpop.permute.xlu0 %1682 }
 0x3ad   : > { %v5324_v6 = vrot.slane %v5323_v52, 2  ;;  %v5343_v4 = vrot.slane %v5342_v22, 2  ;;  %v5436_v37 = vrot.slane %v5435_v26, 4  ;;  %v5455_v35 = vrot.slane %v5454_v56, 4 }
 0x3ae   : > { %v11884_v32 = vadd.f32 %v7031_v57, %v11736_v20  ;;  %v11887_v11 = vadd.f32 %v6802_v1, %v11748_v27  ;;  %v6906_v54 = vsel %vm2712_vm6, 1.0, %v7328_v29  ;;  %v6907_v13 = vsel %vm2713_vm12, 1.0, %v7328_v29 }
 0x3af   : > { %v11891_v49 = vadd.f32 %v5324_v6, %v5323_v52  ;;  %v5437_v63 = vadd.f32 %v5436_v37, %v5435_v26  ;;  %v5456_v14 = vadd.f32 %v5455_v35, %v5454_v56  ;;  %v11894_v62 = vadd.f32 %v6803_v21, %v11758_v12  ;;  %v1946_v51 = vpop.permute.xlu1 %1945 }
 0x3b0   : > { %v11896_v30 = vadd.f32 %v5343_v4, %v5342_v22  ;;  %v11899_v20 = vadd.f32 %v6906_v54, %v11777_v5  ;;  %vm2688_vm1 = vcmp.eq.s32.totalorder %v1683_v17, %v7441_v24  ;;  %vm2689_vm4 = vcmp.eq.s32.totalorder %v1683_v17, %v7452_v28  ;;  %v1840_v27 = vpop.permute.xlu0 %1839 }
 0x3b1   : > { %v5438_v46 = vrot.slane %v5437_v63, 2  ;;  %v5457_v60 = vrot.slane %v5456_v14, 2  ;;  %v11904_v10 = vadd.f32 %v6907_v13, %v11790_v8  ;;  %v6882_v33 = vsel %vm2688_vm1, 1.0, %v7328_v29 }
 0x3b2   : > { %v6883_v12 = vsel %vm2689_vm4, 1.0, %v7328_v29  ;;  %v5472_v19 = vsel %vm4521_vm2, %v6882_v33, 0.0  ;;  %vm2812_vm7 = vcmp.eq.s32.totalorder %v1946_v51, %v7441_v24  ;;  %vm2813_vm8 = vcmp.eq.s32.totalorder %v1946_v51, %v7452_v28 }
 0x3b3   : > { %v5439_v5 = vadd.f32 %v5438_v46, %v5437_v63  ;;  %v5458_v38 = vadd.f32 %v5457_v60, %v5456_v14  ;;  %v5473_v2 = vadd.f32 %v5472_v19, %v11825_v9  ;;  %v5491_v57 = vsel %vm4521_vm2, %v6883_v12, 0.0  ;;  %v1569_v53 = vpop.permute.xlu1 %1568 }
 0x3b4   : > { %v5492_v8 = vadd.f32 %v5491_v57, %v11832_v58  ;;  %v7006_v18 = vsel %vm2812_vm7, 1.0, %v7328_v29  ;;  %v7007_v39 = vsel %vm2813_vm8, 1.0, %v7328_v29  ;;  %vm2762_vm15 = vcmp.eq.s32.totalorder %v1840_v27, %v7441_v24  ;;  %v1518_v47 = vpop.permute.xlu0 %1517 }
 0x3b5   : > { %v5326_v48 = vrot.slane %v11891_v49, 1  ;;  %v5440_v34 = vrot.slane %v5439_v5, 1  ;;  %v5459_v36 = vrot.slane %v5458_v38, 1  ;;  %v5474_v52 = vrot.slane %v5473_v2, 4 }
 0x3b6   : > { %v5493_v22 = vrot.slane %v5492_v8, 4  ;;  %v11919_v9 = vadd.f32 %v7006_v18, %v11799_v3  ;;  %vm2763_vm5 = vcmp.eq.s32.totalorder %v1840_v27, %v7452_v28  ;;  %v6956_v58 = vsel %vm2762_vm15, 1.0, %v7328_v29 }
 0x3b7   : > { %v11923_v26 = vadd.f32 %v5440_v34, %v5439_v5  ;;  %v5475_v56 = vadd.f32 %v5474_v52, %v5473_v2  ;;  %v11926_v40 = vadd.f32 %v7007_v39, %v11806_v55  ;;  %v6957_v1 = vsel %vm2763_vm5, 1.0, %v7328_v29  ;;  %v1789_v21 = vpop.permute.xlu1 %1788 }
 0x3b8   : > { %v11929_v17 = vadd.f32 %v5459_v36, %v5458_v38  ;;  %v5494_v6 = vadd.f32 %v5493_v22, %v5492_v8  ;;  %v11932_v4 = vadd.f32 %v6956_v58, %v11767_v16  ;;  %vm2634_vm9 = vcmp.eq.s32.totalorder %v1569_v53, %v7441_v24  ;;  %v1738_v3 = vpop.permute.xlu0 %1737 }
 0x3b9   : > { %v5476_v37 = vrot.slane %v5475_v56, 2  ;;  %vm2635_vm11 = vcmp.eq.s32.totalorder %v1569_v53, %v7452_v28  ;;  %v6828_v35 = vsel %vm2634_vm9, 1.0, %v7328_v29  ;;  %vm2610_vm3 = vcmp.eq.s32.totalorder %v1518_v47, %v7441_v24 }
 0x3ba   : > { %v5495_v55 = vrot.slane %v5494_v6, 2  ;;  %v11939_v54 = vadd.f32 %v6957_v1, %v11772_v41  ;;  %v6829_v13 = vsel %vm2635_vm11, 1.0, %v7328_v29  ;;  %vm2611_vm0 = vcmp.eq.s32.totalorder %v1518_v47, %v7452_v28 }
 0x3bb   : > { %v5477_v16 = vadd.f32 %v5476_v37, %v5475_v56  ;;  %v11944_v63 = vadd.f32 %v6828_v35, %v11809_v0  ;;  %v6804_v14 = vsel %vm2610_vm3, 1.0, %v7328_v29  ;;  %v6805_v51 = vsel %vm2611_vm0, 1.0, %v7328_v29  ;;  %v2001_v41 = vpop.permute.xlu1 %2000 }
 0x3bc   : > { %v5496_v27 = vadd.f32 %v5495_v55, %v5494_v6  ;;  %v5358_v46 = vsel %vm4521_vm2, %v6804_v14, 0.0  ;;  %v5377_v60 = vsel %vm4521_vm2, %v6805_v51, 0.0  ;;  %vm2738_vm6 = vcmp.eq.s32.totalorder %v1789_v21, %v7441_v24  ;;  %v1895_v33 = vpop.permute.xlu0 %1894 }
 0x3bd   : > { %v5478_v12 = vrot.slane %v5477_v16, 1  ;;  %v5359_v19 = vadd.f32 %v5358_v46, %v11887_v11  ;;  %v5378_v5 = vadd.f32 %v5377_v60, %v11894_v62  ;;  %vm2739_vm12 = vcmp.eq.s32.totalorder %v1789_v21, %v7452_v28 }
 0x3be   : > { %v5497_v0 = vrot.slane %v5496_v27, 1  ;;  %v11955_v38 = vadd.f32 %v6829_v13, %v11816_v59  ;;  %v6932_v2 = vsel %vm2738_vm6, 1.0, %v7328_v29  ;;  %vm2714_vm1 = vcmp.eq.s32.totalorder %v1738_v3, %v7441_v24 }
 0x3bf   : > { %v11959_v57 = vadd.f32 %v5478_v12, %v5477_v16  ;;  %v5360_v53 = vrot.slane %v5359_v19, 4  ;;  %v5379_v8 = vrot.slane %v5378_v5, 4  ;;  %v6933_v18 = vsel %vm2739_vm12, 1.0, %v7328_v29 }
 0x3c0   : > { %v11962_v39 = vadd.f32 %v5497_v0, %v5496_v27  ;;  %v5547_v11 = vadd.f32 %v6932_v2, %v11855_v7  ;;  %vm2715_vm4 = vcmp.eq.s32.totalorder %v1738_v3, %v7452_v28  ;;  %v6908_v62 = vsel %vm2714_vm1, 1.0, %v7328_v29  ;;  %v1573_v59 = vpop.permute.xlu0 %1572  ;;  %v1793_v7 = vpop.permute.xlu1 %1792 }
 0x3c1   : > { %v5361_v47 = vadd.f32 %v5360_v53, %v5359_v19  ;;  %v11967_v34 = vadd.f32 %v5379_v8, %v5378_v5  ;;  %v6909_v36 = vsel %vm2715_vm4, 1.0, %v7328_v29  ;;  %v5510_v52 = vsel %vm4521_vm2, %v6908_v62, 0.0 }
 0x3c2   : > { %v5511_v22 = vadd.f32 %v5510_v52, %v11899_v20  ;;  %v5529_v58 = vsel %vm4521_vm2, %v6909_v36, 0.0  ;;  %vm2838_vm7 = vcmp.eq.s32.totalorder %v2001_v41, %v7441_v24  ;;  %vm2839_vm8 = vcmp.eq.s32.totalorder %v2001_v41, %v7452_v28 }
 0x3c3   : > { %v5362_v56 = vrot.slane %v5361_v47, 2  ;;  %v5566_v1 = vadd.f32 %v6933_v18, %v11864_v25  ;;  %v5530_v21 = vadd.f32 %v5529_v58, %v11904_v10  ;;  %v7032_v6 = vsel %vm2838_vm7, 1.0, %v7328_v29 }
 0x3c4   : > { %v5381_v3 = vrot.slane %v11967_v34, 2  ;;  %v5512_v37 = vrot.slane %v5511_v22, 4  ;;  %v7033_v35 = vsel %vm2839_vm8, 1.0, %v7328_v29  ;;  %vm2788_vm15 = vcmp.eq.s32.totalorder %v1895_v33, %v7441_v24  ;;  %v1844_v14 = vpop.permute.xlu0 %1843 }
 0x3c5   : > { %v11981_v20 = vadd.f32 %v5362_v56, %v5361_v47  ;;  %v5531_v55 = vrot.slane %v5530_v21, 4  ;;  %v11984_v13 = vadd.f32 %v7032_v6, %v11869_v42  ;;  %vm2789_vm5 = vcmp.eq.s32.totalorder %v1895_v33, %v7452_v28 }
 0x3c6   : > { %v5513_v25 = vadd.f32 %v5512_v37, %v5511_v22  ;;  %v11988_v10 = vadd.f32 %v7033_v35, %v11884_v32  ;;  %v6982_v16 = vsel %vm2788_vm15, 1.0, %v7328_v29  ;;  %vm2740_vm9 = vcmp.eq.s32.totalorder %v1793_v7, %v7441_v24  ;;  %v1950_v32 = vpop.permute.xlu1 %1949 }
 0x3c7   : > { %v5532_v51 = vadd.f32 %v5531_v55, %v5530_v21  ;;  %v6983_v27 = vsel %vm2789_vm5, 1.0, %v7328_v29  ;;  %v11994_v46 = vadd.f32 %v6982_v16, %v11845_v23  ;;  %vm2741_vm11 = vcmp.eq.s32.totalorder %v1793_v7, %v7452_v28 }
 0x3c8   : > { %v5514_v42 = vrot.slane %v5513_v25, 2  ;;  %v6934_v60 = vsel %vm2740_vm9, 1.0, %v7328_v29  ;;  %v6935_v41 = vsel %vm2741_vm11, 1.0, %v7328_v29  ;;  %vm2636_vm3 = vcmp.eq.s32.totalorder %v1573_v59, %v7441_v24  ;;  %v1848_v22 = vpop.permute.xlu0 %1847 }
 0x3c9   : > { %v5533_v33 = vrot.slane %v5532_v51, 2  ;;  %v5548_v12 = vsel %vm4521_vm2, %v6934_v60, 0.0  ;;  %v5567_v19 = vsel %vm4521_vm2, %v6935_v41, 0.0  ;;  %vm2637_vm0 = vcmp.eq.s32.totalorder %v1573_v59, %v7452_v28 }
 0x3ca   : > { %v5515_v5 = vadd.f32 %v5514_v42, %v5513_v25  ;;  %v5549_v23 = vadd.f32 %v5548_v12, %v5547_v11  ;;  %v5568_v0 = vadd.f32 %v5567_v19, %v5566_v1  ;;  %v6830_v2 = vsel %vm2636_vm3, 1.0, %v7328_v29  ;;  %v1899_v6 = vpop.permute.xlu1 %1898 }
 0x3cb   : > { %v5534_v53 = vadd.f32 %v5533_v33, %v5532_v51  ;;  %v6831_v8 = vsel %vm2637_vm0, 1.0, %v7328_v29  ;;  %v5396_v18 = vsel %vm4521_vm2, %v6830_v2, 0.0  ;;  %vm2814_vm6 = vcmp.eq.s32.totalorder %v1950_v32, %v7441_v24 }
 0x3cc   : > { %v5516_v62 = vrot.slane %v5515_v5, 1  ;;  %v5550_v47 = vrot.slane %v5549_v23, 4  ;;  %v5569_v36 = vrot.slane %v5568_v0, 4  ;;  %v5397_v52 = vadd.f32 %v5396_v18, %v11944_v63 }
 0x3cd   : > { %v5535_v58 = vrot.slane %v5534_v53, 1  ;;  %v5415_v59 = vsel %vm4521_vm2, %v6831_v8, 0.0  ;;  %vm2815_vm12 = vcmp.eq.s32.totalorder %v1950_v32, %v7452_v28  ;;  %v7008_v11 = vsel %vm2814_vm6, 1.0, %v7328_v29  ;;  %v2005_v32 = vpop.permute.xlu0 %2004 }
 0x3ce   : > { %v5641_v7 = vadd.f32 %v6983_v27, %v11852_v15  ;;  %v5551_v56 = vadd.f32 %v5550_v47, %v5549_v23  ;;  %v5570_v1 = vadd.f32 %v5569_v36, %v5568_v0  ;;  %v5398_v21 = vrot.slane %v5397_v52, 4  ;;  %v1903_v0 = vpop.permute.xlu1 %1902 }
 0x3cf   : > { %v12012_v37 = vadd.f32 %v5516_v62, %v5515_v5  ;;  %v12014_v35 = vadd.f32 %v5535_v58, %v5534_v53  ;;  %v5416_v63 = vadd.f32 %v5415_v59, %v11955_v38  ;;  %v7009_v55 = vsel %vm2815_vm12, 1.0, %v7328_v29 }
 0x3d0   : > { %v5552_v25 = vrot.slane %v5551_v56, 2  ;;  %v5571_v16 = vrot.slane %v5570_v1, 2  ;;  %v12018_v51 = vadd.f32 %v5398_v21, %v5397_v52  ;;  %v5660_v42 = vadd.f32 %v7008_v11, %v11919_v9 }
 0x3d1   : > { %v5417_v60 = vrot.slane %v5416_v63, 4  ;;  %vm2764_vm1 = vcmp.eq.s32.totalorder %v1844_v14, %v7441_v24  ;;  %vm2765_vm4 = vcmp.eq.s32.totalorder %v1844_v14, %v7452_v28  ;;  %vm2790_vm7 = vcmp.eq.s32.totalorder %v1899_v6, %v7441_v24  ;;  %v1954_v58 = vpop.permute.xlu0 %1953 }
 0x3d2   : > { %v5553_v15 = vadd.f32 %v5552_v25, %v5551_v56  ;;  %v5572_v27 = vadd.f32 %v5571_v16, %v5570_v1  ;;  %v5679_v41 = vadd.f32 %v7009_v55, %v11926_v40  ;;  %v6958_v38 = vsel %vm2764_vm1, 1.0, %v7328_v29 }
 0x3d3   : > { %v5400_v33 = vrot.slane %v12018_v51, 2  ;;  %v12027_v12 = vadd.f32 %v5417_v60, %v5416_v63  ;;  %v6959_v9 = vsel %vm2765_vm4, 1.0, %v7328_v29  ;;  %vm2791_vm8 = vcmp.eq.s32.totalorder %v1899_v6, %v7452_v28 }
 0x3d4   : > { %v5554_v19 = vrot.slane %v5553_v15, 1  ;;  %v5573_v5 = vrot.slane %v5572_v27, 1  ;;  %v5585_v14 = vadd.f32 %v6958_v38, %v11932_v4  ;;  %v6984_v23 = vsel %vm2790_vm7, 1.0, %v7328_v29 }
 0x3d5   : > { %v5604_v40 = vadd.f32 %v6959_v9, %v11939_v54  ;;  %v6985_v2 = vsel %vm2791_vm8, 1.0, %v7328_v29  ;;  %vm2766_vm15 = vcmp.eq.s32.totalorder %v1848_v22, %v7441_v24  ;;  %vm2767_vm5 = vcmp.eq.s32.totalorder %v1848_v22, %v7452_v28 }
 0x3d6   : > { %v12037_v53 = vadd.f32 %v5554_v19, %v5553_v15  ;;  %v5623_v8 = vadd.f32 %v6984_v23, %v11994_v46  ;;  %v5642_v18 = vadd.f32 %v6985_v2, %v5641_v7  ;;  %v6960_v62 = vsel %vm2766_vm15, 1.0, %v7328_v29  ;;  %v1958_v15 = vpop.permute.xlu1 %1957 }
 0x3d7   : > { %v6961_v4 = vsel %vm2767_vm5, 1.0, %v7328_v29  ;;  %v5586_v47 = vsel %vm4521_vm2, %v6960_v62, 0.0  ;;  %vm2792_vm9 = vcmp.eq.s32.totalorder %v1903_v0, %v7441_v24  ;;  %vm2793_vm11 = vcmp.eq.s32.totalorder %v1903_v0, %v7452_v28 }
 0x3d8   : > { %v5587_v54 = vadd.f32 %v5586_v47, %v5585_v14  ;;  %v5605_v36 = vsel %vm4521_vm2, %v6961_v4, 0.0  ;;  %v6986_v52 = vsel %vm2792_vm9, 1.0, %v7328_v29  ;;  %v6987_v22 = vsel %vm2793_vm11, 1.0, %v7328_v29 }
 0x3d9   : > { %v5606_v46 = vadd.f32 %v5605_v36, %v5604_v40  ;;  %v5624_v59 = vsel %vm4521_vm2, %v6986_v52, 0.0  ;;  %v5643_v11 = vsel %vm4521_vm2, %v6987_v22, 0.0  ;;  %vm2840_vm3 = vcmp.eq.s32.totalorder %v2005_v32, %v7441_v24 }
 0x3da   : > { %v5588_v7 = vrot.slane %v5587_v54, 4  ;;  %v5625_v56 = vadd.f32 %v5624_v59, %v5623_v8  ;;  %v5644_v1 = vadd.f32 %v5643_v11, %v5642_v18  ;;  %vm2841_vm0 = vcmp.eq.s32.totalorder %v2005_v32, %v7452_v28 }
 0x3db   : > { %v12052_v21 = vadd.f32 %v5573_v5, %v5572_v27  ;;  %v5607_v6 = vrot.slane %v5606_v46, 4  ;;  %v7034_v63 = vsel %vm2840_vm3, 1.0, %v7328_v29  ;;  %vm2816_vm6 = vcmp.eq.s32.totalorder %v1954_v58, %v7441_v24 }
 0x3dc   : > { %v5589_v55 = vadd.f32 %v5588_v7, %v5587_v54  ;;  %v5626_v25 = vrot.slane %v5625_v56, 4  ;;  %v5645_v16 = vrot.slane %v5644_v1, 4  ;;  %v7035_v60 = vsel %vm2841_vm0, 1.0, %v7328_v29 }
 0x3dd   : > { %v5608_v38 = vadd.f32 %v5607_v6, %v5606_v46  ;;  %v12058_v9 = vadd.f32 %v7034_v63, %v11984_v13  ;;  %vm2817_vm12 = vcmp.eq.s32.totalorder %v1954_v58, %v7452_v28  ;;  %v7010_v27 = vsel %vm2816_vm6, 1.0, %v7328_v29 }
 0x3de   : > { %v5590_v32 = vrot.slane %v5589_v55, 2  ;;  %v5627_v19 = vadd.f32 %v5626_v25, %v5625_v56  ;;  %v5646_v5 = vadd.f32 %v5645_v16, %v5644_v1  ;;  %v7011_v14 = vsel %vm2817_vm12, 1.0, %v7328_v29 }
 0x3df   : > { %v5609_v23 = vrot.slane %v5608_v38, 2  ;;  %v5661_v0 = vadd.f32 %v7010_v27, %v5660_v42  ;;  %v5680_v40 = vadd.f32 %v7011_v14, %v5679_v41  ;;  %vm2818_vm1 = vcmp.eq.s32.totalorder %v1958_v15, %v7441_v24 }
 0x3e0   : > { %v5591_v2 = vadd.f32 %v5590_v32, %v5589_v55  ;;  %v5628_v8 = vrot.slane %v5627_v19, 2  ;;  %v5647_v18 = vrot.slane %v5646_v5, 2  ;;  %vm2819_vm4 = vcmp.eq.s32.totalorder %v1958_v15, %v7452_v28 }
 0x3e1   : > { %v5610_v13 = vadd.f32 %v5609_v23, %v5608_v38  ;;  %v7012_v62 = vsel %vm2818_vm1, 1.0, %v7328_v29  ;;  %v7013_v4 = vsel %vm2819_vm4, 1.0, %v7328_v29  ;;  %v5345_v47 = vrot.slane %v11896_v30, 1  ;;  %v2013_v23 = vpop.permute.xlu1 %2012 }
 0x3e2   : > { %v5592_v54 = vrot.slane %v5591_v2, 1  ;;  %v12068_v36 = vadd.f32 %v5628_v8, %v5627_v19  ;;  %v5648_v52 = vadd.f32 %v5647_v18, %v5646_v5  ;;  %v5662_v42 = vsel %vm4521_vm2, %v7012_v62, 0.0 }
 0x3e3   : > { %v5611_v41 = vrot.slane %v5610_v13, 1  ;;  %v5717_v22 = vadd.f32 %v7035_v60, %v11988_v10  ;;  %v5663_v58 = vadd.f32 %v5662_v42, %v5661_v0  ;;  %v5681_v46 = vsel %vm4521_vm2, %v7013_v4, 0.0 }
 0x3e4   : > { %v12073_v59 = vadd.f32 %v5592_v54, %v5591_v2  ;;  %v5630_v11 = vrot.slane %v12068_v36, 1  ;;  %v5682_v7 = vadd.f32 %v5681_v46, %v5680_v40  ;;  %v5346_v56 = vadd.f32 %v5345_v47, %v11896_v30 }
 0x3e5   : > { %v5649_v1 = vrot.slane %v5648_v52, 1  ;;  %v5664_v6 = vrot.slane %v5663_v58, 4  ;;  %v5382_v63 = vadd.f32 %v5381_v3, %v11967_v34  ;;  %v5419_v55 = vrot.slane %v12027_v12, 2  ;;  %v2009_v3 = vpop.permute.xlu0 %2008 }
 0x3e6   : > { %v5683_v25 = vrot.slane %v5682_v7, 4  ;;  %v5871_v10 = vsel %vm5831_vm14, %v11796_v61, %v11741_v44  ;;  %v5327_v16 = vadd.f32 %v5326_v48, %v11891_v49  ;;  %v5364_v60 = vrot.slane %v11981_v20, 1 }
 0x3e7   : > { %v5665_v30 = vadd.f32 %v5664_v6, %v5663_v58  ;;  %v5383_v15 = vrot.slane %v5382_v63, 1  ;;  %v5420_v38 = vadd.f32 %v5419_v55, %v12027_v12  ;;  %vm12276_vm7 = vcmask 1044484  }
 0x3e8   : > { %v5872_v34 = vsel %vm12276_vm7, %v11841_v31, %v5871_v10  ;;  %v5684_v27 = vadd.f32 %v5683_v25, %v5682_v7  ;;  %vm12277_vm8 = vcmask 1045509   ;;  %v5365_v19 = vadd.f32 %v5364_v60, %v11981_v20  ;;  %vm12278_vm15 = vmmov %vm12276_vm7 }
 0x3e9   : > { %v5873_v32 = vsel %vm12277_vm8, %v5346_v56, %v5872_v34  ;;  %v5401_v44 = vadd.f32 %v5400_v33, %v12018_v51  ;;  %v5666_v61 = vrot.slane %v5665_v30, 2  ;;  %v5384_v49 = vadd.f32 %v5383_v15, %v5382_v63  ;;  %vm12280_vm11 = vmmov %vm12277_vm8 }
 0x3ea   : > { %v5421_v48 = vrot.slane %v5420_v38, 1  ;;  %v5864_v12 = vsel %vm5831_vm14, %v11787_v50, %v11753_v45  ;;  %v5685_v5 = vrot.slane %v5684_v27, 2  ;;  %vm2842_vm5 = vcmp.eq.s32.totalorder %v2009_v3, %v7441_v24 }
 0x3eb   : > { %v5402_v14 = vrot.slane %v5401_v44, 1  ;;  %v5865_v31 = vsel %vm12278_vm15, %v11839_v43, %v5864_v12  ;;  %v5667_v20 = vadd.f32 %v5666_v61, %v5665_v30  ;;  %vm12279_vm9 = vcmask 1046534  }
 0x3ec   : > { %v5422_v0 = vadd.f32 %v5421_v48, %v5420_v38  ;;  %v5874_v40 = vsel %vm12279_vm9, %v5384_v49, %v5873_v32  ;;  %v5866_v51 = vsel %vm12280_vm11, %v5327_v16, %v5865_v31  ;;  %v5686_v33 = vadd.f32 %v5685_v5, %v5684_v27  ;;  %vm12281_vm3 = vmmov %vm12279_vm9  ;;  %v5730_v48 = vld [vmem:[#allocation2 + $0x18] sm:$0xff]  ;;  %v6003_v31 = vld [vmem:[%s12214_s2] sm:$0xff] (!%p7040_p8) }
 0x3ed   : > { %v5403_v2 = vadd.f32 %v5402_v14, %v5401_v44  ;;  %v5867_v8 = vsel %vm12281_vm3, %v5365_v19, %v5866_v51  ;;  %vm2843_vm0 = vcmp.eq.s32.totalorder %v2009_v3, %v7452_v28  ;;  %vm12282_vm6 = vcmask 1047559  }
 0x3ee   : > { %v5875_v45 = vsel %vm12282_vm6, %v5422_v0, %v5874_v40  ;;  %v7036_v50 = vsel %vm2842_vm5, 1.0, %v7328_v29  ;;  %v7037_v43 = vsel %vm2843_vm0, 1.0, %v7328_v29  ;;  %vm2844_vm12 = vcmp.eq.s32.totalorder %v2013_v23, %v7441_v24  ;;  %vm12283_vm1 = vmmov %vm12282_vm6  ;;  %v6006_v40 = vld [vmem:[%s12214_s2 + $0x18] sm:$0xff] (!%p7040_p8) }
 0x3ef   : > { %5972 = vmatprep.mubr.f32.mxu1 %v5875_v45  ;;  %v5868_v18 = vsel %vm12283_vm1, %v5403_v2, %v5867_v8  ;;  %v5699_v62 = vadd.f32 %v7036_v50, %v12058_v9  ;;  %v5718_v4 = vadd.f32 %v7037_v43, %v5717_v22  ;;  %vm2845_vm4 = vcmp.eq.s32.totalorder %v2013_v23, %v7452_v28  ;;  %vm12289_vm5 = vmmov %vm12281_vm3  ;;  %v6004_v23 = vld [vmem:[%s12214_s2 + $0x8] sm:$0xff] (!%p7040_p8)  ;;  %v5995_v45 = vld [vmem:[#allocation2] sm:$0xff] (!%p7040_p8) }
 0x3f0   : > { %v5612_v47 = vadd.f32 %v5611_v41, %v5610_v13  ;;  %5973 = vmatmul.mubr.f32.vlgmr.msra.gmra.mrb[0].mxu1 %v5868_v18  ;;  %v7038_v54 = vsel %vm2844_vm12, 1.0, %v7328_v29  ;;  %v7039_v42 = vsel %vm2845_vm4, 1.0, %v7328_v29  ;;  %v5687_v58 = vrot.slane %v5686_v33, 1  ;;  %v6008_v2 = vld [vmem:[%s12214_s2 + $0x28] sm:$0xff] (!%p7040_p8)  ;;  %v6009_v50 = vld [vmem:[%s12214_s2 + $0x30] sm:$0xff] (!%p7040_p8)  ;;  %v6010_v43 = vld [vmem:[%s12214_s2 + $0x38] sm:$0xff] (!%p7040_p8) }
 0x3f1   : > { %v5700_v46 = vsel %vm4521_vm2, %v7038_v54, 0.0  ;;  %v5719_v7 = vsel %vm4521_vm2, %v7039_v42, 0.0  ;;  %v5650_v24 = vadd.f32 %v5649_v1, %v5648_v52  ;;  %v5883_v56 = vsel %vm5827_vm10, %v11962_v39, %v11929_v17  ;;  %vm12284_vm2 = vmmov %vm12276_vm7  ;;  %v6011_v54 = vld [vmem:[%s12214_s2 + $0x40] sm:$0xff] (!%p7040_p8)  ;;  %v6012_v42 = vld [vmem:[%s12214_s2 + $0x48] sm:$0xff] (!%p7040_p8) }
 0x3f2   : > { %v5701_v9 = vadd.f32 %v5700_v46, %v5699_v62  ;;  %v5720_v22 = vadd.f32 %v5719_v7, %v5718_v4  ;;  %v5688_v6 = vadd.f32 %v5687_v58, %v5686_v33  ;;  %v5884_v28 = vsel %vm5829_vm13, %v12014_v35, %v5883_v56  ;;  %vm12285_vm7 = vmmov %vm12277_vm8  ;;  %v6007_v33 = vld [vmem:[%s12214_s2 + $0x20] sm:$0xff] (!%p7040_p8)  ;;  %v6013_v46 = vld [vmem:[%s12214_s2 + $0x50] sm:$0xff] (!%p7040_p8) }
 0x3f3   : > { %v5885_v13 = vsel %vm5831_vm14, %v12052_v21, %v5884_v28  ;;  %v5631_v29 = vadd.f32 %v5630_v11, %v12068_v36  ;;  %v5668_v41 = vrot.slane %v5667_v20, 1  ;;  %v5876_v52 = vsel %vm5827_vm10, %v11959_v57, %v11923_v26  ;;  %vm12286_vm8 = vmmov %vm12281_vm3  ;;  %v6014_v7 = vld [vmem:[%s12214_s2 + $0x58] sm:$0xff] (!%p7040_p8)  ;;  %v6015_v56 = vld [vmem:[%s12214_s2 + $0x60] sm:$0xff] (!%p7040_p8) }
 0x3f4   : > { %v5702_v1 = vrot.slane %v5701_v9, 4  ;;  %v5721_v63 = vrot.slane %v5720_v22, 4  ;;  %v5886_v17 = vsel %vm12284_vm2, %v5612_v47, %v5885_v13  ;;  %v5877_v39 = vsel %vm5829_vm13, %v12012_v37, %v5876_v52  ;;  %vm12287_vm15 = vmmov %vm12284_vm2  ;;  %v6018_v28 = vld [vmem:[%s12214_s2 + $0x78] sm:$0xff] (!%p7040_p8) }
 0x3f5   : > { %v5887_v55 = vsel %vm12285_vm7, %v5650_v24, %v5886_v17  ;;  %v5669_v35 = vadd.f32 %v5668_v41, %v5667_v20  ;;  %v5878_v21 = vsel %vm5831_vm14, %v12037_v53, %v5877_v39  ;;  %vm12288_vm10 = vmmov %vm12285_vm7  ;;  %v6005_v20 = vld [vmem:[%s12214_s2 + $0x10] sm:$0xff] (!%p7040_p8)  ;;  %v7178_v0 = vpack.c.bf16 (!%p7040_p8), %v6004_v23, %v6003_v31 }
 0x3f6   : > { %v5703_v25 = vadd.f32 %v5702_v1, %v5701_v9  ;;  %v5722_v36 = vadd.f32 %v5721_v63, %v5720_v22  ;;  %v5888_v11 = vsel %vm12286_vm8, %v5688_v6, %v5887_v55  ;;  %v5879_v26 = vsel %vm12287_vm15, %v12073_v59, %v5878_v21  ;;  %vm12290_vm13 = vmmov %vm12283_vm1  ;;  %v5729_v59 = vld [vmem:[#allocation2 + $0x10] sm:$0xff]  ;;  %v6016_v9 = vld [vmem:[%s12214_s2 + $0x68] sm:$0xff] (!%p7040_p8) }
 0x3f7   : > { %v5880_v57 = vsel %vm12288_vm10, %v5631_v29, %v5879_v26  ;;  %vm12291_vm14 = vmmov %vm12283_vm1  ;;  %v7182_v51 = vpack.c.bf16 (!%p7040_p8), %v6006_v40, %v6005_v20  ;;  %7179 = vmatprep.subr.bf16.mxu0 (!%p7040_p8), %v7178_v0  ;;  %7226 = vmatprep.subr.bf16.mxu1 (!%p7040_p8), %v7178_v0  ;;  %v7186_v8 = vpack.c.bf16 (!%p7040_p8), %v6008_v2, %v6007_v33  ;;  %v5999_v18 = vmul.f32 (!%p7040_p8), 0.01, %v5995_v45  ;;  %v6017_v6 = vld [vmem:[%s12214_s2 + $0x70] sm:$0xff] (!%p7040_p8)  ;;  %v5996_v29 = vld [vmem:[#allocation2 + $0x8] sm:$0xff] (!%p7040_p8) }
 0x3f8   : > { %v5704_v10 = vrot.slane %v5703_v25, 2  ;;  %v5723_v16 = vrot.slane %v5722_v36, 2  ;;  %v5881_v60 = vsel %vm12289_vm5, %v5669_v35, %v5880_v57  ;;  %7181 = vmatpush3.bf16.msra.mxu0 (!%p7040_p8), %v7178_v0  ;;  %7234 = vmatpush3.bf16.msra.mxu1 (!%p7040_p8), %v7178_v0  ;;  %v7190_v47 = vpack.c.bf16 (!%p7040_p8), %v6010_v43, %v6009_v50  ;;  %v7041_v63 = vld [vmem:[%s12215_s3] ss:$0 sm:$0xff] (!%p7040_p8) }
 0x3f9   : > { %7183 = vmatprep.subr.bf16.mxu0 (!%p7040_p8), %v7182_v51  ;;  %7227 = vmatprep.subr.bf16.mxu1 (!%p7040_p8), %v7182_v51  ;;  %v7194_v58 = vpack.c.bf16 (!%p7040_p8), %v6012_v42, %v6011_v54  ;;  %v7198_v24 = vpack.c.bf16 (!%p7040_p8), %v6014_v7, %v6013_v46  ;;  %v7202_v22 = vpack.c.bf16 (!%p7040_p8), %v6016_v9, %v6015_v56  ;;  %v6000_v52 = vmul.f32 (!%p7040_p8), 0.01, %v5996_v29 }
 0x3fa   : > { %v5705_v37 = vadd.f32 %v5704_v10, %v5703_v25  ;;  %v5724_v30 = vadd.f32 %v5723_v16, %v5722_v36  ;;  %7140 = vmatprep.mubr.f32.mxu0 (!%p7040_p8), %v5999_v18  ;;  %v7206_v13 = vpack.c.bf16 (!%p7040_p8), %v6018_v28, %v6017_v6 }
 0x3fc   : > { %v5725_v15 = vrot.slane %v5724_v30, 1  ;;  %v5706_v38 = vrot.slane %v5705_v37, 1  ;;  %7185 = vmatpush3.bf16.msra.mxu0 (!%p7040_p8), %v7182_v51  ;;  %7235 = vmatpush3.bf16.msra.mxu1 (!%p7040_p8), %v7182_v51 }
 0x3fd   : > { %7187 = vmatprep.subr.bf16.mxu0 (!%p7040_p8), %v7186_v8  ;;  %7228 = vmatprep.subr.bf16.mxu1 (!%p7040_p8), %v7186_v8 }
 0x3fe   : > { %v5726_v34 = vadd.f32 %v5725_v15, %v5724_v30  ;;  %v5707_v3 = vadd.f32 %v5706_v38, %v5705_v37 }
 0x400   : > { %v5889_v53 = vsel %vm12290_vm13, %v5726_v34, %v5888_v11  ;;  %v5882_v27 = vsel %vm12291_vm14, %v5707_v3, %v5881_v60  ;;  %7189 = vmatpush3.bf16.msra.mxu0 (!%p7040_p8), %v7186_v8  ;;  %7236 = vmatpush3.bf16.msra.mxu1 (!%p7040_p8), %v7186_v8 }
 0x401   : > { %5977 = vmatprep.mubr.f32.mxu1 %v5889_v53  ;;  %7191 = vmatprep.subr.bf16.mxu0 (!%p7040_p8), %v7190_v47 }
 0x402   : > { %5978 = vmatmul.mubr.f32.gmra.mrb[2].mxu1 %v5882_v27  ;;  %7229 = vmatprep.subr.bf16.mxu1 (!%p7040_p8), %v7190_v47 }
 0x404   : > { %7193 = vmatpush3.bf16.msra.mxu0 (!%p7040_p8), %v7190_v47  ;;  %7237 = vmatpush3.bf16.msra.mxu1 (!%p7040_p8), %v7190_v47 }
 0x405   : > { %7195 = vmatprep.subr.bf16.mxu0 (!%p7040_p8), %v7194_v58  ;;  %7230 = vmatprep.subr.bf16.mxu1 (!%p7040_p8), %v7194_v58 }
 0x408   : > { %7197 = vmatpush3.bf16.msra.mxu0 (!%p7040_p8), %v7194_v58  ;;  %7238 = vmatpush3.bf16.msra.mxu1 (!%p7040_p8), %v7194_v58 }
 0x409   : > { %7199 = vmatprep.subr.bf16.mxu0 (!%p7040_p8), %v7198_v24  ;;  %7231 = vmatprep.subr.bf16.mxu1 (!%p7040_p8), %v7198_v24 }
 0x40c   : > { %7201 = vmatpush3.bf16.msra.mxu0 (!%p7040_p8), %v7198_v24  ;;  %7239 = vmatpush3.bf16.msra.mxu1 (!%p7040_p8), %v7198_v24 }
 0x40d   : > { %7203 = vmatprep.subr.bf16.mxu0 (!%p7040_p8), %v7202_v22  ;;  %7232 = vmatprep.subr.bf16.mxu1 (!%p7040_p8), %v7202_v22 }
 0x410   : > { %7205 = vmatpush3.bf16.msra.mxu0 (!%p7040_p8), %v7202_v22  ;;  %7240 = vmatpush3.bf16.msra.mxu1 (!%p7040_p8), %v7202_v22 }
 0x411   : > { %7207 = vmatprep.subr.bf16.mxu0 (!%p7040_p8), %v7206_v13  ;;  %7233 = vmatprep.subr.bf16.mxu1 (!%p7040_p8), %v7206_v13 }
 0x414   : > { %7209 = vmatpush3.bf16.msra.mxu0 (!%p7040_p8), %v7206_v13  ;;  %7241 = vmatpush3.bf16.msra.mxu1 (!%p7040_p8), %v7206_v13 }
 0x417   : > { %7141 = vmatmul.mubr.f32.vlgmr.msra.gmra.mrb[0].mxu0 (!%p7040_p8), %v6000_v52 }
 0x4c3   : > { %v7082_v32 = vpop.f32.mrb[0].mxu1 }
 0x4c4   : > { %v7083_v19 = vpop.f32.mrb[1].mxu1 }
 0x4c5   : > { %v7084_v44 = vadd.f32 %v7083_v19, %v7082_v32 }
 0x4c7   : > { %v5985_v61 = vadd.f32 %v7084_v44, %v5729_v59 }
 0x4c9   : > { %5989 = vst [vmem:[#allocation2 + $0x10] sm:$0xff] %v5985_v61 }
 0x4d0   : > { %v5997_v62 = vld [vmem:[#allocation2 + $0x10] sm:$0xff] (!%p7040_p8) }
 0x4d1   : > { %v6001_v4 = vmul.f32 (!%p7040_p8), 0.01, %v5997_v62 }
 0x4d3   : > { %7143 = vmatprep.mubr.f32.mxu1 (!%p7040_p8), %v6001_v4 }
 0x4d5   : > { %v7085_v49 = vpop.f32.mrb[2].mxu1  ;;  %5994 = sbr.rel (%p7040_p8) target bundleno = 1469 (0x5bd), region = 44 }
 0x4d6   : > { %v7086_v12 = vpop.f32.mrb[3].mxu1 }
 0x4d7   : > { %v7087_v5 = vadd.f32 %v7086_v12, %v7085_v49 }
 0x4d9   : > { %v5986_v14 = vadd.f32 %v7087_v5, %v5730_v48 }
 0x4db   : > { %5990 = vst [vmem:[#allocation2 + $0x18] sm:$0xff] %v5986_v14 }
 0x4e2   : > { %v5998_v41 = vld [vmem:[#allocation2 + $0x18] sm:$0xff] }
 0x4e3   : > { %v6002_v1 = vmul.f32 0.01, %v5998_v41 }
 0x4e5   : > { %7144 = vmatmul.mubr.f32.vlgmr.msra.gmra.mrb[0].mxu1 %v6002_v1 }
 0x4ea   : > { %v7142_v17 = vpop.f32.mrb[0].mxu0 }
 0x4eb   : > { %v6092_v55 = vpop.f32.mrb[1].mxu0  ;;  %v6098_v36 = vadd.f32 %v7142_v17, %v7041_v63 }
 0x4ec   : > { %v6093_v21 = vadd.f32 %v7041_v63, %v6092_v55 }
 0x4ed   : > { %6112 = vst [vmem:[%s7400_s8 + $0x8] sm:$0xff] %v6098_v36 }
 0x4ee   : > { %6111 = vst [vmem:[%s7400_s8] sm:$0xff] %v6093_v21 }
 0x5b8   : > { %v7145_v39 = vpop.f32.mrb[0].mxu1 }
 0x5b9   : > { %v6102_v35 = vpop.f32.mrb[1].mxu1  ;;  %v6108_v11 = vadd.f32 %v7145_v39, %v7041_v63 }
 0x5ba   : > { %v6103_v25 = vadd.f32 %v7041_v63, %v6102_v35 }
 0x5bb   : > { %6114 = vst [vmem:[%s7400_s8 + $0x18] sm:$0xff] %v6108_v11 }
 0x5bc   : > { %6113 = vst [vmem:[%s7400_s8 + $0x10] sm:$0xff] %v6103_v25 }
 0x5bd PF: > { %s14_s19 = sadd.s32 1, %s7325_s19   ;;  %s12292_s15 = smov %s7317_s17 }
 0x5be   : > { %p11_p9 = scmp.ge.s32.totalorder %s14_s19, 10   ;;  %s12293_s16 = smov %s7321_s18 }
 0x5bf   : > { %s12294_s17 = smov %s12297_s20  ;;  %s12295_s18 = smov %s12301_s21 }
 0x5c0   :  { %13 = sbr.rel (!%p11_p9) target bundleno = 3 (0x3), region = 77 }

</bundles_post_ra>
